<compile_context>
chip_gen: v5e
topology: v5e:2x2
jax: 0.10.0
libtpu: 0.0.40
codegen_flags: <defaults>
</compile_context>

<pallas_src>
import functools

import jax
import jax.numpy as jnp
from jax import lax
from jax.experimental import pallas as pl
from jax.experimental.pallas import tpu as pltpu

EPS = 1e-5
_VMEM_LIMIT = 48 * 1024 * 1024   # below v7x's 64 MiB physical VMEM, plenty for v5e/v6e

# 4x4 ConvTranspose kernel tap indices used by output phase p (rows) / q (cols):
# phase 0 -> kernel taps (3, 1), phase 1 -> kernel taps (2, 0)
_TAPS = ((3, 1), (2, 0))


def _row_tile(h):
    """Rows of the low-res input processed per grid step (2*TH output rows)."""
    for th in (8, 4):
        if h % th == 0:
            return th
    return h          # fallback: full height (output block covers the full Ho dim)


def _col_tile(s, cap=4096):
    """Lane-dense tile of the flattened Ho*Wo axis for kernel 2."""
    if s <= cap:
        return s
    for ts in range(cap - cap % 128, 127, -128):
        if s % ts == 0:
            return ts
    return s


# ---------------------------------------------------------------------------
# Kernel 1: fused im2col + transposed-conv matmul (+bias) + phase interleave
#           + partial BatchNorm statistics.
#   x_ref   : (1, H+2, Cin, W+2)      padded input, channel-major per row (bf16)
#   w_ref   : (2, 2, 2, 2, Cout, Cin) weight taps per (p, q, a, b)         (bf16)
#   e_ref   : (2, W, 2W)              column-interleave expansion matrices (f32)
#   b_ref   : (Cout, 1)               conv bias                            (f32)
#   conv_ref: (1, Cout, 2*TH, Wo)     conv output rows of this tile        (bf16)
#   s_ref, ss_ref : (1, Cout, 1)      per-channel sum / sum-of-squares, accumulated
#                                     across the row-tile ("arbitrary") grid axis.
# ---------------------------------------------------------------------------
def _convt_kernel(x_ref, w_ref, e_ref, b_ref, conv_ref, s_ref, ss_ref,
                  *, th, w_in, cout):
    t = pl.program_id(1)

    @pl.when(t == 0)
    def _():
        s_ref[...] = jnp.zeros_like(s_ref)
        ss_ref[...] = jnp.zeros_like(ss_ref)

    bias = b_ref[...]                                   # (Cout, 1)
    acc_s = jnp.zeros((cout, 1), jnp.float32)
    acc_q = jnp.zeros((cout, 1), jnp.float32)
    m0 = t * th                                         # first input row of this tile

    for i in range(th):
        # Padded input rows m, m+1, m+2 feed output rows 2m and 2m+1 (m = m0 + i).
        rows = [x_ref[0, m0 + i + d] for d in (0, 1, 2)]        # each (Cin, W+2) bf16
        for p in (0, 1):                                        # output row phase
            y_q = []
            for q in (0, 1):                                    # output column phase
                acc = jnp.zeros((cout, w_in), jnp.float32)
                for a in (0, 1):                                # row tap
                    for b in (0, 1):                            # column tap
                        piece = rows[p + a][:, q + b:q + b + w_in]      # (Cin, W)
                        acc = acc + jnp.dot(w_ref[p, q, a, b], piece,
                                            preferred_element_type=jnp.float32)
                y_q.append(acc)                                 # (Cout, W) f32
            # MXU column interleave: yrow[:, 2l+q] = y_q[q][:, l]   (exact, 0/1 matrices)
            yrow = (jnp.dot(y_q[0], e_ref[0], preferred_element_type=jnp.float32) +
                    jnp.dot(y_q[1], e_ref[1], preferred_element_type=jnp.float32))
            yrow = yrow + bias                                  # (Cout, 2W)
            conv_ref[0, :, 2 * i + p, :] = yrow.astype(conv_ref.dtype)
            acc_s = acc_s + jnp.sum(yrow, axis=1, keepdims=True)
            acc_q = acc_q + jnp.sum(yrow * yrow, axis=1, keepdims=True)

    s_ref[0] = s_ref[0] + acc_s
    ss_ref[0] = ss_ref[0] + acc_q


# ---------------------------------------------------------------------------
# Kernel 2: fused BatchNorm affine + ReLU + channel concat, lane-dense Ho*Wo.
#   conv_ref: (1, Cout,  TS) bf16     down_ref: (1, Cdown, TS) f32
#   scale/shift: (Cout, 1) f32        o_ref: (1, Cout+Cdown, TS) f32
# ---------------------------------------------------------------------------
def _bn_relu_cat_kernel(conv_ref, down_ref, scale_ref, shift_ref, o_ref, *, cout):
    y = conv_ref[0].astype(jnp.float32) * scale_ref[...] + shift_ref[...]
    o_ref[0, :cout, :] = jnp.maximum(y, 0.0)        # BN + ReLU half
    o_ref[0, cout:, :] = down_ref[0]                # skip-connection half (plain copy)


def decoder_layer_forward(img_nchw, down_nchw, weight, bias, gamma, beta):
    """img: (N,Cin,H,W), down: (N,Cdown,2H,2W), weight: (Cin,Cout,4,4) (PyTorch layout)."""
    N, Cin, H, W = img_nchw.shape
    Cout = weight.shape[1]
    Ho, Wo = 2 * H, 2 * W
    Cdown = down_nchw.shape[1]
    TH = _row_tile(H)
    n_row_tiles = H // TH

    # ---- cheap layout prep only (no im2col materialization in HBM) --------------
    x = jnp.transpose(img_nchw.astype(jnp.float32), (0, 2, 1, 3))          # (N,H,Cin,W)
    x = jnp.pad(x, ((0, 0), (1, 1), (0, 0), (1, 1))).astype(jnp.bfloat16)  # (N,H+2,Cin,W+2)

    # weight taps: w_taps[p, q, a, b] = weight[:, :, _TAPS[p][a], _TAPS[q][b]].T
    w_taps = jnp.stack([
        jnp.stack([
            jnp.stack([
                jnp.stack([jnp.transpose(weight[:, :, _TAPS[p][a], _TAPS[q][b]], (1, 0))
                           for b in (0, 1)], axis=0)
                for a in (0, 1)], axis=0)
            for q in (0, 1)], axis=0)
        for p in (0, 1)], axis=0).astype(jnp.bfloat16)        # (2,2,2,2,Cout,Cin)

    # column-interleave expansion matrices: E[q][l, 2l+q] = 1
    li = jnp.arange(W)[:, None]
    jj = jnp.arange(Wo)[None, :]
    e_mats = jnp.stack([(jj == 2 * li).astype(jnp.float32),
                        (jj == 2 * li + 1).astype(jnp.float32)], axis=0)   # (2, W, 2W)

    b2d = bias.reshape(Cout, 1).astype(jnp.float32)

    kernel1 = functools.partial(_convt_kernel, th=TH, w_in=W, cout=Cout)
    conv, ssum, ssq = pl.pallas_call(
        kernel1,
        out_shape=(jax.ShapeDtypeStruct((N, Cout, Ho, Wo), jnp.bfloat16),
                   jax.ShapeDtypeStruct((N, Cout, 1), jnp.float32),
                   jax.ShapeDtypeStruct((N, Cout, 1), jnp.float32)),
        grid=(N, n_row_tiles),
        in_specs=[pl.BlockSpec((1, H + 2, Cin, W + 2), lambda n, t: (n, 0, 0, 0)),
                  pl.BlockSpec((2, 2, 2, 2, Cout, Cin),
                               lambda n, t: (0, 0, 0, 0, 0, 0)),
                  pl.BlockSpec((2, W, Wo), lambda n, t: (0, 0, 0)),
                  pl.BlockSpec((Cout, 1), lambda n, t: (0, 0))],
        out_specs=(pl.BlockSpec((1, Cout, 2 * TH, Wo), lambda n, t: (n, 0, t, 0)),
                   pl.BlockSpec((1, Cout, 1), lambda n, t: (n, 0, 0)),
                   pl.BlockSpec((1, Cout, 1), lambda n, t: (n, 0, 0))),
        compiler_params=pltpu.CompilerParams(
            dimension_semantics=("parallel", "arbitrary"),
            vmem_limit_bytes=_VMEM_LIMIT),
    )(x, w_taps, e_mats, b2d)

    # ---- BatchNorm2d (training mode): batch stats, biased variance --------------
    count = jnp.float32(N * Ho * Wo)
    mean = jnp.sum(ssum[:, :, 0], axis=0) / count
    var = jnp.maximum(jnp.sum(ssq[:, :, 0], axis=0) / count - mean * mean, 0.0)
    scale = gamma.astype(jnp.float32) / jnp.sqrt(var + EPS)
    shift = beta.astype(jnp.float32) - mean * scale

    # ---- fused BN affine + ReLU + channel concat (lane-dense Ho*Wo) --------------
    S = Ho * Wo
    TS = _col_tile(S)
    conv_flat = conv.reshape(N, Cout, S)                            # free reshape
    down_flat = down_nchw.astype(jnp.float32).reshape(N, Cdown, S)  # free reshape
    Ct = Cout + Cdown

    kernel2 = functools.partial(_bn_relu_cat_kernel, cout=Cout)
    out_flat = pl.pallas_call(
        kernel2,
        out_shape=jax.ShapeDtypeStruct((N, Ct, S), jnp.float32),
        grid=(N, S // TS),
        in_specs=[pl.BlockSpec((1, Cout, TS), lambda n, s: (n, 0, s)),
                  pl.BlockSpec((1, Cdown, TS), lambda n, s: (n, 0, s)),
                  pl.BlockSpec((Cout, 1), lambda n, s: (0, 0)),
                  pl.BlockSpec((Cout, 1), lambda n, s: (0, 0))],
        out_specs=pl.BlockSpec((1, Ct, TS), lambda n, s: (n, 0, s)),
        compiler_params=pltpu.CompilerParams(
            dimension_semantics=("parallel", "parallel"),
            vmem_limit_bytes=_VMEM_LIMIT),
    )(conv_flat, down_flat, scale.reshape(Cout, 1), shift.reshape(Cout, 1))

    return out_flat.reshape(N, Ct, Ho, Wo)   # NCHW: (N, Cout + Cdown, 2H, 2W)


# ---------------------------------------------------------------------------
# Pure-JAX reference (for correctness check)
# ---------------------------------------------------------------------------
def _reference(img, down, weight, bias, gamma, beta):
    w = jnp.transpose(weight[:, :, ::-1, ::-1], (1, 0, 2, 3))   # (Cout, Cin, 4, 4)
    conv = lax.conv_general_dilated(
        img.astype(jnp.float32), w.astype(jnp.float32),
        window_strides=(1, 1), padding=((2, 2), (2, 2)),
        lhs_dilation=(2, 2), dimension_numbers=('NCHW', 'OIHW', 'NCHW'))
    conv = conv + bias[None, :, None, None]
    mean = conv.mean(axis=(0, 2, 3), keepdims=True)
    var = conv.var(axis=(0, 2, 3), keepdims=True)               # biased, like train BN
    bn = (conv - mean) / jnp.sqrt(var + EPS)
    bn = bn * gamma[None, :, None, None] + beta[None, :, None, None]
    act = jnp.maximum(bn, 0.0)
    return jnp.concatenate([act, down.astype(jnp.float32)], axis=1)


if __name__ == "__main__":
    key = jax.random.PRNGKey(0)
    k1, k2, k3, k4, k5, k6 = jax.random.split(key, 6)

    N, Cin, Cout, H, W = 2, 4, 8, 16, 16      # output spatial = 32x32
    Cdown = 8

    img = jax.random.normal(k1, (N, Cin, H, W), dtype=jnp.float32)
    down = jax.random.normal(k2, (N, Cdown, 2 * H, 2 * W), dtype=jnp.float32)
    weight = 0.1 * jax.random.normal(k3, (Cin, Cout, 4, 4), dtype=jnp.float32)
    bias = 0.05 * jax.random.normal(k4, (Cout,), dtype=jnp.float32)
    gamma = 1.0 + 0.1 * jax.random.normal(k5, (Cout,), dtype=jnp.float32)
    beta = 0.1 * jax.random.normal(k6, (Cout,), dtype=jnp.float32)

    out = jax.block_until_ready(
        decoder_layer_forward(img, down, weight, bias, gamma, beta))
    ref = _reference(img, down, weight, bias, gamma, beta)

    assert out.shape == (N, Cout + Cdown, 2 * H, 2 * W), out.shape
    # bf16 MXU operands + bf16 conv activation => looser tolerance vs the f32 reference
    assert bool(jnp.allclose(out, ref, atol=5e-2, rtol=5e-2)), \
        float(jnp.max(jnp.abs(out - ref)))

    print("KERNEL_OK")
</pallas_src>

<mosaic_0001>
module attributes {stable_mosaic.version = 11 : i64} {
  func.func @_convt_kernel(%arg0: i32, %arg1: i32, %arg2: memref<1x18x4x18xbf16, #tpu.memory_space<vmem>>, %arg3: memref<2x2x2x2x8x4xbf16, #tpu.memory_space<vmem>>, %arg4: memref<2x16x32xf32, #tpu.memory_space<vmem>>, %arg5: memref<8x1xf32, #tpu.memory_space<vmem>>, %arg6: memref<1x8x16x32xbf16, #tpu.memory_space<vmem>>, %arg7: memref<1x8x1xf32, #tpu.memory_space<vmem>>, %arg8: memref<1x8x1xf32, #tpu.memory_space<vmem>>) attributes {dimension_semantics = [#tpu.dimension_semantics<parallel>, #tpu.dimension_semantics<arbitrary>], iteration_bounds = array<i64: 2, 2>, scalar_prefetch = 0 : i64, scratch_operands = 0 : i64, tpu.core_type = #tpu.core_type<tc>, window_params = [{transform_indices = @transform_0, window_bounds = array<i64: 1, 18, 4, 18>}, {pipeline_mode = #tpu.pipeline_mode<synchronous>, transform_indices = @transform_1, window_bounds = array<i64: 2, 2, 2, 2, 8, 4>}, {pipeline_mode = #tpu.pipeline_mode<synchronous>, transform_indices = @transform_2, window_bounds = array<i64: 2, 16, 32>}, {pipeline_mode = #tpu.pipeline_mode<synchronous>, transform_indices = @transform_3, window_bounds = array<i64: 8, 1>}, {transform_indices = @transform_4, window_bounds = array<i64: 1, 8, 16, 32>}, {transform_indices = @transform_5, window_bounds = array<i64: 1, 8, 1>}, {transform_indices = @transform_6, window_bounds = array<i64: 1, 8, 1>}]} {
    %c0_i32 = arith.constant 0 : i32
    %0 = arith.cmpi eq, %arg1, %c0_i32 : i32
    %1 = arith.extui %0 : i1 to i32
    %c0_i32_0 = arith.constant 0 : i32
    %2 = arith.cmpi ne, %1, %c0_i32_0 : i32
    scf.if %2 {
      %cst_1265 = arith.constant 0.000000e+00 : f32
      %1131 = vector.broadcast %cst_1265 : f32 to vector<1x8x1xf32>
      %c0_1266 = arith.constant 0 : index
      %c0_1267 = arith.constant 0 : index
      %c0_1268 = arith.constant 0 : index
      %1132 = vector.load %arg7[%c0_1266, %c0_1267, %c0_1268] : memref<1x8x1xf32, #tpu.memory_space<vmem>>, vector<1x8x1xf32>
      tpu.vector_store %arg7[%c0_1266, %c0_1267, %c0_1268], %1131 {strides = array<i32>} : memref<1x8x1xf32, #tpu.memory_space<vmem>>, vector<1x8x1xf32>,
      %cst_1269 = arith.constant 0.000000e+00 : f32
      %1133 = vector.broadcast %cst_1269 : f32 to vector<1x8x1xf32>
      %c0_1270 = arith.constant 0 : index
      %c0_1271 = arith.constant 0 : index
      %c0_1272 = arith.constant 0 : index
      %1134 = vector.load %arg8[%c0_1270, %c0_1271, %c0_1272] : memref<1x8x1xf32, #tpu.memory_space<vmem>>, vector<1x8x1xf32>
      tpu.vector_store %arg8[%c0_1270, %c0_1271, %c0_1272], %1133 {strides = array<i32>} : memref<1x8x1xf32, #tpu.memory_space<vmem>>, vector<1x8x1xf32>,
    } else {
    }
    %c0 = arith.constant 0 : index
    %c0_1 = arith.constant 0 : index
    %3 = vector.load %arg5[%c0, %c0_1] : memref<8x1xf32, #tpu.memory_space<vmem>>, vector<8x1xf32>
    %cst = arith.constant 0.000000e+00 : f32
    %4 = vector.broadcast %cst : f32 to vector<8x1xf32>
    %cst_2 = arith.constant 0.000000e+00 : f32
    %5 = vector.broadcast %cst_2 : f32 to vector<8x1xf32>
    %c8_i32 = arith.constant 8 : i32
    %6 = arith.muli %arg1, %c8_i32 : i32
    %c0_i32_3 = arith.constant 0 : i32
    %7 = arith.addi %6, %c0_i32_3 : i32
    %c0_i32_4 = arith.constant 0 : i32
    %8 = arith.addi %7, %c0_i32_4 : i32
    %c0_5 = arith.constant 0 : index
    %9 = arith.index_cast %8 : i32 to index
    %c0_6 = arith.constant 0 : index
    %c0_7 = arith.constant 0 : index
    %10 = vector.load %arg2[%c0_5, %9, %c0_6, %c0_7] : memref<1x18x4x18xbf16, #tpu.memory_space<vmem>>, vector<1x1x4x18xbf16>
    %11 = vector.shape_cast %10 : vector<1x1x4x18xbf16> to vector<4x18xbf16>
    %c0_i32_8 = arith.constant 0 : i32
    %12 = arith.addi %6, %c0_i32_8 : i32
    %c1_i32 = arith.constant 1 : i32
    %13 = arith.addi %12, %c1_i32 : i32
    %c0_9 = arith.constant 0 : index
    %14 = arith.index_cast %13 : i32 to index
    %c0_10 = arith.constant 0 : index
    %c0_11 = arith.constant 0 : index
    %15 = vector.load %arg2[%c0_9, %14, %c0_10, %c0_11] : memref<1x18x4x18xbf16, #tpu.memory_space<vmem>>, vector<1x1x4x18xbf16>
    %16 = vector.shape_cast %15 : vector<1x1x4x18xbf16> to vector<4x18xbf16>
    %c0_i32_12 = arith.constant 0 : i32
    %17 = arith.addi %6, %c0_i32_12 : i32
    %c2_i32 = arith.constant 2 : i32
    %18 = arith.addi %17, %c2_i32 : i32
    %c0_13 = arith.constant 0 : index
    %19 = arith.index_cast %18 : i32 to index
    %c0_14 = arith.constant 0 : index
    %c0_15 = arith.constant 0 : index
    %20 = vector.load %arg2[%c0_13, %19, %c0_14, %c0_15] : memref<1x18x4x18xbf16, #tpu.memory_space<vmem>>, vector<1x1x4x18xbf16>
    %21 = vector.shape_cast %20 : vector<1x1x4x18xbf16> to vector<4x18xbf16>
    %cst_16 = arith.constant 0.000000e+00 : f32
    %22 = vector.broadcast %cst_16 : f32 to vector<8x16xf32>
    %23 = vector.extract_strided_slice %11 {offsets = [0, 0], sizes = [4, 16], strides = [1, 1]} : vector<4x18xbf16> to vector<4x16xbf16>
    %c0_17 = arith.constant 0 : index
    %c0_18 = arith.constant 0 : index
    %c0_19 = arith.constant 0 : index
    %c0_20 = arith.constant 0 : index
    %c0_21 = arith.constant 0 : index
    %c0_22 = arith.constant 0 : index
    %24 = vector.load %arg3[%c0_17, %c0_18, %c0_19, %c0_20, %c0_21, %c0_22] : memref<2x2x2x2x8x4xbf16, #tpu.memory_space<vmem>>, vector<1x1x1x1x8x4xbf16>
    %25 = vector.shape_cast %24 : vector<1x1x1x1x8x4xbf16> to vector<8x4xbf16>
    %cst_23 = arith.constant dense<0.000000e+00> : vector<8x16xf32>
    %26 = tpu.matmul %25, %23, %cst_23 {dimension_numbers = #tpu.dot_dimension_numbers<[1], [0], [0], [1], [0, 0, 1, 1], [], []>} : vector<8x4xbf16>, vector<4x16xbf16>, vector<8x16xf32> -> vector<8x16xf32>
    %27 = arith.addf %22, %26 : vector<8x16xf32>
    %28 = vector.extract_strided_slice %11 {offsets = [0, 1], sizes = [4, 16], strides = [1, 1]} : vector<4x18xbf16> to vector<4x16xbf16>
    %c0_24 = arith.constant 0 : index
    %c0_25 = arith.constant 0 : index
    %c0_26 = arith.constant 0 : index
    %c1 = arith.constant 1 : index
    %c0_27 = arith.constant 0 : index
    %c0_28 = arith.constant 0 : index
    %29 = vector.load %arg3[%c0_24, %c0_25, %c0_26, %c1, %c0_27, %c0_28] : memref<2x2x2x2x8x4xbf16, #tpu.memory_space<vmem>>, vector<1x1x1x1x8x4xbf16>
    %30 = vector.shape_cast %29 : vector<1x1x1x1x8x4xbf16> to vector<8x4xbf16>
    %cst_29 = arith.constant dense<0.000000e+00> : vector<8x16xf32>
    %31 = tpu.matmul %30, %28, %cst_29 {dimension_numbers = #tpu.dot_dimension_numbers<[1], [0], [0], [1], [0, 0, 1, 1], [], []>} : vector<8x4xbf16>, vector<4x16xbf16>, vector<8x16xf32> -> vector<8x16xf32>
    %32 = arith.addf %27, %31 : vector<8x16xf32>
    %33 = vector.extract_strided_slice %16 {offsets = [0, 0], sizes = [4, 16], strides = [1, 1]} : vector<4x18xbf16> to vector<4x16xbf16>
    %c0_30 = arith.constant 0 : index
    %c0_31 = arith.constant 0 : index
    %c1_32 = arith.constant 1 : index
    %c0_33 = arith.constant 0 : index
    %c0_34 = arith.constant 0 : index
    %c0_35 = arith.constant 0 : index
    %34 = vector.load %arg3[%c0_30, %c0_31, %c1_32, %c0_33, %c0_34, %c0_35] : memref<2x2x2x2x8x4xbf16, #tpu.memory_space<vmem>>, vector<1x1x1x1x8x4xbf16>
    %35 = vector.shape_cast %34 : vector<1x1x1x1x8x4xbf16> to vector<8x4xbf16>
    %cst_36 = arith.constant dense<0.000000e+00> : vector<8x16xf32>
    %36 = tpu.matmul %35, %33, %cst_36 {dimension_numbers = #tpu.dot_dimension_numbers<[1], [0], [0], [1], [0, 0, 1, 1], [], []>} : vector<8x4xbf16>, vector<4x16xbf16>, vector<8x16xf32> -> vector<8x16xf32>
    %37 = arith.addf %32, %36 : vector<8x16xf32>
    %38 = vector.extract_strided_slice %16 {offsets = [0, 1], sizes = [4, 16], strides = [1, 1]} : vector<4x18xbf16> to vector<4x16xbf16>
    %c0_37 = arith.constant 0 : index
    %c0_38 = arith.constant 0 : index
    %c1_39 = arith.constant 1 : index
    %c1_40 = arith.constant 1 : index
    %c0_41 = arith.constant 0 : index
    %c0_42 = arith.constant 0 : index
    %39 = vector.load %arg3[%c0_37, %c0_38, %c1_39, %c1_40, %c0_41, %c0_42] : memref<2x2x2x2x8x4xbf16, #tpu.memory_space<vmem>>, vector<1x1x1x1x8x4xbf16>
    %40 = vector.shape_cast %39 : vector<1x1x1x1x8x4xbf16> to vector<8x4xbf16>
    %cst_43 = arith.constant dense<0.000000e+00> : vector<8x16xf32>
    %41 = tpu.matmul %40, %38, %cst_43 {dimension_numbers = #tpu.dot_dimension_numbers<[1], [0], [0], [1], [0, 0, 1, 1], [], []>} : vector<8x4xbf16>, vector<4x16xbf16>, vector<8x16xf32> -> vector<8x16xf32>
    %42 = arith.addf %37, %41 : vector<8x16xf32>
    %cst_44 = arith.constant 0.000000e+00 : f32
    %43 = vector.broadcast %cst_44 : f32 to vector<8x16xf32>
    %44 = vector.extract_strided_slice %11 {offsets = [0, 1], sizes = [4, 16], strides = [1, 1]} : vector<4x18xbf16> to vector<4x16xbf16>
    %c0_45 = arith.constant 0 : index
    %c1_46 = arith.constant 1 : index
    %c0_47 = arith.constant 0 : index
    %c0_48 = arith.constant 0 : index
    %c0_49 = arith.constant 0 : index
    %c0_50 = arith.constant 0 : index
    %45 = vector.load %arg3[%c0_45, %c1_46, %c0_47, %c0_48, %c0_49, %c0_50] : memref<2x2x2x2x8x4xbf16, #tpu.memory_space<vmem>>, vector<1x1x1x1x8x4xbf16>
    %46 = vector.shape_cast %45 : vector<1x1x1x1x8x4xbf16> to vector<8x4xbf16>
    %cst_51 = arith.constant dense<0.000000e+00> : vector<8x16xf32>
    %47 = tpu.matmul %46, %44, %cst_51 {dimension_numbers = #tpu.dot_dimension_numbers<[1], [0], [0], [1], [0, 0, 1, 1], [], []>} : vector<8x4xbf16>, vector<4x16xbf16>, vector<8x16xf32> -> vector<8x16xf32>
    %48 = arith.addf %43, %47 : vector<8x16xf32>
    %49 = vector.extract_strided_slice %11 {offsets = [0, 2], sizes = [4, 16], strides = [1, 1]} : vector<4x18xbf16> to vector<4x16xbf16>
    %c0_52 = arith.constant 0 : index
    %c1_53 = arith.constant 1 : index
    %c0_54 = arith.constant 0 : index
    %c1_55 = arith.constant 1 : index
    %c0_56 = arith.constant 0 : index
    %c0_57 = arith.constant 0 : index
    %50 = vector.load %arg3[%c0_52, %c1_53, %c0_54, %c1_55, %c0_56, %c0_57] : memref<2x2x2x2x8x4xbf16, #tpu.memory_space<vmem>>, vector<1x1x1x1x8x4xbf16>
    %51 = vector.shape_cast %50 : vector<1x1x1x1x8x4xbf16> to vector<8x4xbf16>
    %cst_58 = arith.constant dense<0.000000e+00> : vector<8x16xf32>
    %52 = tpu.matmul %51, %49, %cst_58 {dimension_numbers = #tpu.dot_dimension_numbers<[1], [0], [0], [1], [0, 0, 1, 1], [], []>} : vector<8x4xbf16>, vector<4x16xbf16>, vector<8x16xf32> -> vector<8x16xf32>
    %53 = arith.addf %48, %52 : vector<8x16xf32>
    %54 = vector.extract_strided_slice %16 {offsets = [0, 1], sizes = [4, 16], strides = [1, 1]} : vector<4x18xbf16> to vector<4x16xbf16>
    %c0_59 = arith.constant 0 : index
    %c1_60 = arith.constant 1 : index
    %c1_61 = arith.constant 1 : index
    %c0_62 = arith.constant 0 : index
    %c0_63 = arith.constant 0 : index
    %c0_64 = arith.constant 0 : index
    %55 = vector.load %arg3[%c0_59, %c1_60, %c1_61, %c0_62, %c0_63, %c0_64] : memref<2x2x2x2x8x4xbf16, #tpu.memory_space<vmem>>, vector<1x1x1x1x8x4xbf16>
    %56 = vector.shape_cast %55 : vector<1x1x1x1x8x4xbf16> to vector<8x4xbf16>
    %cst_65 = arith.constant dense<0.000000e+00> : vector<8x16xf32>
    %57 = tpu.matmul %56, %54, %cst_65 {dimension_numbers = #tpu.dot_dimension_numbers<[1], [0], [0], [1], [0, 0, 1, 1], [], []>} : vector<8x4xbf16>, vector<4x16xbf16>, vector<8x16xf32> -> vector<8x16xf32>
    %58 = arith.addf %53, %57 : vector<8x16xf32>
    %59 = vector.extract_strided_slice %16 {offsets = [0, 2], sizes = [4, 16], strides = [1, 1]} : vector<4x18xbf16> to vector<4x16xbf16>
    %c0_66 = arith.constant 0 : index
    %c1_67 = arith.constant 1 : index
    %c1_68 = arith.constant 1 : index
    %c1_69 = arith.constant 1 : index
    %c0_70 = arith.constant 0 : index
    %c0_71 = arith.constant 0 : index
    %60 = vector.load %arg3[%c0_66, %c1_67, %c1_68, %c1_69, %c0_70, %c0_71] : memref<2x2x2x2x8x4xbf16, #tpu.memory_space<vmem>>, vector<1x1x1x1x8x4xbf16>
    %61 = vector.shape_cast %60 : vector<1x1x1x1x8x4xbf16> to vector<8x4xbf16>
    %cst_72 = arith.constant dense<0.000000e+00> : vector<8x16xf32>
    %62 = tpu.matmul %61, %59, %cst_72 {dimension_numbers = #tpu.dot_dimension_numbers<[1], [0], [0], [1], [0, 0, 1, 1], [], []>} : vector<8x4xbf16>, vector<4x16xbf16>, vector<8x16xf32> -> vector<8x16xf32>
    %63 = arith.addf %58, %62 : vector<8x16xf32>
    %c0_73 = arith.constant 0 : index
    %c0_74 = arith.constant 0 : index
    %c0_75 = arith.constant 0 : index
    %64 = vector.load %arg4[%c0_73, %c0_74, %c0_75] : memref<2x16x32xf32, #tpu.memory_space<vmem>>, vector<1x16x32xf32>
    %65 = vector.shape_cast %64 : vector<1x16x32xf32> to vector<16x32xf32>
    %cst_76 = arith.constant dense<0.000000e+00> : vector<8x32xf32>
    %66 = tpu.matmul %42, %65, %cst_76 {dimension_numbers = #tpu.dot_dimension_numbers<[1], [0], [0], [1], [0, 0, 1, 1], [], []>} : vector<8x16xf32>, vector<16x32xf32>, vector<8x32xf32> -> vector<8x32xf32>
    %c1_77 = arith.constant 1 : index
    %c0_78 = arith.constant 0 : index
    %c0_79 = arith.constant 0 : index
    %67 = vector.load %arg4[%c1_77, %c0_78, %c0_79] : memref<2x16x32xf32, #tpu.memory_space<vmem>>, vector<1x16x32xf32>
    %68 = vector.shape_cast %67 : vector<1x16x32xf32> to vector<16x32xf32>
    %cst_80 = arith.constant dense<0.000000e+00> : vector<8x32xf32>
    %69 = tpu.matmul %63, %68, %cst_80 {dimension_numbers = #tpu.dot_dimension_numbers<[1], [0], [0], [1], [0, 0, 1, 1], [], []>} : vector<8x16xf32>, vector<16x32xf32>, vector<8x32xf32> -> vector<8x32xf32>
    %70 = arith.addf %66, %69 : vector<8x32xf32>
    %71 = vector.broadcast %3 : vector<8x1xf32> to vector<8x32xf32>
    %72 = arith.addf %70, %71 : vector<8x32xf32>
    %73 = arith.truncf %72 : vector<8x32xf32> to vector<8x32xbf16>
    %c0_81 = arith.constant 0 : index
    %c0_82 = arith.constant 0 : index
    %c0_83 = arith.constant 0 : index
    %c0_84 = arith.constant 0 : index
    %74 = vector.load %arg6[%c0_81, %c0_82, %c0_83, %c0_84] : memref<1x8x16x32xbf16, #tpu.memory_space<vmem>>, vector<1x8x1x32xbf16>
    %75 = vector.shape_cast %74 : vector<1x8x1x32xbf16> to vector<8x32xbf16>
    %76 = vector.shape_cast %73 : vector<8x32xbf16> to vector<1x8x1x32xbf16>
    tpu.vector_store %arg6[%c0_81, %c0_82, %c0_83, %c0_84], %76 {strides = array<i32>} : memref<1x8x16x32xbf16, #tpu.memory_space<vmem>>, vector<1x8x1x32xbf16>,
    %cst_85 = arith.constant dense<0.000000e+00> : vector<8xf32>
    %77 = vector.multi_reduction <add>, %72, %cst_85 [1] : vector<8x32xf32> to vector<8xf32>
    %78 = vector.shape_cast %77 : vector<8xf32> to vector<8x1xf32>
    %79 = arith.addf %4, %78 : vector<8x1xf32>
    %80 = arith.mulf %72, %72 : vector<8x32xf32>
    %cst_86 = arith.constant dense<0.000000e+00> : vector<8xf32>
    %81 = vector.multi_reduction <add>, %80, %cst_86 [1] : vector<8x32xf32> to vector<8xf32>
    %82 = vector.shape_cast %81 : vector<8xf32> to vector<8x1xf32>
    %83 = arith.addf %5, %82 : vector<8x1xf32>
    %cst_87 = arith.constant 0.000000e+00 : f32
    %84 = vector.broadcast %cst_87 : f32 to vector<8x16xf32>
    %85 = vector.extract_strided_slice %16 {offsets = [0, 0], sizes = [4, 16], strides = [1, 1]} : vector<4x18xbf16> to vector<4x16xbf16>
    %c1_88 = arith.constant 1 : index
    %c0_89 = arith.constant 0 : index
    %c0_90 = arith.constant 0 : index
    %c0_91 = arith.constant 0 : index
    %c0_92 = arith.constant 0 : index
    %c0_93 = arith.constant 0 : index
    %86 = vector.load %arg3[%c1_88, %c0_89, %c0_90, %c0_91, %c0_92, %c0_93] : memref<2x2x2x2x8x4xbf16, #tpu.memory_space<vmem>>, vector<1x1x1x1x8x4xbf16>
    %87 = vector.shape_cast %86 : vector<1x1x1x1x8x4xbf16> to vector<8x4xbf16>
    %cst_94 = arith.constant dense<0.000000e+00> : vector<8x16xf32>
    %88 = tpu.matmul %87, %85, %cst_94 {dimension_numbers = #tpu.dot_dimension_numbers<[1], [0], [0], [1], [0, 0, 1, 1], [], []>} : vector<8x4xbf16>, vector<4x16xbf16>, vector<8x16xf32> -> vector<8x16xf32>
    %89 = arith.addf %84, %88 : vector<8x16xf32>
    %90 = vector.extract_strided_slice %16 {offsets = [0, 1], sizes = [4, 16], strides = [1, 1]} : vector<4x18xbf16> to vector<4x16xbf16>
    %c1_95 = arith.constant 1 : index
    %c0_96 = arith.constant 0 : index
    %c0_97 = arith.constant 0 : index
    %c1_98 = arith.constant 1 : index
    %c0_99 = arith.constant 0 : index
    %c0_100 = arith.constant 0 : index
    %91 = vector.load %arg3[%c1_95, %c0_96, %c0_97, %c1_98, %c0_99, %c0_100] : memref<2x2x2x2x8x4xbf16, #tpu.memory_space<vmem>>, vector<1x1x1x1x8x4xbf16>
    %92 = vector.shape_cast %91 : vector<1x1x1x1x8x4xbf16> to vector<8x4xbf16>
    %cst_101 = arith.constant dense<0.000000e+00> : vector<8x16xf32>
    %93 = tpu.matmul %92, %90, %cst_101 {dimension_numbers = #tpu.dot_dimension_numbers<[1], [0], [0], [1], [0, 0, 1, 1], [], []>} : vector<8x4xbf16>, vector<4x16xbf16>, vector<8x16xf32> -> vector<8x16xf32>
    %94 = arith.addf %89, %93 : vector<8x16xf32>
    %95 = vector.extract_strided_slice %21 {offsets = [0, 0], sizes = [4, 16], strides = [1, 1]} : vector<4x18xbf16> to vector<4x16xbf16>
    %c1_102 = arith.constant 1 : index
    %c0_103 = arith.constant 0 : index
    %c1_104 = arith.constant 1 : index
    %c0_105 = arith.constant 0 : index
    %c0_106 = arith.constant 0 : index
    %c0_107 = arith.constant 0 : index
    %96 = vector.load %arg3[%c1_102, %c0_103, %c1_104, %c0_105, %c0_106, %c0_107] : memref<2x2x2x2x8x4xbf16, #tpu.memory_space<vmem>>, vector<1x1x1x1x8x4xbf16>
    %97 = vector.shape_cast %96 : vector<1x1x1x1x8x4xbf16> to vector<8x4xbf16>
    %cst_108 = arith.constant dense<0.000000e+00> : vector<8x16xf32>
    %98 = tpu.matmul %97, %95, %cst_108 {dimension_numbers = #tpu.dot_dimension_numbers<[1], [0], [0], [1], [0, 0, 1, 1], [], []>} : vector<8x4xbf16>, vector<4x16xbf16>, vector<8x16xf32> -> vector<8x16xf32>
    %99 = arith.addf %94, %98 : vector<8x16xf32>
    %100 = vector.extract_strided_slice %21 {offsets = [0, 1], sizes = [4, 16], strides = [1, 1]} : vector<4x18xbf16> to vector<4x16xbf16>
    %c1_109 = arith.constant 1 : index
    %c0_110 = arith.constant 0 : index
    %c1_111 = arith.constant 1 : index
    %c1_112 = arith.constant 1 : index
    %c0_113 = arith.constant 0 : index
    %c0_114 = arith.constant 0 : index
    %101 = vector.load %arg3[%c1_109, %c0_110, %c1_111, %c1_112, %c0_113, %c0_114] : memref<2x2x2x2x8x4xbf16, #tpu.memory_space<vmem>>, vector<1x1x1x1x8x4xbf16>
    %102 = vector.shape_cast %101 : vector<1x1x1x1x8x4xbf16> to vector<8x4xbf16>
    %cst_115 = arith.constant dense<0.000000e+00> : vector<8x16xf32>
    %103 = tpu.matmul %102, %100, %cst_115 {dimension_numbers = #tpu.dot_dimension_numbers<[1], [0], [0], [1], [0, 0, 1, 1], [], []>} : vector<8x4xbf16>, vector<4x16xbf16>, vector<8x16xf32> -> vector<8x16xf32>
    %104 = arith.addf %99, %103 : vector<8x16xf32>
    %cst_116 = arith.constant 0.000000e+00 : f32
    %105 = vector.broadcast %cst_116 : f32 to vector<8x16xf32>
    %106 = vector.extract_strided_slice %16 {offsets = [0, 1], sizes = [4, 16], strides = [1, 1]} : vector<4x18xbf16> to vector<4x16xbf16>
    %c1_117 = arith.constant 1 : index
    %c1_118 = arith.constant 1 : index
    %c0_119 = arith.constant 0 : index
    %c0_120 = arith.constant 0 : index
    %c0_121 = arith.constant 0 : index
    %c0_122 = arith.constant 0 : index
    %107 = vector.load %arg3[%c1_117, %c1_118, %c0_119, %c0_120, %c0_121, %c0_122] : memref<2x2x2x2x8x4xbf16, #tpu.memory_space<vmem>>, vector<1x1x1x1x8x4xbf16>
    %108 = vector.shape_cast %107 : vector<1x1x1x1x8x4xbf16> to vector<8x4xbf16>
    %cst_123 = arith.constant dense<0.000000e+00> : vector<8x16xf32>
    %109 = tpu.matmul %108, %106, %cst_123 {dimension_numbers = #tpu.dot_dimension_numbers<[1], [0], [0], [1], [0, 0, 1, 1], [], []>} : vector<8x4xbf16>, vector<4x16xbf16>, vector<8x16xf32> -> vector<8x16xf32>
    %110 = arith.addf %105, %109 : vector<8x16xf32>
    %111 = vector.extract_strided_slice %16 {offsets = [0, 2], sizes = [4, 16], strides = [1, 1]} : vector<4x18xbf16> to vector<4x16xbf16>
    %c1_124 = arith.constant 1 : index
    %c1_125 = arith.constant 1 : index
    %c0_126 = arith.constant 0 : index
    %c1_127 = arith.constant 1 : index
    %c0_128 = arith.constant 0 : index
    %c0_129 = arith.constant 0 : index
    %112 = vector.load %arg3[%c1_124, %c1_125, %c0_126, %c1_127, %c0_128, %c0_129] : memref<2x2x2x2x8x4xbf16, #tpu.memory_space<vmem>>, vector<1x1x1x1x8x4xbf16>
    %113 = vector.shape_cast %112 : vector<1x1x1x1x8x4xbf16> to vector<8x4xbf16>
    %cst_130 = arith.constant dense<0.000000e+00> : vector<8x16xf32>
    %114 = tpu.matmul %113, %111, %cst_130 {dimension_numbers = #tpu.dot_dimension_numbers<[1], [0], [0], [1], [0, 0, 1, 1], [], []>} : vector<8x4xbf16>, vector<4x16xbf16>, vector<8x16xf32> -> vector<8x16xf32>
    %115 = arith.addf %110, %114 : vector<8x16xf32>
    %116 = vector.extract_strided_slice %21 {offsets = [0, 1], sizes = [4, 16], strides = [1, 1]} : vector<4x18xbf16> to vector<4x16xbf16>
    %c1_131 = arith.constant 1 : index
    %c1_132 = arith.constant 1 : index
    %c1_133 = arith.constant 1 : index
    %c0_134 = arith.constant 0 : index
    %c0_135 = arith.constant 0 : index
    %c0_136 = arith.constant 0 : index
    %117 = vector.load %arg3[%c1_131, %c1_132, %c1_133, %c0_134, %c0_135, %c0_136] : memref<2x2x2x2x8x4xbf16, #tpu.memory_space<vmem>>, vector<1x1x1x1x8x4xbf16>
    %118 = vector.shape_cast %117 : vector<1x1x1x1x8x4xbf16> to vector<8x4xbf16>
    %cst_137 = arith.constant dense<0.000000e+00> : vector<8x16xf32>
    %119 = tpu.matmul %118, %116, %cst_137 {dimension_numbers = #tpu.dot_dimension_numbers<[1], [0], [0], [1], [0, 0, 1, 1], [], []>} : vector<8x4xbf16>, vector<4x16xbf16>, vector<8x16xf32> -> vector<8x16xf32>
    %120 = arith.addf %115, %119 : vector<8x16xf32>
    %121 = vector.extract_strided_slice %21 {offsets = [0, 2], sizes = [4, 16], strides = [1, 1]} : vector<4x18xbf16> to vector<4x16xbf16>
    %c1_138 = arith.constant 1 : index
    %c1_139 = arith.constant 1 : index
    %c1_140 = arith.constant 1 : index
    %c1_141 = arith.constant 1 : index
    %c0_142 = arith.constant 0 : index
    %c0_143 = arith.constant 0 : index
    %122 = vector.load %arg3[%c1_138, %c1_139, %c1_140, %c1_141, %c0_142, %c0_143] : memref<2x2x2x2x8x4xbf16, #tpu.memory_space<vmem>>, vector<1x1x1x1x8x4xbf16>
    %123 = vector.shape_cast %122 : vector<1x1x1x1x8x4xbf16> to vector<8x4xbf16>
    %cst_144 = arith.constant dense<0.000000e+00> : vector<8x16xf32>
    %124 = tpu.matmul %123, %121, %cst_144 {dimension_numbers = #tpu.dot_dimension_numbers<[1], [0], [0], [1], [0, 0, 1, 1], [], []>} : vector<8x4xbf16>, vector<4x16xbf16>, vector<8x16xf32> -> vector<8x16xf32>
    %125 = arith.addf %120, %124 : vector<8x16xf32>
    %c0_145 = arith.constant 0 : index
    %c0_146 = arith.constant 0 : index
    %c0_147 = arith.constant 0 : index
    %126 = vector.load %arg4[%c0_145, %c0_146, %c0_147] : memref<2x16x32xf32, #tpu.memory_space<vmem>>, vector<1x16x32xf32>
    %127 = vector.shape_cast %126 : vector<1x16x32xf32> to vector<16x32xf32>
    %cst_148 = arith.constant dense<0.000000e+00> : vector<8x32xf32>
    %128 = tpu.matmul %104, %127, %cst_148 {dimension_numbers = #tpu.dot_dimension_numbers<[1], [0], [0], [1], [0, 0, 1, 1], [], []>} : vector<8x16xf32>, vector<16x32xf32>, vector<8x32xf32> -> vector<8x32xf32>
    %c1_149 = arith.constant 1 : index
    %c0_150 = arith.constant 0 : index
    %c0_151 = arith.constant 0 : index
    %129 = vector.load %arg4[%c1_149, %c0_150, %c0_151] : memref<2x16x32xf32, #tpu.memory_space<vmem>>, vector<1x16x32xf32>
    %130 = vector.shape_cast %129 : vector<1x16x32xf32> to vector<16x32xf32>
    %cst_152 = arith.constant dense<0.000000e+00> : vector<8x32xf32>
    %131 = tpu.matmul %125, %130, %cst_152 {dimension_numbers = #tpu.dot_dimension_numbers<[1], [0], [0], [1], [0, 0, 1, 1], [], []>} : vector<8x16xf32>, vector<16x32xf32>, vector<8x32xf32> -> vector<8x32xf32>
    %132 = arith.addf %128, %131 : vector<8x32xf32>
    %133 = vector.broadcast %3 : vector<8x1xf32> to vector<8x32xf32>
    %134 = arith.addf %132, %133 : vector<8x32xf32>
    %135 = arith.truncf %134 : vector<8x32xf32> to vector<8x32xbf16>
    %c0_153 = arith.constant 0 : index
    %c0_154 = arith.constant 0 : index
    %c1_155 = arith.constant 1 : index
    %c0_156 = arith.constant 0 : index
    %136 = vector.load %arg6[%c0_153, %c0_154, %c1_155, %c0_156] : memref<1x8x16x32xbf16, #tpu.memory_space<vmem>>, vector<1x8x1x32xbf16>
    %137 = vector.shape_cast %136 : vector<1x8x1x32xbf16> to vector<8x32xbf16>
    %138 = vector.shape_cast %135 : vector<8x32xbf16> to vector<1x8x1x32xbf16>
    tpu.vector_store %arg6[%c0_153, %c0_154, %c1_155, %c0_156], %138 {strides = array<i32>} : memref<1x8x16x32xbf16, #tpu.memory_space<vmem>>, vector<1x8x1x32xbf16>,
    %cst_157 = arith.constant dense<0.000000e+00> : vector<8xf32>
    %139 = vector.multi_reduction <add>, %134, %cst_157 [1] : vector<8x32xf32> to vector<8xf32>
    %140 = vector.shape_cast %139 : vector<8xf32> to vector<8x1xf32>
    %141 = arith.addf %79, %140 : vector<8x1xf32>
    %142 = arith.mulf %134, %134 : vector<8x32xf32>
    %cst_158 = arith.constant dense<0.000000e+00> : vector<8xf32>
    %143 = vector.multi_reduction <add>, %142, %cst_158 [1] : vector<8x32xf32> to vector<8xf32>
    %144 = vector.shape_cast %143 : vector<8xf32> to vector<8x1xf32>
    %145 = arith.addf %83, %144 : vector<8x1xf32>
    %c1_i32_159 = arith.constant 1 : i32
    %146 = arith.addi %6, %c1_i32_159 : i32
    %c0_i32_160 = arith.constant 0 : i32
    %147 = arith.addi %146, %c0_i32_160 : i32
    %c0_161 = arith.constant 0 : index
    %148 = arith.index_cast %147 : i32 to index
    %c0_162 = arith.constant 0 : index
    %c0_163 = arith.constant 0 : index
    %149 = vector.load %arg2[%c0_161, %148, %c0_162, %c0_163] : memref<1x18x4x18xbf16, #tpu.memory_space<vmem>>, vector<1x1x4x18xbf16>
    %150 = vector.shape_cast %149 : vector<1x1x4x18xbf16> to vector<4x18xbf16>
    %c1_i32_164 = arith.constant 1 : i32
    %151 = arith.addi %6, %c1_i32_164 : i32
    %c1_i32_165 = arith.constant 1 : i32
    %152 = arith.addi %151, %c1_i32_165 : i32
    %c0_166 = arith.constant 0 : index
    %153 = arith.index_cast %152 : i32 to index
    %c0_167 = arith.constant 0 : index
    %c0_168 = arith.constant 0 : index
    %154 = vector.load %arg2[%c0_166, %153, %c0_167, %c0_168] : memref<1x18x4x18xbf16, #tpu.memory_space<vmem>>, vector<1x1x4x18xbf16>
    %155 = vector.shape_cast %154 : vector<1x1x4x18xbf16> to vector<4x18xbf16>
    %c1_i32_169 = arith.constant 1 : i32
    %156 = arith.addi %6, %c1_i32_169 : i32
    %c2_i32_170 = arith.constant 2 : i32
    %157 = arith.addi %156, %c2_i32_170 : i32
    %c0_171 = arith.constant 0 : index
    %158 = arith.index_cast %157 : i32 to index
    %c0_172 = arith.constant 0 : index
    %c0_173 = arith.constant 0 : index
    %159 = vector.load %arg2[%c0_171, %158, %c0_172, %c0_173] : memref<1x18x4x18xbf16, #tpu.memory_space<vmem>>, vector<1x1x4x18xbf16>
    %160 = vector.shape_cast %159 : vector<1x1x4x18xbf16> to vector<4x18xbf16>
    %cst_174 = arith.constant 0.000000e+00 : f32
    %161 = vector.broadcast %cst_174 : f32 to vector<8x16xf32>
    %162 = vector.extract_strided_slice %150 {offsets = [0, 0], sizes = [4, 16], strides = [1, 1]} : vector<4x18xbf16> to vector<4x16xbf16>
    %c0_175 = arith.constant 0 : index
    %c0_176 = arith.constant 0 : index
    %c0_177 = arith.constant 0 : index
    %c0_178 = arith.constant 0 : index
    %c0_179 = arith.constant 0 : index
    %c0_180 = arith.constant 0 : index
    %163 = vector.load %arg3[%c0_175, %c0_176, %c0_177, %c0_178, %c0_179, %c0_180] : memref<2x2x2x2x8x4xbf16, #tpu.memory_space<vmem>>, vector<1x1x1x1x8x4xbf16>
    %164 = vector.shape_cast %163 : vector<1x1x1x1x8x4xbf16> to vector<8x4xbf16>
    %cst_181 = arith.constant dense<0.000000e+00> : vector<8x16xf32>
    %165 = tpu.matmul %164, %162, %cst_181 {dimension_numbers = #tpu.dot_dimension_numbers<[1], [0], [0], [1], [0, 0, 1, 1], [], []>} : vector<8x4xbf16>, vector<4x16xbf16>, vector<8x16xf32> -> vector<8x16xf32>
    %166 = arith.addf %161, %165 : vector<8x16xf32>
    %167 = vector.extract_strided_slice %150 {offsets = [0, 1], sizes = [4, 16], strides = [1, 1]} : vector<4x18xbf16> to vector<4x16xbf16>
    %c0_182 = arith.constant 0 : index
    %c0_183 = arith.constant 0 : index
    %c0_184 = arith.constant 0 : index
    %c1_185 = arith.constant 1 : index
    %c0_186 = arith.constant 0 : index
    %c0_187 = arith.constant 0 : index
    %168 = vector.load %arg3[%c0_182, %c0_183, %c0_184, %c1_185, %c0_186, %c0_187] : memref<2x2x2x2x8x4xbf16, #tpu.memory_space<vmem>>, vector<1x1x1x1x8x4xbf16>
    %169 = vector.shape_cast %168 : vector<1x1x1x1x8x4xbf16> to vector<8x4xbf16>
    %cst_188 = arith.constant dense<0.000000e+00> : vector<8x16xf32>
    %170 = tpu.matmul %169, %167, %cst_188 {dimension_numbers = #tpu.dot_dimension_numbers<[1], [0], [0], [1], [0, 0, 1, 1], [], []>} : vector<8x4xbf16>, vector<4x16xbf16>, vector<8x16xf32> -> vector<8x16xf32>
    %171 = arith.addf %166, %170 : vector<8x16xf32>
    %172 = vector.extract_strided_slice %155 {offsets = [0, 0], sizes = [4, 16], strides = [1, 1]} : vector<4x18xbf16> to vector<4x16xbf16>
    %c0_189 = arith.constant 0 : index
    %c0_190 = arith.constant 0 : index
    %c1_191 = arith.constant 1 : index
    %c0_192 = arith.constant 0 : index
    %c0_193 = arith.constant 0 : index
    %c0_194 = arith.constant 0 : index
    %173 = vector.load %arg3[%c0_189, %c0_190, %c1_191, %c0_192, %c0_193, %c0_194] : memref<2x2x2x2x8x4xbf16, #tpu.memory_space<vmem>>, vector<1x1x1x1x8x4xbf16>
    %174 = vector.shape_cast %173 : vector<1x1x1x1x8x4xbf16> to vector<8x4xbf16>
    %cst_195 = arith.constant dense<0.000000e+00> : vector<8x16xf32>
    %175 = tpu.matmul %174, %172, %cst_195 {dimension_numbers = #tpu.dot_dimension_numbers<[1], [0], [0], [1], [0, 0, 1, 1], [], []>} : vector<8x4xbf16>, vector<4x16xbf16>, vector<8x16xf32> -> vector<8x16xf32>
    %176 = arith.addf %171, %175 : vector<8x16xf32>
    %177 = vector.extract_strided_slice %155 {offsets = [0, 1], sizes = [4, 16], strides = [1, 1]} : vector<4x18xbf16> to vector<4x16xbf16>
    %c0_196 = arith.constant 0 : index
    %c0_197 = arith.constant 0 : index
    %c1_198 = arith.constant 1 : index
    %c1_199 = arith.constant 1 : index
    %c0_200 = arith.constant 0 : index
    %c0_201 = arith.constant 0 : index
    %178 = vector.load %arg3[%c0_196, %c0_197, %c1_198, %c1_199, %c0_200, %c0_201] : memref<2x2x2x2x8x4xbf16, #tpu.memory_space<vmem>>, vector<1x1x1x1x8x4xbf16>
    %179 = vector.shape_cast %178 : vector<1x1x1x1x8x4xbf16> to vector<8x4xbf16>
    %cst_202 = arith.constant dense<0.000000e+00> : vector<8x16xf32>
    %180 = tpu.matmul %179, %177, %cst_202 {dimension_numbers = #tpu.dot_dimension_numbers<[1], [0], [0], [1], [0, 0, 1, 1], [], []>} : vector<8x4xbf16>, vector<4x16xbf16>, vector<8x16xf32> -> vector<8x16xf32>
    %181 = arith.addf %176, %180 : vector<8x16xf32>
    %cst_203 = arith.constant 0.000000e+00 : f32
    %182 = vector.broadcast %cst_203 : f32 to vector<8x16xf32>
    %183 = vector.extract_strided_slice %150 {offsets = [0, 1], sizes = [4, 16], strides = [1, 1]} : vector<4x18xbf16> to vector<4x16xbf16>
    %c0_204 = arith.constant 0 : index
    %c1_205 = arith.constant 1 : index
    %c0_206 = arith.constant 0 : index
    %c0_207 = arith.constant 0 : index
    %c0_208 = arith.constant 0 : index
    %c0_209 = arith.constant 0 : index
    %184 = vector.load %arg3[%c0_204, %c1_205, %c0_206, %c0_207, %c0_208, %c0_209] : memref<2x2x2x2x8x4xbf16, #tpu.memory_space<vmem>>, vector<1x1x1x1x8x4xbf16>
    %185 = vector.shape_cast %184 : vector<1x1x1x1x8x4xbf16> to vector<8x4xbf16>
    %cst_210 = arith.constant dense<0.000000e+00> : vector<8x16xf32>
    %186 = tpu.matmul %185, %183, %cst_210 {dimension_numbers = #tpu.dot_dimension_numbers<[1], [0], [0], [1], [0, 0, 1, 1], [], []>} : vector<8x4xbf16>, vector<4x16xbf16>, vector<8x16xf32> -> vector<8x16xf32>
    %187 = arith.addf %182, %186 : vector<8x16xf32>
    %188 = vector.extract_strided_slice %150 {offsets = [0, 2], sizes = [4, 16], strides = [1, 1]} : vector<4x18xbf16> to vector<4x16xbf16>
    %c0_211 = arith.constant 0 : index
    %c1_212 = arith.constant 1 : index
    %c0_213 = arith.constant 0 : index
    %c1_214 = arith.constant 1 : index
    %c0_215 = arith.constant 0 : index
    %c0_216 = arith.constant 0 : index
    %189 = vector.load %arg3[%c0_211, %c1_212, %c0_213, %c1_214, %c0_215, %c0_216] : memref<2x2x2x2x8x4xbf16, #tpu.memory_space<vmem>>, vector<1x1x1x1x8x4xbf16>
    %190 = vector.shape_cast %189 : vector<1x1x1x1x8x4xbf16> to vector<8x4xbf16>
    %cst_217 = arith.constant dense<0.000000e+00> : vector<8x16xf32>
    %191 = tpu.matmul %190, %188, %cst_217 {dimension_numbers = #tpu.dot_dimension_numbers<[1], [0], [0], [1], [0, 0, 1, 1], [], []>} : vector<8x4xbf16>, vector<4x16xbf16>, vector<8x16xf32> -> vector<8x16xf32>
    %192 = arith.addf %187, %191 : vector<8x16xf32>
    %193 = vector.extract_strided_slice %155 {offsets = [0, 1], sizes = [4, 16], strides = [1, 1]} : vector<4x18xbf16> to vector<4x16xbf16>
    %c0_218 = arith.constant 0 : index
    %c1_219 = arith.constant 1 : index
    %c1_220 = arith.constant 1 : index
    %c0_221 = arith.constant 0 : index
    %c0_222 = arith.constant 0 : index
    %c0_223 = arith.constant 0 : index
    %194 = vector.load %arg3[%c0_218, %c1_219, %c1_220, %c0_221, %c0_222, %c0_223] : memref<2x2x2x2x8x4xbf16, #tpu.memory_space<vmem>>, vector<1x1x1x1x8x4xbf16>
    %195 = vector.shape_cast %194 : vector<1x1x1x1x8x4xbf16> to vector<8x4xbf16>
    %cst_224 = arith.constant dense<0.000000e+00> : vector<8x16xf32>
    %196 = tpu.matmul %195, %193, %cst_224 {dimension_numbers = #tpu.dot_dimension_numbers<[1], [0], [0], [1], [0, 0, 1, 1], [], []>} : vector<8x4xbf16>, vector<4x16xbf16>, vector<8x16xf32> -> vector<8x16xf32>
    %197 = arith.addf %192, %196 : vector<8x16xf32>
    %198 = vector.extract_strided_slice %155 {offsets = [0, 2], sizes = [4, 16], strides = [1, 1]} : vector<4x18xbf16> to vector<4x16xbf16>
    %c0_225 = arith.constant 0 : index
    %c1_226 = arith.constant 1 : index
    %c1_227 = arith.constant 1 : index
    %c1_228 = arith.constant 1 : index
    %c0_229 = arith.constant 0 : index
    %c0_230 = arith.constant 0 : index
    %199 = vector.load %arg3[%c0_225, %c1_226, %c1_227, %c1_228, %c0_229, %c0_230] : memref<2x2x2x2x8x4xbf16, #tpu.memory_space<vmem>>, vector<1x1x1x1x8x4xbf16>
    %200 = vector.shape_cast %199 : vector<1x1x1x1x8x4xbf16> to vector<8x4xbf16>
    %cst_231 = arith.constant dense<0.000000e+00> : vector<8x16xf32>
    %201 = tpu.matmul %200, %198, %cst_231 {dimension_numbers = #tpu.dot_dimension_numbers<[1], [0], [0], [1], [0, 0, 1, 1], [], []>} : vector<8x4xbf16>, vector<4x16xbf16>, vector<8x16xf32> -> vector<8x16xf32>
    %202 = arith.addf %197, %201 : vector<8x16xf32>
    %c0_232 = arith.constant 0 : index
    %c0_233 = arith.constant 0 : index
    %c0_234 = arith.constant 0 : index
    %203 = vector.load %arg4[%c0_232, %c0_233, %c0_234] : memref<2x16x32xf32, #tpu.memory_space<vmem>>, vector<1x16x32xf32>
    %204 = vector.shape_cast %203 : vector<1x16x32xf32> to vector<16x32xf32>
    %cst_235 = arith.constant dense<0.000000e+00> : vector<8x32xf32>
    %205 = tpu.matmul %181, %204, %cst_235 {dimension_numbers = #tpu.dot_dimension_numbers<[1], [0], [0], [1], [0, 0, 1, 1], [], []>} : vector<8x16xf32>, vector<16x32xf32>, vector<8x32xf32> -> vector<8x32xf32>
    %c1_236 = arith.constant 1 : index
    %c0_237 = arith.constant 0 : index
    %c0_238 = arith.constant 0 : index
    %206 = vector.load %arg4[%c1_236, %c0_237, %c0_238] : memref<2x16x32xf32, #tpu.memory_space<vmem>>, vector<1x16x32xf32>
    %207 = vector.shape_cast %206 : vector<1x16x32xf32> to vector<16x32xf32>
    %cst_239 = arith.constant dense<0.000000e+00> : vector<8x32xf32>
    %208 = tpu.matmul %202, %207, %cst_239 {dimension_numbers = #tpu.dot_dimension_numbers<[1], [0], [0], [1], [0, 0, 1, 1], [], []>} : vector<8x16xf32>, vector<16x32xf32>, vector<8x32xf32> -> vector<8x32xf32>
    %209 = arith.addf %205, %208 : vector<8x32xf32>
    %210 = vector.broadcast %3 : vector<8x1xf32> to vector<8x32xf32>
    %211 = arith.addf %209, %210 : vector<8x32xf32>
    %212 = arith.truncf %211 : vector<8x32xf32> to vector<8x32xbf16>
    %c0_240 = arith.constant 0 : index
    %c0_241 = arith.constant 0 : index
    %c2 = arith.constant 2 : index
    %c0_242 = arith.constant 0 : index
    %213 = vector.load %arg6[%c0_240, %c0_241, %c2, %c0_242] : memref<1x8x16x32xbf16, #tpu.memory_space<vmem>>, vector<1x8x1x32xbf16>
    %214 = vector.shape_cast %213 : vector<1x8x1x32xbf16> to vector<8x32xbf16>
    %215 = vector.shape_cast %212 : vector<8x32xbf16> to vector<1x8x1x32xbf16>
    tpu.vector_store %arg6[%c0_240, %c0_241, %c2, %c0_242], %215 {strides = array<i32>} : memref<1x8x16x32xbf16, #tpu.memory_space<vmem>>, vector<1x8x1x32xbf16>,
    %cst_243 = arith.constant dense<0.000000e+00> : vector<8xf32>
    %216 = vector.multi_reduction <add>, %211, %cst_243 [1] : vector<8x32xf32> to vector<8xf32>
    %217 = vector.shape_cast %216 : vector<8xf32> to vector<8x1xf32>
    %218 = arith.addf %141, %217 : vector<8x1xf32>
    %219 = arith.mulf %211, %211 : vector<8x32xf32>
    %cst_244 = arith.constant dense<0.000000e+00> : vector<8xf32>
    %220 = vector.multi_reduction <add>, %219, %cst_244 [1] : vector<8x32xf32> to vector<8xf32>
    %221 = vector.shape_cast %220 : vector<8xf32> to vector<8x1xf32>
    %222 = arith.addf %145, %221 : vector<8x1xf32>
    %cst_245 = arith.constant 0.000000e+00 : f32
    %223 = vector.broadcast %cst_245 : f32 to vector<8x16xf32>
    %224 = vector.extract_strided_slice %155 {offsets = [0, 0], sizes = [4, 16], strides = [1, 1]} : vector<4x18xbf16> to vector<4x16xbf16>
    %c1_246 = arith.constant 1 : index
    %c0_247 = arith.constant 0 : index
    %c0_248 = arith.constant 0 : index
    %c0_249 = arith.constant 0 : index
    %c0_250 = arith.constant 0 : index
    %c0_251 = arith.constant 0 : index
    %225 = vector.load %arg3[%c1_246, %c0_247, %c0_248, %c0_249, %c0_250, %c0_251] : memref<2x2x2x2x8x4xbf16, #tpu.memory_space<vmem>>, vector<1x1x1x1x8x4xbf16>
    %226 = vector.shape_cast %225 : vector<1x1x1x1x8x4xbf16> to vector<8x4xbf16>
    %cst_252 = arith.constant dense<0.000000e+00> : vector<8x16xf32>
    %227 = tpu.matmul %226, %224, %cst_252 {dimension_numbers = #tpu.dot_dimension_numbers<[1], [0], [0], [1], [0, 0, 1, 1], [], []>} : vector<8x4xbf16>, vector<4x16xbf16>, vector<8x16xf32> -> vector<8x16xf32>
    %228 = arith.addf %223, %227 : vector<8x16xf32>
    %229 = vector.extract_strided_slice %155 {offsets = [0, 1], sizes = [4, 16], strides = [1, 1]} : vector<4x18xbf16> to vector<4x16xbf16>
    %c1_253 = arith.constant 1 : index
    %c0_254 = arith.constant 0 : index
    %c0_255 = arith.constant 0 : index
    %c1_256 = arith.constant 1 : index
    %c0_257 = arith.constant 0 : index
    %c0_258 = arith.constant 0 : index
    %230 = vector.load %arg3[%c1_253, %c0_254, %c0_255, %c1_256, %c0_257, %c0_258] : memref<2x2x2x2x8x4xbf16, #tpu.memory_space<vmem>>, vector<1x1x1x1x8x4xbf16>
    %231 = vector.shape_cast %230 : vector<1x1x1x1x8x4xbf16> to vector<8x4xbf16>
    %cst_259 = arith.constant dense<0.000000e+00> : vector<8x16xf32>
    %232 = tpu.matmul %231, %229, %cst_259 {dimension_numbers = #tpu.dot_dimension_numbers<[1], [0], [0], [1], [0, 0, 1, 1], [], []>} : vector<8x4xbf16>, vector<4x16xbf16>, vector<8x16xf32> -> vector<8x16xf32>
    %233 = arith.addf %228, %232 : vector<8x16xf32>
    %234 = vector.extract_strided_slice %160 {offsets = [0, 0], sizes = [4, 16], strides = [1, 1]} : vector<4x18xbf16> to vector<4x16xbf16>
    %c1_260 = arith.constant 1 : index
    %c0_261 = arith.constant 0 : index
    %c1_262 = arith.constant 1 : index
    %c0_263 = arith.constant 0 : index
    %c0_264 = arith.constant 0 : index
    %c0_265 = arith.constant 0 : index
    %235 = vector.load %arg3[%c1_260, %c0_261, %c1_262, %c0_263, %c0_264, %c0_265] : memref<2x2x2x2x8x4xbf16, #tpu.memory_space<vmem>>, vector<1x1x1x1x8x4xbf16>
    %236 = vector.shape_cast %235 : vector<1x1x1x1x8x4xbf16> to vector<8x4xbf16>
    %cst_266 = arith.constant dense<0.000000e+00> : vector<8x16xf32>
    %237 = tpu.matmul %236, %234, %cst_266 {dimension_numbers = #tpu.dot_dimension_numbers<[1], [0], [0], [1], [0, 0, 1, 1], [], []>} : vector<8x4xbf16>, vector<4x16xbf16>, vector<8x16xf32> -> vector<8x16xf32>
    %238 = arith.addf %233, %237 : vector<8x16xf32>
    %239 = vector.extract_strided_slice %160 {offsets = [0, 1], sizes = [4, 16], strides = [1, 1]} : vector<4x18xbf16> to vector<4x16xbf16>
    %c1_267 = arith.constant 1 : index
    %c0_268 = arith.constant 0 : index
    %c1_269 = arith.constant 1 : index
    %c1_270 = arith.constant 1 : index
    %c0_271 = arith.constant 0 : index
    %c0_272 = arith.constant 0 : index
    %240 = vector.load %arg3[%c1_267, %c0_268, %c1_269, %c1_270, %c0_271, %c0_272] : memref<2x2x2x2x8x4xbf16, #tpu.memory_space<vmem>>, vector<1x1x1x1x8x4xbf16>
    %241 = vector.shape_cast %240 : vector<1x1x1x1x8x4xbf16> to vector<8x4xbf16>
    %cst_273 = arith.constant dense<0.000000e+00> : vector<8x16xf32>
    %242 = tpu.matmul %241, %239, %cst_273 {dimension_numbers = #tpu.dot_dimension_numbers<[1], [0], [0], [1], [0, 0, 1, 1], [], []>} : vector<8x4xbf16>, vector<4x16xbf16>, vector<8x16xf32> -> vector<8x16xf32>
    %243 = arith.addf %238, %242 : vector<8x16xf32>
    %cst_274 = arith.constant 0.000000e+00 : f32
    %244 = vector.broadcast %cst_274 : f32 to vector<8x16xf32>
    %245 = vector.extract_strided_slice %155 {offsets = [0, 1], sizes = [4, 16], strides = [1, 1]} : vector<4x18xbf16> to vector<4x16xbf16>
    %c1_275 = arith.constant 1 : index
    %c1_276 = arith.constant 1 : index
    %c0_277 = arith.constant 0 : index
    %c0_278 = arith.constant 0 : index
    %c0_279 = arith.constant 0 : index
    %c0_280 = arith.constant 0 : index
    %246 = vector.load %arg3[%c1_275, %c1_276, %c0_277, %c0_278, %c0_279, %c0_280] : memref<2x2x2x2x8x4xbf16, #tpu.memory_space<vmem>>, vector<1x1x1x1x8x4xbf16>
    %247 = vector.shape_cast %246 : vector<1x1x1x1x8x4xbf16> to vector<8x4xbf16>
    %cst_281 = arith.constant dense<0.000000e+00> : vector<8x16xf32>
    %248 = tpu.matmul %247, %245, %cst_281 {dimension_numbers = #tpu.dot_dimension_numbers<[1], [0], [0], [1], [0, 0, 1, 1], [], []>} : vector<8x4xbf16>, vector<4x16xbf16>, vector<8x16xf32> -> vector<8x16xf32>
    %249 = arith.addf %244, %248 : vector<8x16xf32>
    %250 = vector.extract_strided_slice %155 {offsets = [0, 2], sizes = [4, 16], strides = [1, 1]} : vector<4x18xbf16> to vector<4x16xbf16>
    %c1_282 = arith.constant 1 : index
    %c1_283 = arith.constant 1 : index
    %c0_284 = arith.constant 0 : index
    %c1_285 = arith.constant 1 : index
    %c0_286 = arith.constant 0 : index
    %c0_287 = arith.constant 0 : index
    %251 = vector.load %arg3[%c1_282, %c1_283, %c0_284, %c1_285, %c0_286, %c0_287] : memref<2x2x2x2x8x4xbf16, #tpu.memory_space<vmem>>, vector<1x1x1x1x8x4xbf16>
    %252 = vector.shape_cast %251 : vector<1x1x1x1x8x4xbf16> to vector<8x4xbf16>
    %cst_288 = arith.constant dense<0.000000e+00> : vector<8x16xf32>
    %253 = tpu.matmul %252, %250, %cst_288 {dimension_numbers = #tpu.dot_dimension_numbers<[1], [0], [0], [1], [0, 0, 1, 1], [], []>} : vector<8x4xbf16>, vector<4x16xbf16>, vector<8x16xf32> -> vector<8x16xf32>
    %254 = arith.addf %249, %253 : vector<8x16xf32>
    %255 = vector.extract_strided_slice %160 {offsets = [0, 1], sizes = [4, 16], strides = [1, 1]} : vector<4x18xbf16> to vector<4x16xbf16>
    %c1_289 = arith.constant 1 : index
    %c1_290 = arith.constant 1 : index
    %c1_291 = arith.constant 1 : index
    %c0_292 = arith.constant 0 : index
    %c0_293 = arith.constant 0 : index
    %c0_294 = arith.constant 0 : index
    %256 = vector.load %arg3[%c1_289, %c1_290, %c1_291, %c0_292, %c0_293, %c0_294] : memref<2x2x2x2x8x4xbf16, #tpu.memory_space<vmem>>, vector<1x1x1x1x8x4xbf16>
    %257 = vector.shape_cast %256 : vector<1x1x1x1x8x4xbf16> to vector<8x4xbf16>
    %cst_295 = arith.constant dense<0.000000e+00> : vector<8x16xf32>
    %258 = tpu.matmul %257, %255, %cst_295 {dimension_numbers = #tpu.dot_dimension_numbers<[1], [0], [0], [1], [0, 0, 1, 1], [], []>} : vector<8x4xbf16>, vector<4x16xbf16>, vector<8x16xf32> -> vector<8x16xf32>
    %259 = arith.addf %254, %258 : vector<8x16xf32>
    %260 = vector.extract_strided_slice %160 {offsets = [0, 2], sizes = [4, 16], strides = [1, 1]} : vector<4x18xbf16> to vector<4x16xbf16>
    %c1_296 = arith.constant 1 : index
    %c1_297 = arith.constant 1 : index
    %c1_298 = arith.constant 1 : index
    %c1_299 = arith.constant 1 : index
    %c0_300 = arith.constant 0 : index
    %c0_301 = arith.constant 0 : index
    %261 = vector.load %arg3[%c1_296, %c1_297, %c1_298, %c1_299, %c0_300, %c0_301] : memref<2x2x2x2x8x4xbf16, #tpu.memory_space<vmem>>, vector<1x1x1x1x8x4xbf16>
    %262 = vector.shape_cast %261 : vector<1x1x1x1x8x4xbf16> to vector<8x4xbf16>
    %cst_302 = arith.constant dense<0.000000e+00> : vector<8x16xf32>
    %263 = tpu.matmul %262, %260, %cst_302 {dimension_numbers = #tpu.dot_dimension_numbers<[1], [0], [0], [1], [0, 0, 1, 1], [], []>} : vector<8x4xbf16>, vector<4x16xbf16>, vector<8x16xf32> -> vector<8x16xf32>
    %264 = arith.addf %259, %263 : vector<8x16xf32>
    %c0_303 = arith.constant 0 : index
    %c0_304 = arith.constant 0 : index
    %c0_305 = arith.constant 0 : index
    %265 = vector.load %arg4[%c0_303, %c0_304, %c0_305] : memref<2x16x32xf32, #tpu.memory_space<vmem>>, vector<1x16x32xf32>
    %266 = vector.shape_cast %265 : vector<1x16x32xf32> to vector<16x32xf32>
    %cst_306 = arith.constant dense<0.000000e+00> : vector<8x32xf32>
    %267 = tpu.matmul %243, %266, %cst_306 {dimension_numbers = #tpu.dot_dimension_numbers<[1], [0], [0], [1], [0, 0, 1, 1], [], []>} : vector<8x16xf32>, vector<16x32xf32>, vector<8x32xf32> -> vector<8x32xf32>
    %c1_307 = arith.constant 1 : index
    %c0_308 = arith.constant 0 : index
    %c0_309 = arith.constant 0 : index
    %268 = vector.load %arg4[%c1_307, %c0_308, %c0_309] : memref<2x16x32xf32, #tpu.memory_space<vmem>>, vector<1x16x32xf32>
    %269 = vector.shape_cast %268 : vector<1x16x32xf32> to vector<16x32xf32>
    %cst_310 = arith.constant dense<0.000000e+00> : vector<8x32xf32>
    %270 = tpu.matmul %264, %269, %cst_310 {dimension_numbers = #tpu.dot_dimension_numbers<[1], [0], [0], [1], [0, 0, 1, 1], [], []>} : vector<8x16xf32>, vector<16x32xf32>, vector<8x32xf32> -> vector<8x32xf32>
    %271 = arith.addf %267, %270 : vector<8x32xf32>
    %272 = vector.broadcast %3 : vector<8x1xf32> to vector<8x32xf32>
    %273 = arith.addf %271, %272 : vector<8x32xf32>
    %274 = arith.truncf %273 : vector<8x32xf32> to vector<8x32xbf16>
    %c0_311 = arith.constant 0 : index
    %c0_312 = arith.constant 0 : index
    %c3 = arith.constant 3 : index
    %c0_313 = arith.constant 0 : index
    %275 = vector.load %arg6[%c0_311, %c0_312, %c3, %c0_313] : memref<1x8x16x32xbf16, #tpu.memory_space<vmem>>, vector<1x8x1x32xbf16>
    %276 = vector.shape_cast %275 : vector<1x8x1x32xbf16> to vector<8x32xbf16>
    %277 = vector.shape_cast %274 : vector<8x32xbf16> to vector<1x8x1x32xbf16>
    tpu.vector_store %arg6[%c0_311, %c0_312, %c3, %c0_313], %277 {strides = array<i32>} : memref<1x8x16x32xbf16, #tpu.memory_space<vmem>>, vector<1x8x1x32xbf16>,
    %cst_314 = arith.constant dense<0.000000e+00> : vector<8xf32>
    %278 = vector.multi_reduction <add>, %273, %cst_314 [1] : vector<8x32xf32> to vector<8xf32>
    %279 = vector.shape_cast %278 : vector<8xf32> to vector<8x1xf32>
    %280 = arith.addf %218, %279 : vector<8x1xf32>
    %281 = arith.mulf %273, %273 : vector<8x32xf32>
    %cst_315 = arith.constant dense<0.000000e+00> : vector<8xf32>
    %282 = vector.multi_reduction <add>, %281, %cst_315 [1] : vector<8x32xf32> to vector<8xf32>
    %283 = vector.shape_cast %282 : vector<8xf32> to vector<8x1xf32>
    %284 = arith.addf %222, %283 : vector<8x1xf32>
    %c2_i32_316 = arith.constant 2 : i32
    %285 = arith.addi %6, %c2_i32_316 : i32
    %c0_i32_317 = arith.constant 0 : i32
    %286 = arith.addi %285, %c0_i32_317 : i32
    %c0_318 = arith.constant 0 : index
    %287 = arith.index_cast %286 : i32 to index
    %c0_319 = arith.constant 0 : index
    %c0_320 = arith.constant 0 : index
    %288 = vector.load %arg2[%c0_318, %287, %c0_319, %c0_320] : memref<1x18x4x18xbf16, #tpu.memory_space<vmem>>, vector<1x1x4x18xbf16>
    %289 = vector.shape_cast %288 : vector<1x1x4x18xbf16> to vector<4x18xbf16>
    %c2_i32_321 = arith.constant 2 : i32
    %290 = arith.addi %6, %c2_i32_321 : i32
    %c1_i32_322 = arith.constant 1 : i32
    %291 = arith.addi %290, %c1_i32_322 : i32
    %c0_323 = arith.constant 0 : index
    %292 = arith.index_cast %291 : i32 to index
    %c0_324 = arith.constant 0 : index
    %c0_325 = arith.constant 0 : index
    %293 = vector.load %arg2[%c0_323, %292, %c0_324, %c0_325] : memref<1x18x4x18xbf16, #tpu.memory_space<vmem>>, vector<1x1x4x18xbf16>
    %294 = vector.shape_cast %293 : vector<1x1x4x18xbf16> to vector<4x18xbf16>
    %c2_i32_326 = arith.constant 2 : i32
    %295 = arith.addi %6, %c2_i32_326 : i32
    %c2_i32_327 = arith.constant 2 : i32
    %296 = arith.addi %295, %c2_i32_327 : i32
    %c0_328 = arith.constant 0 : index
    %297 = arith.index_cast %296 : i32 to index
    %c0_329 = arith.constant 0 : index
    %c0_330 = arith.constant 0 : index
    %298 = vector.load %arg2[%c0_328, %297, %c0_329, %c0_330] : memref<1x18x4x18xbf16, #tpu.memory_space<vmem>>, vector<1x1x4x18xbf16>
    %299 = vector.shape_cast %298 : vector<1x1x4x18xbf16> to vector<4x18xbf16>
    %cst_331 = arith.constant 0.000000e+00 : f32
    %300 = vector.broadcast %cst_331 : f32 to vector<8x16xf32>
    %301 = vector.extract_strided_slice %289 {offsets = [0, 0], sizes = [4, 16], strides = [1, 1]} : vector<4x18xbf16> to vector<4x16xbf16>
    %c0_332 = arith.constant 0 : index
    %c0_333 = arith.constant 0 : index
    %c0_334 = arith.constant 0 : index
    %c0_335 = arith.constant 0 : index
    %c0_336 = arith.constant 0 : index
    %c0_337 = arith.constant 0 : index
    %302 = vector.load %arg3[%c0_332, %c0_333, %c0_334, %c0_335, %c0_336, %c0_337] : memref<2x2x2x2x8x4xbf16, #tpu.memory_space<vmem>>, vector<1x1x1x1x8x4xbf16>
    %303 = vector.shape_cast %302 : vector<1x1x1x1x8x4xbf16> to vector<8x4xbf16>
    %cst_338 = arith.constant dense<0.000000e+00> : vector<8x16xf32>
    %304 = tpu.matmul %303, %301, %cst_338 {dimension_numbers = #tpu.dot_dimension_numbers<[1], [0], [0], [1], [0, 0, 1, 1], [], []>} : vector<8x4xbf16>, vector<4x16xbf16>, vector<8x16xf32> -> vector<8x16xf32>
    %305 = arith.addf %300, %304 : vector<8x16xf32>
    %306 = vector.extract_strided_slice %289 {offsets = [0, 1], sizes = [4, 16], strides = [1, 1]} : vector<4x18xbf16> to vector<4x16xbf16>
    %c0_339 = arith.constant 0 : index
    %c0_340 = arith.constant 0 : index
    %c0_341 = arith.constant 0 : index
    %c1_342 = arith.constant 1 : index
    %c0_343 = arith.constant 0 : index
    %c0_344 = arith.constant 0 : index
    %307 = vector.load %arg3[%c0_339, %c0_340, %c0_341, %c1_342, %c0_343, %c0_344] : memref<2x2x2x2x8x4xbf16, #tpu.memory_space<vmem>>, vector<1x1x1x1x8x4xbf16>
    %308 = vector.shape_cast %307 : vector<1x1x1x1x8x4xbf16> to vector<8x4xbf16>
    %cst_345 = arith.constant dense<0.000000e+00> : vector<8x16xf32>
    %309 = tpu.matmul %308, %306, %cst_345 {dimension_numbers = #tpu.dot_dimension_numbers<[1], [0], [0], [1], [0, 0, 1, 1], [], []>} : vector<8x4xbf16>, vector<4x16xbf16>, vector<8x16xf32> -> vector<8x16xf32>
    %310 = arith.addf %305, %309 : vector<8x16xf32>
    %311 = vector.extract_strided_slice %294 {offsets = [0, 0], sizes = [4, 16], strides = [1, 1]} : vector<4x18xbf16> to vector<4x16xbf16>
    %c0_346 = arith.constant 0 : index
    %c0_347 = arith.constant 0 : index
    %c1_348 = arith.constant 1 : index
    %c0_349 = arith.constant 0 : index
    %c0_350 = arith.constant 0 : index
    %c0_351 = arith.constant 0 : index
    %312 = vector.load %arg3[%c0_346, %c0_347, %c1_348, %c0_349, %c0_350, %c0_351] : memref<2x2x2x2x8x4xbf16, #tpu.memory_space<vmem>>, vector<1x1x1x1x8x4xbf16>
    %313 = vector.shape_cast %312 : vector<1x1x1x1x8x4xbf16> to vector<8x4xbf16>
    %cst_352 = arith.constant dense<0.000000e+00> : vector<8x16xf32>
    %314 = tpu.matmul %313, %311, %cst_352 {dimension_numbers = #tpu.dot_dimension_numbers<[1], [0], [0], [1], [0, 0, 1, 1], [], []>} : vector<8x4xbf16>, vector<4x16xbf16>, vector<8x16xf32> -> vector<8x16xf32>
    %315 = arith.addf %310, %314 : vector<8x16xf32>
    %316 = vector.extract_strided_slice %294 {offsets = [0, 1], sizes = [4, 16], strides = [1, 1]} : vector<4x18xbf16> to vector<4x16xbf16>
    %c0_353 = arith.constant 0 : index
    %c0_354 = arith.constant 0 : index
    %c1_355 = arith.constant 1 : index
    %c1_356 = arith.constant 1 : index
    %c0_357 = arith.constant 0 : index
    %c0_358 = arith.constant 0 : index
    %317 = vector.load %arg3[%c0_353, %c0_354, %c1_355, %c1_356, %c0_357, %c0_358] : memref<2x2x2x2x8x4xbf16, #tpu.memory_space<vmem>>, vector<1x1x1x1x8x4xbf16>
    %318 = vector.shape_cast %317 : vector<1x1x1x1x8x4xbf16> to vector<8x4xbf16>
    %cst_359 = arith.constant dense<0.000000e+00> : vector<8x16xf32>
    %319 = tpu.matmul %318, %316, %cst_359 {dimension_numbers = #tpu.dot_dimension_numbers<[1], [0], [0], [1], [0, 0, 1, 1], [], []>} : vector<8x4xbf16>, vector<4x16xbf16>, vector<8x16xf32> -> vector<8x16xf32>
    %320 = arith.addf %315, %319 : vector<8x16xf32>
    %cst_360 = arith.constant 0.000000e+00 : f32
    %321 = vector.broadcast %cst_360 : f32 to vector<8x16xf32>
    %322 = vector.extract_strided_slice %289 {offsets = [0, 1], sizes = [4, 16], strides = [1, 1]} : vector<4x18xbf16> to vector<4x16xbf16>
    %c0_361 = arith.constant 0 : index
    %c1_362 = arith.constant 1 : index
    %c0_363 = arith.constant 0 : index
    %c0_364 = arith.constant 0 : index
    %c0_365 = arith.constant 0 : index
    %c0_366 = arith.constant 0 : index
    %323 = vector.load %arg3[%c0_361, %c1_362, %c0_363, %c0_364, %c0_365, %c0_366] : memref<2x2x2x2x8x4xbf16, #tpu.memory_space<vmem>>, vector<1x1x1x1x8x4xbf16>
    %324 = vector.shape_cast %323 : vector<1x1x1x1x8x4xbf16> to vector<8x4xbf16>
    %cst_367 = arith.constant dense<0.000000e+00> : vector<8x16xf32>
    %325 = tpu.matmul %324, %322, %cst_367 {dimension_numbers = #tpu.dot_dimension_numbers<[1], [0], [0], [1], [0, 0, 1, 1], [], []>} : vector<8x4xbf16>, vector<4x16xbf16>, vector<8x16xf32> -> vector<8x16xf32>
    %326 = arith.addf %321, %325 : vector<8x16xf32>
    %327 = vector.extract_strided_slice %289 {offsets = [0, 2], sizes = [4, 16], strides = [1, 1]} : vector<4x18xbf16> to vector<4x16xbf16>
    %c0_368 = arith.constant 0 : index
    %c1_369 = arith.constant 1 : index
    %c0_370 = arith.constant 0 : index
    %c1_371 = arith.constant 1 : index
    %c0_372 = arith.constant 0 : index
    %c0_373 = arith.constant 0 : index
    %328 = vector.load %arg3[%c0_368, %c1_369, %c0_370, %c1_371, %c0_372, %c0_373] : memref<2x2x2x2x8x4xbf16, #tpu.memory_space<vmem>>, vector<1x1x1x1x8x4xbf16>
    %329 = vector.shape_cast %328 : vector<1x1x1x1x8x4xbf16> to vector<8x4xbf16>
    %cst_374 = arith.constant dense<0.000000e+00> : vector<8x16xf32>
    %330 = tpu.matmul %329, %327, %cst_374 {dimension_numbers = #tpu.dot_dimension_numbers<[1], [0], [0], [1], [0, 0, 1, 1], [], []>} : vector<8x4xbf16>, vector<4x16xbf16>, vector<8x16xf32> -> vector<8x16xf32>
    %331 = arith.addf %326, %330 : vector<8x16xf32>
    %332 = vector.extract_strided_slice %294 {offsets = [0, 1], sizes = [4, 16], strides = [1, 1]} : vector<4x18xbf16> to vector<4x16xbf16>
    %c0_375 = arith.constant 0 : index
    %c1_376 = arith.constant 1 : index
    %c1_377 = arith.constant 1 : index
    %c0_378 = arith.constant 0 : index
    %c0_379 = arith.constant 0 : index
    %c0_380 = arith.constant 0 : index
    %333 = vector.load %arg3[%c0_375, %c1_376, %c1_377, %c0_378, %c0_379, %c0_380] : memref<2x2x2x2x8x4xbf16, #tpu.memory_space<vmem>>, vector<1x1x1x1x8x4xbf16>
    %334 = vector.shape_cast %333 : vector<1x1x1x1x8x4xbf16> to vector<8x4xbf16>
    %cst_381 = arith.constant dense<0.000000e+00> : vector<8x16xf32>
    %335 = tpu.matmul %334, %332, %cst_381 {dimension_numbers = #tpu.dot_dimension_numbers<[1], [0], [0], [1], [0, 0, 1, 1], [], []>} : vector<8x4xbf16>, vector<4x16xbf16>, vector<8x16xf32> -> vector<8x16xf32>
    %336 = arith.addf %331, %335 : vector<8x16xf32>
    %337 = vector.extract_strided_slice %294 {offsets = [0, 2], sizes = [4, 16], strides = [1, 1]} : vector<4x18xbf16> to vector<4x16xbf16>
    %c0_382 = arith.constant 0 : index
    %c1_383 = arith.constant 1 : index
    %c1_384 = arith.constant 1 : index
    %c1_385 = arith.constant 1 : index
    %c0_386 = arith.constant 0 : index
    %c0_387 = arith.constant 0 : index
    %338 = vector.load %arg3[%c0_382, %c1_383, %c1_384, %c1_385, %c0_386, %c0_387] : memref<2x2x2x2x8x4xbf16, #tpu.memory_space<vmem>>, vector<1x1x1x1x8x4xbf16>
    %339 = vector.shape_cast %338 : vector<1x1x1x1x8x4xbf16> to vector<8x4xbf16>
    %cst_388 = arith.constant dense<0.000000e+00> : vector<8x16xf32>
    %340 = tpu.matmul %339, %337, %cst_388 {dimension_numbers = #tpu.dot_dimension_numbers<[1], [0], [0], [1], [0, 0, 1, 1], [], []>} : vector<8x4xbf16>, vector<4x16xbf16>, vector<8x16xf32> -> vector<8x16xf32>
    %341 = arith.addf %336, %340 : vector<8x16xf32>
    %c0_389 = arith.constant 0 : index
    %c0_390 = arith.constant 0 : index
    %c0_391 = arith.constant 0 : index
    %342 = vector.load %arg4[%c0_389, %c0_390, %c0_391] : memref<2x16x32xf32, #tpu.memory_space<vmem>>, vector<1x16x32xf32>
    %343 = vector.shape_cast %342 : vector<1x16x32xf32> to vector<16x32xf32>
    %cst_392 = arith.constant dense<0.000000e+00> : vector<8x32xf32>
    %344 = tpu.matmul %320, %343, %cst_392 {dimension_numbers = #tpu.dot_dimension_numbers<[1], [0], [0], [1], [0, 0, 1, 1], [], []>} : vector<8x16xf32>, vector<16x32xf32>, vector<8x32xf32> -> vector<8x32xf32>
    %c1_393 = arith.constant 1 : index
    %c0_394 = arith.constant 0 : index
    %c0_395 = arith.constant 0 : index
    %345 = vector.load %arg4[%c1_393, %c0_394, %c0_395] : memref<2x16x32xf32, #tpu.memory_space<vmem>>, vector<1x16x32xf32>
    %346 = vector.shape_cast %345 : vector<1x16x32xf32> to vector<16x32xf32>
    %cst_396 = arith.constant dense<0.000000e+00> : vector<8x32xf32>
    %347 = tpu.matmul %341, %346, %cst_396 {dimension_numbers = #tpu.dot_dimension_numbers<[1], [0], [0], [1], [0, 0, 1, 1], [], []>} : vector<8x16xf32>, vector<16x32xf32>, vector<8x32xf32> -> vector<8x32xf32>
    %348 = arith.addf %344, %347 : vector<8x32xf32>
    %349 = vector.broadcast %3 : vector<8x1xf32> to vector<8x32xf32>
    %350 = arith.addf %348, %349 : vector<8x32xf32>
    %351 = arith.truncf %350 : vector<8x32xf32> to vector<8x32xbf16>
    %c0_397 = arith.constant 0 : index
    %c0_398 = arith.constant 0 : index
    %c4 = arith.constant 4 : index
    %c0_399 = arith.constant 0 : index
    %352 = vector.load %arg6[%c0_397, %c0_398, %c4, %c0_399] : memref<1x8x16x32xbf16, #tpu.memory_space<vmem>>, vector<1x8x1x32xbf16>
    %353 = vector.shape_cast %352 : vector<1x8x1x32xbf16> to vector<8x32xbf16>
    %354 = vector.shape_cast %351 : vector<8x32xbf16> to vector<1x8x1x32xbf16>
    tpu.vector_store %arg6[%c0_397, %c0_398, %c4, %c0_399], %354 {strides = array<i32>} : memref<1x8x16x32xbf16, #tpu.memory_space<vmem>>, vector<1x8x1x32xbf16>,
    %cst_400 = arith.constant dense<0.000000e+00> : vector<8xf32>
    %355 = vector.multi_reduction <add>, %350, %cst_400 [1] : vector<8x32xf32> to vector<8xf32>
    %356 = vector.shape_cast %355 : vector<8xf32> to vector<8x1xf32>
    %357 = arith.addf %280, %356 : vector<8x1xf32>
    %358 = arith.mulf %350, %350 : vector<8x32xf32>
    %cst_401 = arith.constant dense<0.000000e+00> : vector<8xf32>
    %359 = vector.multi_reduction <add>, %358, %cst_401 [1] : vector<8x32xf32> to vector<8xf32>
    %360 = vector.shape_cast %359 : vector<8xf32> to vector<8x1xf32>
    %361 = arith.addf %284, %360 : vector<8x1xf32>
    %cst_402 = arith.constant 0.000000e+00 : f32
    %362 = vector.broadcast %cst_402 : f32 to vector<8x16xf32>
    %363 = vector.extract_strided_slice %294 {offsets = [0, 0], sizes = [4, 16], strides = [1, 1]} : vector<4x18xbf16> to vector<4x16xbf16>
    %c1_403 = arith.constant 1 : index
    %c0_404 = arith.constant 0 : index
    %c0_405 = arith.constant 0 : index
    %c0_406 = arith.constant 0 : index
    %c0_407 = arith.constant 0 : index
    %c0_408 = arith.constant 0 : index
    %364 = vector.load %arg3[%c1_403, %c0_404, %c0_405, %c0_406, %c0_407, %c0_408] : memref<2x2x2x2x8x4xbf16, #tpu.memory_space<vmem>>, vector<1x1x1x1x8x4xbf16>
    %365 = vector.shape_cast %364 : vector<1x1x1x1x8x4xbf16> to vector<8x4xbf16>
    %cst_409 = arith.constant dense<0.000000e+00> : vector<8x16xf32>
    %366 = tpu.matmul %365, %363, %cst_409 {dimension_numbers = #tpu.dot_dimension_numbers<[1], [0], [0], [1], [0, 0, 1, 1], [], []>} : vector<8x4xbf16>, vector<4x16xbf16>, vector<8x16xf32> -> vector<8x16xf32>
    %367 = arith.addf %362, %366 : vector<8x16xf32>
    %368 = vector.extract_strided_slice %294 {offsets = [0, 1], sizes = [4, 16], strides = [1, 1]} : vector<4x18xbf16> to vector<4x16xbf16>
    %c1_410 = arith.constant 1 : index
    %c0_411 = arith.constant 0 : index
    %c0_412 = arith.constant 0 : index
    %c1_413 = arith.constant 1 : index
    %c0_414 = arith.constant 0 : index
    %c0_415 = arith.constant 0 : index
    %369 = vector.load %arg3[%c1_410, %c0_411, %c0_412, %c1_413, %c0_414, %c0_415] : memref<2x2x2x2x8x4xbf16, #tpu.memory_space<vmem>>, vector<1x1x1x1x8x4xbf16>
    %370 = vector.shape_cast %369 : vector<1x1x1x1x8x4xbf16> to vector<8x4xbf16>
    %cst_416 = arith.constant dense<0.000000e+00> : vector<8x16xf32>
    %371 = tpu.matmul %370, %368, %cst_416 {dimension_numbers = #tpu.dot_dimension_numbers<[1], [0], [0], [1], [0, 0, 1, 1], [], []>} : vector<8x4xbf16>, vector<4x16xbf16>, vector<8x16xf32> -> vector<8x16xf32>
    %372 = arith.addf %367, %371 : vector<8x16xf32>
    %373 = vector.extract_strided_slice %299 {offsets = [0, 0], sizes = [4, 16], strides = [1, 1]} : vector<4x18xbf16> to vector<4x16xbf16>
    %c1_417 = arith.constant 1 : index
    %c0_418 = arith.constant 0 : index
    %c1_419 = arith.constant 1 : index
    %c0_420 = arith.constant 0 : index
    %c0_421 = arith.constant 0 : index
    %c0_422 = arith.constant 0 : index
    %374 = vector.load %arg3[%c1_417, %c0_418, %c1_419, %c0_420, %c0_421, %c0_422] : memref<2x2x2x2x8x4xbf16, #tpu.memory_space<vmem>>, vector<1x1x1x1x8x4xbf16>
    %375 = vector.shape_cast %374 : vector<1x1x1x1x8x4xbf16> to vector<8x4xbf16>
    %cst_423 = arith.constant dense<0.000000e+00> : vector<8x16xf32>
    %376 = tpu.matmul %375, %373, %cst_423 {dimension_numbers = #tpu.dot_dimension_numbers<[1], [0], [0], [1], [0, 0, 1, 1], [], []>} : vector<8x4xbf16>, vector<4x16xbf16>, vector<8x16xf32> -> vector<8x16xf32>
    %377 = arith.addf %372, %376 : vector<8x16xf32>
    %378 = vector.extract_strided_slice %299 {offsets = [0, 1], sizes = [4, 16], strides = [1, 1]} : vector<4x18xbf16> to vector<4x16xbf16>
    %c1_424 = arith.constant 1 : index
    %c0_425 = arith.constant 0 : index
    %c1_426 = arith.constant 1 : index
    %c1_427 = arith.constant 1 : index
    %c0_428 = arith.constant 0 : index
    %c0_429 = arith.constant 0 : index
    %379 = vector.load %arg3[%c1_424, %c0_425, %c1_426, %c1_427, %c0_428, %c0_429] : memref<2x2x2x2x8x4xbf16, #tpu.memory_space<vmem>>, vector<1x1x1x1x8x4xbf16>
    %380 = vector.shape_cast %379 : vector<1x1x1x1x8x4xbf16> to vector<8x4xbf16>
    %cst_430 = arith.constant dense<0.000000e+00> : vector<8x16xf32>
    %381 = tpu.matmul %380, %378, %cst_430 {dimension_numbers = #tpu.dot_dimension_numbers<[1], [0], [0], [1], [0, 0, 1, 1], [], []>} : vector<8x4xbf16>, vector<4x16xbf16>, vector<8x16xf32> -> vector<8x16xf32>
    %382 = arith.addf %377, %381 : vector<8x16xf32>
    %cst_431 = arith.constant 0.000000e+00 : f32
    %383 = vector.broadcast %cst_431 : f32 to vector<8x16xf32>
    %384 = vector.extract_strided_slice %294 {offsets = [0, 1], sizes = [4, 16], strides = [1, 1]} : vector<4x18xbf16> to vector<4x16xbf16>
    %c1_432 = arith.constant 1 : index
    %c1_433 = arith.constant 1 : index
    %c0_434 = arith.constant 0 : index
    %c0_435 = arith.constant 0 : index
    %c0_436 = arith.constant 0 : index
    %c0_437 = arith.constant 0 : index
    %385 = vector.load %arg3[%c1_432, %c1_433, %c0_434, %c0_435, %c0_436, %c0_437] : memref<2x2x2x2x8x4xbf16, #tpu.memory_space<vmem>>, vector<1x1x1x1x8x4xbf16>
    %386 = vector.shape_cast %385 : vector<1x1x1x1x8x4xbf16> to vector<8x4xbf16>
    %cst_438 = arith.constant dense<0.000000e+00> : vector<8x16xf32>
    %387 = tpu.matmul %386, %384, %cst_438 {dimension_numbers = #tpu.dot_dimension_numbers<[1], [0], [0], [1], [0, 0, 1, 1], [], []>} : vector<8x4xbf16>, vector<4x16xbf16>, vector<8x16xf32> -> vector<8x16xf32>
    %388 = arith.addf %383, %387 : vector<8x16xf32>
    %389 = vector.extract_strided_slice %294 {offsets = [0, 2], sizes = [4, 16], strides = [1, 1]} : vector<4x18xbf16> to vector<4x16xbf16>
    %c1_439 = arith.constant 1 : index
    %c1_440 = arith.constant 1 : index
    %c0_441 = arith.constant 0 : index
    %c1_442 = arith.constant 1 : index
    %c0_443 = arith.constant 0 : index
    %c0_444 = arith.constant 0 : index
    %390 = vector.load %arg3[%c1_439, %c1_440, %c0_441, %c1_442, %c0_443, %c0_444] : memref<2x2x2x2x8x4xbf16, #tpu.memory_space<vmem>>, vector<1x1x1x1x8x4xbf16>
    %391 = vector.shape_cast %390 : vector<1x1x1x1x8x4xbf16> to vector<8x4xbf16>
    %cst_445 = arith.constant dense<0.000000e+00> : vector<8x16xf32>
    %392 = tpu.matmul %391, %389, %cst_445 {dimension_numbers = #tpu.dot_dimension_numbers<[1], [0], [0], [1], [0, 0, 1, 1], [], []>} : vector<8x4xbf16>, vector<4x16xbf16>, vector<8x16xf32> -> vector<8x16xf32>
    %393 = arith.addf %388, %392 : vector<8x16xf32>
    %394 = vector.extract_strided_slice %299 {offsets = [0, 1], sizes = [4, 16], strides = [1, 1]} : vector<4x18xbf16> to vector<4x16xbf16>
    %c1_446 = arith.constant 1 : index
    %c1_447 = arith.constant 1 : index
    %c1_448 = arith.constant 1 : index
    %c0_449 = arith.constant 0 : index
    %c0_450 = arith.constant 0 : index
    %c0_451 = arith.constant 0 : index
    %395 = vector.load %arg3[%c1_446, %c1_447, %c1_448, %c0_449, %c0_450, %c0_451] : memref<2x2x2x2x8x4xbf16, #tpu.memory_space<vmem>>, vector<1x1x1x1x8x4xbf16>
    %396 = vector.shape_cast %395 : vector<1x1x1x1x8x4xbf16> to vector<8x4xbf16>
    %cst_452 = arith.constant dense<0.000000e+00> : vector<8x16xf32>
    %397 = tpu.matmul %396, %394, %cst_452 {dimension_numbers = #tpu.dot_dimension_numbers<[1], [0], [0], [1], [0, 0, 1, 1], [], []>} : vector<8x4xbf16>, vector<4x16xbf16>, vector<8x16xf32> -> vector<8x16xf32>
    %398 = arith.addf %393, %397 : vector<8x16xf32>
    %399 = vector.extract_strided_slice %299 {offsets = [0, 2], sizes = [4, 16], strides = [1, 1]} : vector<4x18xbf16> to vector<4x16xbf16>
    %c1_453 = arith.constant 1 : index
    %c1_454 = arith.constant 1 : index
    %c1_455 = arith.constant 1 : index
    %c1_456 = arith.constant 1 : index
    %c0_457 = arith.constant 0 : index
    %c0_458 = arith.constant 0 : index
    %400 = vector.load %arg3[%c1_453, %c1_454, %c1_455, %c1_456, %c0_457, %c0_458] : memref<2x2x2x2x8x4xbf16, #tpu.memory_space<vmem>>, vector<1x1x1x1x8x4xbf16>
    %401 = vector.shape_cast %400 : vector<1x1x1x1x8x4xbf16> to vector<8x4xbf16>
    %cst_459 = arith.constant dense<0.000000e+00> : vector<8x16xf32>
    %402 = tpu.matmul %401, %399, %cst_459 {dimension_numbers = #tpu.dot_dimension_numbers<[1], [0], [0], [1], [0, 0, 1, 1], [], []>} : vector<8x4xbf16>, vector<4x16xbf16>, vector<8x16xf32> -> vector<8x16xf32>
    %403 = arith.addf %398, %402 : vector<8x16xf32>
    %c0_460 = arith.constant 0 : index
    %c0_461 = arith.constant 0 : index
    %c0_462 = arith.constant 0 : index
    %404 = vector.load %arg4[%c0_460, %c0_461, %c0_462] : memref<2x16x32xf32, #tpu.memory_space<vmem>>, vector<1x16x32xf32>
    %405 = vector.shape_cast %404 : vector<1x16x32xf32> to vector<16x32xf32>
    %cst_463 = arith.constant dense<0.000000e+00> : vector<8x32xf32>
    %406 = tpu.matmul %382, %405, %cst_463 {dimension_numbers = #tpu.dot_dimension_numbers<[1], [0], [0], [1], [0, 0, 1, 1], [], []>} : vector<8x16xf32>, vector<16x32xf32>, vector<8x32xf32> -> vector<8x32xf32>
    %c1_464 = arith.constant 1 : index
    %c0_465 = arith.constant 0 : index
    %c0_466 = arith.constant 0 : index
    %407 = vector.load %arg4[%c1_464, %c0_465, %c0_466] : memref<2x16x32xf32, #tpu.memory_space<vmem>>, vector<1x16x32xf32>
    %408 = vector.shape_cast %407 : vector<1x16x32xf32> to vector<16x32xf32>
    %cst_467 = arith.constant dense<0.000000e+00> : vector<8x32xf32>
    %409 = tpu.matmul %403, %408, %cst_467 {dimension_numbers = #tpu.dot_dimension_numbers<[1], [0], [0], [1], [0, 0, 1, 1], [], []>} : vector<8x16xf32>, vector<16x32xf32>, vector<8x32xf32> -> vector<8x32xf32>
    %410 = arith.addf %406, %409 : vector<8x32xf32>
    %411 = vector.broadcast %3 : vector<8x1xf32> to vector<8x32xf32>
    %412 = arith.addf %410, %411 : vector<8x32xf32>
    %413 = arith.truncf %412 : vector<8x32xf32> to vector<8x32xbf16>
    %c0_468 = arith.constant 0 : index
    %c0_469 = arith.constant 0 : index
    %c5 = arith.constant 5 : index
    %c0_470 = arith.constant 0 : index
    %414 = vector.load %arg6[%c0_468, %c0_469, %c5, %c0_470] : memref<1x8x16x32xbf16, #tpu.memory_space<vmem>>, vector<1x8x1x32xbf16>
    %415 = vector.shape_cast %414 : vector<1x8x1x32xbf16> to vector<8x32xbf16>
    %416 = vector.shape_cast %413 : vector<8x32xbf16> to vector<1x8x1x32xbf16>
    tpu.vector_store %arg6[%c0_468, %c0_469, %c5, %c0_470], %416 {strides = array<i32>} : memref<1x8x16x32xbf16, #tpu.memory_space<vmem>>, vector<1x8x1x32xbf16>,
    %cst_471 = arith.constant dense<0.000000e+00> : vector<8xf32>
    %417 = vector.multi_reduction <add>, %412, %cst_471 [1] : vector<8x32xf32> to vector<8xf32>
    %418 = vector.shape_cast %417 : vector<8xf32> to vector<8x1xf32>
    %419 = arith.addf %357, %418 : vector<8x1xf32>
    %420 = arith.mulf %412, %412 : vector<8x32xf32>
    %cst_472 = arith.constant dense<0.000000e+00> : vector<8xf32>
    %421 = vector.multi_reduction <add>, %420, %cst_472 [1] : vector<8x32xf32> to vector<8xf32>
    %422 = vector.shape_cast %421 : vector<8xf32> to vector<8x1xf32>
    %423 = arith.addf %361, %422 : vector<8x1xf32>
    %c3_i32 = arith.constant 3 : i32
    %424 = arith.addi %6, %c3_i32 : i32
    %c0_i32_473 = arith.constant 0 : i32
    %425 = arith.addi %424, %c0_i32_473 : i32
    %c0_474 = arith.constant 0 : index
    %426 = arith.index_cast %425 : i32 to index
    %c0_475 = arith.constant 0 : index
    %c0_476 = arith.constant 0 : index
    %427 = vector.load %arg2[%c0_474, %426, %c0_475, %c0_476] : memref<1x18x4x18xbf16, #tpu.memory_space<vmem>>, vector<1x1x4x18xbf16>
    %428 = vector.shape_cast %427 : vector<1x1x4x18xbf16> to vector<4x18xbf16>
    %c3_i32_477 = arith.constant 3 : i32
    %429 = arith.addi %6, %c3_i32_477 : i32
    %c1_i32_478 = arith.constant 1 : i32
    %430 = arith.addi %429, %c1_i32_478 : i32
    %c0_479 = arith.constant 0 : index
    %431 = arith.index_cast %430 : i32 to index
    %c0_480 = arith.constant 0 : index
    %c0_481 = arith.constant 0 : index
    %432 = vector.load %arg2[%c0_479, %431, %c0_480, %c0_481] : memref<1x18x4x18xbf16, #tpu.memory_space<vmem>>, vector<1x1x4x18xbf16>
    %433 = vector.shape_cast %432 : vector<1x1x4x18xbf16> to vector<4x18xbf16>
    %c3_i32_482 = arith.constant 3 : i32
    %434 = arith.addi %6, %c3_i32_482 : i32
    %c2_i32_483 = arith.constant 2 : i32
    %435 = arith.addi %434, %c2_i32_483 : i32
    %c0_484 = arith.constant 0 : index
    %436 = arith.index_cast %435 : i32 to index
    %c0_485 = arith.constant 0 : index
    %c0_486 = arith.constant 0 : index
    %437 = vector.load %arg2[%c0_484, %436, %c0_485, %c0_486] : memref<1x18x4x18xbf16, #tpu.memory_space<vmem>>, vector<1x1x4x18xbf16>
    %438 = vector.shape_cast %437 : vector<1x1x4x18xbf16> to vector<4x18xbf16>
    %cst_487 = arith.constant 0.000000e+00 : f32
    %439 = vector.broadcast %cst_487 : f32 to vector<8x16xf32>
    %440 = vector.extract_strided_slice %428 {offsets = [0, 0], sizes = [4, 16], strides = [1, 1]} : vector<4x18xbf16> to vector<4x16xbf16>
    %c0_488 = arith.constant 0 : index
    %c0_489 = arith.constant 0 : index
    %c0_490 = arith.constant 0 : index
    %c0_491 = arith.constant 0 : index
    %c0_492 = arith.constant 0 : index
    %c0_493 = arith.constant 0 : index
    %441 = vector.load %arg3[%c0_488, %c0_489, %c0_490, %c0_491, %c0_492, %c0_493] : memref<2x2x2x2x8x4xbf16, #tpu.memory_space<vmem>>, vector<1x1x1x1x8x4xbf16>
    %442 = vector.shape_cast %441 : vector<1x1x1x1x8x4xbf16> to vector<8x4xbf16>
    %cst_494 = arith.constant dense<0.000000e+00> : vector<8x16xf32>
    %443 = tpu.matmul %442, %440, %cst_494 {dimension_numbers = #tpu.dot_dimension_numbers<[1], [0], [0], [1], [0, 0, 1, 1], [], []>} : vector<8x4xbf16>, vector<4x16xbf16>, vector<8x16xf32> -> vector<8x16xf32>
    %444 = arith.addf %439, %443 : vector<8x16xf32>
    %445 = vector.extract_strided_slice %428 {offsets = [0, 1], sizes = [4, 16], strides = [1, 1]} : vector<4x18xbf16> to vector<4x16xbf16>
    %c0_495 = arith.constant 0 : index
    %c0_496 = arith.constant 0 : index
    %c0_497 = arith.constant 0 : index
    %c1_498 = arith.constant 1 : index
    %c0_499 = arith.constant 0 : index
    %c0_500 = arith.constant 0 : index
    %446 = vector.load %arg3[%c0_495, %c0_496, %c0_497, %c1_498, %c0_499, %c0_500] : memref<2x2x2x2x8x4xbf16, #tpu.memory_space<vmem>>, vector<1x1x1x1x8x4xbf16>
    %447 = vector.shape_cast %446 : vector<1x1x1x1x8x4xbf16> to vector<8x4xbf16>
    %cst_501 = arith.constant dense<0.000000e+00> : vector<8x16xf32>
    %448 = tpu.matmul %447, %445, %cst_501 {dimension_numbers = #tpu.dot_dimension_numbers<[1], [0], [0], [1], [0, 0, 1, 1], [], []>} : vector<8x4xbf16>, vector<4x16xbf16>, vector<8x16xf32> -> vector<8x16xf32>
    %449 = arith.addf %444, %448 : vector<8x16xf32>
    %450 = vector.extract_strided_slice %433 {offsets = [0, 0], sizes = [4, 16], strides = [1, 1]} : vector<4x18xbf16> to vector<4x16xbf16>
    %c0_502 = arith.constant 0 : index
    %c0_503 = arith.constant 0 : index
    %c1_504 = arith.constant 1 : index
    %c0_505 = arith.constant 0 : index
    %c0_506 = arith.constant 0 : index
    %c0_507 = arith.constant 0 : index
    %451 = vector.load %arg3[%c0_502, %c0_503, %c1_504, %c0_505, %c0_506, %c0_507] : memref<2x2x2x2x8x4xbf16, #tpu.memory_space<vmem>>, vector<1x1x1x1x8x4xbf16>
    %452 = vector.shape_cast %451 : vector<1x1x1x1x8x4xbf16> to vector<8x4xbf16>
    %cst_508 = arith.constant dense<0.000000e+00> : vector<8x16xf32>
    %453 = tpu.matmul %452, %450, %cst_508 {dimension_numbers = #tpu.dot_dimension_numbers<[1], [0], [0], [1], [0, 0, 1, 1], [], []>} : vector<8x4xbf16>, vector<4x16xbf16>, vector<8x16xf32> -> vector<8x16xf32>
    %454 = arith.addf %449, %453 : vector<8x16xf32>
    %455 = vector.extract_strided_slice %433 {offsets = [0, 1], sizes = [4, 16], strides = [1, 1]} : vector<4x18xbf16> to vector<4x16xbf16>
    %c0_509 = arith.constant 0 : index
    %c0_510 = arith.constant 0 : index
    %c1_511 = arith.constant 1 : index
    %c1_512 = arith.constant 1 : index
    %c0_513 = arith.constant 0 : index
    %c0_514 = arith.constant 0 : index
    %456 = vector.load %arg3[%c0_509, %c0_510, %c1_511, %c1_512, %c0_513, %c0_514] : memref<2x2x2x2x8x4xbf16, #tpu.memory_space<vmem>>, vector<1x1x1x1x8x4xbf16>
    %457 = vector.shape_cast %456 : vector<1x1x1x1x8x4xbf16> to vector<8x4xbf16>
    %cst_515 = arith.constant dense<0.000000e+00> : vector<8x16xf32>
    %458 = tpu.matmul %457, %455, %cst_515 {dimension_numbers = #tpu.dot_dimension_numbers<[1], [0], [0], [1], [0, 0, 1, 1], [], []>} : vector<8x4xbf16>, vector<4x16xbf16>, vector<8x16xf32> -> vector<8x16xf32>
    %459 = arith.addf %454, %458 : vector<8x16xf32>
    %cst_516 = arith.constant 0.000000e+00 : f32
    %460 = vector.broadcast %cst_516 : f32 to vector<8x16xf32>
    %461 = vector.extract_strided_slice %428 {offsets = [0, 1], sizes = [4, 16], strides = [1, 1]} : vector<4x18xbf16> to vector<4x16xbf16>
    %c0_517 = arith.constant 0 : index
    %c1_518 = arith.constant 1 : index
    %c0_519 = arith.constant 0 : index
    %c0_520 = arith.constant 0 : index
    %c0_521 = arith.constant 0 : index
    %c0_522 = arith.constant 0 : index
    %462 = vector.load %arg3[%c0_517, %c1_518, %c0_519, %c0_520, %c0_521, %c0_522] : memref<2x2x2x2x8x4xbf16, #tpu.memory_space<vmem>>, vector<1x1x1x1x8x4xbf16>
    %463 = vector.shape_cast %462 : vector<1x1x1x1x8x4xbf16> to vector<8x4xbf16>
    %cst_523 = arith.constant dense<0.000000e+00> : vector<8x16xf32>
    %464 = tpu.matmul %463, %461, %cst_523 {dimension_numbers = #tpu.dot_dimension_numbers<[1], [0], [0], [1], [0, 0, 1, 1], [], []>} : vector<8x4xbf16>, vector<4x16xbf16>, vector<8x16xf32> -> vector<8x16xf32>
    %465 = arith.addf %460, %464 : vector<8x16xf32>
    %466 = vector.extract_strided_slice %428 {offsets = [0, 2], sizes = [4, 16], strides = [1, 1]} : vector<4x18xbf16> to vector<4x16xbf16>
    %c0_524 = arith.constant 0 : index
    %c1_525 = arith.constant 1 : index
    %c0_526 = arith.constant 0 : index
    %c1_527 = arith.constant 1 : index
    %c0_528 = arith.constant 0 : index
    %c0_529 = arith.constant 0 : index
    %467 = vector.load %arg3[%c0_524, %c1_525, %c0_526, %c1_527, %c0_528, %c0_529] : memref<2x2x2x2x8x4xbf16, #tpu.memory_space<vmem>>, vector<1x1x1x1x8x4xbf16>
    %468 = vector.shape_cast %467 : vector<1x1x1x1x8x4xbf16> to vector<8x4xbf16>
    %cst_530 = arith.constant dense<0.000000e+00> : vector<8x16xf32>
    %469 = tpu.matmul %468, %466, %cst_530 {dimension_numbers = #tpu.dot_dimension_numbers<[1], [0], [0], [1], [0, 0, 1, 1], [], []>} : vector<8x4xbf16>, vector<4x16xbf16>, vector<8x16xf32> -> vector<8x16xf32>
    %470 = arith.addf %465, %469 : vector<8x16xf32>
    %471 = vector.extract_strided_slice %433 {offsets = [0, 1], sizes = [4, 16], strides = [1, 1]} : vector<4x18xbf16> to vector<4x16xbf16>
    %c0_531 = arith.constant 0 : index
    %c1_532 = arith.constant 1 : index
    %c1_533 = arith.constant 1 : index
    %c0_534 = arith.constant 0 : index
    %c0_535 = arith.constant 0 : index
    %c0_536 = arith.constant 0 : index
    %472 = vector.load %arg3[%c0_531, %c1_532, %c1_533, %c0_534, %c0_535, %c0_536] : memref<2x2x2x2x8x4xbf16, #tpu.memory_space<vmem>>, vector<1x1x1x1x8x4xbf16>
    %473 = vector.shape_cast %472 : vector<1x1x1x1x8x4xbf16> to vector<8x4xbf16>
    %cst_537 = arith.constant dense<0.000000e+00> : vector<8x16xf32>
    %474 = tpu.matmul %473, %471, %cst_537 {dimension_numbers = #tpu.dot_dimension_numbers<[1], [0], [0], [1], [0, 0, 1, 1], [], []>} : vector<8x4xbf16>, vector<4x16xbf16>, vector<8x16xf32> -> vector<8x16xf32>
    %475 = arith.addf %470, %474 : vector<8x16xf32>
    %476 = vector.extract_strided_slice %433 {offsets = [0, 2], sizes = [4, 16], strides = [1, 1]} : vector<4x18xbf16> to vector<4x16xbf16>
    %c0_538 = arith.constant 0 : index
    %c1_539 = arith.constant 1 : index
    %c1_540 = arith.constant 1 : index
    %c1_541 = arith.constant 1 : index
    %c0_542 = arith.constant 0 : index
    %c0_543 = arith.constant 0 : index
    %477 = vector.load %arg3[%c0_538, %c1_539, %c1_540, %c1_541, %c0_542, %c0_543] : memref<2x2x2x2x8x4xbf16, #tpu.memory_space<vmem>>, vector<1x1x1x1x8x4xbf16>
    %478 = vector.shape_cast %477 : vector<1x1x1x1x8x4xbf16> to vector<8x4xbf16>
    %cst_544 = arith.constant dense<0.000000e+00> : vector<8x16xf32>
    %479 = tpu.matmul %478, %476, %cst_544 {dimension_numbers = #tpu.dot_dimension_numbers<[1], [0], [0], [1], [0, 0, 1, 1], [], []>} : vector<8x4xbf16>, vector<4x16xbf16>, vector<8x16xf32> -> vector<8x16xf32>
    %480 = arith.addf %475, %479 : vector<8x16xf32>
    %c0_545 = arith.constant 0 : index
    %c0_546 = arith.constant 0 : index
    %c0_547 = arith.constant 0 : index
    %481 = vector.load %arg4[%c0_545, %c0_546, %c0_547] : memref<2x16x32xf32, #tpu.memory_space<vmem>>, vector<1x16x32xf32>
    %482 = vector.shape_cast %481 : vector<1x16x32xf32> to vector<16x32xf32>
    %cst_548 = arith.constant dense<0.000000e+00> : vector<8x32xf32>
    %483 = tpu.matmul %459, %482, %cst_548 {dimension_numbers = #tpu.dot_dimension_numbers<[1], [0], [0], [1], [0, 0, 1, 1], [], []>} : vector<8x16xf32>, vector<16x32xf32>, vector<8x32xf32> -> vector<8x32xf32>
    %c1_549 = arith.constant 1 : index
    %c0_550 = arith.constant 0 : index
    %c0_551 = arith.constant 0 : index
    %484 = vector.load %arg4[%c1_549, %c0_550, %c0_551] : memref<2x16x32xf32, #tpu.memory_space<vmem>>, vector<1x16x32xf32>
    %485 = vector.shape_cast %484 : vector<1x16x32xf32> to vector<16x32xf32>
    %cst_552 = arith.constant dense<0.000000e+00> : vector<8x32xf32>
    %486 = tpu.matmul %480, %485, %cst_552 {dimension_numbers = #tpu.dot_dimension_numbers<[1], [0], [0], [1], [0, 0, 1, 1], [], []>} : vector<8x16xf32>, vector<16x32xf32>, vector<8x32xf32> -> vector<8x32xf32>
    %487 = arith.addf %483, %486 : vector<8x32xf32>
    %488 = vector.broadcast %3 : vector<8x1xf32> to vector<8x32xf32>
    %489 = arith.addf %487, %488 : vector<8x32xf32>
    %490 = arith.truncf %489 : vector<8x32xf32> to vector<8x32xbf16>
    %c0_553 = arith.constant 0 : index
    %c0_554 = arith.constant 0 : index
    %c6 = arith.constant 6 : index
    %c0_555 = arith.constant 0 : index
    %491 = vector.load %arg6[%c0_553, %c0_554, %c6, %c0_555] : memref<1x8x16x32xbf16, #tpu.memory_space<vmem>>, vector<1x8x1x32xbf16>
    %492 = vector.shape_cast %491 : vector<1x8x1x32xbf16> to vector<8x32xbf16>
    %493 = vector.shape_cast %490 : vector<8x32xbf16> to vector<1x8x1x32xbf16>
    tpu.vector_store %arg6[%c0_553, %c0_554, %c6, %c0_555], %493 {strides = array<i32>} : memref<1x8x16x32xbf16, #tpu.memory_space<vmem>>, vector<1x8x1x32xbf16>,
    %cst_556 = arith.constant dense<0.000000e+00> : vector<8xf32>
    %494 = vector.multi_reduction <add>, %489, %cst_556 [1] : vector<8x32xf32> to vector<8xf32>
    %495 = vector.shape_cast %494 : vector<8xf32> to vector<8x1xf32>
    %496 = arith.addf %419, %495 : vector<8x1xf32>
    %497 = arith.mulf %489, %489 : vector<8x32xf32>
    %cst_557 = arith.constant dense<0.000000e+00> : vector<8xf32>
    %498 = vector.multi_reduction <add>, %497, %cst_557 [1] : vector<8x32xf32> to vector<8xf32>
    %499 = vector.shape_cast %498 : vector<8xf32> to vector<8x1xf32>
    %500 = arith.addf %423, %499 : vector<8x1xf32>
    %cst_558 = arith.constant 0.000000e+00 : f32
    %501 = vector.broadcast %cst_558 : f32 to vector<8x16xf32>
    %502 = vector.extract_strided_slice %433 {offsets = [0, 0], sizes = [4, 16], strides = [1, 1]} : vector<4x18xbf16> to vector<4x16xbf16>
    %c1_559 = arith.constant 1 : index
    %c0_560 = arith.constant 0 : index
    %c0_561 = arith.constant 0 : index
    %c0_562 = arith.constant 0 : index
    %c0_563 = arith.constant 0 : index
    %c0_564 = arith.constant 0 : index
    %503 = vector.load %arg3[%c1_559, %c0_560, %c0_561, %c0_562, %c0_563, %c0_564] : memref<2x2x2x2x8x4xbf16, #tpu.memory_space<vmem>>, vector<1x1x1x1x8x4xbf16>
    %504 = vector.shape_cast %503 : vector<1x1x1x1x8x4xbf16> to vector<8x4xbf16>
    %cst_565 = arith.constant dense<0.000000e+00> : vector<8x16xf32>
    %505 = tpu.matmul %504, %502, %cst_565 {dimension_numbers = #tpu.dot_dimension_numbers<[1], [0], [0], [1], [0, 0, 1, 1], [], []>} : vector<8x4xbf16>, vector<4x16xbf16>, vector<8x16xf32> -> vector<8x16xf32>
    %506 = arith.addf %501, %505 : vector<8x16xf32>
    %507 = vector.extract_strided_slice %433 {offsets = [0, 1], sizes = [4, 16], strides = [1, 1]} : vector<4x18xbf16> to vector<4x16xbf16>
    %c1_566 = arith.constant 1 : index
    %c0_567 = arith.constant 0 : index
    %c0_568 = arith.constant 0 : index
    %c1_569 = arith.constant 1 : index
    %c0_570 = arith.constant 0 : index
    %c0_571 = arith.constant 0 : index
    %508 = vector.load %arg3[%c1_566, %c0_567, %c0_568, %c1_569, %c0_570, %c0_571] : memref<2x2x2x2x8x4xbf16, #tpu.memory_space<vmem>>, vector<1x1x1x1x8x4xbf16>
    %509 = vector.shape_cast %508 : vector<1x1x1x1x8x4xbf16> to vector<8x4xbf16>
    %cst_572 = arith.constant dense<0.000000e+00> : vector<8x16xf32>
    %510 = tpu.matmul %509, %507, %cst_572 {dimension_numbers = #tpu.dot_dimension_numbers<[1], [0], [0], [1], [0, 0, 1, 1], [], []>} : vector<8x4xbf16>, vector<4x16xbf16>, vector<8x16xf32> -> vector<8x16xf32>
    %511 = arith.addf %506, %510 : vector<8x16xf32>
    %512 = vector.extract_strided_slice %438 {offsets = [0, 0], sizes = [4, 16], strides = [1, 1]} : vector<4x18xbf16> to vector<4x16xbf16>
    %c1_573 = arith.constant 1 : index
    %c0_574 = arith.constant 0 : index
    %c1_575 = arith.constant 1 : index
    %c0_576 = arith.constant 0 : index
    %c0_577 = arith.constant 0 : index
    %c0_578 = arith.constant 0 : index
    %513 = vector.load %arg3[%c1_573, %c0_574, %c1_575, %c0_576, %c0_577, %c0_578] : memref<2x2x2x2x8x4xbf16, #tpu.memory_space<vmem>>, vector<1x1x1x1x8x4xbf16>
    %514 = vector.shape_cast %513 : vector<1x1x1x1x8x4xbf16> to vector<8x4xbf16>
    %cst_579 = arith.constant dense<0.000000e+00> : vector<8x16xf32>
    %515 = tpu.matmul %514, %512, %cst_579 {dimension_numbers = #tpu.dot_dimension_numbers<[1], [0], [0], [1], [0, 0, 1, 1], [], []>} : vector<8x4xbf16>, vector<4x16xbf16>, vector<8x16xf32> -> vector<8x16xf32>
    %516 = arith.addf %511, %515 : vector<8x16xf32>
    %517 = vector.extract_strided_slice %438 {offsets = [0, 1], sizes = [4, 16], strides = [1, 1]} : vector<4x18xbf16> to vector<4x16xbf16>
    %c1_580 = arith.constant 1 : index
    %c0_581 = arith.constant 0 : index
    %c1_582 = arith.constant 1 : index
    %c1_583 = arith.constant 1 : index
    %c0_584 = arith.constant 0 : index
    %c0_585 = arith.constant 0 : index
    %518 = vector.load %arg3[%c1_580, %c0_581, %c1_582, %c1_583, %c0_584, %c0_585] : memref<2x2x2x2x8x4xbf16, #tpu.memory_space<vmem>>, vector<1x1x1x1x8x4xbf16>
    %519 = vector.shape_cast %518 : vector<1x1x1x1x8x4xbf16> to vector<8x4xbf16>
    %cst_586 = arith.constant dense<0.000000e+00> : vector<8x16xf32>
    %520 = tpu.matmul %519, %517, %cst_586 {dimension_numbers = #tpu.dot_dimension_numbers<[1], [0], [0], [1], [0, 0, 1, 1], [], []>} : vector<8x4xbf16>, vector<4x16xbf16>, vector<8x16xf32> -> vector<8x16xf32>
    %521 = arith.addf %516, %520 : vector<8x16xf32>
    %cst_587 = arith.constant 0.000000e+00 : f32
    %522 = vector.broadcast %cst_587 : f32 to vector<8x16xf32>
    %523 = vector.extract_strided_slice %433 {offsets = [0, 1], sizes = [4, 16], strides = [1, 1]} : vector<4x18xbf16> to vector<4x16xbf16>
    %c1_588 = arith.constant 1 : index
    %c1_589 = arith.constant 1 : index
    %c0_590 = arith.constant 0 : index
    %c0_591 = arith.constant 0 : index
    %c0_592 = arith.constant 0 : index
    %c0_593 = arith.constant 0 : index
    %524 = vector.load %arg3[%c1_588, %c1_589, %c0_590, %c0_591, %c0_592, %c0_593] : memref<2x2x2x2x8x4xbf16, #tpu.memory_space<vmem>>, vector<1x1x1x1x8x4xbf16>
    %525 = vector.shape_cast %524 : vector<1x1x1x1x8x4xbf16> to vector<8x4xbf16>
    %cst_594 = arith.constant dense<0.000000e+00> : vector<8x16xf32>
    %526 = tpu.matmul %525, %523, %cst_594 {dimension_numbers = #tpu.dot_dimension_numbers<[1], [0], [0], [1], [0, 0, 1, 1], [], []>} : vector<8x4xbf16>, vector<4x16xbf16>, vector<8x16xf32> -> vector<8x16xf32>
    %527 = arith.addf %522, %526 : vector<8x16xf32>
    %528 = vector.extract_strided_slice %433 {offsets = [0, 2], sizes = [4, 16], strides = [1, 1]} : vector<4x18xbf16> to vector<4x16xbf16>
    %c1_595 = arith.constant 1 : index
    %c1_596 = arith.constant 1 : index
    %c0_597 = arith.constant 0 : index
    %c1_598 = arith.constant 1 : index
    %c0_599 = arith.constant 0 : index
    %c0_600 = arith.constant 0 : index
    %529 = vector.load %arg3[%c1_595, %c1_596, %c0_597, %c1_598, %c0_599, %c0_600] : memref<2x2x2x2x8x4xbf16, #tpu.memory_space<vmem>>, vector<1x1x1x1x8x4xbf16>
    %530 = vector.shape_cast %529 : vector<1x1x1x1x8x4xbf16> to vector<8x4xbf16>
    %cst_601 = arith.constant dense<0.000000e+00> : vector<8x16xf32>
    %531 = tpu.matmul %530, %528, %cst_601 {dimension_numbers = #tpu.dot_dimension_numbers<[1], [0], [0], [1], [0, 0, 1, 1], [], []>} : vector<8x4xbf16>, vector<4x16xbf16>, vector<8x16xf32> -> vector<8x16xf32>
    %532 = arith.addf %527, %531 : vector<8x16xf32>
    %533 = vector.extract_strided_slice %438 {offsets = [0, 1], sizes = [4, 16], strides = [1, 1]} : vector<4x18xbf16> to vector<4x16xbf16>
    %c1_602 = arith.constant 1 : index
    %c1_603 = arith.constant 1 : index
    %c1_604 = arith.constant 1 : index
    %c0_605 = arith.constant 0 : index
    %c0_606 = arith.constant 0 : index
    %c0_607 = arith.constant 0 : index
    %534 = vector.load %arg3[%c1_602, %c1_603, %c1_604, %c0_605, %c0_606, %c0_607] : memref<2x2x2x2x8x4xbf16, #tpu.memory_space<vmem>>, vector<1x1x1x1x8x4xbf16>
    %535 = vector.shape_cast %534 : vector<1x1x1x1x8x4xbf16> to vector<8x4xbf16>
    %cst_608 = arith.constant dense<0.000000e+00> : vector<8x16xf32>
    %536 = tpu.matmul %535, %533, %cst_608 {dimension_numbers = #tpu.dot_dimension_numbers<[1], [0], [0], [1], [0, 0, 1, 1], [], []>} : vector<8x4xbf16>, vector<4x16xbf16>, vector<8x16xf32> -> vector<8x16xf32>
    %537 = arith.addf %532, %536 : vector<8x16xf32>
    %538 = vector.extract_strided_slice %438 {offsets = [0, 2], sizes = [4, 16], strides = [1, 1]} : vector<4x18xbf16> to vector<4x16xbf16>
    %c1_609 = arith.constant 1 : index
    %c1_610 = arith.constant 1 : index
    %c1_611 = arith.constant 1 : index
    %c1_612 = arith.constant 1 : index
    %c0_613 = arith.constant 0 : index
    %c0_614 = arith.constant 0 : index
    %539 = vector.load %arg3[%c1_609, %c1_610, %c1_611, %c1_612, %c0_613, %c0_614] : memref<2x2x2x2x8x4xbf16, #tpu.memory_space<vmem>>, vector<1x1x1x1x8x4xbf16>
    %540 = vector.shape_cast %539 : vector<1x1x1x1x8x4xbf16> to vector<8x4xbf16>
    %cst_615 = arith.constant dense<0.000000e+00> : vector<8x16xf32>
    %541 = tpu.matmul %540, %538, %cst_615 {dimension_numbers = #tpu.dot_dimension_numbers<[1], [0], [0], [1], [0, 0, 1, 1], [], []>} : vector<8x4xbf16>, vector<4x16xbf16>, vector<8x16xf32> -> vector<8x16xf32>
    %542 = arith.addf %537, %541 : vector<8x16xf32>
    %c0_616 = arith.constant 0 : index
    %c0_617 = arith.constant 0 : index
    %c0_618 = arith.constant 0 : index
    %543 = vector.load %arg4[%c0_616, %c0_617, %c0_618] : memref<2x16x32xf32, #tpu.memory_space<vmem>>, vector<1x16x32xf32>
    %544 = vector.shape_cast %543 : vector<1x16x32xf32> to vector<16x32xf32>
    %cst_619 = arith.constant dense<0.000000e+00> : vector<8x32xf32>
    %545 = tpu.matmul %521, %544, %cst_619 {dimension_numbers = #tpu.dot_dimension_numbers<[1], [0], [0], [1], [0, 0, 1, 1], [], []>} : vector<8x16xf32>, vector<16x32xf32>, vector<8x32xf32> -> vector<8x32xf32>
    %c1_620 = arith.constant 1 : index
    %c0_621 = arith.constant 0 : index
    %c0_622 = arith.constant 0 : index
    %546 = vector.load %arg4[%c1_620, %c0_621, %c0_622] : memref<2x16x32xf32, #tpu.memory_space<vmem>>, vector<1x16x32xf32>
    %547 = vector.shape_cast %546 : vector<1x16x32xf32> to vector<16x32xf32>
    %cst_623 = arith.constant dense<0.000000e+00> : vector<8x32xf32>
    %548 = tpu.matmul %542, %547, %cst_623 {dimension_numbers = #tpu.dot_dimension_numbers<[1], [0], [0], [1], [0, 0, 1, 1], [], []>} : vector<8x16xf32>, vector<16x32xf32>, vector<8x32xf32> -> vector<8x32xf32>
    %549 = arith.addf %545, %548 : vector<8x32xf32>
    %550 = vector.broadcast %3 : vector<8x1xf32> to vector<8x32xf32>
    %551 = arith.addf %549, %550 : vector<8x32xf32>
    %552 = arith.truncf %551 : vector<8x32xf32> to vector<8x32xbf16>
    %c0_624 = arith.constant 0 : index
    %c0_625 = arith.constant 0 : index
    %c7 = arith.constant 7 : index
    %c0_626 = arith.constant 0 : index
    %553 = vector.load %arg6[%c0_624, %c0_625, %c7, %c0_626] : memref<1x8x16x32xbf16, #tpu.memory_space<vmem>>, vector<1x8x1x32xbf16>
    %554 = vector.shape_cast %553 : vector<1x8x1x32xbf16> to vector<8x32xbf16>
    %555 = vector.shape_cast %552 : vector<8x32xbf16> to vector<1x8x1x32xbf16>
    tpu.vector_store %arg6[%c0_624, %c0_625, %c7, %c0_626], %555 {strides = array<i32>} : memref<1x8x16x32xbf16, #tpu.memory_space<vmem>>, vector<1x8x1x32xbf16>,
    %cst_627 = arith.constant dense<0.000000e+00> : vector<8xf32>
    %556 = vector.multi_reduction <add>, %551, %cst_627 [1] : vector<8x32xf32> to vector<8xf32>
    %557 = vector.shape_cast %556 : vector<8xf32> to vector<8x1xf32>
    %558 = arith.addf %496, %557 : vector<8x1xf32>
    %559 = arith.mulf %551, %551 : vector<8x32xf32>
    %cst_628 = arith.constant dense<0.000000e+00> : vector<8xf32>
    %560 = vector.multi_reduction <add>, %559, %cst_628 [1] : vector<8x32xf32> to vector<8xf32>
    %561 = vector.shape_cast %560 : vector<8xf32> to vector<8x1xf32>
    %562 = arith.addf %500, %561 : vector<8x1xf32>
    %c4_i32 = arith.constant 4 : i32
    %563 = arith.addi %6, %c4_i32 : i32
    %c0_i32_629 = arith.constant 0 : i32
    %564 = arith.addi %563, %c0_i32_629 : i32
    %c0_630 = arith.constant 0 : index
    %565 = arith.index_cast %564 : i32 to index
    %c0_631 = arith.constant 0 : index
    %c0_632 = arith.constant 0 : index
    %566 = vector.load %arg2[%c0_630, %565, %c0_631, %c0_632] : memref<1x18x4x18xbf16, #tpu.memory_space<vmem>>, vector<1x1x4x18xbf16>
    %567 = vector.shape_cast %566 : vector<1x1x4x18xbf16> to vector<4x18xbf16>
    %c4_i32_633 = arith.constant 4 : i32
    %568 = arith.addi %6, %c4_i32_633 : i32
    %c1_i32_634 = arith.constant 1 : i32
    %569 = arith.addi %568, %c1_i32_634 : i32
    %c0_635 = arith.constant 0 : index
    %570 = arith.index_cast %569 : i32 to index
    %c0_636 = arith.constant 0 : index
    %c0_637 = arith.constant 0 : index
    %571 = vector.load %arg2[%c0_635, %570, %c0_636, %c0_637] : memref<1x18x4x18xbf16, #tpu.memory_space<vmem>>, vector<1x1x4x18xbf16>
    %572 = vector.shape_cast %571 : vector<1x1x4x18xbf16> to vector<4x18xbf16>
    %c4_i32_638 = arith.constant 4 : i32
    %573 = arith.addi %6, %c4_i32_638 : i32
    %c2_i32_639 = arith.constant 2 : i32
    %574 = arith.addi %573, %c2_i32_639 : i32
    %c0_640 = arith.constant 0 : index
    %575 = arith.index_cast %574 : i32 to index
    %c0_641 = arith.constant 0 : index
    %c0_642 = arith.constant 0 : index
    %576 = vector.load %arg2[%c0_640, %575, %c0_641, %c0_642] : memref<1x18x4x18xbf16, #tpu.memory_space<vmem>>, vector<1x1x4x18xbf16>
    %577 = vector.shape_cast %576 : vector<1x1x4x18xbf16> to vector<4x18xbf16>
    %cst_643 = arith.constant 0.000000e+00 : f32
    %578 = vector.broadcast %cst_643 : f32 to vector<8x16xf32>
    %579 = vector.extract_strided_slice %567 {offsets = [0, 0], sizes = [4, 16], strides = [1, 1]} : vector<4x18xbf16> to vector<4x16xbf16>
    %c0_644 = arith.constant 0 : index
    %c0_645 = arith.constant 0 : index
    %c0_646 = arith.constant 0 : index
    %c0_647 = arith.constant 0 : index
    %c0_648 = arith.constant 0 : index
    %c0_649 = arith.constant 0 : index
    %580 = vector.load %arg3[%c0_644, %c0_645, %c0_646, %c0_647, %c0_648, %c0_649] : memref<2x2x2x2x8x4xbf16, #tpu.memory_space<vmem>>, vector<1x1x1x1x8x4xbf16>
    %581 = vector.shape_cast %580 : vector<1x1x1x1x8x4xbf16> to vector<8x4xbf16>
    %cst_650 = arith.constant dense<0.000000e+00> : vector<8x16xf32>
    %582 = tpu.matmul %581, %579, %cst_650 {dimension_numbers = #tpu.dot_dimension_numbers<[1], [0], [0], [1], [0, 0, 1, 1], [], []>} : vector<8x4xbf16>, vector<4x16xbf16>, vector<8x16xf32> -> vector<8x16xf32>
    %583 = arith.addf %578, %582 : vector<8x16xf32>
    %584 = vector.extract_strided_slice %567 {offsets = [0, 1], sizes = [4, 16], strides = [1, 1]} : vector<4x18xbf16> to vector<4x16xbf16>
    %c0_651 = arith.constant 0 : index
    %c0_652 = arith.constant 0 : index
    %c0_653 = arith.constant 0 : index
    %c1_654 = arith.constant 1 : index
    %c0_655 = arith.constant 0 : index
    %c0_656 = arith.constant 0 : index
    %585 = vector.load %arg3[%c0_651, %c0_652, %c0_653, %c1_654, %c0_655, %c0_656] : memref<2x2x2x2x8x4xbf16, #tpu.memory_space<vmem>>, vector<1x1x1x1x8x4xbf16>
    %586 = vector.shape_cast %585 : vector<1x1x1x1x8x4xbf16> to vector<8x4xbf16>
    %cst_657 = arith.constant dense<0.000000e+00> : vector<8x16xf32>
    %587 = tpu.matmul %586, %584, %cst_657 {dimension_numbers = #tpu.dot_dimension_numbers<[1], [0], [0], [1], [0, 0, 1, 1], [], []>} : vector<8x4xbf16>, vector<4x16xbf16>, vector<8x16xf32> -> vector<8x16xf32>
    %588 = arith.addf %583, %587 : vector<8x16xf32>
    %589 = vector.extract_strided_slice %572 {offsets = [0, 0], sizes = [4, 16], strides = [1, 1]} : vector<4x18xbf16> to vector<4x16xbf16>
    %c0_658 = arith.constant 0 : index
    %c0_659 = arith.constant 0 : index
    %c1_660 = arith.constant 1 : index
    %c0_661 = arith.constant 0 : index
    %c0_662 = arith.constant 0 : index
    %c0_663 = arith.constant 0 : index
    %590 = vector.load %arg3[%c0_658, %c0_659, %c1_660, %c0_661, %c0_662, %c0_663] : memref<2x2x2x2x8x4xbf16, #tpu.memory_space<vmem>>, vector<1x1x1x1x8x4xbf16>
    %591 = vector.shape_cast %590 : vector<1x1x1x1x8x4xbf16> to vector<8x4xbf16>
    %cst_664 = arith.constant dense<0.000000e+00> : vector<8x16xf32>
    %592 = tpu.matmul %591, %589, %cst_664 {dimension_numbers = #tpu.dot_dimension_numbers<[1], [0], [0], [1], [0, 0, 1, 1], [], []>} : vector<8x4xbf16>, vector<4x16xbf16>, vector<8x16xf32> -> vector<8x16xf32>
    %593 = arith.addf %588, %592 : vector<8x16xf32>
    %594 = vector.extract_strided_slice %572 {offsets = [0, 1], sizes = [4, 16], strides = [1, 1]} : vector<4x18xbf16> to vector<4x16xbf16>
    %c0_665 = arith.constant 0 : index
    %c0_666 = arith.constant 0 : index
    %c1_667 = arith.constant 1 : index
    %c1_668 = arith.constant 1 : index
    %c0_669 = arith.constant 0 : index
    %c0_670 = arith.constant 0 : index
    %595 = vector.load %arg3[%c0_665, %c0_666, %c1_667, %c1_668, %c0_669, %c0_670] : memref<2x2x2x2x8x4xbf16, #tpu.memory_space<vmem>>, vector<1x1x1x1x8x4xbf16>
    %596 = vector.shape_cast %595 : vector<1x1x1x1x8x4xbf16> to vector<8x4xbf16>
    %cst_671 = arith.constant dense<0.000000e+00> : vector<8x16xf32>
    %597 = tpu.matmul %596, %594, %cst_671 {dimension_numbers = #tpu.dot_dimension_numbers<[1], [0], [0], [1], [0, 0, 1, 1], [], []>} : vector<8x4xbf16>, vector<4x16xbf16>, vector<8x16xf32> -> vector<8x16xf32>
    %598 = arith.addf %593, %597 : vector<8x16xf32>
    %cst_672 = arith.constant 0.000000e+00 : f32
    %599 = vector.broadcast %cst_672 : f32 to vector<8x16xf32>
    %600 = vector.extract_strided_slice %567 {offsets = [0, 1], sizes = [4, 16], strides = [1, 1]} : vector<4x18xbf16> to vector<4x16xbf16>
    %c0_673 = arith.constant 0 : index
    %c1_674 = arith.constant 1 : index
    %c0_675 = arith.constant 0 : index
    %c0_676 = arith.constant 0 : index
    %c0_677 = arith.constant 0 : index
    %c0_678 = arith.constant 0 : index
    %601 = vector.load %arg3[%c0_673, %c1_674, %c0_675, %c0_676, %c0_677, %c0_678] : memref<2x2x2x2x8x4xbf16, #tpu.memory_space<vmem>>, vector<1x1x1x1x8x4xbf16>
    %602 = vector.shape_cast %601 : vector<1x1x1x1x8x4xbf16> to vector<8x4xbf16>
    %cst_679 = arith.constant dense<0.000000e+00> : vector<8x16xf32>
    %603 = tpu.matmul %602, %600, %cst_679 {dimension_numbers = #tpu.dot_dimension_numbers<[1], [0], [0], [1], [0, 0, 1, 1], [], []>} : vector<8x4xbf16>, vector<4x16xbf16>, vector<8x16xf32> -> vector<8x16xf32>
    %604 = arith.addf %599, %603 : vector<8x16xf32>
    %605 = vector.extract_strided_slice %567 {offsets = [0, 2], sizes = [4, 16], strides = [1, 1]} : vector<4x18xbf16> to vector<4x16xbf16>
    %c0_680 = arith.constant 0 : index
    %c1_681 = arith.constant 1 : index
    %c0_682 = arith.constant 0 : index
    %c1_683 = arith.constant 1 : index
    %c0_684 = arith.constant 0 : index
    %c0_685 = arith.constant 0 : index
    %606 = vector.load %arg3[%c0_680, %c1_681, %c0_682, %c1_683, %c0_684, %c0_685] : memref<2x2x2x2x8x4xbf16, #tpu.memory_space<vmem>>, vector<1x1x1x1x8x4xbf16>
    %607 = vector.shape_cast %606 : vector<1x1x1x1x8x4xbf16> to vector<8x4xbf16>
    %cst_686 = arith.constant dense<0.000000e+00> : vector<8x16xf32>
    %608 = tpu.matmul %607, %605, %cst_686 {dimension_numbers = #tpu.dot_dimension_numbers<[1], [0], [0], [1], [0, 0, 1, 1], [], []>} : vector<8x4xbf16>, vector<4x16xbf16>, vector<8x16xf32> -> vector<8x16xf32>
    %609 = arith.addf %604, %608 : vector<8x16xf32>
    %610 = vector.extract_strided_slice %572 {offsets = [0, 1], sizes = [4, 16], strides = [1, 1]} : vector<4x18xbf16> to vector<4x16xbf16>
    %c0_687 = arith.constant 0 : index
    %c1_688 = arith.constant 1 : index
    %c1_689 = arith.constant 1 : index
    %c0_690 = arith.constant 0 : index
    %c0_691 = arith.constant 0 : index
    %c0_692 = arith.constant 0 : index
    %611 = vector.load %arg3[%c0_687, %c1_688, %c1_689, %c0_690, %c0_691, %c0_692] : memref<2x2x2x2x8x4xbf16, #tpu.memory_space<vmem>>, vector<1x1x1x1x8x4xbf16>
    %612 = vector.shape_cast %611 : vector<1x1x1x1x8x4xbf16> to vector<8x4xbf16>
    %cst_693 = arith.constant dense<0.000000e+00> : vector<8x16xf32>
    %613 = tpu.matmul %612, %610, %cst_693 {dimension_numbers = #tpu.dot_dimension_numbers<[1], [0], [0], [1], [0, 0, 1, 1], [], []>} : vector<8x4xbf16>, vector<4x16xbf16>, vector<8x16xf32> -> vector<8x16xf32>
    %614 = arith.addf %609, %613 : vector<8x16xf32>
    %615 = vector.extract_strided_slice %572 {offsets = [0, 2], sizes = [4, 16], strides = [1, 1]} : vector<4x18xbf16> to vector<4x16xbf16>
    %c0_694 = arith.constant 0 : index
    %c1_695 = arith.constant 1 : index
    %c1_696 = arith.constant 1 : index
    %c1_697 = arith.constant 1 : index
    %c0_698 = arith.constant 0 : index
    %c0_699 = arith.constant 0 : index
    %616 = vector.load %arg3[%c0_694, %c1_695, %c1_696, %c1_697, %c0_698, %c0_699] : memref<2x2x2x2x8x4xbf16, #tpu.memory_space<vmem>>, vector<1x1x1x1x8x4xbf16>
    %617 = vector.shape_cast %616 : vector<1x1x1x1x8x4xbf16> to vector<8x4xbf16>
    %cst_700 = arith.constant dense<0.000000e+00> : vector<8x16xf32>
    %618 = tpu.matmul %617, %615, %cst_700 {dimension_numbers = #tpu.dot_dimension_numbers<[1], [0], [0], [1], [0, 0, 1, 1], [], []>} : vector<8x4xbf16>, vector<4x16xbf16>, vector<8x16xf32> -> vector<8x16xf32>
    %619 = arith.addf %614, %618 : vector<8x16xf32>
    %c0_701 = arith.constant 0 : index
    %c0_702 = arith.constant 0 : index
    %c0_703 = arith.constant 0 : index
    %620 = vector.load %arg4[%c0_701, %c0_702, %c0_703] : memref<2x16x32xf32, #tpu.memory_space<vmem>>, vector<1x16x32xf32>
    %621 = vector.shape_cast %620 : vector<1x16x32xf32> to vector<16x32xf32>
    %cst_704 = arith.constant dense<0.000000e+00> : vector<8x32xf32>
    %622 = tpu.matmul %598, %621, %cst_704 {dimension_numbers = #tpu.dot_dimension_numbers<[1], [0], [0], [1], [0, 0, 1, 1], [], []>} : vector<8x16xf32>, vector<16x32xf32>, vector<8x32xf32> -> vector<8x32xf32>
    %c1_705 = arith.constant 1 : index
    %c0_706 = arith.constant 0 : index
    %c0_707 = arith.constant 0 : index
    %623 = vector.load %arg4[%c1_705, %c0_706, %c0_707] : memref<2x16x32xf32, #tpu.memory_space<vmem>>, vector<1x16x32xf32>
    %624 = vector.shape_cast %623 : vector<1x16x32xf32> to vector<16x32xf32>
    %cst_708 = arith.constant dense<0.000000e+00> : vector<8x32xf32>
    %625 = tpu.matmul %619, %624, %cst_708 {dimension_numbers = #tpu.dot_dimension_numbers<[1], [0], [0], [1], [0, 0, 1, 1], [], []>} : vector<8x16xf32>, vector<16x32xf32>, vector<8x32xf32> -> vector<8x32xf32>
    %626 = arith.addf %622, %625 : vector<8x32xf32>
    %627 = vector.broadcast %3 : vector<8x1xf32> to vector<8x32xf32>
    %628 = arith.addf %626, %627 : vector<8x32xf32>
    %629 = arith.truncf %628 : vector<8x32xf32> to vector<8x32xbf16>
    %c0_709 = arith.constant 0 : index
    %c0_710 = arith.constant 0 : index
    %c8 = arith.constant 8 : index
    %c0_711 = arith.constant 0 : index
    %630 = vector.load %arg6[%c0_709, %c0_710, %c8, %c0_711] : memref<1x8x16x32xbf16, #tpu.memory_space<vmem>>, vector<1x8x1x32xbf16>
    %631 = vector.shape_cast %630 : vector<1x8x1x32xbf16> to vector<8x32xbf16>
    %632 = vector.shape_cast %629 : vector<8x32xbf16> to vector<1x8x1x32xbf16>
    tpu.vector_store %arg6[%c0_709, %c0_710, %c8, %c0_711], %632 {strides = array<i32>} : memref<1x8x16x32xbf16, #tpu.memory_space<vmem>>, vector<1x8x1x32xbf16>,
    %cst_712 = arith.constant dense<0.000000e+00> : vector<8xf32>
    %633 = vector.multi_reduction <add>, %628, %cst_712 [1] : vector<8x32xf32> to vector<8xf32>
    %634 = vector.shape_cast %633 : vector<8xf32> to vector<8x1xf32>
    %635 = arith.addf %558, %634 : vector<8x1xf32>
    %636 = arith.mulf %628, %628 : vector<8x32xf32>
    %cst_713 = arith.constant dense<0.000000e+00> : vector<8xf32>
    %637 = vector.multi_reduction <add>, %636, %cst_713 [1] : vector<8x32xf32> to vector<8xf32>
    %638 = vector.shape_cast %637 : vector<8xf32> to vector<8x1xf32>
    %639 = arith.addf %562, %638 : vector<8x1xf32>
    %cst_714 = arith.constant 0.000000e+00 : f32
    %640 = vector.broadcast %cst_714 : f32 to vector<8x16xf32>
    %641 = vector.extract_strided_slice %572 {offsets = [0, 0], sizes = [4, 16], strides = [1, 1]} : vector<4x18xbf16> to vector<4x16xbf16>
    %c1_715 = arith.constant 1 : index
    %c0_716 = arith.constant 0 : index
    %c0_717 = arith.constant 0 : index
    %c0_718 = arith.constant 0 : index
    %c0_719 = arith.constant 0 : index
    %c0_720 = arith.constant 0 : index
    %642 = vector.load %arg3[%c1_715, %c0_716, %c0_717, %c0_718, %c0_719, %c0_720] : memref<2x2x2x2x8x4xbf16, #tpu.memory_space<vmem>>, vector<1x1x1x1x8x4xbf16>
    %643 = vector.shape_cast %642 : vector<1x1x1x1x8x4xbf16> to vector<8x4xbf16>
    %cst_721 = arith.constant dense<0.000000e+00> : vector<8x16xf32>
    %644 = tpu.matmul %643, %641, %cst_721 {dimension_numbers = #tpu.dot_dimension_numbers<[1], [0], [0], [1], [0, 0, 1, 1], [], []>} : vector<8x4xbf16>, vector<4x16xbf16>, vector<8x16xf32> -> vector<8x16xf32>
    %645 = arith.addf %640, %644 : vector<8x16xf32>
    %646 = vector.extract_strided_slice %572 {offsets = [0, 1], sizes = [4, 16], strides = [1, 1]} : vector<4x18xbf16> to vector<4x16xbf16>
    %c1_722 = arith.constant 1 : index
    %c0_723 = arith.constant 0 : index
    %c0_724 = arith.constant 0 : index
    %c1_725 = arith.constant 1 : index
    %c0_726 = arith.constant 0 : index
    %c0_727 = arith.constant 0 : index
    %647 = vector.load %arg3[%c1_722, %c0_723, %c0_724, %c1_725, %c0_726, %c0_727] : memref<2x2x2x2x8x4xbf16, #tpu.memory_space<vmem>>, vector<1x1x1x1x8x4xbf16>
    %648 = vector.shape_cast %647 : vector<1x1x1x1x8x4xbf16> to vector<8x4xbf16>
    %cst_728 = arith.constant dense<0.000000e+00> : vector<8x16xf32>
    %649 = tpu.matmul %648, %646, %cst_728 {dimension_numbers = #tpu.dot_dimension_numbers<[1], [0], [0], [1], [0, 0, 1, 1], [], []>} : vector<8x4xbf16>, vector<4x16xbf16>, vector<8x16xf32> -> vector<8x16xf32>
    %650 = arith.addf %645, %649 : vector<8x16xf32>
    %651 = vector.extract_strided_slice %577 {offsets = [0, 0], sizes = [4, 16], strides = [1, 1]} : vector<4x18xbf16> to vector<4x16xbf16>
    %c1_729 = arith.constant 1 : index
    %c0_730 = arith.constant 0 : index
    %c1_731 = arith.constant 1 : index
    %c0_732 = arith.constant 0 : index
    %c0_733 = arith.constant 0 : index
    %c0_734 = arith.constant 0 : index
    %652 = vector.load %arg3[%c1_729, %c0_730, %c1_731, %c0_732, %c0_733, %c0_734] : memref<2x2x2x2x8x4xbf16, #tpu.memory_space<vmem>>, vector<1x1x1x1x8x4xbf16>
    %653 = vector.shape_cast %652 : vector<1x1x1x1x8x4xbf16> to vector<8x4xbf16>
    %cst_735 = arith.constant dense<0.000000e+00> : vector<8x16xf32>
    %654 = tpu.matmul %653, %651, %cst_735 {dimension_numbers = #tpu.dot_dimension_numbers<[1], [0], [0], [1], [0, 0, 1, 1], [], []>} : vector<8x4xbf16>, vector<4x16xbf16>, vector<8x16xf32> -> vector<8x16xf32>
    %655 = arith.addf %650, %654 : vector<8x16xf32>
    %656 = vector.extract_strided_slice %577 {offsets = [0, 1], sizes = [4, 16], strides = [1, 1]} : vector<4x18xbf16> to vector<4x16xbf16>
    %c1_736 = arith.constant 1 : index
    %c0_737 = arith.constant 0 : index
    %c1_738 = arith.constant 1 : index
    %c1_739 = arith.constant 1 : index
    %c0_740 = arith.constant 0 : index
    %c0_741 = arith.constant 0 : index
    %657 = vector.load %arg3[%c1_736, %c0_737, %c1_738, %c1_739, %c0_740, %c0_741] : memref<2x2x2x2x8x4xbf16, #tpu.memory_space<vmem>>, vector<1x1x1x1x8x4xbf16>
    %658 = vector.shape_cast %657 : vector<1x1x1x1x8x4xbf16> to vector<8x4xbf16>
    %cst_742 = arith.constant dense<0.000000e+00> : vector<8x16xf32>
    %659 = tpu.matmul %658, %656, %cst_742 {dimension_numbers = #tpu.dot_dimension_numbers<[1], [0], [0], [1], [0, 0, 1, 1], [], []>} : vector<8x4xbf16>, vector<4x16xbf16>, vector<8x16xf32> -> vector<8x16xf32>
    %660 = arith.addf %655, %659 : vector<8x16xf32>
    %cst_743 = arith.constant 0.000000e+00 : f32
    %661 = vector.broadcast %cst_743 : f32 to vector<8x16xf32>
    %662 = vector.extract_strided_slice %572 {offsets = [0, 1], sizes = [4, 16], strides = [1, 1]} : vector<4x18xbf16> to vector<4x16xbf16>
    %c1_744 = arith.constant 1 : index
    %c1_745 = arith.constant 1 : index
    %c0_746 = arith.constant 0 : index
    %c0_747 = arith.constant 0 : index
    %c0_748 = arith.constant 0 : index
    %c0_749 = arith.constant 0 : index
    %663 = vector.load %arg3[%c1_744, %c1_745, %c0_746, %c0_747, %c0_748, %c0_749] : memref<2x2x2x2x8x4xbf16, #tpu.memory_space<vmem>>, vector<1x1x1x1x8x4xbf16>
    %664 = vector.shape_cast %663 : vector<1x1x1x1x8x4xbf16> to vector<8x4xbf16>
    %cst_750 = arith.constant dense<0.000000e+00> : vector<8x16xf32>
    %665 = tpu.matmul %664, %662, %cst_750 {dimension_numbers = #tpu.dot_dimension_numbers<[1], [0], [0], [1], [0, 0, 1, 1], [], []>} : vector<8x4xbf16>, vector<4x16xbf16>, vector<8x16xf32> -> vector<8x16xf32>
    %666 = arith.addf %661, %665 : vector<8x16xf32>
    %667 = vector.extract_strided_slice %572 {offsets = [0, 2], sizes = [4, 16], strides = [1, 1]} : vector<4x18xbf16> to vector<4x16xbf16>
    %c1_751 = arith.constant 1 : index
    %c1_752 = arith.constant 1 : index
    %c0_753 = arith.constant 0 : index
    %c1_754 = arith.constant 1 : index
    %c0_755 = arith.constant 0 : index
    %c0_756 = arith.constant 0 : index
    %668 = vector.load %arg3[%c1_751, %c1_752, %c0_753, %c1_754, %c0_755, %c0_756] : memref<2x2x2x2x8x4xbf16, #tpu.memory_space<vmem>>, vector<1x1x1x1x8x4xbf16>
    %669 = vector.shape_cast %668 : vector<1x1x1x1x8x4xbf16> to vector<8x4xbf16>
    %cst_757 = arith.constant dense<0.000000e+00> : vector<8x16xf32>
    %670 = tpu.matmul %669, %667, %cst_757 {dimension_numbers = #tpu.dot_dimension_numbers<[1], [0], [0], [1], [0, 0, 1, 1], [], []>} : vector<8x4xbf16>, vector<4x16xbf16>, vector<8x16xf32> -> vector<8x16xf32>
    %671 = arith.addf %666, %670 : vector<8x16xf32>
    %672 = vector.extract_strided_slice %577 {offsets = [0, 1], sizes = [4, 16], strides = [1, 1]} : vector<4x18xbf16> to vector<4x16xbf16>
    %c1_758 = arith.constant 1 : index
    %c1_759 = arith.constant 1 : index
    %c1_760 = arith.constant 1 : index
    %c0_761 = arith.constant 0 : index
    %c0_762 = arith.constant 0 : index
    %c0_763 = arith.constant 0 : index
    %673 = vector.load %arg3[%c1_758, %c1_759, %c1_760, %c0_761, %c0_762, %c0_763] : memref<2x2x2x2x8x4xbf16, #tpu.memory_space<vmem>>, vector<1x1x1x1x8x4xbf16>
    %674 = vector.shape_cast %673 : vector<1x1x1x1x8x4xbf16> to vector<8x4xbf16>
    %cst_764 = arith.constant dense<0.000000e+00> : vector<8x16xf32>
    %675 = tpu.matmul %674, %672, %cst_764 {dimension_numbers = #tpu.dot_dimension_numbers<[1], [0], [0], [1], [0, 0, 1, 1], [], []>} : vector<8x4xbf16>, vector<4x16xbf16>, vector<8x16xf32> -> vector<8x16xf32>
    %676 = arith.addf %671, %675 : vector<8x16xf32>
    %677 = vector.extract_strided_slice %577 {offsets = [0, 2], sizes = [4, 16], strides = [1, 1]} : vector<4x18xbf16> to vector<4x16xbf16>
    %c1_765 = arith.constant 1 : index
    %c1_766 = arith.constant 1 : index
    %c1_767 = arith.constant 1 : index
    %c1_768 = arith.constant 1 : index
    %c0_769 = arith.constant 0 : index
    %c0_770 = arith.constant 0 : index
    %678 = vector.load %arg3[%c1_765, %c1_766, %c1_767, %c1_768, %c0_769, %c0_770] : memref<2x2x2x2x8x4xbf16, #tpu.memory_space<vmem>>, vector<1x1x1x1x8x4xbf16>
    %679 = vector.shape_cast %678 : vector<1x1x1x1x8x4xbf16> to vector<8x4xbf16>
    %cst_771 = arith.constant dense<0.000000e+00> : vector<8x16xf32>
    %680 = tpu.matmul %679, %677, %cst_771 {dimension_numbers = #tpu.dot_dimension_numbers<[1], [0], [0], [1], [0, 0, 1, 1], [], []>} : vector<8x4xbf16>, vector<4x16xbf16>, vector<8x16xf32> -> vector<8x16xf32>
    %681 = arith.addf %676, %680 : vector<8x16xf32>
    %c0_772 = arith.constant 0 : index
    %c0_773 = arith.constant 0 : index
    %c0_774 = arith.constant 0 : index
    %682 = vector.load %arg4[%c0_772, %c0_773, %c0_774] : memref<2x16x32xf32, #tpu.memory_space<vmem>>, vector<1x16x32xf32>
    %683 = vector.shape_cast %682 : vector<1x16x32xf32> to vector<16x32xf32>
    %cst_775 = arith.constant dense<0.000000e+00> : vector<8x32xf32>
    %684 = tpu.matmul %660, %683, %cst_775 {dimension_numbers = #tpu.dot_dimension_numbers<[1], [0], [0], [1], [0, 0, 1, 1], [], []>} : vector<8x16xf32>, vector<16x32xf32>, vector<8x32xf32> -> vector<8x32xf32>
    %c1_776 = arith.constant 1 : index
    %c0_777 = arith.constant 0 : index
    %c0_778 = arith.constant 0 : index
    %685 = vector.load %arg4[%c1_776, %c0_777, %c0_778] : memref<2x16x32xf32, #tpu.memory_space<vmem>>, vector<1x16x32xf32>
    %686 = vector.shape_cast %685 : vector<1x16x32xf32> to vector<16x32xf32>
    %cst_779 = arith.constant dense<0.000000e+00> : vector<8x32xf32>
    %687 = tpu.matmul %681, %686, %cst_779 {dimension_numbers = #tpu.dot_dimension_numbers<[1], [0], [0], [1], [0, 0, 1, 1], [], []>} : vector<8x16xf32>, vector<16x32xf32>, vector<8x32xf32> -> vector<8x32xf32>
    %688 = arith.addf %684, %687 : vector<8x32xf32>
    %689 = vector.broadcast %3 : vector<8x1xf32> to vector<8x32xf32>
    %690 = arith.addf %688, %689 : vector<8x32xf32>
    %691 = arith.truncf %690 : vector<8x32xf32> to vector<8x32xbf16>
    %c0_780 = arith.constant 0 : index
    %c0_781 = arith.constant 0 : index
    %c9 = arith.constant 9 : index
    %c0_782 = arith.constant 0 : index
    %692 = vector.load %arg6[%c0_780, %c0_781, %c9, %c0_782] : memref<1x8x16x32xbf16, #tpu.memory_space<vmem>>, vector<1x8x1x32xbf16>
    %693 = vector.shape_cast %692 : vector<1x8x1x32xbf16> to vector<8x32xbf16>
    %694 = vector.shape_cast %691 : vector<8x32xbf16> to vector<1x8x1x32xbf16>
    tpu.vector_store %arg6[%c0_780, %c0_781, %c9, %c0_782], %694 {strides = array<i32>} : memref<1x8x16x32xbf16, #tpu.memory_space<vmem>>, vector<1x8x1x32xbf16>,
    %cst_783 = arith.constant dense<0.000000e+00> : vector<8xf32>
    %695 = vector.multi_reduction <add>, %690, %cst_783 [1] : vector<8x32xf32> to vector<8xf32>
    %696 = vector.shape_cast %695 : vector<8xf32> to vector<8x1xf32>
    %697 = arith.addf %635, %696 : vector<8x1xf32>
    %698 = arith.mulf %690, %690 : vector<8x32xf32>
    %cst_784 = arith.constant dense<0.000000e+00> : vector<8xf32>
    %699 = vector.multi_reduction <add>, %698, %cst_784 [1] : vector<8x32xf32> to vector<8xf32>
    %700 = vector.shape_cast %699 : vector<8xf32> to vector<8x1xf32>
    %701 = arith.addf %639, %700 : vector<8x1xf32>
    %c5_i32 = arith.constant 5 : i32
    %702 = arith.addi %6, %c5_i32 : i32
    %c0_i32_785 = arith.constant 0 : i32
    %703 = arith.addi %702, %c0_i32_785 : i32
    %c0_786 = arith.constant 0 : index
    %704 = arith.index_cast %703 : i32 to index
    %c0_787 = arith.constant 0 : index
    %c0_788 = arith.constant 0 : index
    %705 = vector.load %arg2[%c0_786, %704, %c0_787, %c0_788] : memref<1x18x4x18xbf16, #tpu.memory_space<vmem>>, vector<1x1x4x18xbf16>
    %706 = vector.shape_cast %705 : vector<1x1x4x18xbf16> to vector<4x18xbf16>
    %c5_i32_789 = arith.constant 5 : i32
    %707 = arith.addi %6, %c5_i32_789 : i32
    %c1_i32_790 = arith.constant 1 : i32
    %708 = arith.addi %707, %c1_i32_790 : i32
    %c0_791 = arith.constant 0 : index
    %709 = arith.index_cast %708 : i32 to index
    %c0_792 = arith.constant 0 : index
    %c0_793 = arith.constant 0 : index
    %710 = vector.load %arg2[%c0_791, %709, %c0_792, %c0_793] : memref<1x18x4x18xbf16, #tpu.memory_space<vmem>>, vector<1x1x4x18xbf16>
    %711 = vector.shape_cast %710 : vector<1x1x4x18xbf16> to vector<4x18xbf16>
    %c5_i32_794 = arith.constant 5 : i32
    %712 = arith.addi %6, %c5_i32_794 : i32
    %c2_i32_795 = arith.constant 2 : i32
    %713 = arith.addi %712, %c2_i32_795 : i32
    %c0_796 = arith.constant 0 : index
    %714 = arith.index_cast %713 : i32 to index
    %c0_797 = arith.constant 0 : index
    %c0_798 = arith.constant 0 : index
    %715 = vector.load %arg2[%c0_796, %714, %c0_797, %c0_798] : memref<1x18x4x18xbf16, #tpu.memory_space<vmem>>, vector<1x1x4x18xbf16>
    %716 = vector.shape_cast %715 : vector<1x1x4x18xbf16> to vector<4x18xbf16>
    %cst_799 = arith.constant 0.000000e+00 : f32
    %717 = vector.broadcast %cst_799 : f32 to vector<8x16xf32>
    %718 = vector.extract_strided_slice %706 {offsets = [0, 0], sizes = [4, 16], strides = [1, 1]} : vector<4x18xbf16> to vector<4x16xbf16>
    %c0_800 = arith.constant 0 : index
    %c0_801 = arith.constant 0 : index
    %c0_802 = arith.constant 0 : index
    %c0_803 = arith.constant 0 : index
    %c0_804 = arith.constant 0 : index
    %c0_805 = arith.constant 0 : index
    %719 = vector.load %arg3[%c0_800, %c0_801, %c0_802, %c0_803, %c0_804, %c0_805] : memref<2x2x2x2x8x4xbf16, #tpu.memory_space<vmem>>, vector<1x1x1x1x8x4xbf16>
    %720 = vector.shape_cast %719 : vector<1x1x1x1x8x4xbf16> to vector<8x4xbf16>
    %cst_806 = arith.constant dense<0.000000e+00> : vector<8x16xf32>
    %721 = tpu.matmul %720, %718, %cst_806 {dimension_numbers = #tpu.dot_dimension_numbers<[1], [0], [0], [1], [0, 0, 1, 1], [], []>} : vector<8x4xbf16>, vector<4x16xbf16>, vector<8x16xf32> -> vector<8x16xf32>
    %722 = arith.addf %717, %721 : vector<8x16xf32>
    %723 = vector.extract_strided_slice %706 {offsets = [0, 1], sizes = [4, 16], strides = [1, 1]} : vector<4x18xbf16> to vector<4x16xbf16>
    %c0_807 = arith.constant 0 : index
    %c0_808 = arith.constant 0 : index
    %c0_809 = arith.constant 0 : index
    %c1_810 = arith.constant 1 : index
    %c0_811 = arith.constant 0 : index
    %c0_812 = arith.constant 0 : index
    %724 = vector.load %arg3[%c0_807, %c0_808, %c0_809, %c1_810, %c0_811, %c0_812] : memref<2x2x2x2x8x4xbf16, #tpu.memory_space<vmem>>, vector<1x1x1x1x8x4xbf16>
    %725 = vector.shape_cast %724 : vector<1x1x1x1x8x4xbf16> to vector<8x4xbf16>
    %cst_813 = arith.constant dense<0.000000e+00> : vector<8x16xf32>
    %726 = tpu.matmul %725, %723, %cst_813 {dimension_numbers = #tpu.dot_dimension_numbers<[1], [0], [0], [1], [0, 0, 1, 1], [], []>} : vector<8x4xbf16>, vector<4x16xbf16>, vector<8x16xf32> -> vector<8x16xf32>
    %727 = arith.addf %722, %726 : vector<8x16xf32>
    %728 = vector.extract_strided_slice %711 {offsets = [0, 0], sizes = [4, 16], strides = [1, 1]} : vector<4x18xbf16> to vector<4x16xbf16>
    %c0_814 = arith.constant 0 : index
    %c0_815 = arith.constant 0 : index
    %c1_816 = arith.constant 1 : index
    %c0_817 = arith.constant 0 : index
    %c0_818 = arith.constant 0 : index
    %c0_819 = arith.constant 0 : index
    %729 = vector.load %arg3[%c0_814, %c0_815, %c1_816, %c0_817, %c0_818, %c0_819] : memref<2x2x2x2x8x4xbf16, #tpu.memory_space<vmem>>, vector<1x1x1x1x8x4xbf16>
    %730 = vector.shape_cast %729 : vector<1x1x1x1x8x4xbf16> to vector<8x4xbf16>
    %cst_820 = arith.constant dense<0.000000e+00> : vector<8x16xf32>
    %731 = tpu.matmul %730, %728, %cst_820 {dimension_numbers = #tpu.dot_dimension_numbers<[1], [0], [0], [1], [0, 0, 1, 1], [], []>} : vector<8x4xbf16>, vector<4x16xbf16>, vector<8x16xf32> -> vector<8x16xf32>
    %732 = arith.addf %727, %731 : vector<8x16xf32>
    %733 = vector.extract_strided_slice %711 {offsets = [0, 1], sizes = [4, 16], strides = [1, 1]} : vector<4x18xbf16> to vector<4x16xbf16>
    %c0_821 = arith.constant 0 : index
    %c0_822 = arith.constant 0 : index
    %c1_823 = arith.constant 1 : index
    %c1_824 = arith.constant 1 : index
    %c0_825 = arith.constant 0 : index
    %c0_826 = arith.constant 0 : index
    %734 = vector.load %arg3[%c0_821, %c0_822, %c1_823, %c1_824, %c0_825, %c0_826] : memref<2x2x2x2x8x4xbf16, #tpu.memory_space<vmem>>, vector<1x1x1x1x8x4xbf16>
    %735 = vector.shape_cast %734 : vector<1x1x1x1x8x4xbf16> to vector<8x4xbf16>
    %cst_827 = arith.constant dense<0.000000e+00> : vector<8x16xf32>
    %736 = tpu.matmul %735, %733, %cst_827 {dimension_numbers = #tpu.dot_dimension_numbers<[1], [0], [0], [1], [0, 0, 1, 1], [], []>} : vector<8x4xbf16>, vector<4x16xbf16>, vector<8x16xf32> -> vector<8x16xf32>
    %737 = arith.addf %732, %736 : vector<8x16xf32>
    %cst_828 = arith.constant 0.000000e+00 : f32
    %738 = vector.broadcast %cst_828 : f32 to vector<8x16xf32>
    %739 = vector.extract_strided_slice %706 {offsets = [0, 1], sizes = [4, 16], strides = [1, 1]} : vector<4x18xbf16> to vector<4x16xbf16>
    %c0_829 = arith.constant 0 : index
    %c1_830 = arith.constant 1 : index
    %c0_831 = arith.constant 0 : index
    %c0_832 = arith.constant 0 : index
    %c0_833 = arith.constant 0 : index
    %c0_834 = arith.constant 0 : index
    %740 = vector.load %arg3[%c0_829, %c1_830, %c0_831, %c0_832, %c0_833, %c0_834] : memref<2x2x2x2x8x4xbf16, #tpu.memory_space<vmem>>, vector<1x1x1x1x8x4xbf16>
    %741 = vector.shape_cast %740 : vector<1x1x1x1x8x4xbf16> to vector<8x4xbf16>
    %cst_835 = arith.constant dense<0.000000e+00> : vector<8x16xf32>
    %742 = tpu.matmul %741, %739, %cst_835 {dimension_numbers = #tpu.dot_dimension_numbers<[1], [0], [0], [1], [0, 0, 1, 1], [], []>} : vector<8x4xbf16>, vector<4x16xbf16>, vector<8x16xf32> -> vector<8x16xf32>
    %743 = arith.addf %738, %742 : vector<8x16xf32>
    %744 = vector.extract_strided_slice %706 {offsets = [0, 2], sizes = [4, 16], strides = [1, 1]} : vector<4x18xbf16> to vector<4x16xbf16>
    %c0_836 = arith.constant 0 : index
    %c1_837 = arith.constant 1 : index
    %c0_838 = arith.constant 0 : index
    %c1_839 = arith.constant 1 : index
    %c0_840 = arith.constant 0 : index
    %c0_841 = arith.constant 0 : index
    %745 = vector.load %arg3[%c0_836, %c1_837, %c0_838, %c1_839, %c0_840, %c0_841] : memref<2x2x2x2x8x4xbf16, #tpu.memory_space<vmem>>, vector<1x1x1x1x8x4xbf16>
    %746 = vector.shape_cast %745 : vector<1x1x1x1x8x4xbf16> to vector<8x4xbf16>
    %cst_842 = arith.constant dense<0.000000e+00> : vector<8x16xf32>
    %747 = tpu.matmul %746, %744, %cst_842 {dimension_numbers = #tpu.dot_dimension_numbers<[1], [0], [0], [1], [0, 0, 1, 1], [], []>} : vector<8x4xbf16>, vector<4x16xbf16>, vector<8x16xf32> -> vector<8x16xf32>
    %748 = arith.addf %743, %747 : vector<8x16xf32>
    %749 = vector.extract_strided_slice %711 {offsets = [0, 1], sizes = [4, 16], strides = [1, 1]} : vector<4x18xbf16> to vector<4x16xbf16>
    %c0_843 = arith.constant 0 : index
    %c1_844 = arith.constant 1 : index
    %c1_845 = arith.constant 1 : index
    %c0_846 = arith.constant 0 : index
    %c0_847 = arith.constant 0 : index
    %c0_848 = arith.constant 0 : index
    %750 = vector.load %arg3[%c0_843, %c1_844, %c1_845, %c0_846, %c0_847, %c0_848] : memref<2x2x2x2x8x4xbf16, #tpu.memory_space<vmem>>, vector<1x1x1x1x8x4xbf16>
    %751 = vector.shape_cast %750 : vector<1x1x1x1x8x4xbf16> to vector<8x4xbf16>
    %cst_849 = arith.constant dense<0.000000e+00> : vector<8x16xf32>
    %752 = tpu.matmul %751, %749, %cst_849 {dimension_numbers = #tpu.dot_dimension_numbers<[1], [0], [0], [1], [0, 0, 1, 1], [], []>} : vector<8x4xbf16>, vector<4x16xbf16>, vector<8x16xf32> -> vector<8x16xf32>
    %753 = arith.addf %748, %752 : vector<8x16xf32>
    %754 = vector.extract_strided_slice %711 {offsets = [0, 2], sizes = [4, 16], strides = [1, 1]} : vector<4x18xbf16> to vector<4x16xbf16>
    %c0_850 = arith.constant 0 : index
    %c1_851 = arith.constant 1 : index
    %c1_852 = arith.constant 1 : index
    %c1_853 = arith.constant 1 : index
    %c0_854 = arith.constant 0 : index
    %c0_855 = arith.constant 0 : index
    %755 = vector.load %arg3[%c0_850, %c1_851, %c1_852, %c1_853, %c0_854, %c0_855] : memref<2x2x2x2x8x4xbf16, #tpu.memory_space<vmem>>, vector<1x1x1x1x8x4xbf16>
    %756 = vector.shape_cast %755 : vector<1x1x1x1x8x4xbf16> to vector<8x4xbf16>
    %cst_856 = arith.constant dense<0.000000e+00> : vector<8x16xf32>
    %757 = tpu.matmul %756, %754, %cst_856 {dimension_numbers = #tpu.dot_dimension_numbers<[1], [0], [0], [1], [0, 0, 1, 1], [], []>} : vector<8x4xbf16>, vector<4x16xbf16>, vector<8x16xf32> -> vector<8x16xf32>
    %758 = arith.addf %753, %757 : vector<8x16xf32>
    %c0_857 = arith.constant 0 : index
    %c0_858 = arith.constant 0 : index
    %c0_859 = arith.constant 0 : index
    %759 = vector.load %arg4[%c0_857, %c0_858, %c0_859] : memref<2x16x32xf32, #tpu.memory_space<vmem>>, vector<1x16x32xf32>
    %760 = vector.shape_cast %759 : vector<1x16x32xf32> to vector<16x32xf32>
    %cst_860 = arith.constant dense<0.000000e+00> : vector<8x32xf32>
    %761 = tpu.matmul %737, %760, %cst_860 {dimension_numbers = #tpu.dot_dimension_numbers<[1], [0], [0], [1], [0, 0, 1, 1], [], []>} : vector<8x16xf32>, vector<16x32xf32>, vector<8x32xf32> -> vector<8x32xf32>
    %c1_861 = arith.constant 1 : index
    %c0_862 = arith.constant 0 : index
    %c0_863 = arith.constant 0 : index
    %762 = vector.load %arg4[%c1_861, %c0_862, %c0_863] : memref<2x16x32xf32, #tpu.memory_space<vmem>>, vector<1x16x32xf32>
    %763 = vector.shape_cast %762 : vector<1x16x32xf32> to vector<16x32xf32>
    %cst_864 = arith.constant dense<0.000000e+00> : vector<8x32xf32>
    %764 = tpu.matmul %758, %763, %cst_864 {dimension_numbers = #tpu.dot_dimension_numbers<[1], [0], [0], [1], [0, 0, 1, 1], [], []>} : vector<8x16xf32>, vector<16x32xf32>, vector<8x32xf32> -> vector<8x32xf32>
    %765 = arith.addf %761, %764 : vector<8x32xf32>
    %766 = vector.broadcast %3 : vector<8x1xf32> to vector<8x32xf32>
    %767 = arith.addf %765, %766 : vector<8x32xf32>
    %768 = arith.truncf %767 : vector<8x32xf32> to vector<8x32xbf16>
    %c0_865 = arith.constant 0 : index
    %c0_866 = arith.constant 0 : index
    %c10 = arith.constant 10 : index
    %c0_867 = arith.constant 0 : index
    %769 = vector.load %arg6[%c0_865, %c0_866, %c10, %c0_867] : memref<1x8x16x32xbf16, #tpu.memory_space<vmem>>, vector<1x8x1x32xbf16>
    %770 = vector.shape_cast %769 : vector<1x8x1x32xbf16> to vector<8x32xbf16>
    %771 = vector.shape_cast %768 : vector<8x32xbf16> to vector<1x8x1x32xbf16>
    tpu.vector_store %arg6[%c0_865, %c0_866, %c10, %c0_867], %771 {strides = array<i32>} : memref<1x8x16x32xbf16, #tpu.memory_space<vmem>>, vector<1x8x1x32xbf16>,
    %cst_868 = arith.constant dense<0.000000e+00> : vector<8xf32>
    %772 = vector.multi_reduction <add>, %767, %cst_868 [1] : vector<8x32xf32> to vector<8xf32>
    %773 = vector.shape_cast %772 : vector<8xf32> to vector<8x1xf32>
    %774 = arith.addf %697, %773 : vector<8x1xf32>
    %775 = arith.mulf %767, %767 : vector<8x32xf32>
    %cst_869 = arith.constant dense<0.000000e+00> : vector<8xf32>
    %776 = vector.multi_reduction <add>, %775, %cst_869 [1] : vector<8x32xf32> to vector<8xf32>
    %777 = vector.shape_cast %776 : vector<8xf32> to vector<8x1xf32>
    %778 = arith.addf %701, %777 : vector<8x1xf32>
    %cst_870 = arith.constant 0.000000e+00 : f32
    %779 = vector.broadcast %cst_870 : f32 to vector<8x16xf32>
    %780 = vector.extract_strided_slice %711 {offsets = [0, 0], sizes = [4, 16], strides = [1, 1]} : vector<4x18xbf16> to vector<4x16xbf16>
    %c1_871 = arith.constant 1 : index
    %c0_872 = arith.constant 0 : index
    %c0_873 = arith.constant 0 : index
    %c0_874 = arith.constant 0 : index
    %c0_875 = arith.constant 0 : index
    %c0_876 = arith.constant 0 : index
    %781 = vector.load %arg3[%c1_871, %c0_872, %c0_873, %c0_874, %c0_875, %c0_876] : memref<2x2x2x2x8x4xbf16, #tpu.memory_space<vmem>>, vector<1x1x1x1x8x4xbf16>
    %782 = vector.shape_cast %781 : vector<1x1x1x1x8x4xbf16> to vector<8x4xbf16>
    %cst_877 = arith.constant dense<0.000000e+00> : vector<8x16xf32>
    %783 = tpu.matmul %782, %780, %cst_877 {dimension_numbers = #tpu.dot_dimension_numbers<[1], [0], [0], [1], [0, 0, 1, 1], [], []>} : vector<8x4xbf16>, vector<4x16xbf16>, vector<8x16xf32> -> vector<8x16xf32>
    %784 = arith.addf %779, %783 : vector<8x16xf32>
    %785 = vector.extract_strided_slice %711 {offsets = [0, 1], sizes = [4, 16], strides = [1, 1]} : vector<4x18xbf16> to vector<4x16xbf16>
    %c1_878 = arith.constant 1 : index
    %c0_879 = arith.constant 0 : index
    %c0_880 = arith.constant 0 : index
    %c1_881 = arith.constant 1 : index
    %c0_882 = arith.constant 0 : index
    %c0_883 = arith.constant 0 : index
    %786 = vector.load %arg3[%c1_878, %c0_879, %c0_880, %c1_881, %c0_882, %c0_883] : memref<2x2x2x2x8x4xbf16, #tpu.memory_space<vmem>>, vector<1x1x1x1x8x4xbf16>
    %787 = vector.shape_cast %786 : vector<1x1x1x1x8x4xbf16> to vector<8x4xbf16>
    %cst_884 = arith.constant dense<0.000000e+00> : vector<8x16xf32>
    %788 = tpu.matmul %787, %785, %cst_884 {dimension_numbers = #tpu.dot_dimension_numbers<[1], [0], [0], [1], [0, 0, 1, 1], [], []>} : vector<8x4xbf16>, vector<4x16xbf16>, vector<8x16xf32> -> vector<8x16xf32>
    %789 = arith.addf %784, %788 : vector<8x16xf32>
    %790 = vector.extract_strided_slice %716 {offsets = [0, 0], sizes = [4, 16], strides = [1, 1]} : vector<4x18xbf16> to vector<4x16xbf16>
    %c1_885 = arith.constant 1 : index
    %c0_886 = arith.constant 0 : index
    %c1_887 = arith.constant 1 : index
    %c0_888 = arith.constant 0 : index
    %c0_889 = arith.constant 0 : index
    %c0_890 = arith.constant 0 : index
    %791 = vector.load %arg3[%c1_885, %c0_886, %c1_887, %c0_888, %c0_889, %c0_890] : memref<2x2x2x2x8x4xbf16, #tpu.memory_space<vmem>>, vector<1x1x1x1x8x4xbf16>
    %792 = vector.shape_cast %791 : vector<1x1x1x1x8x4xbf16> to vector<8x4xbf16>
    %cst_891 = arith.constant dense<0.000000e+00> : vector<8x16xf32>
    %793 = tpu.matmul %792, %790, %cst_891 {dimension_numbers = #tpu.dot_dimension_numbers<[1], [0], [0], [1], [0, 0, 1, 1], [], []>} : vector<8x4xbf16>, vector<4x16xbf16>, vector<8x16xf32> -> vector<8x16xf32>
    %794 = arith.addf %789, %793 : vector<8x16xf32>
    %795 = vector.extract_strided_slice %716 {offsets = [0, 1], sizes = [4, 16], strides = [1, 1]} : vector<4x18xbf16> to vector<4x16xbf16>
    %c1_892 = arith.constant 1 : index
    %c0_893 = arith.constant 0 : index
    %c1_894 = arith.constant 1 : index
    %c1_895 = arith.constant 1 : index
    %c0_896 = arith.constant 0 : index
    %c0_897 = arith.constant 0 : index
    %796 = vector.load %arg3[%c1_892, %c0_893, %c1_894, %c1_895, %c0_896, %c0_897] : memref<2x2x2x2x8x4xbf16, #tpu.memory_space<vmem>>, vector<1x1x1x1x8x4xbf16>
    %797 = vector.shape_cast %796 : vector<1x1x1x1x8x4xbf16> to vector<8x4xbf16>
    %cst_898 = arith.constant dense<0.000000e+00> : vector<8x16xf32>
    %798 = tpu.matmul %797, %795, %cst_898 {dimension_numbers = #tpu.dot_dimension_numbers<[1], [0], [0], [1], [0, 0, 1, 1], [], []>} : vector<8x4xbf16>, vector<4x16xbf16>, vector<8x16xf32> -> vector<8x16xf32>
    %799 = arith.addf %794, %798 : vector<8x16xf32>
    %cst_899 = arith.constant 0.000000e+00 : f32
    %800 = vector.broadcast %cst_899 : f32 to vector<8x16xf32>
    %801 = vector.extract_strided_slice %711 {offsets = [0, 1], sizes = [4, 16], strides = [1, 1]} : vector<4x18xbf16> to vector<4x16xbf16>
    %c1_900 = arith.constant 1 : index
    %c1_901 = arith.constant 1 : index
    %c0_902 = arith.constant 0 : index
    %c0_903 = arith.constant 0 : index
    %c0_904 = arith.constant 0 : index
    %c0_905 = arith.constant 0 : index
    %802 = vector.load %arg3[%c1_900, %c1_901, %c0_902, %c0_903, %c0_904, %c0_905] : memref<2x2x2x2x8x4xbf16, #tpu.memory_space<vmem>>, vector<1x1x1x1x8x4xbf16>
    %803 = vector.shape_cast %802 : vector<1x1x1x1x8x4xbf16> to vector<8x4xbf16>
    %cst_906 = arith.constant dense<0.000000e+00> : vector<8x16xf32>
    %804 = tpu.matmul %803, %801, %cst_906 {dimension_numbers = #tpu.dot_dimension_numbers<[1], [0], [0], [1], [0, 0, 1, 1], [], []>} : vector<8x4xbf16>, vector<4x16xbf16>, vector<8x16xf32> -> vector<8x16xf32>
    %805 = arith.addf %800, %804 : vector<8x16xf32>
    %806 = vector.extract_strided_slice %711 {offsets = [0, 2], sizes = [4, 16], strides = [1, 1]} : vector<4x18xbf16> to vector<4x16xbf16>
    %c1_907 = arith.constant 1 : index
    %c1_908 = arith.constant 1 : index
    %c0_909 = arith.constant 0 : index
    %c1_910 = arith.constant 1 : index
    %c0_911 = arith.constant 0 : index
    %c0_912 = arith.constant 0 : index
    %807 = vector.load %arg3[%c1_907, %c1_908, %c0_909, %c1_910, %c0_911, %c0_912] : memref<2x2x2x2x8x4xbf16, #tpu.memory_space<vmem>>, vector<1x1x1x1x8x4xbf16>
    %808 = vector.shape_cast %807 : vector<1x1x1x1x8x4xbf16> to vector<8x4xbf16>
    %cst_913 = arith.constant dense<0.000000e+00> : vector<8x16xf32>
    %809 = tpu.matmul %808, %806, %cst_913 {dimension_numbers = #tpu.dot_dimension_numbers<[1], [0], [0], [1], [0, 0, 1, 1], [], []>} : vector<8x4xbf16>, vector<4x16xbf16>, vector<8x16xf32> -> vector<8x16xf32>
    %810 = arith.addf %805, %809 : vector<8x16xf32>
    %811 = vector.extract_strided_slice %716 {offsets = [0, 1], sizes = [4, 16], strides = [1, 1]} : vector<4x18xbf16> to vector<4x16xbf16>
    %c1_914 = arith.constant 1 : index
    %c1_915 = arith.constant 1 : index
    %c1_916 = arith.constant 1 : index
    %c0_917 = arith.constant 0 : index
    %c0_918 = arith.constant 0 : index
    %c0_919 = arith.constant 0 : index
    %812 = vector.load %arg3[%c1_914, %c1_915, %c1_916, %c0_917, %c0_918, %c0_919] : memref<2x2x2x2x8x4xbf16, #tpu.memory_space<vmem>>, vector<1x1x1x1x8x4xbf16>
    %813 = vector.shape_cast %812 : vector<1x1x1x1x8x4xbf16> to vector<8x4xbf16>
    %cst_920 = arith.constant dense<0.000000e+00> : vector<8x16xf32>
    %814 = tpu.matmul %813, %811, %cst_920 {dimension_numbers = #tpu.dot_dimension_numbers<[1], [0], [0], [1], [0, 0, 1, 1], [], []>} : vector<8x4xbf16>, vector<4x16xbf16>, vector<8x16xf32> -> vector<8x16xf32>
    %815 = arith.addf %810, %814 : vector<8x16xf32>
    %816 = vector.extract_strided_slice %716 {offsets = [0, 2], sizes = [4, 16], strides = [1, 1]} : vector<4x18xbf16> to vector<4x16xbf16>
    %c1_921 = arith.constant 1 : index
    %c1_922 = arith.constant 1 : index
    %c1_923 = arith.constant 1 : index
    %c1_924 = arith.constant 1 : index
    %c0_925 = arith.constant 0 : index
    %c0_926 = arith.constant 0 : index
    %817 = vector.load %arg3[%c1_921, %c1_922, %c1_923, %c1_924, %c0_925, %c0_926] : memref<2x2x2x2x8x4xbf16, #tpu.memory_space<vmem>>, vector<1x1x1x1x8x4xbf16>
    %818 = vector.shape_cast %817 : vector<1x1x1x1x8x4xbf16> to vector<8x4xbf16>
    %cst_927 = arith.constant dense<0.000000e+00> : vector<8x16xf32>
    %819 = tpu.matmul %818, %816, %cst_927 {dimension_numbers = #tpu.dot_dimension_numbers<[1], [0], [0], [1], [0, 0, 1, 1], [], []>} : vector<8x4xbf16>, vector<4x16xbf16>, vector<8x16xf32> -> vector<8x16xf32>
    %820 = arith.addf %815, %819 : vector<8x16xf32>
    %c0_928 = arith.constant 0 : index
    %c0_929 = arith.constant 0 : index
    %c0_930 = arith.constant 0 : index
    %821 = vector.load %arg4[%c0_928, %c0_929, %c0_930] : memref<2x16x32xf32, #tpu.memory_space<vmem>>, vector<1x16x32xf32>
    %822 = vector.shape_cast %821 : vector<1x16x32xf32> to vector<16x32xf32>
    %cst_931 = arith.constant dense<0.000000e+00> : vector<8x32xf32>
    %823 = tpu.matmul %799, %822, %cst_931 {dimension_numbers = #tpu.dot_dimension_numbers<[1], [0], [0], [1], [0, 0, 1, 1], [], []>} : vector<8x16xf32>, vector<16x32xf32>, vector<8x32xf32> -> vector<8x32xf32>
    %c1_932 = arith.constant 1 : index
    %c0_933 = arith.constant 0 : index
    %c0_934 = arith.constant 0 : index
    %824 = vector.load %arg4[%c1_932, %c0_933, %c0_934] : memref<2x16x32xf32, #tpu.memory_space<vmem>>, vector<1x16x32xf32>
    %825 = vector.shape_cast %824 : vector<1x16x32xf32> to vector<16x32xf32>
    %cst_935 = arith.constant dense<0.000000e+00> : vector<8x32xf32>
    %826 = tpu.matmul %820, %825, %cst_935 {dimension_numbers = #tpu.dot_dimension_numbers<[1], [0], [0], [1], [0, 0, 1, 1], [], []>} : vector<8x16xf32>, vector<16x32xf32>, vector<8x32xf32> -> vector<8x32xf32>
    %827 = arith.addf %823, %826 : vector<8x32xf32>
    %828 = vector.broadcast %3 : vector<8x1xf32> to vector<8x32xf32>
    %829 = arith.addf %827, %828 : vector<8x32xf32>
    %830 = arith.truncf %829 : vector<8x32xf32> to vector<8x32xbf16>
    %c0_936 = arith.constant 0 : index
    %c0_937 = arith.constant 0 : index
    %c11 = arith.constant 11 : index
    %c0_938 = arith.constant 0 : index
    %831 = vector.load %arg6[%c0_936, %c0_937, %c11, %c0_938] : memref<1x8x16x32xbf16, #tpu.memory_space<vmem>>, vector<1x8x1x32xbf16>
    %832 = vector.shape_cast %831 : vector<1x8x1x32xbf16> to vector<8x32xbf16>
    %833 = vector.shape_cast %830 : vector<8x32xbf16> to vector<1x8x1x32xbf16>
    tpu.vector_store %arg6[%c0_936, %c0_937, %c11, %c0_938], %833 {strides = array<i32>} : memref<1x8x16x32xbf16, #tpu.memory_space<vmem>>, vector<1x8x1x32xbf16>,
    %cst_939 = arith.constant dense<0.000000e+00> : vector<8xf32>
    %834 = vector.multi_reduction <add>, %829, %cst_939 [1] : vector<8x32xf32> to vector<8xf32>
    %835 = vector.shape_cast %834 : vector<8xf32> to vector<8x1xf32>
    %836 = arith.addf %774, %835 : vector<8x1xf32>
    %837 = arith.mulf %829, %829 : vector<8x32xf32>
    %cst_940 = arith.constant dense<0.000000e+00> : vector<8xf32>
    %838 = vector.multi_reduction <add>, %837, %cst_940 [1] : vector<8x32xf32> to vector<8xf32>
    %839 = vector.shape_cast %838 : vector<8xf32> to vector<8x1xf32>
    %840 = arith.addf %778, %839 : vector<8x1xf32>
    %c6_i32 = arith.constant 6 : i32
    %841 = arith.addi %6, %c6_i32 : i32
    %c0_i32_941 = arith.constant 0 : i32
    %842 = arith.addi %841, %c0_i32_941 : i32
    %c0_942 = arith.constant 0 : index
    %843 = arith.index_cast %842 : i32 to index
    %c0_943 = arith.constant 0 : index
    %c0_944 = arith.constant 0 : index
    %844 = vector.load %arg2[%c0_942, %843, %c0_943, %c0_944] : memref<1x18x4x18xbf16, #tpu.memory_space<vmem>>, vector<1x1x4x18xbf16>
    %845 = vector.shape_cast %844 : vector<1x1x4x18xbf16> to vector<4x18xbf16>
    %c6_i32_945 = arith.constant 6 : i32
    %846 = arith.addi %6, %c6_i32_945 : i32
    %c1_i32_946 = arith.constant 1 : i32
    %847 = arith.addi %846, %c1_i32_946 : i32
    %c0_947 = arith.constant 0 : index
    %848 = arith.index_cast %847 : i32 to index
    %c0_948 = arith.constant 0 : index
    %c0_949 = arith.constant 0 : index
    %849 = vector.load %arg2[%c0_947, %848, %c0_948, %c0_949] : memref<1x18x4x18xbf16, #tpu.memory_space<vmem>>, vector<1x1x4x18xbf16>
    %850 = vector.shape_cast %849 : vector<1x1x4x18xbf16> to vector<4x18xbf16>
    %c6_i32_950 = arith.constant 6 : i32
    %851 = arith.addi %6, %c6_i32_950 : i32
    %c2_i32_951 = arith.constant 2 : i32
    %852 = arith.addi %851, %c2_i32_951 : i32
    %c0_952 = arith.constant 0 : index
    %853 = arith.index_cast %852 : i32 to index
    %c0_953 = arith.constant 0 : index
    %c0_954 = arith.constant 0 : index
    %854 = vector.load %arg2[%c0_952, %853, %c0_953, %c0_954] : memref<1x18x4x18xbf16, #tpu.memory_space<vmem>>, vector<1x1x4x18xbf16>
    %855 = vector.shape_cast %854 : vector<1x1x4x18xbf16> to vector<4x18xbf16>
    %cst_955 = arith.constant 0.000000e+00 : f32
    %856 = vector.broadcast %cst_955 : f32 to vector<8x16xf32>
    %857 = vector.extract_strided_slice %845 {offsets = [0, 0], sizes = [4, 16], strides = [1, 1]} : vector<4x18xbf16> to vector<4x16xbf16>
    %c0_956 = arith.constant 0 : index
    %c0_957 = arith.constant 0 : index
    %c0_958 = arith.constant 0 : index
    %c0_959 = arith.constant 0 : index
    %c0_960 = arith.constant 0 : index
    %c0_961 = arith.constant 0 : index
    %858 = vector.load %arg3[%c0_956, %c0_957, %c0_958, %c0_959, %c0_960, %c0_961] : memref<2x2x2x2x8x4xbf16, #tpu.memory_space<vmem>>, vector<1x1x1x1x8x4xbf16>
    %859 = vector.shape_cast %858 : vector<1x1x1x1x8x4xbf16> to vector<8x4xbf16>
    %cst_962 = arith.constant dense<0.000000e+00> : vector<8x16xf32>
    %860 = tpu.matmul %859, %857, %cst_962 {dimension_numbers = #tpu.dot_dimension_numbers<[1], [0], [0], [1], [0, 0, 1, 1], [], []>} : vector<8x4xbf16>, vector<4x16xbf16>, vector<8x16xf32> -> vector<8x16xf32>
    %861 = arith.addf %856, %860 : vector<8x16xf32>
    %862 = vector.extract_strided_slice %845 {offsets = [0, 1], sizes = [4, 16], strides = [1, 1]} : vector<4x18xbf16> to vector<4x16xbf16>
    %c0_963 = arith.constant 0 : index
    %c0_964 = arith.constant 0 : index
    %c0_965 = arith.constant 0 : index
    %c1_966 = arith.constant 1 : index
    %c0_967 = arith.constant 0 : index
    %c0_968 = arith.constant 0 : index
    %863 = vector.load %arg3[%c0_963, %c0_964, %c0_965, %c1_966, %c0_967, %c0_968] : memref<2x2x2x2x8x4xbf16, #tpu.memory_space<vmem>>, vector<1x1x1x1x8x4xbf16>
    %864 = vector.shape_cast %863 : vector<1x1x1x1x8x4xbf16> to vector<8x4xbf16>
    %cst_969 = arith.constant dense<0.000000e+00> : vector<8x16xf32>
    %865 = tpu.matmul %864, %862, %cst_969 {dimension_numbers = #tpu.dot_dimension_numbers<[1], [0], [0], [1], [0, 0, 1, 1], [], []>} : vector<8x4xbf16>, vector<4x16xbf16>, vector<8x16xf32> -> vector<8x16xf32>
    %866 = arith.addf %861, %865 : vector<8x16xf32>
    %867 = vector.extract_strided_slice %850 {offsets = [0, 0], sizes = [4, 16], strides = [1, 1]} : vector<4x18xbf16> to vector<4x16xbf16>
    %c0_970 = arith.constant 0 : index
    %c0_971 = arith.constant 0 : index
    %c1_972 = arith.constant 1 : index
    %c0_973 = arith.constant 0 : index
    %c0_974 = arith.constant 0 : index
    %c0_975 = arith.constant 0 : index
    %868 = vector.load %arg3[%c0_970, %c0_971, %c1_972, %c0_973, %c0_974, %c0_975] : memref<2x2x2x2x8x4xbf16, #tpu.memory_space<vmem>>, vector<1x1x1x1x8x4xbf16>
    %869 = vector.shape_cast %868 : vector<1x1x1x1x8x4xbf16> to vector<8x4xbf16>
    %cst_976 = arith.constant dense<0.000000e+00> : vector<8x16xf32>
    %870 = tpu.matmul %869, %867, %cst_976 {dimension_numbers = #tpu.dot_dimension_numbers<[1], [0], [0], [1], [0, 0, 1, 1], [], []>} : vector<8x4xbf16>, vector<4x16xbf16>, vector<8x16xf32> -> vector<8x16xf32>
    %871 = arith.addf %866, %870 : vector<8x16xf32>
    %872 = vector.extract_strided_slice %850 {offsets = [0, 1], sizes = [4, 16], strides = [1, 1]} : vector<4x18xbf16> to vector<4x16xbf16>
    %c0_977 = arith.constant 0 : index
    %c0_978 = arith.constant 0 : index
    %c1_979 = arith.constant 1 : index
    %c1_980 = arith.constant 1 : index
    %c0_981 = arith.constant 0 : index
    %c0_982 = arith.constant 0 : index
    %873 = vector.load %arg3[%c0_977, %c0_978, %c1_979, %c1_980, %c0_981, %c0_982] : memref<2x2x2x2x8x4xbf16, #tpu.memory_space<vmem>>, vector<1x1x1x1x8x4xbf16>
    %874 = vector.shape_cast %873 : vector<1x1x1x1x8x4xbf16> to vector<8x4xbf16>
    %cst_983 = arith.constant dense<0.000000e+00> : vector<8x16xf32>
    %875 = tpu.matmul %874, %872, %cst_983 {dimension_numbers = #tpu.dot_dimension_numbers<[1], [0], [0], [1], [0, 0, 1, 1], [], []>} : vector<8x4xbf16>, vector<4x16xbf16>, vector<8x16xf32> -> vector<8x16xf32>
    %876 = arith.addf %871, %875 : vector<8x16xf32>
    %cst_984 = arith.constant 0.000000e+00 : f32
    %877 = vector.broadcast %cst_984 : f32 to vector<8x16xf32>
    %878 = vector.extract_strided_slice %845 {offsets = [0, 1], sizes = [4, 16], strides = [1, 1]} : vector<4x18xbf16> to vector<4x16xbf16>
    %c0_985 = arith.constant 0 : index
    %c1_986 = arith.constant 1 : index
    %c0_987 = arith.constant 0 : index
    %c0_988 = arith.constant 0 : index
    %c0_989 = arith.constant 0 : index
    %c0_990 = arith.constant 0 : index
    %879 = vector.load %arg3[%c0_985, %c1_986, %c0_987, %c0_988, %c0_989, %c0_990] : memref<2x2x2x2x8x4xbf16, #tpu.memory_space<vmem>>, vector<1x1x1x1x8x4xbf16>
    %880 = vector.shape_cast %879 : vector<1x1x1x1x8x4xbf16> to vector<8x4xbf16>
    %cst_991 = arith.constant dense<0.000000e+00> : vector<8x16xf32>
    %881 = tpu.matmul %880, %878, %cst_991 {dimension_numbers = #tpu.dot_dimension_numbers<[1], [0], [0], [1], [0, 0, 1, 1], [], []>} : vector<8x4xbf16>, vector<4x16xbf16>, vector<8x16xf32> -> vector<8x16xf32>
    %882 = arith.addf %877, %881 : vector<8x16xf32>
    %883 = vector.extract_strided_slice %845 {offsets = [0, 2], sizes = [4, 16], strides = [1, 1]} : vector<4x18xbf16> to vector<4x16xbf16>
    %c0_992 = arith.constant 0 : index
    %c1_993 = arith.constant 1 : index
    %c0_994 = arith.constant 0 : index
    %c1_995 = arith.constant 1 : index
    %c0_996 = arith.constant 0 : index
    %c0_997 = arith.constant 0 : index
    %884 = vector.load %arg3[%c0_992, %c1_993, %c0_994, %c1_995, %c0_996, %c0_997] : memref<2x2x2x2x8x4xbf16, #tpu.memory_space<vmem>>, vector<1x1x1x1x8x4xbf16>
    %885 = vector.shape_cast %884 : vector<1x1x1x1x8x4xbf16> to vector<8x4xbf16>
    %cst_998 = arith.constant dense<0.000000e+00> : vector<8x16xf32>
    %886 = tpu.matmul %885, %883, %cst_998 {dimension_numbers = #tpu.dot_dimension_numbers<[1], [0], [0], [1], [0, 0, 1, 1], [], []>} : vector<8x4xbf16>, vector<4x16xbf16>, vector<8x16xf32> -> vector<8x16xf32>
    %887 = arith.addf %882, %886 : vector<8x16xf32>
    %888 = vector.extract_strided_slice %850 {offsets = [0, 1], sizes = [4, 16], strides = [1, 1]} : vector<4x18xbf16> to vector<4x16xbf16>
    %c0_999 = arith.constant 0 : index
    %c1_1000 = arith.constant 1 : index
    %c1_1001 = arith.constant 1 : index
    %c0_1002 = arith.constant 0 : index
    %c0_1003 = arith.constant 0 : index
    %c0_1004 = arith.constant 0 : index
    %889 = vector.load %arg3[%c0_999, %c1_1000, %c1_1001, %c0_1002, %c0_1003, %c0_1004] : memref<2x2x2x2x8x4xbf16, #tpu.memory_space<vmem>>, vector<1x1x1x1x8x4xbf16>
    %890 = vector.shape_cast %889 : vector<1x1x1x1x8x4xbf16> to vector<8x4xbf16>
    %cst_1005 = arith.constant dense<0.000000e+00> : vector<8x16xf32>
    %891 = tpu.matmul %890, %888, %cst_1005 {dimension_numbers = #tpu.dot_dimension_numbers<[1], [0], [0], [1], [0, 0, 1, 1], [], []>} : vector<8x4xbf16>, vector<4x16xbf16>, vector<8x16xf32> -> vector<8x16xf32>
    %892 = arith.addf %887, %891 : vector<8x16xf32>
    %893 = vector.extract_strided_slice %850 {offsets = [0, 2], sizes = [4, 16], strides = [1, 1]} : vector<4x18xbf16> to vector<4x16xbf16>
    %c0_1006 = arith.constant 0 : index
    %c1_1007 = arith.constant 1 : index
    %c1_1008 = arith.constant 1 : index
    %c1_1009 = arith.constant 1 : index
    %c0_1010 = arith.constant 0 : index
    %c0_1011 = arith.constant 0 : index
    %894 = vector.load %arg3[%c0_1006, %c1_1007, %c1_1008, %c1_1009, %c0_1010, %c0_1011] : memref<2x2x2x2x8x4xbf16, #tpu.memory_space<vmem>>, vector<1x1x1x1x8x4xbf16>
    %895 = vector.shape_cast %894 : vector<1x1x1x1x8x4xbf16> to vector<8x4xbf16>
    %cst_1012 = arith.constant dense<0.000000e+00> : vector<8x16xf32>
    %896 = tpu.matmul %895, %893, %cst_1012 {dimension_numbers = #tpu.dot_dimension_numbers<[1], [0], [0], [1], [0, 0, 1, 1], [], []>} : vector<8x4xbf16>, vector<4x16xbf16>, vector<8x16xf32> -> vector<8x16xf32>
    %897 = arith.addf %892, %896 : vector<8x16xf32>
    %c0_1013 = arith.constant 0 : index
    %c0_1014 = arith.constant 0 : index
    %c0_1015 = arith.constant 0 : index
    %898 = vector.load %arg4[%c0_1013, %c0_1014, %c0_1015] : memref<2x16x32xf32, #tpu.memory_space<vmem>>, vector<1x16x32xf32>
    %899 = vector.shape_cast %898 : vector<1x16x32xf32> to vector<16x32xf32>
    %cst_1016 = arith.constant dense<0.000000e+00> : vector<8x32xf32>
    %900 = tpu.matmul %876, %899, %cst_1016 {dimension_numbers = #tpu.dot_dimension_numbers<[1], [0], [0], [1], [0, 0, 1, 1], [], []>} : vector<8x16xf32>, vector<16x32xf32>, vector<8x32xf32> -> vector<8x32xf32>
    %c1_1017 = arith.constant 1 : index
    %c0_1018 = arith.constant 0 : index
    %c0_1019 = arith.constant 0 : index
    %901 = vector.load %arg4[%c1_1017, %c0_1018, %c0_1019] : memref<2x16x32xf32, #tpu.memory_space<vmem>>, vector<1x16x32xf32>
    %902 = vector.shape_cast %901 : vector<1x16x32xf32> to vector<16x32xf32>
    %cst_1020 = arith.constant dense<0.000000e+00> : vector<8x32xf32>
    %903 = tpu.matmul %897, %902, %cst_1020 {dimension_numbers = #tpu.dot_dimension_numbers<[1], [0], [0], [1], [0, 0, 1, 1], [], []>} : vector<8x16xf32>, vector<16x32xf32>, vector<8x32xf32> -> vector<8x32xf32>
    %904 = arith.addf %900, %903 : vector<8x32xf32>
    %905 = vector.broadcast %3 : vector<8x1xf32> to vector<8x32xf32>
    %906 = arith.addf %904, %905 : vector<8x32xf32>
    %907 = arith.truncf %906 : vector<8x32xf32> to vector<8x32xbf16>
    %c0_1021 = arith.constant 0 : index
    %c0_1022 = arith.constant 0 : index
    %c12 = arith.constant 12 : index
    %c0_1023 = arith.constant 0 : index
    %908 = vector.load %arg6[%c0_1021, %c0_1022, %c12, %c0_1023] : memref<1x8x16x32xbf16, #tpu.memory_space<vmem>>, vector<1x8x1x32xbf16>
    %909 = vector.shape_cast %908 : vector<1x8x1x32xbf16> to vector<8x32xbf16>
    %910 = vector.shape_cast %907 : vector<8x32xbf16> to vector<1x8x1x32xbf16>
    tpu.vector_store %arg6[%c0_1021, %c0_1022, %c12, %c0_1023], %910 {strides = array<i32>} : memref<1x8x16x32xbf16, #tpu.memory_space<vmem>>, vector<1x8x1x32xbf16>,
    %cst_1024 = arith.constant dense<0.000000e+00> : vector<8xf32>
    %911 = vector.multi_reduction <add>, %906, %cst_1024 [1] : vector<8x32xf32> to vector<8xf32>
    %912 = vector.shape_cast %911 : vector<8xf32> to vector<8x1xf32>
    %913 = arith.addf %836, %912 : vector<8x1xf32>
    %914 = arith.mulf %906, %906 : vector<8x32xf32>
    %cst_1025 = arith.constant dense<0.000000e+00> : vector<8xf32>
    %915 = vector.multi_reduction <add>, %914, %cst_1025 [1] : vector<8x32xf32> to vector<8xf32>
    %916 = vector.shape_cast %915 : vector<8xf32> to vector<8x1xf32>
    %917 = arith.addf %840, %916 : vector<8x1xf32>
    %cst_1026 = arith.constant 0.000000e+00 : f32
    %918 = vector.broadcast %cst_1026 : f32 to vector<8x16xf32>
    %919 = vector.extract_strided_slice %850 {offsets = [0, 0], sizes = [4, 16], strides = [1, 1]} : vector<4x18xbf16> to vector<4x16xbf16>
    %c1_1027 = arith.constant 1 : index
    %c0_1028 = arith.constant 0 : index
    %c0_1029 = arith.constant 0 : index
    %c0_1030 = arith.constant 0 : index
    %c0_1031 = arith.constant 0 : index
    %c0_1032 = arith.constant 0 : index
    %920 = vector.load %arg3[%c1_1027, %c0_1028, %c0_1029, %c0_1030, %c0_1031, %c0_1032] : memref<2x2x2x2x8x4xbf16, #tpu.memory_space<vmem>>, vector<1x1x1x1x8x4xbf16>
    %921 = vector.shape_cast %920 : vector<1x1x1x1x8x4xbf16> to vector<8x4xbf16>
    %cst_1033 = arith.constant dense<0.000000e+00> : vector<8x16xf32>
    %922 = tpu.matmul %921, %919, %cst_1033 {dimension_numbers = #tpu.dot_dimension_numbers<[1], [0], [0], [1], [0, 0, 1, 1], [], []>} : vector<8x4xbf16>, vector<4x16xbf16>, vector<8x16xf32> -> vector<8x16xf32>
    %923 = arith.addf %918, %922 : vector<8x16xf32>
    %924 = vector.extract_strided_slice %850 {offsets = [0, 1], sizes = [4, 16], strides = [1, 1]} : vector<4x18xbf16> to vector<4x16xbf16>
    %c1_1034 = arith.constant 1 : index
    %c0_1035 = arith.constant 0 : index
    %c0_1036 = arith.constant 0 : index
    %c1_1037 = arith.constant 1 : index
    %c0_1038 = arith.constant 0 : index
    %c0_1039 = arith.constant 0 : index
    %925 = vector.load %arg3[%c1_1034, %c0_1035, %c0_1036, %c1_1037, %c0_1038, %c0_1039] : memref<2x2x2x2x8x4xbf16, #tpu.memory_space<vmem>>, vector<1x1x1x1x8x4xbf16>
    %926 = vector.shape_cast %925 : vector<1x1x1x1x8x4xbf16> to vector<8x4xbf16>
    %cst_1040 = arith.constant dense<0.000000e+00> : vector<8x16xf32>
    %927 = tpu.matmul %926, %924, %cst_1040 {dimension_numbers = #tpu.dot_dimension_numbers<[1], [0], [0], [1], [0, 0, 1, 1], [], []>} : vector<8x4xbf16>, vector<4x16xbf16>, vector<8x16xf32> -> vector<8x16xf32>
    %928 = arith.addf %923, %927 : vector<8x16xf32>
    %929 = vector.extract_strided_slice %855 {offsets = [0, 0], sizes = [4, 16], strides = [1, 1]} : vector<4x18xbf16> to vector<4x16xbf16>
    %c1_1041 = arith.constant 1 : index
    %c0_1042 = arith.constant 0 : index
    %c1_1043 = arith.constant 1 : index
    %c0_1044 = arith.constant 0 : index
    %c0_1045 = arith.constant 0 : index
    %c0_1046 = arith.constant 0 : index
    %930 = vector.load %arg3[%c1_1041, %c0_1042, %c1_1043, %c0_1044, %c0_1045, %c0_1046] : memref<2x2x2x2x8x4xbf16, #tpu.memory_space<vmem>>, vector<1x1x1x1x8x4xbf16>
    %931 = vector.shape_cast %930 : vector<1x1x1x1x8x4xbf16> to vector<8x4xbf16>
    %cst_1047 = arith.constant dense<0.000000e+00> : vector<8x16xf32>
    %932 = tpu.matmul %931, %929, %cst_1047 {dimension_numbers = #tpu.dot_dimension_numbers<[1], [0], [0], [1], [0, 0, 1, 1], [], []>} : vector<8x4xbf16>, vector<4x16xbf16>, vector<8x16xf32> -> vector<8x16xf32>
    %933 = arith.addf %928, %932 : vector<8x16xf32>
    %934 = vector.extract_strided_slice %855 {offsets = [0, 1], sizes = [4, 16], strides = [1, 1]} : vector<4x18xbf16> to vector<4x16xbf16>
    %c1_1048 = arith.constant 1 : index
    %c0_1049 = arith.constant 0 : index
    %c1_1050 = arith.constant 1 : index
    %c1_1051 = arith.constant 1 : index
    %c0_1052 = arith.constant 0 : index
    %c0_1053 = arith.constant 0 : index
    %935 = vector.load %arg3[%c1_1048, %c0_1049, %c1_1050, %c1_1051, %c0_1052, %c0_1053] : memref<2x2x2x2x8x4xbf16, #tpu.memory_space<vmem>>, vector<1x1x1x1x8x4xbf16>
    %936 = vector.shape_cast %935 : vector<1x1x1x1x8x4xbf16> to vector<8x4xbf16>
    %cst_1054 = arith.constant dense<0.000000e+00> : vector<8x16xf32>
    %937 = tpu.matmul %936, %934, %cst_1054 {dimension_numbers = #tpu.dot_dimension_numbers<[1], [0], [0], [1], [0, 0, 1, 1], [], []>} : vector<8x4xbf16>, vector<4x16xbf16>, vector<8x16xf32> -> vector<8x16xf32>
    %938 = arith.addf %933, %937 : vector<8x16xf32>
    %cst_1055 = arith.constant 0.000000e+00 : f32
    %939 = vector.broadcast %cst_1055 : f32 to vector<8x16xf32>
    %940 = vector.extract_strided_slice %850 {offsets = [0, 1], sizes = [4, 16], strides = [1, 1]} : vector<4x18xbf16> to vector<4x16xbf16>
    %c1_1056 = arith.constant 1 : index
    %c1_1057 = arith.constant 1 : index
    %c0_1058 = arith.constant 0 : index
    %c0_1059 = arith.constant 0 : index
    %c0_1060 = arith.constant 0 : index
    %c0_1061 = arith.constant 0 : index
    %941 = vector.load %arg3[%c1_1056, %c1_1057, %c0_1058, %c0_1059, %c0_1060, %c0_1061] : memref<2x2x2x2x8x4xbf16, #tpu.memory_space<vmem>>, vector<1x1x1x1x8x4xbf16>
    %942 = vector.shape_cast %941 : vector<1x1x1x1x8x4xbf16> to vector<8x4xbf16>
    %cst_1062 = arith.constant dense<0.000000e+00> : vector<8x16xf32>
    %943 = tpu.matmul %942, %940, %cst_1062 {dimension_numbers = #tpu.dot_dimension_numbers<[1], [0], [0], [1], [0, 0, 1, 1], [], []>} : vector<8x4xbf16>, vector<4x16xbf16>, vector<8x16xf32> -> vector<8x16xf32>
    %944 = arith.addf %939, %943 : vector<8x16xf32>
    %945 = vector.extract_strided_slice %850 {offsets = [0, 2], sizes = [4, 16], strides = [1, 1]} : vector<4x18xbf16> to vector<4x16xbf16>
    %c1_1063 = arith.constant 1 : index
    %c1_1064 = arith.constant 1 : index
    %c0_1065 = arith.constant 0 : index
    %c1_1066 = arith.constant 1 : index
    %c0_1067 = arith.constant 0 : index
    %c0_1068 = arith.constant 0 : index
    %946 = vector.load %arg3[%c1_1063, %c1_1064, %c0_1065, %c1_1066, %c0_1067, %c0_1068] : memref<2x2x2x2x8x4xbf16, #tpu.memory_space<vmem>>, vector<1x1x1x1x8x4xbf16>
    %947 = vector.shape_cast %946 : vector<1x1x1x1x8x4xbf16> to vector<8x4xbf16>
    %cst_1069 = arith.constant dense<0.000000e+00> : vector<8x16xf32>
    %948 = tpu.matmul %947, %945, %cst_1069 {dimension_numbers = #tpu.dot_dimension_numbers<[1], [0], [0], [1], [0, 0, 1, 1], [], []>} : vector<8x4xbf16>, vector<4x16xbf16>, vector<8x16xf32> -> vector<8x16xf32>
    %949 = arith.addf %944, %948 : vector<8x16xf32>
    %950 = vector.extract_strided_slice %855 {offsets = [0, 1], sizes = [4, 16], strides = [1, 1]} : vector<4x18xbf16> to vector<4x16xbf16>
    %c1_1070 = arith.constant 1 : index
    %c1_1071 = arith.constant 1 : index
    %c1_1072 = arith.constant 1 : index
    %c0_1073 = arith.constant 0 : index
    %c0_1074 = arith.constant 0 : index
    %c0_1075 = arith.constant 0 : index
    %951 = vector.load %arg3[%c1_1070, %c1_1071, %c1_1072, %c0_1073, %c0_1074, %c0_1075] : memref<2x2x2x2x8x4xbf16, #tpu.memory_space<vmem>>, vector<1x1x1x1x8x4xbf16>
    %952 = vector.shape_cast %951 : vector<1x1x1x1x8x4xbf16> to vector<8x4xbf16>
    %cst_1076 = arith.constant dense<0.000000e+00> : vector<8x16xf32>
    %953 = tpu.matmul %952, %950, %cst_1076 {dimension_numbers = #tpu.dot_dimension_numbers<[1], [0], [0], [1], [0, 0, 1, 1], [], []>} : vector<8x4xbf16>, vector<4x16xbf16>, vector<8x16xf32> -> vector<8x16xf32>
    %954 = arith.addf %949, %953 : vector<8x16xf32>
    %955 = vector.extract_strided_slice %855 {offsets = [0, 2], sizes = [4, 16], strides = [1, 1]} : vector<4x18xbf16> to vector<4x16xbf16>
    %c1_1077 = arith.constant 1 : index
    %c1_1078 = arith.constant 1 : index
    %c1_1079 = arith.constant 1 : index
    %c1_1080 = arith.constant 1 : index
    %c0_1081 = arith.constant 0 : index
    %c0_1082 = arith.constant 0 : index
    %956 = vector.load %arg3[%c1_1077, %c1_1078, %c1_1079, %c1_1080, %c0_1081, %c0_1082] : memref<2x2x2x2x8x4xbf16, #tpu.memory_space<vmem>>, vector<1x1x1x1x8x4xbf16>
    %957 = vector.shape_cast %956 : vector<1x1x1x1x8x4xbf16> to vector<8x4xbf16>
    %cst_1083 = arith.constant dense<0.000000e+00> : vector<8x16xf32>
    %958 = tpu.matmul %957, %955, %cst_1083 {dimension_numbers = #tpu.dot_dimension_numbers<[1], [0], [0], [1], [0, 0, 1, 1], [], []>} : vector<8x4xbf16>, vector<4x16xbf16>, vector<8x16xf32> -> vector<8x16xf32>
    %959 = arith.addf %954, %958 : vector<8x16xf32>
    %c0_1084 = arith.constant 0 : index
    %c0_1085 = arith.constant 0 : index
    %c0_1086 = arith.constant 0 : index
    %960 = vector.load %arg4[%c0_1084, %c0_1085, %c0_1086] : memref<2x16x32xf32, #tpu.memory_space<vmem>>, vector<1x16x32xf32>
    %961 = vector.shape_cast %960 : vector<1x16x32xf32> to vector<16x32xf32>
    %cst_1087 = arith.constant dense<0.000000e+00> : vector<8x32xf32>
    %962 = tpu.matmul %938, %961, %cst_1087 {dimension_numbers = #tpu.dot_dimension_numbers<[1], [0], [0], [1], [0, 0, 1, 1], [], []>} : vector<8x16xf32>, vector<16x32xf32>, vector<8x32xf32> -> vector<8x32xf32>
    %c1_1088 = arith.constant 1 : index
    %c0_1089 = arith.constant 0 : index
    %c0_1090 = arith.constant 0 : index
    %963 = vector.load %arg4[%c1_1088, %c0_1089, %c0_1090] : memref<2x16x32xf32, #tpu.memory_space<vmem>>, vector<1x16x32xf32>
    %964 = vector.shape_cast %963 : vector<1x16x32xf32> to vector<16x32xf32>
    %cst_1091 = arith.constant dense<0.000000e+00> : vector<8x32xf32>
    %965 = tpu.matmul %959, %964, %cst_1091 {dimension_numbers = #tpu.dot_dimension_numbers<[1], [0], [0], [1], [0, 0, 1, 1], [], []>} : vector<8x16xf32>, vector<16x32xf32>, vector<8x32xf32> -> vector<8x32xf32>
    %966 = arith.addf %962, %965 : vector<8x32xf32>
    %967 = vector.broadcast %3 : vector<8x1xf32> to vector<8x32xf32>
    %968 = arith.addf %966, %967 : vector<8x32xf32>
    %969 = arith.truncf %968 : vector<8x32xf32> to vector<8x32xbf16>
    %c0_1092 = arith.constant 0 : index
    %c0_1093 = arith.constant 0 : index
    %c13 = arith.constant 13 : index
    %c0_1094 = arith.constant 0 : index
    %970 = vector.load %arg6[%c0_1092, %c0_1093, %c13, %c0_1094] : memref<1x8x16x32xbf16, #tpu.memory_space<vmem>>, vector<1x8x1x32xbf16>
    %971 = vector.shape_cast %970 : vector<1x8x1x32xbf16> to vector<8x32xbf16>
    %972 = vector.shape_cast %969 : vector<8x32xbf16> to vector<1x8x1x32xbf16>
    tpu.vector_store %arg6[%c0_1092, %c0_1093, %c13, %c0_1094], %972 {strides = array<i32>} : memref<1x8x16x32xbf16, #tpu.memory_space<vmem>>, vector<1x8x1x32xbf16>,
    %cst_1095 = arith.constant dense<0.000000e+00> : vector<8xf32>
    %973 = vector.multi_reduction <add>, %968, %cst_1095 [1] : vector<8x32xf32> to vector<8xf32>
    %974 = vector.shape_cast %973 : vector<8xf32> to vector<8x1xf32>
    %975 = arith.addf %913, %974 : vector<8x1xf32>
    %976 = arith.mulf %968, %968 : vector<8x32xf32>
    %cst_1096 = arith.constant dense<0.000000e+00> : vector<8xf32>
    %977 = vector.multi_reduction <add>, %976, %cst_1096 [1] : vector<8x32xf32> to vector<8xf32>
    %978 = vector.shape_cast %977 : vector<8xf32> to vector<8x1xf32>
    %979 = arith.addf %917, %978 : vector<8x1xf32>
    %c7_i32 = arith.constant 7 : i32
    %980 = arith.addi %6, %c7_i32 : i32
    %c0_i32_1097 = arith.constant 0 : i32
    %981 = arith.addi %980, %c0_i32_1097 : i32
    %c0_1098 = arith.constant 0 : index
    %982 = arith.index_cast %981 : i32 to index
    %c0_1099 = arith.constant 0 : index
    %c0_1100 = arith.constant 0 : index
    %983 = vector.load %arg2[%c0_1098, %982, %c0_1099, %c0_1100] : memref<1x18x4x18xbf16, #tpu.memory_space<vmem>>, vector<1x1x4x18xbf16>
    %984 = vector.shape_cast %983 : vector<1x1x4x18xbf16> to vector<4x18xbf16>
    %c7_i32_1101 = arith.constant 7 : i32
    %985 = arith.addi %6, %c7_i32_1101 : i32
    %c1_i32_1102 = arith.constant 1 : i32
    %986 = arith.addi %985, %c1_i32_1102 : i32
    %c0_1103 = arith.constant 0 : index
    %987 = arith.index_cast %986 : i32 to index
    %c0_1104 = arith.constant 0 : index
    %c0_1105 = arith.constant 0 : index
    %988 = vector.load %arg2[%c0_1103, %987, %c0_1104, %c0_1105] : memref<1x18x4x18xbf16, #tpu.memory_space<vmem>>, vector<1x1x4x18xbf16>
    %989 = vector.shape_cast %988 : vector<1x1x4x18xbf16> to vector<4x18xbf16>
    %c7_i32_1106 = arith.constant 7 : i32
    %990 = arith.addi %6, %c7_i32_1106 : i32
    %c2_i32_1107 = arith.constant 2 : i32
    %991 = arith.addi %990, %c2_i32_1107 : i32
    %c0_1108 = arith.constant 0 : index
    %992 = arith.index_cast %991 : i32 to index
    %c0_1109 = arith.constant 0 : index
    %c0_1110 = arith.constant 0 : index
    %993 = vector.load %arg2[%c0_1108, %992, %c0_1109, %c0_1110] : memref<1x18x4x18xbf16, #tpu.memory_space<vmem>>, vector<1x1x4x18xbf16>
    %994 = vector.shape_cast %993 : vector<1x1x4x18xbf16> to vector<4x18xbf16>
    %cst_1111 = arith.constant 0.000000e+00 : f32
    %995 = vector.broadcast %cst_1111 : f32 to vector<8x16xf32>
    %996 = vector.extract_strided_slice %984 {offsets = [0, 0], sizes = [4, 16], strides = [1, 1]} : vector<4x18xbf16> to vector<4x16xbf16>
    %c0_1112 = arith.constant 0 : index
    %c0_1113 = arith.constant 0 : index
    %c0_1114 = arith.constant 0 : index
    %c0_1115 = arith.constant 0 : index
    %c0_1116 = arith.constant 0 : index
    %c0_1117 = arith.constant 0 : index
    %997 = vector.load %arg3[%c0_1112, %c0_1113, %c0_1114, %c0_1115, %c0_1116, %c0_1117] : memref<2x2x2x2x8x4xbf16, #tpu.memory_space<vmem>>, vector<1x1x1x1x8x4xbf16>
    %998 = vector.shape_cast %997 : vector<1x1x1x1x8x4xbf16> to vector<8x4xbf16>
    %cst_1118 = arith.constant dense<0.000000e+00> : vector<8x16xf32>
    %999 = tpu.matmul %998, %996, %cst_1118 {dimension_numbers = #tpu.dot_dimension_numbers<[1], [0], [0], [1], [0, 0, 1, 1], [], []>} : vector<8x4xbf16>, vector<4x16xbf16>, vector<8x16xf32> -> vector<8x16xf32>
    %1000 = arith.addf %995, %999 : vector<8x16xf32>
    %1001 = vector.extract_strided_slice %984 {offsets = [0, 1], sizes = [4, 16], strides = [1, 1]} : vector<4x18xbf16> to vector<4x16xbf16>
    %c0_1119 = arith.constant 0 : index
    %c0_1120 = arith.constant 0 : index
    %c0_1121 = arith.constant 0 : index
    %c1_1122 = arith.constant 1 : index
    %c0_1123 = arith.constant 0 : index
    %c0_1124 = arith.constant 0 : index
    %1002 = vector.load %arg3[%c0_1119, %c0_1120, %c0_1121, %c1_1122, %c0_1123, %c0_1124] : memref<2x2x2x2x8x4xbf16, #tpu.memory_space<vmem>>, vector<1x1x1x1x8x4xbf16>
    %1003 = vector.shape_cast %1002 : vector<1x1x1x1x8x4xbf16> to vector<8x4xbf16>
    %cst_1125 = arith.constant dense<0.000000e+00> : vector<8x16xf32>
    %1004 = tpu.matmul %1003, %1001, %cst_1125 {dimension_numbers = #tpu.dot_dimension_numbers<[1], [0], [0], [1], [0, 0, 1, 1], [], []>} : vector<8x4xbf16>, vector<4x16xbf16>, vector<8x16xf32> -> vector<8x16xf32>
    %1005 = arith.addf %1000, %1004 : vector<8x16xf32>
    %1006 = vector.extract_strided_slice %989 {offsets = [0, 0], sizes = [4, 16], strides = [1, 1]} : vector<4x18xbf16> to vector<4x16xbf16>
    %c0_1126 = arith.constant 0 : index
    %c0_1127 = arith.constant 0 : index
    %c1_1128 = arith.constant 1 : index
    %c0_1129 = arith.constant 0 : index
    %c0_1130 = arith.constant 0 : index
    %c0_1131 = arith.constant 0 : index
    %1007 = vector.load %arg3[%c0_1126, %c0_1127, %c1_1128, %c0_1129, %c0_1130, %c0_1131] : memref<2x2x2x2x8x4xbf16, #tpu.memory_space<vmem>>, vector<1x1x1x1x8x4xbf16>
    %1008 = vector.shape_cast %1007 : vector<1x1x1x1x8x4xbf16> to vector<8x4xbf16>
    %cst_1132 = arith.constant dense<0.000000e+00> : vector<8x16xf32>
    %1009 = tpu.matmul %1008, %1006, %cst_1132 {dimension_numbers = #tpu.dot_dimension_numbers<[1], [0], [0], [1], [0, 0, 1, 1], [], []>} : vector<8x4xbf16>, vector<4x16xbf16>, vector<8x16xf32> -> vector<8x16xf32>
    %1010 = arith.addf %1005, %1009 : vector<8x16xf32>
    %1011 = vector.extract_strided_slice %989 {offsets = [0, 1], sizes = [4, 16], strides = [1, 1]} : vector<4x18xbf16> to vector<4x16xbf16>
    %c0_1133 = arith.constant 0 : index
    %c0_1134 = arith.constant 0 : index
    %c1_1135 = arith.constant 1 : index
    %c1_1136 = arith.constant 1 : index
    %c0_1137 = arith.constant 0 : index
    %c0_1138 = arith.constant 0 : index
    %1012 = vector.load %arg3[%c0_1133, %c0_1134, %c1_1135, %c1_1136, %c0_1137, %c0_1138] : memref<2x2x2x2x8x4xbf16, #tpu.memory_space<vmem>>, vector<1x1x1x1x8x4xbf16>
    %1013 = vector.shape_cast %1012 : vector<1x1x1x1x8x4xbf16> to vector<8x4xbf16>
    %cst_1139 = arith.constant dense<0.000000e+00> : vector<8x16xf32>
    %1014 = tpu.matmul %1013, %1011, %cst_1139 {dimension_numbers = #tpu.dot_dimension_numbers<[1], [0], [0], [1], [0, 0, 1, 1], [], []>} : vector<8x4xbf16>, vector<4x16xbf16>, vector<8x16xf32> -> vector<8x16xf32>
    %1015 = arith.addf %1010, %1014 : vector<8x16xf32>
    %cst_1140 = arith.constant 0.000000e+00 : f32
    %1016 = vector.broadcast %cst_1140 : f32 to vector<8x16xf32>
    %1017 = vector.extract_strided_slice %984 {offsets = [0, 1], sizes = [4, 16], strides = [1, 1]} : vector<4x18xbf16> to vector<4x16xbf16>
    %c0_1141 = arith.constant 0 : index
    %c1_1142 = arith.constant 1 : index
    %c0_1143 = arith.constant 0 : index
    %c0_1144 = arith.constant 0 : index
    %c0_1145 = arith.constant 0 : index
    %c0_1146 = arith.constant 0 : index
    %1018 = vector.load %arg3[%c0_1141, %c1_1142, %c0_1143, %c0_1144, %c0_1145, %c0_1146] : memref<2x2x2x2x8x4xbf16, #tpu.memory_space<vmem>>, vector<1x1x1x1x8x4xbf16>
    %1019 = vector.shape_cast %1018 : vector<1x1x1x1x8x4xbf16> to vector<8x4xbf16>
    %cst_1147 = arith.constant dense<0.000000e+00> : vector<8x16xf32>
    %1020 = tpu.matmul %1019, %1017, %cst_1147 {dimension_numbers = #tpu.dot_dimension_numbers<[1], [0], [0], [1], [0, 0, 1, 1], [], []>} : vector<8x4xbf16>, vector<4x16xbf16>, vector<8x16xf32> -> vector<8x16xf32>
    %1021 = arith.addf %1016, %1020 : vector<8x16xf32>
    %1022 = vector.extract_strided_slice %984 {offsets = [0, 2], sizes = [4, 16], strides = [1, 1]} : vector<4x18xbf16> to vector<4x16xbf16>
    %c0_1148 = arith.constant 0 : index
    %c1_1149 = arith.constant 1 : index
    %c0_1150 = arith.constant 0 : index
    %c1_1151 = arith.constant 1 : index
    %c0_1152 = arith.constant 0 : index
    %c0_1153 = arith.constant 0 : index
    %1023 = vector.load %arg3[%c0_1148, %c1_1149, %c0_1150, %c1_1151, %c0_1152, %c0_1153] : memref<2x2x2x2x8x4xbf16, #tpu.memory_space<vmem>>, vector<1x1x1x1x8x4xbf16>
    %1024 = vector.shape_cast %1023 : vector<1x1x1x1x8x4xbf16> to vector<8x4xbf16>
    %cst_1154 = arith.constant dense<0.000000e+00> : vector<8x16xf32>
    %1025 = tpu.matmul %1024, %1022, %cst_1154 {dimension_numbers = #tpu.dot_dimension_numbers<[1], [0], [0], [1], [0, 0, 1, 1], [], []>} : vector<8x4xbf16>, vector<4x16xbf16>, vector<8x16xf32> -> vector<8x16xf32>
    %1026 = arith.addf %1021, %1025 : vector<8x16xf32>
    %1027 = vector.extract_strided_slice %989 {offsets = [0, 1], sizes = [4, 16], strides = [1, 1]} : vector<4x18xbf16> to vector<4x16xbf16>
    %c0_1155 = arith.constant 0 : index
    %c1_1156 = arith.constant 1 : index
    %c1_1157 = arith.constant 1 : index
    %c0_1158 = arith.constant 0 : index
    %c0_1159 = arith.constant 0 : index
    %c0_1160 = arith.constant 0 : index
    %1028 = vector.load %arg3[%c0_1155, %c1_1156, %c1_1157, %c0_1158, %c0_1159, %c0_1160] : memref<2x2x2x2x8x4xbf16, #tpu.memory_space<vmem>>, vector<1x1x1x1x8x4xbf16>
    %1029 = vector.shape_cast %1028 : vector<1x1x1x1x8x4xbf16> to vector<8x4xbf16>
    %cst_1161 = arith.constant dense<0.000000e+00> : vector<8x16xf32>
    %1030 = tpu.matmul %1029, %1027, %cst_1161 {dimension_numbers = #tpu.dot_dimension_numbers<[1], [0], [0], [1], [0, 0, 1, 1], [], []>} : vector<8x4xbf16>, vector<4x16xbf16>, vector<8x16xf32> -> vector<8x16xf32>
    %1031 = arith.addf %1026, %1030 : vector<8x16xf32>
    %1032 = vector.extract_strided_slice %989 {offsets = [0, 2], sizes = [4, 16], strides = [1, 1]} : vector<4x18xbf16> to vector<4x16xbf16>
    %c0_1162 = arith.constant 0 : index
    %c1_1163 = arith.constant 1 : index
    %c1_1164 = arith.constant 1 : index
    %c1_1165 = arith.constant 1 : index
    %c0_1166 = arith.constant 0 : index
    %c0_1167 = arith.constant 0 : index
    %1033 = vector.load %arg3[%c0_1162, %c1_1163, %c1_1164, %c1_1165, %c0_1166, %c0_1167] : memref<2x2x2x2x8x4xbf16, #tpu.memory_space<vmem>>, vector<1x1x1x1x8x4xbf16>
    %1034 = vector.shape_cast %1033 : vector<1x1x1x1x8x4xbf16> to vector<8x4xbf16>
    %cst_1168 = arith.constant dense<0.000000e+00> : vector<8x16xf32>
    %1035 = tpu.matmul %1034, %1032, %cst_1168 {dimension_numbers = #tpu.dot_dimension_numbers<[1], [0], [0], [1], [0, 0, 1, 1], [], []>} : vector<8x4xbf16>, vector<4x16xbf16>, vector<8x16xf32> -> vector<8x16xf32>
    %1036 = arith.addf %1031, %1035 : vector<8x16xf32>
    %c0_1169 = arith.constant 0 : index
    %c0_1170 = arith.constant 0 : index
    %c0_1171 = arith.constant 0 : index
    %1037 = vector.load %arg4[%c0_1169, %c0_1170, %c0_1171] : memref<2x16x32xf32, #tpu.memory_space<vmem>>, vector<1x16x32xf32>
    %1038 = vector.shape_cast %1037 : vector<1x16x32xf32> to vector<16x32xf32>
    %cst_1172 = arith.constant dense<0.000000e+00> : vector<8x32xf32>
    %1039 = tpu.matmul %1015, %1038, %cst_1172 {dimension_numbers = #tpu.dot_dimension_numbers<[1], [0], [0], [1], [0, 0, 1, 1], [], []>} : vector<8x16xf32>, vector<16x32xf32>, vector<8x32xf32> -> vector<8x32xf32>
    %c1_1173 = arith.constant 1 : index
    %c0_1174 = arith.constant 0 : index
    %c0_1175 = arith.constant 0 : index
    %1040 = vector.load %arg4[%c1_1173, %c0_1174, %c0_1175] : memref<2x16x32xf32, #tpu.memory_space<vmem>>, vector<1x16x32xf32>
    %1041 = vector.shape_cast %1040 : vector<1x16x32xf32> to vector<16x32xf32>
    %cst_1176 = arith.constant dense<0.000000e+00> : vector<8x32xf32>
    %1042 = tpu.matmul %1036, %1041, %cst_1176 {dimension_numbers = #tpu.dot_dimension_numbers<[1], [0], [0], [1], [0, 0, 1, 1], [], []>} : vector<8x16xf32>, vector<16x32xf32>, vector<8x32xf32> -> vector<8x32xf32>
    %1043 = arith.addf %1039, %1042 : vector<8x32xf32>
    %1044 = vector.broadcast %3 : vector<8x1xf32> to vector<8x32xf32>
    %1045 = arith.addf %1043, %1044 : vector<8x32xf32>
    %1046 = arith.truncf %1045 : vector<8x32xf32> to vector<8x32xbf16>
    %c0_1177 = arith.constant 0 : index
    %c0_1178 = arith.constant 0 : index
    %c14 = arith.constant 14 : index
    %c0_1179 = arith.constant 0 : index
    %1047 = vector.load %arg6[%c0_1177, %c0_1178, %c14, %c0_1179] : memref<1x8x16x32xbf16, #tpu.memory_space<vmem>>, vector<1x8x1x32xbf16>
    %1048 = vector.shape_cast %1047 : vector<1x8x1x32xbf16> to vector<8x32xbf16>
    %1049 = vector.shape_cast %1046 : vector<8x32xbf16> to vector<1x8x1x32xbf16>
    tpu.vector_store %arg6[%c0_1177, %c0_1178, %c14, %c0_1179], %1049 {strides = array<i32>} : memref<1x8x16x32xbf16, #tpu.memory_space<vmem>>, vector<1x8x1x32xbf16>,
    %cst_1180 = arith.constant dense<0.000000e+00> : vector<8xf32>
    %1050 = vector.multi_reduction <add>, %1045, %cst_1180 [1] : vector<8x32xf32> to vector<8xf32>
    %1051 = vector.shape_cast %1050 : vector<8xf32> to vector<8x1xf32>
    %1052 = arith.addf %975, %1051 : vector<8x1xf32>
    %1053 = arith.mulf %1045, %1045 : vector<8x32xf32>
    %cst_1181 = arith.constant dense<0.000000e+00> : vector<8xf32>
    %1054 = vector.multi_reduction <add>, %1053, %cst_1181 [1] : vector<8x32xf32> to vector<8xf32>
    %1055 = vector.shape_cast %1054 : vector<8xf32> to vector<8x1xf32>
    %1056 = arith.addf %979, %1055 : vector<8x1xf32>
    %cst_1182 = arith.constant 0.000000e+00 : f32
    %1057 = vector.broadcast %cst_1182 : f32 to vector<8x16xf32>
    %1058 = vector.extract_strided_slice %989 {offsets = [0, 0], sizes = [4, 16], strides = [1, 1]} : vector<4x18xbf16> to vector<4x16xbf16>
    %c1_1183 = arith.constant 1 : index
    %c0_1184 = arith.constant 0 : index
    %c0_1185 = arith.constant 0 : index
    %c0_1186 = arith.constant 0 : index
    %c0_1187 = arith.constant 0 : index
    %c0_1188 = arith.constant 0 : index
    %1059 = vector.load %arg3[%c1_1183, %c0_1184, %c0_1185, %c0_1186, %c0_1187, %c0_1188] : memref<2x2x2x2x8x4xbf16, #tpu.memory_space<vmem>>, vector<1x1x1x1x8x4xbf16>
    %1060 = vector.shape_cast %1059 : vector<1x1x1x1x8x4xbf16> to vector<8x4xbf16>
    %cst_1189 = arith.constant dense<0.000000e+00> : vector<8x16xf32>
    %1061 = tpu.matmul %1060, %1058, %cst_1189 {dimension_numbers = #tpu.dot_dimension_numbers<[1], [0], [0], [1], [0, 0, 1, 1], [], []>} : vector<8x4xbf16>, vector<4x16xbf16>, vector<8x16xf32> -> vector<8x16xf32>
    %1062 = arith.addf %1057, %1061 : vector<8x16xf32>
    %1063 = vector.extract_strided_slice %989 {offsets = [0, 1], sizes = [4, 16], strides = [1, 1]} : vector<4x18xbf16> to vector<4x16xbf16>
    %c1_1190 = arith.constant 1 : index
    %c0_1191 = arith.constant 0 : index
    %c0_1192 = arith.constant 0 : index
    %c1_1193 = arith.constant 1 : index
    %c0_1194 = arith.constant 0 : index
    %c0_1195 = arith.constant 0 : index
    %1064 = vector.load %arg3[%c1_1190, %c0_1191, %c0_1192, %c1_1193, %c0_1194, %c0_1195] : memref<2x2x2x2x8x4xbf16, #tpu.memory_space<vmem>>, vector<1x1x1x1x8x4xbf16>
    %1065 = vector.shape_cast %1064 : vector<1x1x1x1x8x4xbf16> to vector<8x4xbf16>
    %cst_1196 = arith.constant dense<0.000000e+00> : vector<8x16xf32>
    %1066 = tpu.matmul %1065, %1063, %cst_1196 {dimension_numbers = #tpu.dot_dimension_numbers<[1], [0], [0], [1], [0, 0, 1, 1], [], []>} : vector<8x4xbf16>, vector<4x16xbf16>, vector<8x16xf32> -> vector<8x16xf32>
    %1067 = arith.addf %1062, %1066 : vector<8x16xf32>
    %1068 = vector.extract_strided_slice %994 {offsets = [0, 0], sizes = [4, 16], strides = [1, 1]} : vector<4x18xbf16> to vector<4x16xbf16>
    %c1_1197 = arith.constant 1 : index
    %c0_1198 = arith.constant 0 : index
    %c1_1199 = arith.constant 1 : index
    %c0_1200 = arith.constant 0 : index
    %c0_1201 = arith.constant 0 : index
    %c0_1202 = arith.constant 0 : index
    %1069 = vector.load %arg3[%c1_1197, %c0_1198, %c1_1199, %c0_1200, %c0_1201, %c0_1202] : memref<2x2x2x2x8x4xbf16, #tpu.memory_space<vmem>>, vector<1x1x1x1x8x4xbf16>
    %1070 = vector.shape_cast %1069 : vector<1x1x1x1x8x4xbf16> to vector<8x4xbf16>
    %cst_1203 = arith.constant dense<0.000000e+00> : vector<8x16xf32>
    %1071 = tpu.matmul %1070, %1068, %cst_1203 {dimension_numbers = #tpu.dot_dimension_numbers<[1], [0], [0], [1], [0, 0, 1, 1], [], []>} : vector<8x4xbf16>, vector<4x16xbf16>, vector<8x16xf32> -> vector<8x16xf32>
    %1072 = arith.addf %1067, %1071 : vector<8x16xf32>
    %1073 = vector.extract_strided_slice %994 {offsets = [0, 1], sizes = [4, 16], strides = [1, 1]} : vector<4x18xbf16> to vector<4x16xbf16>
    %c1_1204 = arith.constant 1 : index
    %c0_1205 = arith.constant 0 : index
    %c1_1206 = arith.constant 1 : index
    %c1_1207 = arith.constant 1 : index
    %c0_1208 = arith.constant 0 : index
    %c0_1209 = arith.constant 0 : index
    %1074 = vector.load %arg3[%c1_1204, %c0_1205, %c1_1206, %c1_1207, %c0_1208, %c0_1209] : memref<2x2x2x2x8x4xbf16, #tpu.memory_space<vmem>>, vector<1x1x1x1x8x4xbf16>
    %1075 = vector.shape_cast %1074 : vector<1x1x1x1x8x4xbf16> to vector<8x4xbf16>
    %cst_1210 = arith.constant dense<0.000000e+00> : vector<8x16xf32>
    %1076 = tpu.matmul %1075, %1073, %cst_1210 {dimension_numbers = #tpu.dot_dimension_numbers<[1], [0], [0], [1], [0, 0, 1, 1], [], []>} : vector<8x4xbf16>, vector<4x16xbf16>, vector<8x16xf32> -> vector<8x16xf32>
    %1077 = arith.addf %1072, %1076 : vector<8x16xf32>
    %cst_1211 = arith.constant 0.000000e+00 : f32
    %1078 = vector.broadcast %cst_1211 : f32 to vector<8x16xf32>
    %1079 = vector.extract_strided_slice %989 {offsets = [0, 1], sizes = [4, 16], strides = [1, 1]} : vector<4x18xbf16> to vector<4x16xbf16>
    %c1_1212 = arith.constant 1 : index
    %c1_1213 = arith.constant 1 : index
    %c0_1214 = arith.constant 0 : index
    %c0_1215 = arith.constant 0 : index
    %c0_1216 = arith.constant 0 : index
    %c0_1217 = arith.constant 0 : index
    %1080 = vector.load %arg3[%c1_1212, %c1_1213, %c0_1214, %c0_1215, %c0_1216, %c0_1217] : memref<2x2x2x2x8x4xbf16, #tpu.memory_space<vmem>>, vector<1x1x1x1x8x4xbf16>
    %1081 = vector.shape_cast %1080 : vector<1x1x1x1x8x4xbf16> to vector<8x4xbf16>
    %cst_1218 = arith.constant dense<0.000000e+00> : vector<8x16xf32>
    %1082 = tpu.matmul %1081, %1079, %cst_1218 {dimension_numbers = #tpu.dot_dimension_numbers<[1], [0], [0], [1], [0, 0, 1, 1], [], []>} : vector<8x4xbf16>, vector<4x16xbf16>, vector<8x16xf32> -> vector<8x16xf32>
    %1083 = arith.addf %1078, %1082 : vector<8x16xf32>
    %1084 = vector.extract_strided_slice %989 {offsets = [0, 2], sizes = [4, 16], strides = [1, 1]} : vector<4x18xbf16> to vector<4x16xbf16>
    %c1_1219 = arith.constant 1 : index
    %c1_1220 = arith.constant 1 : index
    %c0_1221 = arith.constant 0 : index
    %c1_1222 = arith.constant 1 : index
    %c0_1223 = arith.constant 0 : index
    %c0_1224 = arith.constant 0 : index
    %1085 = vector.load %arg3[%c1_1219, %c1_1220, %c0_1221, %c1_1222, %c0_1223, %c0_1224] : memref<2x2x2x2x8x4xbf16, #tpu.memory_space<vmem>>, vector<1x1x1x1x8x4xbf16>
    %1086 = vector.shape_cast %1085 : vector<1x1x1x1x8x4xbf16> to vector<8x4xbf16>
    %cst_1225 = arith.constant dense<0.000000e+00> : vector<8x16xf32>
    %1087 = tpu.matmul %1086, %1084, %cst_1225 {dimension_numbers = #tpu.dot_dimension_numbers<[1], [0], [0], [1], [0, 0, 1, 1], [], []>} : vector<8x4xbf16>, vector<4x16xbf16>, vector<8x16xf32> -> vector<8x16xf32>
    %1088 = arith.addf %1083, %1087 : vector<8x16xf32>
    %1089 = vector.extract_strided_slice %994 {offsets = [0, 1], sizes = [4, 16], strides = [1, 1]} : vector<4x18xbf16> to vector<4x16xbf16>
    %c1_1226 = arith.constant 1 : index
    %c1_1227 = arith.constant 1 : index
    %c1_1228 = arith.constant 1 : index
    %c0_1229 = arith.constant 0 : index
    %c0_1230 = arith.constant 0 : index
    %c0_1231 = arith.constant 0 : index
    %1090 = vector.load %arg3[%c1_1226, %c1_1227, %c1_1228, %c0_1229, %c0_1230, %c0_1231] : memref<2x2x2x2x8x4xbf16, #tpu.memory_space<vmem>>, vector<1x1x1x1x8x4xbf16>
    %1091 = vector.shape_cast %1090 : vector<1x1x1x1x8x4xbf16> to vector<8x4xbf16>
    %cst_1232 = arith.constant dense<0.000000e+00> : vector<8x16xf32>
    %1092 = tpu.matmul %1091, %1089, %cst_1232 {dimension_numbers = #tpu.dot_dimension_numbers<[1], [0], [0], [1], [0, 0, 1, 1], [], []>} : vector<8x4xbf16>, vector<4x16xbf16>, vector<8x16xf32> -> vector<8x16xf32>
    %1093 = arith.addf %1088, %1092 : vector<8x16xf32>
    %1094 = vector.extract_strided_slice %994 {offsets = [0, 2], sizes = [4, 16], strides = [1, 1]} : vector<4x18xbf16> to vector<4x16xbf16>
    %c1_1233 = arith.constant 1 : index
    %c1_1234 = arith.constant 1 : index
    %c1_1235 = arith.constant 1 : index
    %c1_1236 = arith.constant 1 : index
    %c0_1237 = arith.constant 0 : index
    %c0_1238 = arith.constant 0 : index
    %1095 = vector.load %arg3[%c1_1233, %c1_1234, %c1_1235, %c1_1236, %c0_1237, %c0_1238] : memref<2x2x2x2x8x4xbf16, #tpu.memory_space<vmem>>, vector<1x1x1x1x8x4xbf16>
    %1096 = vector.shape_cast %1095 : vector<1x1x1x1x8x4xbf16> to vector<8x4xbf16>
    %cst_1239 = arith.constant dense<0.000000e+00> : vector<8x16xf32>
    %1097 = tpu.matmul %1096, %1094, %cst_1239 {dimension_numbers = #tpu.dot_dimension_numbers<[1], [0], [0], [1], [0, 0, 1, 1], [], []>} : vector<8x4xbf16>, vector<4x16xbf16>, vector<8x16xf32> -> vector<8x16xf32>
    %1098 = arith.addf %1093, %1097 : vector<8x16xf32>
    %c0_1240 = arith.constant 0 : index
    %c0_1241 = arith.constant 0 : index
    %c0_1242 = arith.constant 0 : index
    %1099 = vector.load %arg4[%c0_1240, %c0_1241, %c0_1242] : memref<2x16x32xf32, #tpu.memory_space<vmem>>, vector<1x16x32xf32>
    %1100 = vector.shape_cast %1099 : vector<1x16x32xf32> to vector<16x32xf32>
    %cst_1243 = arith.constant dense<0.000000e+00> : vector<8x32xf32>
    %1101 = tpu.matmul %1077, %1100, %cst_1243 {dimension_numbers = #tpu.dot_dimension_numbers<[1], [0], [0], [1], [0, 0, 1, 1], [], []>} : vector<8x16xf32>, vector<16x32xf32>, vector<8x32xf32> -> vector<8x32xf32>
    %c1_1244 = arith.constant 1 : index
    %c0_1245 = arith.constant 0 : index
    %c0_1246 = arith.constant 0 : index
    %1102 = vector.load %arg4[%c1_1244, %c0_1245, %c0_1246] : memref<2x16x32xf32, #tpu.memory_space<vmem>>, vector<1x16x32xf32>
    %1103 = vector.shape_cast %1102 : vector<1x16x32xf32> to vector<16x32xf32>
    %cst_1247 = arith.constant dense<0.000000e+00> : vector<8x32xf32>
    %1104 = tpu.matmul %1098, %1103, %cst_1247 {dimension_numbers = #tpu.dot_dimension_numbers<[1], [0], [0], [1], [0, 0, 1, 1], [], []>} : vector<8x16xf32>, vector<16x32xf32>, vector<8x32xf32> -> vector<8x32xf32>
    %1105 = arith.addf %1101, %1104 : vector<8x32xf32>
    %1106 = vector.broadcast %3 : vector<8x1xf32> to vector<8x32xf32>
    %1107 = arith.addf %1105, %1106 : vector<8x32xf32>
    %1108 = arith.truncf %1107 : vector<8x32xf32> to vector<8x32xbf16>
    %c0_1248 = arith.constant 0 : index
    %c0_1249 = arith.constant 0 : index
    %c15 = arith.constant 15 : index
    %c0_1250 = arith.constant 0 : index
    %1109 = vector.load %arg6[%c0_1248, %c0_1249, %c15, %c0_1250] : memref<1x8x16x32xbf16, #tpu.memory_space<vmem>>, vector<1x8x1x32xbf16>
    %1110 = vector.shape_cast %1109 : vector<1x8x1x32xbf16> to vector<8x32xbf16>
    %1111 = vector.shape_cast %1108 : vector<8x32xbf16> to vector<1x8x1x32xbf16>
    tpu.vector_store %arg6[%c0_1248, %c0_1249, %c15, %c0_1250], %1111 {strides = array<i32>} : memref<1x8x16x32xbf16, #tpu.memory_space<vmem>>, vector<1x8x1x32xbf16>,
    %cst_1251 = arith.constant dense<0.000000e+00> : vector<8xf32>
    %1112 = vector.multi_reduction <add>, %1107, %cst_1251 [1] : vector<8x32xf32> to vector<8xf32>
    %1113 = vector.shape_cast %1112 : vector<8xf32> to vector<8x1xf32>
    %1114 = arith.addf %1052, %1113 : vector<8x1xf32>
    %1115 = arith.mulf %1107, %1107 : vector<8x32xf32>
    %cst_1252 = arith.constant dense<0.000000e+00> : vector<8xf32>
    %1116 = vector.multi_reduction <add>, %1115, %cst_1252 [1] : vector<8x32xf32> to vector<8xf32>
    %1117 = vector.shape_cast %1116 : vector<8xf32> to vector<8x1xf32>
    %1118 = arith.addf %1056, %1117 : vector<8x1xf32>
    %c0_1253 = arith.constant 0 : index
    %c0_1254 = arith.constant 0 : index
    %c0_1255 = arith.constant 0 : index
    %1119 = vector.load %arg7[%c0_1253, %c0_1254, %c0_1255] : memref<1x8x1xf32, #tpu.memory_space<vmem>>, vector<1x8x1xf32>
    %1120 = vector.shape_cast %1119 : vector<1x8x1xf32> to vector<8x1xf32>
    %1121 = arith.addf %1120, %1114 : vector<8x1xf32>
    %c0_1256 = arith.constant 0 : index
    %c0_1257 = arith.constant 0 : index
    %c0_1258 = arith.constant 0 : index
    %1122 = vector.load %arg7[%c0_1256, %c0_1257, %c0_1258] : memref<1x8x1xf32, #tpu.memory_space<vmem>>, vector<1x8x1xf32>
    %1123 = vector.shape_cast %1122 : vector<1x8x1xf32> to vector<8x1xf32>
    %1124 = vector.shape_cast %1121 : vector<8x1xf32> to vector<1x8x1xf32>
    tpu.vector_store %arg7[%c0_1256, %c0_1257, %c0_1258], %1124 {strides = array<i32>} : memref<1x8x1xf32, #tpu.memory_space<vmem>>, vector<1x8x1xf32>,
    %c0_1259 = arith.constant 0 : index
    %c0_1260 = arith.constant 0 : index
    %c0_1261 = arith.constant 0 : index
    %1125 = vector.load %arg8[%c0_1259, %c0_1260, %c0_1261] : memref<1x8x1xf32, #tpu.memory_space<vmem>>, vector<1x8x1xf32>
    %1126 = vector.shape_cast %1125 : vector<1x8x1xf32> to vector<8x1xf32>
    %1127 = arith.addf %1126, %1118 : vector<8x1xf32>
    %c0_1262 = arith.constant 0 : index
    %c0_1263 = arith.constant 0 : index
    %c0_1264 = arith.constant 0 : index
    %1128 = vector.load %arg8[%c0_1262, %c0_1263, %c0_1264] : memref<1x8x1xf32, #tpu.memory_space<vmem>>, vector<1x8x1xf32>
    %1129 = vector.shape_cast %1128 : vector<1x8x1xf32> to vector<8x1xf32>
    %1130 = vector.shape_cast %1127 : vector<8x1xf32> to vector<1x8x1xf32>
    tpu.vector_store %arg8[%c0_1262, %c0_1263, %c0_1264], %1130 {strides = array<i32>} : memref<1x8x1xf32, #tpu.memory_space<vmem>>, vector<1x8x1xf32>,
    return
  }
  func.func @transform_0(%arg0: i32, %arg1: i32) -> (i32, i32, i32, i32) {
    %c0_i32 = arith.constant 0 : i32
    %c0_i32_0 = arith.constant 0 : i32
    %c0_i32_1 = arith.constant 0 : i32
    %c0_i32_2 = arith.constant 0 : i32
    return %arg0, %c0_i32, %c0_i32_0, %c0_i32_1 : i32, i32, i32, i32
  }
  func.func @transform_1(%arg0: i32, %arg1: i32) -> (i32, i32, i32, i32, i32, i32) {
    %c0_i32 = arith.constant 0 : i32
    %c0_i32_0 = arith.constant 0 : i32
    %c0_i32_1 = arith.constant 0 : i32
    %c0_i32_2 = arith.constant 0 : i32
    %c0_i32_3 = arith.constant 0 : i32
    %c0_i32_4 = arith.constant 0 : i32
    %c0_i32_5 = arith.constant 0 : i32
    return %c0_i32, %c0_i32_0, %c0_i32_1, %c0_i32_2, %c0_i32_3, %c0_i32_4 : i32, i32, i32, i32, i32, i32
  }
  func.func @transform_2(%arg0: i32, %arg1: i32) -> (i32, i32, i32) {
    %c0_i32 = arith.constant 0 : i32
    %c0_i32_0 = arith.constant 0 : i32
    %c0_i32_1 = arith.constant 0 : i32
    %c0_i32_2 = arith.constant 0 : i32
    return %c0_i32, %c0_i32_0, %c0_i32_1 : i32, i32, i32
  }
  func.func @transform_3(%arg0: i32, %arg1: i32) -> (i32, i32) {
    %c0_i32 = arith.constant 0 : i32
    %c0_i32_0 = arith.constant 0 : i32
    %c0_i32_1 = arith.constant 0 : i32
    return %c0_i32, %c0_i32_0 : i32, i32
  }
  func.func @transform_4(%arg0: i32, %arg1: i32) -> (i32, i32, i32, i32) {
    %c0_i32 = arith.constant 0 : i32
    %c0_i32_0 = arith.constant 0 : i32
    %c0_i32_1 = arith.constant 0 : i32
    return %arg0, %c0_i32, %arg1, %c0_i32_0 : i32, i32, i32, i32
  }
  func.func @transform_5(%arg0: i32, %arg1: i32) -> (i32, i32, i32) {
    %c0_i32 = arith.constant 0 : i32
    %c0_i32_0 = arith.constant 0 : i32
    %c0_i32_1 = arith.constant 0 : i32
    return %arg0, %c0_i32, %c0_i32_0 : i32, i32, i32
  }
  func.func @transform_6(%arg0: i32, %arg1: i32) -> (i32, i32, i32) {
    %c0_i32 = arith.constant 0 : i32
    %c0_i32_0 = arith.constant 0 : i32
    %c0_i32_1 = arith.constant 0 : i32
    return %arg0, %c0_i32, %c0_i32_0 : i32, i32, i32
  }
}

</mosaic_0001>

<bundles_post_ra>
// kernel: tpu_custom_call.1
= control target key start
LH: loop header
LB: loop body
LE: loop exit
PB: predicated region body
PF: predicated region fallthrough
CT: control target
= control target key end

     0   :  { %12 = vsyncpa [#allocation3], 0  ;;  %s9167_s0 = inlined_call_operand.vmem [shape: bf16[2,18,4,18], index: 0, kind: input, shape index: {}]   ;;  %s9168_s1 = inlined_call_operand.vmem [shape: bf16[2,2,2,2,8,4], index: 1, kind: input, shape index: {}]   ;;  %s9169_s2 = inlined_call_operand.vmem [shape: f32[2,16,32], index: 2, kind: input, shape index: {}]   ;;  %s9170_s3 = inlined_call_operand.vmem [shape: f32[8,1], index: 3, kind: input, shape index: {}]   ;;  %s9171_s4 = inlined_call_operand.hbm [shape: bf16[2,8,32,32], index: 4, kind: output, shape index: {0}]   ;;  %s9172_s5 = inlined_call_operand.vmem [shape: f32[2,8,1], index: 5, kind: output, shape index: {1}]   ;;  %s9173_s6 = inlined_call_operand.vmem [shape: f32[2,8,1], index: 6, kind: output, shape index: {2}]  }
   0x1   :  { %14 = vsyncpa [#allocation3 + $0x1], 0  ;;  %s6849_s21 = smov 0   ;;  %s6851_s22 = smov 0  }
   0x2   :  { %s6853_s23 = smov 0   ;;  %s6855_s24 = smov 0  }
   0x3   :  { %s6857_s25 = smov 0   ;;  %s6859_s26 = smov 0  }
   0x4   :  { %s6861_s27 = smov 0   ;;  %s6863_s28 = smov 0  }
   0x5 LB: > { %9184 = sst [smem:[#allocation7_spill]] %s6792_s26  ;;  %s6198_s29 = sadd.s32 4294967295, %s6800_s28   ;;  %s6800_s28 = sphi %s6863_s28, %s20_s28   ;;  %s6796_s27 = sphi %s6861_s27, %s9249_s27   ;;  %s6792_s26 = sphi %s6859_s26, %s9248_s26   ;;  %s6788_s25 = sphi %s6857_s25, %s9247_s25   ;;  %s6784_s24 = sphi %s6855_s24, %s9246_s24   ;;  %s6780_s23 = sphi %s6853_s23, %s9252_s23   ;;  %s6776_s22 = sphi %s6851_s22, %s9251_s22   ;;  %s6772_s21 = sphi %s6849_s21, %s9250_s21  }
   0x6   : > { %9185 = sst [smem:[#allocation8_spill]] %s6796_s27  ;;  %s6199_s30 = sadd.s32 4294967294, %s6800_s28  }
   0x7   : > { %s29_s7 = sadd.s32 1, %s6792_s26  ;;  %s32_s8 = sadd.s32 1, %s6796_s27 }
   0x8   : > { %p30_p0 = scmp.ge.s32.totalorder %s29_s7, 2  ;;  %p140_p1 = scmp.ne.s32.totalorder %s6780_s23, %s6776_s22 }
   0x9   : > { %p141_p2 = scmp.eq.s32.totalorder %s6198_s29, 3  ;;  %p146_p5 = scmp.ne.s32.totalorder %s6776_s22, %s6772_s21 }
   0xa   : > { %s9254_s7 = smov (%p30_p0, %s29_s7), 0  ;;  %s9256_s8 = smov (!%p30_p0, %s32_s8), %s6796_s27 }
   0xb   : > { %9186 = sst [smem:[#allocation9_spill]] %s9254_s7  ;;  %s126_s9 = ssub.s32 %s6792_s26, %s9254_s7 }
   0xc   : > { %p6900_p3 = por %p141_p2, %p140_p1  ;;  %p34_p4 = scmp.ge.s32.totalorder %s9256_s8, 2 }
   0xd   : > { %p147_p6 = scmp.eq.s32.totalorder %s6199_s30, 3  ;;  %p6202_p7 = scmp.ge.s32.totalorder %s6800_s28, 1 }
   0xe   : > { %s9258_s8 = smov (%p34_p4, %s9256_s8), 0  ;;  %p234_p9 = scmp.lt.s32.totalorder %s6800_s28, 5 }
   0xf   : > { %9188 = sst [smem:[#allocation10_spill]] %s9258_s8  ;;  %p6909_p8 = por %p147_p6, %p146_p5 }
  0x10   : > { %s125_s12 = ssub.s32 %s6796_s27, %s9258_s8  ;;  %s130_s13 = sadd.s32 1, %s6780_s23 }
  0x11   : > { %s127_s14 = sor.u32 %s126_s9, %s125_s12  ;;  %p235_p10 = pnand %p6202_p7, %p234_p9 }
  0x12   : > { %p128_p11 = scmp.eq.s32.totalorder %s127_s14, 0 }
  0x13   : > { %238 = sbr.rel (%p235_p10) target bundleno = 2962 (0xb92), region = 36 }
  0x14   : > { %s6918_s15 = scalar_select %p128_p11, %s6780_s23, %s130_s13  }
  0x18   : > { %s257_s16 = sand.u32 1, %s6776_s22   ;;  %p272_p12 = scmp.lt.s32.totalorder %s6788_s25, 1 }
  0x19   : > { %s6203_s17 = sshll.u32 %s257_s16, 6  ;;  %p6207_p13 = scmp.ne.s32.totalorder %s6784_s24, 0 }
  0x1a   : > { %s273_s18 = scalar_select %p272_p12, %s6788_s25, 1 }
  0x1b   : > { %s6938_s26 = scalar_lea.vmem [#allocation2], %s6203_s17  ;;  %290 = sbr.rel (%p6207_p13) target bundleno = 35 (0x23), region = 40 }
  0x1c   : > { %s6643_s19 = smul.u32 36, %s273_s18  ;;  %s6205_s20 = sshll.u32 %s273_s18, 3 }
  0x1d   : > { %s6928_s9 = scalar_lea.vmem %s9172_s5, %s6205_s20  ;;  %s6933_s14 = scalar_lea.vmem %s9173_s6, %s6205_s20 }
  0x1e   : > { %s276_s27 = scalar_lea.vmem %s9167_s0, %s6643_s19 }
  0x20   : > { %vm291_vm0 = vcmask 7168   ;;  %v6802_v0 = vmov 0.0  }
  0x21   : > { %292 = vst.msk [vmem:[%s6928_s9] sm:$0xff] %vm291_vm0, %v6802_v0 }
  0x22   : > { %293 = vst.msk [vmem:[%s6933_s14] sm:$0xff] %vm291_vm0, %v6802_v0 }
  0x23 PF: > { %s6633_s18 = sshll.u32 %s6784_s24, 4  ;;  %s6803_s7 = smov 127   ;;  %vm320_vm1 = vcmask 1041408   ;;  %vm316_vm2 = vcmask 31744   ;;  %v6219_v20 = vld [vmem:[%s9168_s1 + $0x8] sm:$0xf] }
  0x24   : > { %s6944_s20 = scalar_lea.vmem %s276_s27, %s6633_s18  ;;  %s6804_s8 = smov 126   ;;  %v307_v22 = vld [vmem:[%s9168_s1] sm:$0xf]  ;;  %v6223_v29 = vld [vmem:[%s9168_s1 + $0x10] sm:$0xf]  ;;  %vm9183_vm3 = vcmask 130048  }
  0x25   : > { %v298_v1 = vld [vmem:[%s6944_s20] sm:$0x3]  ;;  %v6212_v2 = vld [vmem:[%s6944_s20 + $0x2] sm:$0x3]  ;;  %v6955_v9 = vld [vmem:[%s6944_s20 + $0x4] sm:$0x3] }
  0x26   : > { %311 = vst [vmem:[#allocation1] ss:$4 sm:$0xff] %v298_v1  ;;  %v6966_v15 = vld [vmem:[%s6944_s20 + $0x2] sm:$0x3]  ;;  %v6971_v17 = vsel %vm320_vm1, %v6212_v2, 0  ;;  %v340_v21 = vsel %vm320_vm1, %v298_v1, 0 }
  0x27   : > { %370 = vmatpush.bf16.msra.mxu2 %v6971_v17  ;;  %v6975_v18 = vld [vmem:[%s6944_s20 + $0x4] sm:$0x3]  ;;  %349 = vmatpush.bf16.msra.mxu1 %v340_v21  ;;  %v6221_v32 = vld [vmem:[%s9168_s1 + $0xc] sm:$0xf]  ;;  %v7015_v39 = vld [vmem:[%s6944_s20 + $0x6] sm:$0x3] }
  0x28   : > { %v6216_v37 = vld [vmem:[%s9168_s1 + $0x4] sm:$0xf]  ;;  %v6227_v43 = vld [vmem:[%s9168_s1 + $0x18] sm:$0xf]  ;;  %v6224_v44 = vld [vmem:[%s9168_s1 + $0x14] sm:$0xf] }
  0x29   : > { %v6229_v48 = vld [vmem:[%s9168_s1 + $0x1c] sm:$0xf]  ;;  %v7043_v52 = vld [vmem:[%s6944_s20 + $0x4] sm:$0x3]  ;;  %v7048_v54 = vld [vmem:[%s6944_s20 + $0x6] sm:$0x3] }
  0x2a   : > { %6220 = vmatmul.msk.bf16.vlgmr.msra.gmra.mxu2 %vm316_vm2, %v6219_v20  ;;  %6218 = vmatmul.msk.bf16.vlgmr.msra.gmra.mxu1 %vm316_vm2, %v307_v22  ;;  %v7063_v0 = vld [vmem:[%s6944_s20 + $0x8] sm:$0x3]  ;;  %vm571_vm4 = vcmask 1040384   ;;  %vm671_vm5 = vcmask 261120   ;;  %vm576_vm6 = vcmask 1041409   ;;  %vm9182_vm7 = vcmask 1042434  }
  0x2b   : > { %vm584_vm8 = vcmask 1043459   ;;  %vm644_vm9 = vcmask 253952   ;;  %vm645_vm10 = vsmask.f32 256  ;;  %vm1003_vm11 = vsmask.f32 7938 }
  0x2c   : > { %vm7566_vm12 = vmand %vm644_vm9, %vm645_vm10  ;;  %vm1361_vm13 = vcmask 254977   ;;  %vm1362_vm14 = vsmask.f32 1280 }
  0x2d   : > { %v312_v3 = vld.sshfl [vmem:[#allocation1] sm:$0xff pattern:$0x73625140]  ;;  %vm7618_vm15 = vmand %vm644_vm9, %vm1003_vm11  ;;  %vm1711_vm9 = vsmask.f32 7942  ;;  %vm2069_vm11 = vcmask 256002  }
  0x2e   : > { %379 = vst [vmem:[#allocation1] ss:$4 sm:$0xff] %v6212_v2  ;;  %vm7694_vm0 = vmand %vm1361_vm13, %vm1362_vm14 }
  0x2f   : > { %vm7793_vm10 = vmand %vm1361_vm13, %vm1711_vm9  ;;  %vm2070_vm13 = vsmask.f32 2304  ;;  %vm2419_vm9 = vsmask.f32 7946 }
  0x30   : > { %vm7904_vm14 = vmand %vm2069_vm11, %vm2070_vm13 }
  0x31   : > { %vm8025_vm13 = vmand %vm2069_vm11, %vm2419_vm9  ;;  %vm2777_vm11 = vcmask 257027   ;;  %vm2778_vm9 = vsmask.f32 3328 }
  0x35   : > { %v380_v4 = vld.sshfl [vmem:[#allocation1] sm:$0xff pattern:$0x73625140] }
  0x36   : > { %382 = vrot.lane.b32.xlu0 %v380_v4, %s6803_s7  ;;  %408 = vst [vmem:[#allocation1] ss:$4 sm:$0xff] %v298_v1  ;;  %v7076_v4 = vld [vmem:[%s9169_s2] sm:$0xff] }
  0x3d   : > { %v409_v5 = vld.sshfl [vmem:[#allocation1] sm:$0xff pattern:$0x73625140] }
  0x3e   : > { %314 = vrot.lane.b32.xlu0 %v312_v3, %s6803_s7  ;;  %432 = vst [vmem:[#allocation1] ss:$4 sm:$0xff] %v298_v1  ;;  %411 = vrot.lane.b32.xlu2 %v409_v5, %s6804_s8  ;;  %v7070_v3 = vld [vmem:[%s9169_s2 + $0x8] sm:$0xff] }
  0x45   : > { %v433_v6 = vld.sshfl [vmem:[#allocation1] sm:$0xff pattern:$0x73625140] }
  0x46   : > { %458 = vst [vmem:[#allocation1] ss:$4 sm:$0xff] %v6212_v2  ;;  %435 = vrot.lane.b32.xlu2 %v433_v6, %s6803_s7 }
  0x4d   : > { %v459_v7 = vld.sshfl [vmem:[#allocation1] sm:$0xff pattern:$0x73625140] }
  0x4e   : > { %461 = vrot.lane.b32.xlu1 %v459_v7, %s6803_s7  ;;  %485 = vst [vmem:[#allocation1] ss:$4 sm:$0xff] %v6212_v2 }
  0x55   : > { %v486_v8 = vld.sshfl [vmem:[#allocation1] sm:$0xff pattern:$0x73625140] }
  0x56   : > { %488 = vrot.lane.b32.xlu1 %v486_v8, %s6804_s8  ;;  %685 = vst [vmem:[#allocation1] ss:$4 sm:$0xff] %v6212_v2 }
  0x5d   : > { %v686_v10 = vld.sshfl [vmem:[#allocation1] sm:$0xff pattern:$0x73625140] }
  0x5e   : > { %688 = vrot.lane.b32.xlu0 %v686_v10, %s6803_s7  ;;  %749 = vst [vmem:[#allocation1] ss:$4 sm:$0xff] %v6955_v9  ;;  %v6240_v10 = vld [vmem:[%s9168_s1 + $0x24] sm:$0xf] }
  0x65   : > { %v750_v11 = vld.sshfl [vmem:[#allocation1] sm:$0xff pattern:$0x73625140] }
  0x66   : > { %752 = vrot.lane.b32.xlu1 %v750_v11, %s6803_s7  ;;  %778 = vst [vmem:[#allocation1] ss:$4 sm:$0xff] %v6212_v2  ;;  %v6239_v11 = vld [vmem:[%s9168_s1 + $0x20] sm:$0xf] }
  0x6d   : > { %v779_v12 = vld.sshfl [vmem:[#allocation1] sm:$0xff pattern:$0x73625140] }
  0x6e   : > { %802 = vst [vmem:[#allocation1] ss:$4 sm:$0xff] %v6212_v2  ;;  %781 = vrot.lane.b32.xlu2 %v779_v12, %s6804_s8 }
  0x75   : > { %v803_v13 = vld.sshfl [vmem:[#allocation1] sm:$0xff pattern:$0x73625140] }
  0x76   : > { %805 = vrot.lane.b32.xlu0 %v803_v13, %s6803_s7  ;;  %828 = vst [vmem:[#allocation1] ss:$4 sm:$0xff] %v6955_v9 }
  0x7d   : > { %v829_v14 = vld.sshfl [vmem:[#allocation1] sm:$0xff pattern:$0x73625140] }
  0x7e   : > { %831 = vrot.lane.b32.xlu1 %v829_v14, %s6803_s7  ;;  %855 = vst [vmem:[#allocation1] ss:$4 sm:$0xff] %v6955_v9  ;;  %v7097_v14 = vld [vmem:[%s9169_s2 + $0x18] sm:$0xff] }
  0x85   : > { %v856_v16 = vld.sshfl [vmem:[#allocation1] sm:$0xff pattern:$0x73625140] }
  0x86   : > { %858 = vrot.lane.b32.xlu2 %v856_v16, %s6804_s8  ;;  %1047 = vst [vmem:[#allocation1] ss:$4 sm:$0xff] %v6966_v15 }
  0x8d   : > { %v1048_v19 = vld.sshfl [vmem:[#allocation1] sm:$0xff pattern:$0x73625140] }
  0x8e   : > { %1111 = vst [vmem:[#allocation1] ss:$4 sm:$0xff] %v6975_v18  ;;  %1050 = vrot.lane.b32.xlu1 %v1048_v19, %s6803_s7  ;;  %v7103_v19 = vld [vmem:[%s9169_s2 + $0x10] sm:$0xff] }
  0x95   : > { %v1112_v23 = vld.sshfl [vmem:[#allocation1] sm:$0xff pattern:$0x73625140] }
  0x96   : > { %1114 = vrot.lane.b32.xlu0 %v1112_v23, %s6803_s7  ;;  %1138 = vst [vmem:[#allocation1] ss:$4 sm:$0xff] %v6966_v15  ;;  %v731_v23 = vsel %vm320_vm1, %v6955_v9, 0 }
  0x98   : > { %v412_v24 = vpop.permute.xlu2 %411 }
  0x99   : > { %v417_v35 = vsel %vm320_vm1, %v412_v24, 0 }
  0x9d   : > { %v1139_v25 = vld.sshfl [vmem:[#allocation1] sm:$0xff pattern:$0x73625140] }
  0x9e   : > { %1162 = vst [vmem:[#allocation1] ss:$4 sm:$0xff] %v6966_v15  ;;  %1141 = vrot.lane.b32.xlu1 %v1139_v25, %s6804_s8 }
  0xa0   : > { %v436_v26 = vpop.permute.xlu2 %435 }
  0xa1   : > { %v441_v27 = vsel %vm320_vm1, %v436_v26, 0 }
  0xa2   : > { %450 = vmatpush.bf16.msrb.mxu1 %v441_v27 }
  0xa5   : > { %v1163_v28 = vld.sshfl [vmem:[#allocation1] sm:$0xff pattern:$0x73625140]  ;;  %6226 = vmatmul.msk.bf16.vlgmr.msrb.gmra.mxu1 %vm316_vm2, %v6223_v29 }
  0xa6   : > { %1187 = vst [vmem:[#allocation1] ss:$4 sm:$0xff] %v6975_v18  ;;  %556 = vmatpush.msra.mxu1 %v7070_v3 }
  0xa7   : > { %v351_v60 = vpop.f32.mrf.mxu1 }
  0xa8   : > { %v383_v30 = vpop.permute.xlu0 %382  ;;  %557 = vmatpush.msra.mxu1 %v7076_v4 }
  0xa9   : > { %v388_v31 = vsel %vm320_vm1, %v383_v30, 0 }
  0xaa   : > { %397 = vmatpush.bf16.msra.mxu3 %v388_v31 }
  0xad   : > { %6222 = vmatmul.msk.bf16.vlgmr.msra.gmra.mxu3 %vm316_vm2, %v6221_v32  ;;  %v1188_v33 = vld.sshfl [vmem:[#allocation1] sm:$0xff pattern:$0x73625140]  ;;  %v372_v61 = vpop.f32.mrf.mxu2  ;;  %v6248_v32 = vld [vmem:[%s9168_s1 + $0x34] sm:$0xf] }
  0xae   : > { %1213 = vst [vmem:[#allocation1] ss:$4 sm:$0xff] %v6975_v18  ;;  %1190 = vrot.lane.b32.xlu2 %v1188_v33, %s6803_s7  ;;  %v6247_v33 = vld [vmem:[%s9168_s1 + $0x30] sm:$0xf] }
  0xaf   : > { %v353_v63 = vpop.f32.mrf.mxu1 }
  0xb0   : > { %v315_v34 = vpop.permute.xlu0 %314 }
  0xb1   : > { %v322_v36 = vsel %vm320_vm1, %v315_v34, 0 }
  0xb2   : > { %331 = vmatpush.bf16.msra.mxu0 %v322_v36 }
  0xb5   : > { %6217 = vmatmul.msk.bf16.vlgmr.msra.gmra.mxu0 %vm316_vm2, %v6216_v37  ;;  %v1214_v38 = vld.sshfl [vmem:[#allocation1] sm:$0xff pattern:$0x73625140]  ;;  %v374_v1 = vpop.f32.mrf.mxu2 }
  0xb6   : > { %426 = vmatpush.bf16.msrb.mxu0 %v417_v35  ;;  %1216 = vrot.lane.b32.xlu0 %v1214_v38, %s6804_s8  ;;  %1399 = vst [vmem:[#allocation1] ss:$4 sm:$0xff] %v6975_v18  ;;  %v6245_v35 = vld [vmem:[%s9168_s1 + $0x2c] sm:$0xf]  ;;  %v7169_v1 = vld [vmem:[%s6944_s20 + $0xa] sm:$0x3] }
  0xb7   : > { %1165 = vrot.lane.b32.xlu2 %v1163_v28, %s6803_s7 }
  0xba   : > { %533 = vmatpush.msra.mxu0 %v7097_v14 }
  0xbc   : > { %534 = vmatpush.msra.mxu0 %v7103_v19 }
  0xbd   : > { %v1400_v40 = vld.sshfl [vmem:[#allocation1] sm:$0xff pattern:$0x73625140] }
  0xbe   : > { %1402 = vrot.lane.b32.xlu0 %v1400_v40, %s6803_s7  ;;  %1461 = vst [vmem:[#allocation1] ss:$4 sm:$0xff] %v7015_v39  ;;  %v7134_v40 = vld [vmem:[%s6944_s20 + $0x6] sm:$0x3] }
  0xc0   : > { %v462_v41 = vpop.permute.xlu1 %461 }
  0xc1   : > { %v467_v42 = vsel %vm320_vm1, %v462_v41, 0 }
  0xc2   : > { %476 = vmatpush.bf16.msrb.mxu2 %v467_v42 }
  0xc5   : > { %6228 = vmatmul.msk.bf16.vlgmr.msrb.gmra.mxu2 %vm316_vm2, %v6227_v43  ;;  %6225 = vmatmul.msk.bf16.vlgmr.msrb.gmra.mxu0 %vm316_vm2, %v6224_v44  ;;  %v1462_v45 = vld.sshfl [vmem:[#allocation1] sm:$0xff pattern:$0x73625140] }
  0xc6   : > { %1464 = vrot.lane.b32.xlu1 %v1462_v45, %s6803_s7  ;;  %1488 = vst [vmem:[#allocation1] ss:$4 sm:$0xff] %v6975_v18  ;;  %740 = vmatpush.bf16.msrb.mxu0 %v731_v23  ;;  %v7140_v45 = vld [vmem:[%s6944_s20 + $0x8] sm:$0x3] }
  0xc8   : > { %v489_v46 = vpop.permute.xlu1 %488  ;;  %v782_v26 = vpop.permute.xlu2 %781 }
  0xc9   : > { %v494_v47 = vsel %vm320_vm1, %v489_v46, 0  ;;  %v787_v29 = vsel %vm320_vm1, %v782_v26, 0 }
  0xca   : > { %503 = vmatpush.bf16.msrb.mxu3 %v494_v47 }
  0xcd   : > { %6230 = vmatmul.msk.bf16.vlgmr.msrb.gmra.mxu3 %vm316_vm2, %v6229_v48  ;;  %v1489_v49 = vld.sshfl [vmem:[#allocation1] sm:$0xff pattern:$0x73625140] }
  0xce   : > { %719 = vmatpush.bf16.msra.mxu3 %v6971_v17  ;;  %1512 = vst [vmem:[#allocation1] ss:$4 sm:$0xff] %v6975_v18  ;;  %1491 = vrot.lane.b32.xlu2 %v1489_v49, %s6804_s8  ;;  %v6253_v49 = vld [vmem:[%s9168_s1 + $0x3c] sm:$0xf] }
  0xd0   : > { %v689_v7 = vpop.permute.xlu0 %688 }
  0xd1   : > { %v694_v8 = vsel %vm320_vm1, %v689_v7, 0 }
  0xd2   : > { %703 = vmatpush.bf16.msra.mxu2 %v694_v8 }
  0xd5   : > { %v1513_v50 = vld.sshfl [vmem:[#allocation1] sm:$0xff pattern:$0x73625140]  ;;  %6241 = vmatmul.msk.bf16.vlgmr.msra.gmra.mxu2 %vm316_vm2, %v6240_v10  ;;  %v7182_v10 = vld [vmem:[%s6944_s20 + $0x8] sm:$0x3] }
  0xd6   : > { %1515 = vrot.lane.b32.xlu0 %v1513_v50, %s6803_s7  ;;  %1537 = vst [vmem:[#allocation1] ss:$4 sm:$0xff] %v7015_v39  ;;  %796 = vmatpush.bf16.msrb.mxu2 %v787_v29 }
  0xd8   : > { %v753_v17 = vpop.permute.xlu1 %752 }
  0xd9   : > { %v758_v20 = vsel %vm320_vm1, %v753_v17, 0 }
  0xda   : > { %767 = vmatpush.bf16.msrb.mxu1 %v758_v20  ;;  %901 = vmatpush.msra.mxu2 %v7097_v14 }
  0xdc   : > { %902 = vmatpush.msra.mxu2 %v7103_v19 }
  0xdd   : > { %v1538_v51 = vld.sshfl [vmem:[#allocation1] sm:$0xff pattern:$0x73625140]  ;;  %6242 = vmatmul.msk.bf16.vlgmr.msra.gmra.mxu3 %vm316_vm2, %v6239_v11 }
  0xde   : > { %1540 = vrot.lane.b32.xlu1 %v1538_v51, %s6803_s7  ;;  %1563 = vst [vmem:[#allocation1] ss:$4 sm:$0xff] %v7015_v39 }
  0xe0   : > { %v859_v36 = vpop.permute.xlu2 %858 }
  0xe1   : > { %v864_v37 = vsel %vm320_vm1, %v859_v36, 0  ;;  %v1074_v36 = vsel %vm320_vm1, %v6966_v15, 0 }
  0xe5   : > { %v1564_v53 = vld.sshfl [vmem:[#allocation1] sm:$0xff pattern:$0x73625140]  ;;  %6249 = vmatmul.msk.bf16.vlgmr.msrb.gmra.mxu2 %vm316_vm2, %v6248_v32 }
  0xe6   : > { %1566 = vrot.lane.b32.xlu2 %v1564_v53, %s6804_s8  ;;  %1755 = vst [vmem:[#allocation1] ss:$4 sm:$0xff] %v7043_v52 }
  0xe8   : > { %v806_v27 = vpop.permute.xlu0 %805 }
  0xe9   : > { %v811_v30 = vsel %vm320_vm1, %v806_v27, 0 }
  0xea   : > { %820 = vmatpush.bf16.msrb.mxu3 %v811_v30 }
  0xed   : > { %v1756_v55 = vld.sshfl [vmem:[#allocation1] sm:$0xff pattern:$0x73625140]  ;;  %6250 = vmatmul.msk.bf16.vlgmr.msrb.gmra.mxu3 %vm316_vm2, %v6247_v33 }
  0xee   : > { %1819 = vst [vmem:[#allocation1] ss:$4 sm:$0xff] %v7048_v54  ;;  %1758 = vrot.lane.b32.xlu1 %v1756_v55, %s6803_s7  ;;  %924 = vmatpush.msra.mxu3 %v7070_v3 }
  0xf0   : > { %925 = vmatpush.msra.mxu3 %v7076_v4  ;;  %v832_v48 = vpop.permute.xlu1 %831 }
  0xf1   : > { %v837_v55 = vsel %vm320_vm1, %v832_v48, 0 }
  0xf5   : > { %v1820_v56 = vld.sshfl [vmem:[#allocation1] sm:$0xff pattern:$0x73625140] }
  0xf6   : > { %1822 = vrot.lane.b32.xlu0 %v1820_v56, %s6803_s7  ;;  %1846 = vst [vmem:[#allocation1] ss:$4 sm:$0xff] %v7043_v52 }
  0xfd   : > { %v1847_v57 = vld.sshfl [vmem:[#allocation1] sm:$0xff pattern:$0x73625140] }
  0xfe   : > { %1870 = vst [vmem:[#allocation1] ss:$4 sm:$0xff] %v7043_v52  ;;  %1849 = vrot.lane.b32.xlu1 %v1847_v57, %s6804_s8  ;;  %v6243_v57 = vld [vmem:[%s9168_s1 + $0x28] sm:$0xf] }
 0x100   : > { %v1051_v33 = vpop.permute.xlu1 %1050 }
 0x105   : > { %v1871_v58 = vld.sshfl [vmem:[#allocation1] sm:$0xff pattern:$0x73625140] }
 0x106   : > { %1895 = vst [vmem:[#allocation1] ss:$4 sm:$0xff] %v7048_v54 }
 0x108   : > { %v1191_v15 = vpop.permute.xlu2 %1190 }
 0x10d   : > { %v1896_v59 = vld.sshfl [vmem:[#allocation1] sm:$0xff pattern:$0x73625140] }
 0x10e   : > { %1921 = vst [vmem:[#allocation1] ss:$4 sm:$0xff] %v7048_v54  ;;  %1898 = vrot.lane.b32.xlu2 %v1896_v59, %s6803_s7 }
 0x115   : > { %v1922_v62 = vld.sshfl [vmem:[#allocation1] sm:$0xff pattern:$0x73625140] }
 0x116   : > { %1924 = vrot.lane.b32.xlu0 %v1922_v62, %s6804_s8  ;;  %2107 = vst [vmem:[#allocation1] ss:$4 sm:$0xff] %v7048_v54  ;;  %1873 = vrot.lane.b32.xlu2 %v1871_v58, %s6803_s7 }
 0x11d   : > { %v2108_v2 = vld.sshfl [vmem:[#allocation1] sm:$0xff pattern:$0x73625140] }
 0x11e   : > { %2110 = vrot.lane.b32.xlu0 %v2108_v2, %s6803_s7  ;;  %2169 = vst [vmem:[#allocation1] ss:$4 sm:$0xff] %v7063_v0 }
 0x122   : > { %v7079_v5 = vpop.f32.mrf.mxu1 }
 0x125   : > { %v2170_v6 = vld.sshfl [vmem:[#allocation1] sm:$0xff pattern:$0x73625140] }
 0x126   : > { %2196 = vst [vmem:[#allocation1] ss:$4 sm:$0xff] %v7048_v54  ;;  %2172 = vrot.lane.b32.xlu1 %v2170_v6, %s6803_s7 }
 0x12a   : > { %v454_v12 = vpop.f32.mrf.mxu1 }
 0x12b   : > { %v7187_v12 = vld [vmem:[%s6944_s20 + $0xa] sm:$0x3] }
 0x12d   : > { %v2197_v13 = vld.sshfl [vmem:[#allocation1] sm:$0xff pattern:$0x73625140] }
 0x12e   : > { %2220 = vst [vmem:[#allocation1] ss:$4 sm:$0xff] %v7048_v54  ;;  %2199 = vrot.lane.b32.xlu2 %v2197_v13, %s6804_s8 }
 0x130   : > { %v399_v16 = vpop.f32.mrf.mxu3 }
 0x132   : > { %v333_v21 = vpop.f32.mrf.mxu0 }
 0x133   : > { %v352_v22 = vadd.f32 %v351_v60, %v333_v21 }
 0x135   : > { %v376_v24 = vadd.f32 %v372_v61, %v352_v22  ;;  %v2221_v25 = vld.sshfl [vmem:[#allocation1] sm:$0xff pattern:$0x73625140]  ;;  %v6251_v61 = vld [vmem:[%s9168_s1 + $0x38] sm:$0xf] }
 0x136   : > { %2223 = vrot.lane.b32.xlu0 %v2221_v25, %s6803_s7  ;;  %2245 = vst [vmem:[#allocation1] ss:$4 sm:$0xff] %v7063_v0 }
 0x137   : > { %v403_v28 = vadd.f32 %v399_v16, %v376_v24 }
 0x138   : > { %v401_v31 = vpop.f32.mrf.mxu3 }
 0x139   : > { %6234 = vmatmul.msk.f32.vlgmr.msra.gmra.mxu1 %vm9183_vm3, %v403_v28 }
 0x13a   : > { %v335_v9 = vpop.f32.mrf.mxu0  ;;  %873 = vmatpush.bf16.msra.mxu1 %v864_v37 }
 0x13b   : > { %v1115_v9 = vpop.permute.xlu0 %1114 }
 0x13c   : > { %v1120_v32 = vsel %vm320_vm1, %v1115_v9, 0 }
 0x13d   : > { %v2246_v34 = vld.sshfl [vmem:[#allocation1] sm:$0xff pattern:$0x73625140]  ;;  %1129 = vmatpush.bf16.msrb.mxu3 %v1120_v32 }
 0x13e   : > { %2271 = vst [vmem:[#allocation1] ss:$4 sm:$0xff] %v7063_v0  ;;  %2248 = vrot.lane.b32.xlu1 %v2246_v34, %s6803_s7  ;;  %v1094_v34 = vsel %vm320_vm1, %v6975_v18, 0  ;;  %v6268_v18 = vld [vmem:[%s9168_s1 + $0x4] sm:$0xf] }
 0x13f   : > { %1103 = vmatpush.bf16.msrb.mxu2 %v1094_v34 }
 0x141   : > { %6246 = vmatmul.msk.bf16.vlgmr.msrb.gmra.mxu1 %vm316_vm2, %v6245_v35  ;;  %v1056_v35 = vsel %vm320_vm1, %v1051_v33, 0  ;;  %v7287_v33 = vld [vmem:[%s6944_s20 + $0xe] sm:$0x3] }
 0x142   : > { %v428_v38 = vpop.f32.mrf.mxu0  ;;  %1083 = vmatpush.bf16.msrb.mxu1 %v1074_v36 }
 0x143   : > { %v453_v43 = vadd.f32 %v7079_v5, %v428_v38 }
 0x145   : > { %v2272_v41 = vld.sshfl [vmem:[#allocation1] sm:$0xff pattern:$0x73625140] }
 0x146   : > { %2463 = vst [vmem:[#allocation1] ss:$4 sm:$0xff] %v7134_v40  ;;  %2274 = vrot.lane.b32.xlu2 %v2272_v41, %s6804_s8 }
 0x148   : > { %v478_v42 = vpop.f32.mrf.mxu2 }
 0x149   : > { %v482_v46 = vadd.f32 %v478_v42, %v453_v43  ;;  %v1044_v42 = vld [vmem:[%s9168_s1] sm:$0xf] }
 0x14a   : > { %v430_v44 = vpop.f32.mrf.mxu0 }
 0x14b   : > { %v1142_v44 = vpop.permute.xlu1 %1141 }
 0x14c   : > { %v1147_v48 = vsel %vm320_vm1, %v1142_v44, 0 }
 0x14d   : > { %v2464_v47 = vld.sshfl [vmem:[#allocation1] sm:$0xff pattern:$0x73625140] }
 0x14e   : > { %2527 = vst [vmem:[#allocation1] ss:$4 sm:$0xff] %v7140_v45  ;;  %2466 = vrot.lane.b32.xlu1 %v2464_v47, %s6803_s7 }
 0x150   : > { %v505_v50 = vpop.f32.mrf.mxu3  ;;  %v480_v51 = vpop.f32.mrf.mxu2 }
 0x151   : > { %v509_v53 = vadd.f32 %v505_v50, %v482_v46  ;;  %6254 = vmatmul.msk.bf16.vlgmr.msra.gmra.mxu1 %vm316_vm2, %v6253_v49  ;;  %v1217_v50 = vpop.permute.xlu0 %1216 }
 0x153   : > { %6233 = vmatmul.msk.f32.vlgmr.msra.gmra.mxu0 %vm9183_vm3, %v509_v53 }
 0x154   : > { %846 = vmatpush.bf16.msra.mxu0 %v837_v55  ;;  %v1222_v55 = vsel %vm320_vm1, %v1217_v50, 0  ;;  %v7303_v50 = vld [vmem:[%s6944_s20 + $0xc] sm:$0x3] }
 0x155   : > { %v2528_v56 = vld.sshfl [vmem:[#allocation1] sm:$0xff pattern:$0x73625140] }
 0x156   : > { %2530 = vrot.lane.b32.xlu0 %v2528_v56, %s6803_s7  ;;  %2554 = vst [vmem:[#allocation1] ss:$4 sm:$0xff] %v7134_v40  ;;  %v7224_v56 = vld [vmem:[%s6944_s20 + $0xc] sm:$0x3] }
 0x158   : > { %v507_v58 = vpop.f32.mrf.mxu3  ;;  %v705_v16 = vpop.f32.mrf.mxu2 }
 0x15b   : > { %6244 = vmatmul.msk.bf16.vlgmr.msrb.gmra.mxu0 %vm316_vm2, %v6243_v57  ;;  %v1166_v57 = vpop.permute.xlu2 %1165 }
 0x15c   : > { %1065 = vmatpush.bf16.msrb.mxu0 %v1056_v35  ;;  %v1171_v58 = vsel %vm320_vm1, %v1166_v57, 0 }
 0x15d   : > { %v2555_v59 = vld.sshfl [vmem:[#allocation1] sm:$0xff pattern:$0x73625140]  ;;  %1180 = vmatpush.bf16.msra.mxu1 %v1171_v58 }
 0x15e   : > { %2578 = vst [vmem:[#allocation1] ss:$4 sm:$0xff] %v7134_v40  ;;  %2557 = vrot.lane.b32.xlu1 %v2555_v59, %s6804_s8 }
 0x160   : > { %v721_v17 = vpop.f32.mrf.mxu3  ;;  %v707_v22 = vpop.f32.mrf.mxu2 }
 0x161   : > { %6270 = vmatmul.msk.bf16.vlgmr.msrb.gmra.mxu1 %vm316_vm2, %v1044_v42  ;;  %v722_v43 = vadd.f32 %v721_v17, %v705_v16  ;;  %v6271_v17 = vld [vmem:[%s9168_s1 + $0x8] sm:$0xf] }
 0x162   : > { %1282 = vmatpush.msrb.mxu1 %v7070_v3 }
 0x164   : > { %1283 = vmatpush.msrb.mxu1 %v7076_v4 }
 0x165   : > { %v2579_v60 = vld.sshfl [vmem:[#allocation1] sm:$0xff pattern:$0x73625140] }
 0x166   : > { %2603 = vst [vmem:[#allocation1] ss:$4 sm:$0xff] %v7140_v45 }
 0x168   : > { %v723_v23 = vpop.f32.mrf.mxu3  ;;  %v798_v26 = vpop.f32.mrf.mxu2 }
 0x16b   : > { %6252 = vmatmul.msk.bf16.vlgmr.msra.gmra.mxu0 %vm316_vm2, %v6251_v61  ;;  %v6276_v61 = vld [vmem:[%s9168_s1 + $0x14] sm:$0xf] }
 0x16c   : > { %1156 = vmatpush.bf16.msra.mxu0 %v1147_v48  ;;  %v1403_v48 = vpop.permute.xlu0 %1402 }
 0x16d   : > { %v2604_v62 = vld.sshfl [vmem:[#allocation1] sm:$0xff pattern:$0x73625140] }
 0x16e   : > { %2629 = vst [vmem:[#allocation1] ss:$4 sm:$0xff] %v7140_v45  ;;  %2606 = vrot.lane.b32.xlu2 %v2604_v62, %s6803_s7  ;;  %v6275_v62 = vld [vmem:[%s9168_s1 + $0x10] sm:$0xf] }
 0x170   : > { %v822_v27 = vpop.f32.mrf.mxu3  ;;  %v800_v30 = vpop.f32.mrf.mxu2 }
 0x171   : > { %6278 = vmatmul.msk.bf16.vlgmr.msra.gmra.mxu1 %vm316_vm2, %v6275_v62  ;;  %v7317_v62 = vld [vmem:[%s6944_s20 + $0xe] sm:$0x3] }
 0x175   : > { %v2630_v63 = vld.sshfl [vmem:[#allocation1] sm:$0xff pattern:$0x73625140] }
 0x176   : > { %2632 = vrot.lane.b32.xlu0 %v2630_v63, %s6804_s8  ;;  %2815 = vst [vmem:[#allocation1] ss:$4 sm:$0xff] %v7140_v45  ;;  %2581 = vrot.lane.b32.xlu2 %v2579_v60, %s6803_s7  ;;  %v6273_v63 = vld [vmem:[%s9168_s1 + $0xc] sm:$0xf] }
 0x178   : > { %v824_v31 = vpop.f32.mrf.mxu3 }
 0x17b   : > { %6269 = vmatmul.msk.bf16.vlgmr.msrb.gmra.mxu0 %vm316_vm2, %v6268_v18 }
 0x17c   : > { %1259 = vmatpush.msrb.mxu0 %v7097_v14 }
 0x17d   : > { %v2816_v2 = vld.sshfl [vmem:[#allocation1] sm:$0xff pattern:$0x73625140] }
 0x17e   : > { %2818 = vrot.lane.b32.xlu0 %v2816_v2, %s6803_s7  ;;  %2877 = vst [vmem:[#allocation1] ss:$4 sm:$0xff] %v7169_v1  ;;  %1260 = vmatpush.msrb.mxu0 %v7103_v19  ;;  %v823_v2 = vadd.f32 %v822_v27, %v798_v26  ;;  %v7272_v27 = vld [vmem:[%s6944_s20 + $0xc] sm:$0x3] }
 0x185   : > { %v2878_v5 = vld.sshfl [vmem:[#allocation1] sm:$0xff pattern:$0x73625140] }
 0x186   : > { %2904 = vst [vmem:[#allocation1] ss:$4 sm:$0xff] %v7140_v45  ;;  %2880 = vrot.lane.b32.xlu1 %v2878_v5, %s6803_s7 }
 0x18b   : > { %6277 = vmatmul.msk.bf16.vlgmr.msra.gmra.mxu0 %vm316_vm2, %v6276_v61 }
 0x18d   : > { %v2905_v6 = vld.sshfl [vmem:[#allocation1] sm:$0xff pattern:$0x73625140] }
 0x18e   : > { %2928 = vst [vmem:[#allocation1] ss:$4 sm:$0xff] %v7140_v45  ;;  %2907 = vrot.lane.b32.xlu2 %v2905_v6, %s6804_s8 }
 0x195   : > { %v2929_v7 = vld.sshfl [vmem:[#allocation1] sm:$0xff pattern:$0x73625140] }
 0x196   : > { %2931 = vrot.lane.b32.xlu0 %v2929_v7, %s6803_s7  ;;  %2953 = vst [vmem:[#allocation1] ss:$4 sm:$0xff] %v7169_v1 }
 0x19d   : > { %v2954_v8 = vld.sshfl [vmem:[#allocation1] sm:$0xff pattern:$0x73625140] }
 0x19e   : > { %2979 = vst [vmem:[#allocation1] ss:$4 sm:$0xff] %v7169_v1  ;;  %2956 = vrot.lane.b32.xlu1 %v2954_v8, %s6803_s7 }
 0x1a5   : > { %v2980_v11 = vld.sshfl [vmem:[#allocation1] sm:$0xff pattern:$0x73625140] }
 0x1a6   : > { %3171 = vst [vmem:[#allocation1] ss:$4 sm:$0xff] %v7182_v10  ;;  %2982 = vrot.lane.b32.xlu2 %v2980_v11, %s6804_s8  ;;  %v1196_v11 = vsel %vm320_vm1, %v1191_v15, 0 }
 0x1ad   : > { %v3172_v13 = vld.sshfl [vmem:[#allocation1] sm:$0xff pattern:$0x73625140] }
 0x1ae   : > { %3235 = vst [vmem:[#allocation1] ss:$4 sm:$0xff] %v7187_v12  ;;  %3174 = vrot.lane.b32.xlu1 %v3172_v13, %s6803_s7 }
 0x1b5   : > { %v3236_v20 = vld.sshfl [vmem:[#allocation1] sm:$0xff pattern:$0x73625140] }
 0x1b6   : > { %v7191_v21 = vpop.f32.mrf.mxu1  ;;  %3238 = vrot.lane.b32.xlu0 %v3236_v20, %s6803_s7  ;;  %3262 = vst [vmem:[#allocation1] ss:$4 sm:$0xff] %v7182_v10  ;;  %v6281_v20 = vld [vmem:[%s9168_s1 + $0x1c] sm:$0xf] }
 0x1bd   : > { %v3263_v24 = vld.sshfl [vmem:[#allocation1] sm:$0xff pattern:$0x73625140] }
 0x1be   : > { %v769_v25 = vpop.f32.mrf.mxu1  ;;  %3286 = vst [vmem:[#allocation1] ss:$4 sm:$0xff] %v7182_v10  ;;  %3265 = vrot.lane.b32.xlu1 %v3263_v24, %s6804_s8  ;;  %v6279_v24 = vld [vmem:[%s9168_s1 + $0x18] sm:$0xf] }
 0x1c5   : > { %v3287_v28 = vld.sshfl [vmem:[#allocation1] sm:$0xff pattern:$0x73625140] }
 0x1c6   : > { %v771_v29 = vpop.f32.mrf.mxu1  ;;  %3311 = vst [vmem:[#allocation1] ss:$4 sm:$0xff] %v7187_v12 }
 0x1cd   : > { %v3312_v37 = vld.sshfl [vmem:[#allocation1] sm:$0xff pattern:$0x73625140] }
 0x1ce   : > { %v875_v38 = vpop.f32.mrf.mxu1  ;;  %3337 = vst [vmem:[#allocation1] ss:$4 sm:$0xff] %v7187_v12  ;;  %3314 = vrot.lane.b32.xlu2 %v3312_v37, %s6803_s7 }
 0x1d0   : > { %v7206_v41 = vpop.f32.mrf.mxu0 }
 0x1d5   : > { %v3338_v46 = vld.sshfl [vmem:[#allocation1] sm:$0xff pattern:$0x73625140] }
 0x1d6   : > { %v877_v47 = vpop.f32.mrf.mxu1  ;;  %3340 = vrot.lane.b32.xlu0 %v3338_v46, %s6804_s8  ;;  %3520 = vst [vmem:[#allocation1] ss:$4 sm:$0xff] %v7187_v12  ;;  %3289 = vrot.lane.b32.xlu2 %v3287_v28, %s6803_s7 }
 0x1d8   : > { %v742_v49 = vpop.f32.mrf.mxu0 }
 0x1d9   : > { %v746_v51 = vadd.f32 %v742_v49, %v722_v43  ;;  %v1408_v49 = vsel %vm320_vm1, %v1403_v48, 0 }
 0x1db   : > { %v773_v53 = vadd.f32 %v769_v25, %v746_v51  ;;  %v7266_v25 = vld [vmem:[%s6944_s20 + $0xa] sm:$0x3]  ;;  %v6292_v51 = vld [vmem:[%s9168_s1 + $0x24] sm:$0xf] }
 0x1dd   : > { %6258 = vmatmul.msk.f32.vlgmr.msra.gmra.mxu3 %vm9183_vm3, %v773_v53  ;;  %v3521_v59 = vld.sshfl [vmem:[#allocation1] sm:$0xff pattern:$0x73625140] }
 0x1de   : > { %1231 = vmatpush.bf16.msra.mxu3 %v1222_v55  ;;  %3582 = vst [vmem:[#allocation1] ss:$4 sm:$0xff] %v7224_v56  ;;  %3523 = vrot.lane.b32.xlu0 %v3521_v59, %s6803_s7  ;;  %v6291_v53 = vld [vmem:[%s9168_s1 + $0x20] sm:$0xf] }
 0x1e0   : > { %v744_v60 = vpop.f32.mrf.mxu0 }
 0x1e1   : > { %v1465_v60 = vpop.permute.xlu1 %1464 }
 0x1e2   : > { %v1470_v61 = vsel %vm320_vm1, %v1465_v60, 0 }
 0x1e3   : > { %1479 = vmatpush.bf16.msra.mxu1 %v1470_v61  ;;  %v7390_v61 = vld [vmem:[%s6944_s20 + $0xe] sm:$0x3] }
 0x1e4   : > { %9191 = vst [vmem:[#allocation12_spill] sm:$0xff] %v7390_v61 }
 0x1e5   : > { %6274 = vmatmul.msk.bf16.vlgmr.msrb.gmra.mxu3 %vm316_vm2, %v6273_v63  ;;  %v3583_v5 = vld.sshfl [vmem:[#allocation1] sm:$0xff pattern:$0x73625140]  ;;  %v1444_v63 = vsel %vm320_vm1, %v7015_v39, 0  ;;  %v6300_v39 = vld [vmem:[%s9168_s1 + $0x34] sm:$0xf] }
 0x1e6   : > { %1433 = vmatpush.bf16.msrb.mxu3 %v1094_v34  ;;  %3609 = vst [vmem:[#allocation1] ss:$4 sm:$0xff] %v7187_v12  ;;  %3585 = vrot.lane.b32.xlu1 %v3583_v5, %s6803_s7 }
 0x1e7   : > { %1453 = vmatpush.bf16.msra.mxu0 %v1444_v63 }
 0x1e8   : > { %v848_v6 = vpop.f32.mrf.mxu0 }
 0x1e9   : > { %v852_v7 = vadd.f32 %v848_v6, %v823_v2 }
 0x1eb   : > { %v879_v8 = vadd.f32 %v875_v38, %v852_v7  ;;  %v1085_v38 = vpop.f32.mrf.mxu1  ;;  %v1492_v7 = vpop.permute.xlu2 %1491 }
 0x1ed   : > { %6257 = vmatmul.msk.f32.vlgmr.msra.gmra.mxu2 %vm9183_vm3, %v879_v8  ;;  %v3610_v13 = vld.sshfl [vmem:[#allocation1] sm:$0xff pattern:$0x73625140]  ;;  %v1516_v8 = vpop.permute.xlu0 %1515 }
 0x1ee   : > { %1205 = vmatpush.bf16.msra.mxu2 %v1196_v11  ;;  %3633 = vst [vmem:[#allocation1] ss:$4 sm:$0xff] %v7187_v12  ;;  %3612 = vrot.lane.b32.xlu2 %v3610_v13, %s6804_s8  ;;  %v1497_v11 = vsel %vm320_vm1, %v1492_v7, 0  ;;  %v1521_v13 = vsel %vm320_vm1, %v1516_v8, 0 }
 0x1f0   : > { %v850_v16 = vpop.f32.mrf.mxu0 }
 0x1f1   : > { %v6299_v16 = vld [vmem:[%s9168_s1 + $0x30] sm:$0xf] }
 0x1f3   : > { %v1087_v15 = vpop.f32.mrf.mxu1 }
 0x1f4   : > { %v6295_v15 = vld [vmem:[%s9168_s1 + $0x28] sm:$0xf] }
 0x1f5   : > { %6272 = vmatmul.msk.bf16.vlgmr.msrb.gmra.mxu2 %vm316_vm2, %v6271_v17  ;;  %6282 = vmatmul.msk.bf16.vlgmr.msra.gmra.mxu3 %vm316_vm2, %v6281_v20  ;;  %v3634_v22 = vld.sshfl [vmem:[#allocation1] sm:$0xff pattern:$0x73625140] }
 0x1f6   : > { %3636 = vrot.lane.b32.xlu0 %v3634_v22, %s6803_s7  ;;  %3658 = vst [vmem:[#allocation1] ss:$4 sm:$0xff] %v7224_v56  ;;  %1417 = vmatpush.bf16.msrb.mxu2 %v1408_v49  ;;  %v6303_v49 = vld [vmem:[%s9168_s1 + $0x38] sm:$0xf] }
 0x1f7   : > { %1530 = vmatpush.bf16.msra.mxu3 %v1521_v13 }
 0x1f8   : > { %v1067_v37 = vpop.f32.mrf.mxu0 }
 0x1f9   : > { %v1086_v17 = vadd.f32 %v1085_v38, %v1067_v37 }
 0x1fb   : > { %v1182_v46 = vpop.f32.mrf.mxu1 }
 0x1fd   : > { %v3659_v23 = vld.sshfl [vmem:[#allocation1] sm:$0xff pattern:$0x73625140] }
 0x1fe   : > { %3684 = vst [vmem:[#allocation1] ss:$4 sm:$0xff] %v7224_v56  ;;  %3661 = vrot.lane.b32.xlu1 %v3659_v23, %s6803_s7 }
 0x200   : > { %v1069_v42 = vpop.f32.mrf.mxu0 }
 0x203   : > { %v1184_v58 = vpop.f32.mrf.mxu1 }
 0x205   : > { %6280 = vmatmul.msk.bf16.vlgmr.msra.gmra.mxu2 %vm316_vm2, %v6279_v24  ;;  %v3685_v26 = vld.sshfl [vmem:[#allocation1] sm:$0xff pattern:$0x73625140]  ;;  %6294 = vmatmul.msk.bf16.vlgmr.msrb.gmra.mxu3 %vm316_vm2, %v6291_v53 }
 0x206   : > { %3874 = vst [vmem:[#allocation1] ss:$4 sm:$0xff] %v7266_v25  ;;  %3687 = vrot.lane.b32.xlu2 %v3685_v26, %s6804_s8  ;;  %1506 = vmatpush.bf16.msra.mxu2 %v1497_v11 }
 0x207   : > { %1632 = vmatpush.msrb.mxu3 %v7070_v3  ;;  %v1567_v3 = vpop.permute.xlu2 %1566 }
 0x208   : > { %v1158_v44 = vpop.f32.mrf.mxu0 }
 0x209   : > { %1633 = vmatpush.msrb.mxu3 %v7076_v4  ;;  %v6297_v4 = vld [vmem:[%s9168_s1 + $0x2c] sm:$0xf] }
 0x20d   : > { %v3875_v28 = vld.sshfl [vmem:[#allocation1] sm:$0xff pattern:$0x73625140] }
 0x20e   : > { %3938 = vst [vmem:[#allocation1] ss:$4 sm:$0xff] %v7272_v27  ;;  %3877 = vrot.lane.b32.xlu1 %v3875_v28, %s6803_s7 }
 0x210   : > { %v1160_v57 = vpop.f32.mrf.mxu0 }
 0x215   : > { %v3939_v29 = vld.sshfl [vmem:[#allocation1] sm:$0xff pattern:$0x73625140]  ;;  %6293 = vmatmul.msk.bf16.vlgmr.msrb.gmra.mxu2 %vm316_vm2, %v6292_v51  ;;  %6302 = vmatmul.msk.bf16.vlgmr.msra.gmra.mxu3 %vm316_vm2, %v6299_v16 }
 0x216   : > { %3941 = vrot.lane.b32.xlu0 %v3939_v29, %s6803_s7  ;;  %3965 = vst [vmem:[#allocation1] ss:$4 sm:$0xff] %v7266_v25  ;;  %1609 = vmatpush.msrb.mxu2 %v7097_v14  ;;  %v1572_v14 = vsel %vm320_vm1, %v1567_v3, 0 }
 0x218   : > { %1610 = vmatpush.msrb.mxu2 %v7103_v19  ;;  %v1183_v19 = vadd.f32 %v1182_v46, %v1158_v44  ;;  %v7367_v46 = vld [vmem:[%s6944_s20 + $0x10] sm:$0x3] }
 0x219   : > { %9190 = vst [vmem:[#allocation11_spill] sm:$0xff] %v7367_v46 }
 0x21d   : > { %v3966_v30 = vld.sshfl [vmem:[#allocation1] sm:$0xff pattern:$0x73625140] }
 0x21e   : > { %3989 = vst [vmem:[#allocation1] ss:$4 sm:$0xff] %v7266_v25  ;;  %3968 = vrot.lane.b32.xlu1 %v3966_v30, %s6804_s8 }
 0x225   : > { %v3990_v31 = vld.sshfl [vmem:[#allocation1] sm:$0xff pattern:$0x73625140]  ;;  %6301 = vmatmul.msk.bf16.vlgmr.msra.gmra.mxu2 %vm316_vm2, %v6300_v39 }
 0x226   : > { %4014 = vst [vmem:[#allocation1] ss:$4 sm:$0xff] %v7272_v27 }
 0x22d   : > { %v4015_v9 = vld.sshfl [vmem:[#allocation1] sm:$0xff pattern:$0x73625140] }
 0x22e   : > { %4040 = vst [vmem:[#allocation1] ss:$4 sm:$0xff] %v7272_v27  ;;  %4017 = vrot.lane.b32.xlu2 %v4015_v9, %s6803_s7 }
 0x235   : > { %v4041_v32 = vld.sshfl [vmem:[#allocation1] sm:$0xff pattern:$0x73625140] }
 0x236   : > { %4043 = vrot.lane.b32.xlu0 %v4041_v32, %s6804_s8  ;;  %4223 = vst [vmem:[#allocation1] ss:$4 sm:$0xff] %v7272_v27  ;;  %3992 = vrot.lane.b32.xlu2 %v3990_v31, %s6803_s7  ;;  %v1823_v31 = vpop.permute.xlu0 %1822 }
 0x237   : > { %v1828_v32 = vsel %vm320_vm1, %v1823_v31, 0  ;;  %v6805_v31 = vmov 0  }
 0x238   : > { %1837 = vmatpush.bf16.msra.mxu3 %v1828_v32  ;;  %6733 = vset.pattern.permute.xlu0 %v6805_v31  ;;  %v6327_v31 = vld [vmem:[%s9168_s1 + $0x10] sm:$0xf] }
 0x23d   : > { %v4224_v34 = vld.sshfl [vmem:[#allocation1] sm:$0xff pattern:$0x73625140] }
 0x23e   : > { %4226 = vrot.lane.b32.xlu0 %v4224_v34, %s6803_s7  ;;  %4285 = vst [vmem:[#allocation1] ss:$4 sm:$0xff] %v7287_v33  ;;  %v7377_v53 = vpop.permute.xlu0 %1924 }
 0x245   : > { %v4286_v35 = vld.sshfl [vmem:[#allocation1] sm:$0xff pattern:$0x73625140] }
 0x246   : > { %4312 = vst [vmem:[#allocation1] ss:$4 sm:$0xff] %v7272_v27  ;;  %4288 = vrot.lane.b32.xlu1 %v4286_v35, %s6803_s7  ;;  %v1541_v35 = vpop.permute.xlu1 %1540  ;;  %v7381_v57 = vpop.permute.xlu0 %2110 }
 0x247   : > { %v1546_v38 = vsel %vm320_vm1, %v1541_v35, 0 }
 0x24d   : > { %v4313_v36 = vld.sshfl [vmem:[#allocation1] sm:$0xff pattern:$0x73625140] }
 0x24e   : > { %4336 = vst [vmem:[#allocation1] ss:$4 sm:$0xff] %v7272_v27  ;;  %4315 = vrot.lane.b32.xlu2 %v4313_v36, %s6804_s8  ;;  %v7387_v60 = vpop.permute.xlu0 %2223 }
 0x255   : > { %v4337_v18 = vld.sshfl [vmem:[#allocation1] sm:$0xff pattern:$0x73625140] }
 0x256   : > { %4339 = vrot.lane.b32.xlu0 %v4337_v18, %s6803_s7  ;;  %4361 = vst [vmem:[#allocation1] ss:$4 sm:$0xff] %v7287_v33 }
 0x25d   : > { %v4362_v43 = vld.sshfl [vmem:[#allocation1] sm:$0xff pattern:$0x73625140] }
 0x25e   : > { %4387 = vst [vmem:[#allocation1] ss:$4 sm:$0xff] %v7287_v33  ;;  %4364 = vrot.lane.b32.xlu1 %v4362_v43, %s6803_s7  ;;  %v6305_v43 = vld [vmem:[%s9168_s1 + $0x3c] sm:$0xf] }
 0x260   : > { %v7299_v47 = vpop.f32.mrf.mxu3 }
 0x265   : > { %v4388_v55 = vld.sshfl [vmem:[#allocation1] sm:$0xff pattern:$0x73625140] }
 0x266   : > { %4577 = vst [vmem:[#allocation1] ss:$4 sm:$0xff] %v7303_v50  ;;  %4390 = vrot.lane.b32.xlu2 %v4388_v55, %s6804_s8 }
 0x268   : > { %v1131_v59 = vpop.f32.mrf.mxu3 }
 0x26d   : > { %v4578_v2 = vld.sshfl [vmem:[#allocation1] sm:$0xff pattern:$0x73625140] }
 0x26e   : > { %4641 = vst [vmem:[#allocation1] ss:$4 sm:$0xff] %v7317_v62  ;;  %4580 = vrot.lane.b32.xlu1 %v4578_v2, %s6803_s7  ;;  %v7394_v2 = vpop.permute.xlu0 %2530 }
 0x270   : > { %v7323_v5 = vpop.f32.mrf.mxu2  ;;  %v1133_v6 = vpop.f32.mrf.mxu3 }
 0x271   : > { %v7397_v6 = vld [vmem:[%s6944_s20 + $0x10] sm:$0x3] }
 0x272   : > { %9192 = vst [vmem:[#allocation13_spill] sm:$0xff] %v7397_v6 }
 0x275   : > { %v4642_v20 = vld.sshfl [vmem:[#allocation1] sm:$0xff pattern:$0x73625140] }
 0x276   : > { %4668 = vst [vmem:[#allocation1] ss:$4 sm:$0xff] %v7303_v50  ;;  %4644 = vrot.lane.b32.xlu0 %v4642_v20, %s6803_s7  ;;  %v7401_v8 = vpop.permute.xlu0 %2632 }
 0x278   : > { %v1105_v22 = vpop.f32.mrf.mxu2  ;;  %v1233_v23 = vpop.f32.mrf.mxu3 }
 0x279   : > { %v1109_v24 = vadd.f32 %v1105_v22, %v1086_v17 }
 0x27b   : > { %v1135_v26 = vadd.f32 %v1131_v59, %v1109_v24 }
 0x27d   : > { %6286 = vmatmul.msk.f32.vlgmr.msrb.gmra.mxu1 %vm9183_vm3, %v1135_v26  ;;  %v4669_v28 = vld.sshfl [vmem:[#allocation1] sm:$0xff pattern:$0x73625140] }
 0x27e   : > { %1581 = vmatpush.bf16.msrb.mxu1 %v1572_v14  ;;  %4692 = vst [vmem:[#allocation1] ss:$4 sm:$0xff] %v7303_v50  ;;  %4671 = vrot.lane.b32.xlu1 %v4669_v28, %s6804_s8  ;;  %v7405_v39 = vpop.permute.xlu0 %2818 }
 0x280   : > { %v1107_v29 = vpop.f32.mrf.mxu2  ;;  %v1235_v30 = vpop.f32.mrf.mxu3 }
 0x285   : > { %6298 = vmatmul.msk.bf16.vlgmr.msra.gmra.mxu1 %vm316_vm2, %v6297_v4  ;;  %v4693_v9 = vld.sshfl [vmem:[#allocation1] sm:$0xff pattern:$0x73625140]  ;;  %v7422_v4 = vld [vmem:[%s6944_s20 + $0x12] sm:$0x3]  ;;  %s5982_s20 = scalar_lea.sflag [#allocation3], %s257_s16 }
 0x286   : > { %4717 = vst [vmem:[#allocation1] ss:$4 sm:$0xff] %v7317_v62  ;;  %v7410_v17 = vpop.permute.xlu0 %2931 }
 0x287   : > { %9193 = vst [vmem:[#allocation14_spill] sm:$0xff] %v7422_v4 }
 0x288   : > { %v1207_v34 = vpop.f32.mrf.mxu2  ;;  %v1435_v22 = vpop.f32.mrf.mxu3 }
 0x289   : > { %v1211_v36 = vadd.f32 %v1207_v34, %v1183_v19 }
 0x28b   : > { %v1237_v37 = vadd.f32 %v1233_v23, %v1211_v36 }
 0x28d   : > { %6285 = vmatmul.msk.f32.vlgmr.msrb.gmra.mxu0 %vm9183_vm3, %v1237_v37  ;;  %v4718_v18 = vld.sshfl [vmem:[#allocation1] sm:$0xff pattern:$0x73625140] }
 0x28e   : > { %1555 = vmatpush.bf16.msrb.mxu0 %v1546_v38  ;;  %4743 = vst [vmem:[#allocation1] ss:$4 sm:$0xff] %v7317_v62  ;;  %4720 = vrot.lane.b32.xlu2 %v4718_v18, %s6803_s7  ;;  %v7414_v26 = vpop.permute.xlu0 %3238  ;;  %v1759_v38 = vpop.permute.xlu1 %1758  ;;  %v1802_v18 = vsel %vm320_vm1, %v7048_v54, 0 }
 0x28f   : > { %1811 = vmatpush.bf16.msra.mxu2 %v1802_v18 }
 0x290   : > { %v1209_v42 = vpop.f32.mrf.mxu2  ;;  %v1437_v3 = vpop.f32.mrf.mxu3 }
 0x291   : > { %v1764_v42 = vsel %vm320_vm1, %v1759_v38, 0 }
 0x295   : > { %6296 = vmatmul.msk.bf16.vlgmr.msra.gmra.mxu0 %vm316_vm2, %v6295_v15  ;;  %6306 = vmatmul.msk.bf16.vlgmr.msrb.gmra.mxu1 %vm316_vm2, %v6305_v43  ;;  %v4744_v44 = vld.sshfl [vmem:[#allocation1] sm:$0xff pattern:$0x73625140]  ;;  %v1782_v15 = vsel %vm320_vm1, %v7043_v52, 0  ;;  %v1899_v52 = vpop.permute.xlu2 %1898 }
 0x296   : > { %4746 = vrot.lane.b32.xlu0 %v4744_v44, %s6804_s8  ;;  %4926 = vst [vmem:[#allocation1] ss:$4 sm:$0xff] %v7317_v62  ;;  %4695 = vrot.lane.b32.xlu2 %v4693_v9, %s6803_s7  ;;  %v7424_v19 = vpop.permute.xlu0 %3340 }
 0x297   : > { %1773 = vmatpush.bf16.msra.mxu0 %v1764_v42  ;;  %1791 = vmatpush.bf16.msra.mxu1 %v1782_v15  ;;  %v1904_v15 = vsel %vm320_vm1, %v1899_v52, 0 }
 0x298   : > { %v1419_v20 = vpop.f32.mrf.mxu2  ;;  %v1532_v29 = vpop.f32.mrf.mxu3 }
 0x29d   : > { %v4927_v48 = vld.sshfl [vmem:[#allocation1] sm:$0xff pattern:$0x73625140] }
 0x29e   : > { %4929 = vrot.lane.b32.xlu0 %v4927_v48, %s6803_s7  ;;  %4988 = vst [vmem:[#allocation1] ss:$4 sm:$0xff] %v7367_v46  ;;  %v7428_v37 = vpop.permute.xlu0 %3523  ;;  %v6320_v48 = vld [vmem:[%s9168_s1 + $0x4] sm:$0xf] }
 0x2a0   : > { %v1421_v24 = vpop.f32.mrf.mxu2  ;;  %v1534_v34 = vpop.f32.mrf.mxu3 }
 0x2a1   : > { %v1874_v24 = vpop.permute.xlu2 %1873 }
 0x2a5   : > { %6304 = vmatmul.msk.bf16.vlgmr.msrb.gmra.mxu0 %vm316_vm2, %v6303_v49  ;;  %v4989_v51 = vld.sshfl [vmem:[#allocation1] sm:$0xff pattern:$0x73625140] }
 0x2a6   : > { %5015 = vst [vmem:[#allocation1] ss:$4 sm:$0xff] %v7317_v62  ;;  %4991 = vrot.lane.b32.xlu1 %v4989_v51, %s6803_s7  ;;  %v1752_v49 = vld [vmem:[%s9168_s1] sm:$0xf]  ;;  %v1436_v51 = vadd.f32 %v1435_v22, %v1419_v20  ;;  %v1879_v20 = vsel %vm320_vm1, %v1874_v24, 0 }
 0x2a7   : > { %6322 = vmatmul.msk.bf16.vlgmr.msra.gmra.mxu1 %vm316_vm2, %v1752_v49  ;;  %v2229_v49 = vsel %vm320_vm1, %v7387_v60, 0 }
 0x2a8   : > { %v1508_v28 = vpop.f32.mrf.mxu2  ;;  %1888 = vmatpush.bf16.msrb.mxu1 %v1879_v20  ;;  %v560_v20 = vadd.f32 %v7191_v21, %v7206_v41 }
 0x2a9   : > { %v1533_v34 = vadd.f32 %v1532_v29, %v1508_v28  ;;  %v6323_v28 = vld [vmem:[%s9168_s1 + $0x8] sm:$0xf]  ;;  %v6333_v29 = vld [vmem:[%s9168_s1 + $0x1c] sm:$0xf] }
 0x2ad   : > { %v5016_v55 = vld.sshfl [vmem:[#allocation1] sm:$0xff pattern:$0x73625140] }
 0x2ae   : > { %5039 = vst [vmem:[#allocation1] ss:$4 sm:$0xff] %v7317_v62  ;;  %5018 = vrot.lane.b32.xlu2 %v5016_v55, %s6804_s8  ;;  %v7449_v55 = vpop.permute.xlu0 %3636 }
 0x2b0   : > { %v1510_v32 = vpop.f32.mrf.mxu2 }
 0x2b1   : > { %v6325_v32 = vld [vmem:[%s9168_s1 + $0xc] sm:$0xf] }
 0x2b5   : > { %v5040_v58 = vld.sshfl [vmem:[#allocation1] sm:$0xff pattern:$0x73625140]  ;;  %6321 = vmatmul.msk.bf16.vlgmr.msra.gmra.mxu0 %vm316_vm2, %v6320_v48 }
 0x2b6   : > { %5042 = vrot.lane.b32.xlu0 %v5040_v58, %s6803_s7  ;;  %5064 = vst [vmem:[#allocation1] ss:$4 sm:$0xff] %v7367_v46  ;;  %v1850_v58 = vpop.permute.xlu1 %1849  ;;  %v7458_v22 = vpop.permute.xlu0 %3941 }
 0x2b7   : > { %6330 = vmatmul.msk.bf16.vlgmr.msrb.gmra.mxu1 %vm316_vm2, %v6327_v31 }
 0x2bd   : > { %v5065_v59 = vld.sshfl [vmem:[#allocation1] sm:$0xff pattern:$0x73625140] }
 0x2be   : > { %5090 = vst [vmem:[#allocation1] ss:$4 sm:$0xff] %v7367_v46  ;;  %5067 = vrot.lane.b32.xlu1 %v5065_v59, %s6803_s7  ;;  %v1855_v59 = vsel %vm320_vm1, %v1850_v58, 0  ;;  %v7475_v38 = vpop.permute.xlu0 %4043  ;;  %v2200_v58 = vpop.permute.xlu2 %2199  ;;  %v656_v46 = vld [vmem:[%s6938_s26 + $0x18] sm:$0x1] }
 0x2bf   : > { %1864 = vmatpush.bf16.msrb.mxu0 %v1855_v59  ;;  %v2205_v60 = vsel %vm320_vm1, %v2200_v58, 0 }
 0x2c5   : > { %v5091_v63 = vld.sshfl [vmem:[#allocation1] sm:$0xff pattern:$0x73625140] }
 0x2c6   : > { %5280 = vst [vmem:[#allocation1] ss:$4 sm:$0xff] %v7390_v61  ;;  %5093 = vrot.lane.b32.xlu2 %v5091_v63, %s6804_s8 }
 0x2cd   : > { %v5281_v7 = vld.sshfl [vmem:[#allocation1] sm:$0xff pattern:$0x73625140] }
 0x2ce   : > { %5344 = vst [vmem:[#allocation1] ss:$4 sm:$0xff] %v7397_v6  ;;  %5283 = vrot.lane.b32.xlu1 %v5281_v7, %s6803_s7 }
 0x2d5   : > { %v5345_v11 = vld.sshfl [vmem:[#allocation1] sm:$0xff pattern:$0x73625140] }
 0x2d6   : > { %5347 = vrot.lane.b32.xlu0 %v5345_v11, %s6803_s7  ;;  %5371 = vst [vmem:[#allocation1] ss:$4 sm:$0xff] %v7390_v61 }
 0x2dd   : > { %v5372_v13 = vld.sshfl [vmem:[#allocation1] sm:$0xff pattern:$0x73625140] }
 0x2de   : > { %5395 = vst [vmem:[#allocation1] ss:$4 sm:$0xff] %v7390_v61  ;;  %5374 = vrot.lane.b32.xlu1 %v5372_v13, %s6804_s8  ;;  %v1930_v13 = vsel %vm320_vm1, %v7377_v53, 0  ;;  %v6328_v53 = vld [vmem:[%s9168_s1 + $0x14] sm:$0xf] }
 0x2df   : > { %6329 = vmatmul.msk.bf16.vlgmr.msrb.gmra.mxu0 %vm316_vm2, %v6328_v53 }
 0x2e5   : > { %v5396_v16 = vld.sshfl [vmem:[#allocation1] sm:$0xff pattern:$0x73625140] }
 0x2e6   : > { %5420 = vst [vmem:[#allocation1] ss:$4 sm:$0xff] %v7397_v6 }
 0x2ed   : > { %v5421_v23 = vld.sshfl [vmem:[#allocation1] sm:$0xff pattern:$0x73625140] }
 0x2ee   : > { %5446 = vst [vmem:[#allocation1] ss:$4 sm:$0xff] %v7397_v6  ;;  %5423 = vrot.lane.b32.xlu2 %v5421_v23, %s6803_s7 }
 0x2f5   : > { %v5447_v14 = vld.sshfl [vmem:[#allocation1] sm:$0xff pattern:$0x73625140] }
 0x2f6   : > { %5449 = vrot.lane.b32.xlu0 %v5447_v14, %s6804_s8  ;;  %5629 = vst [vmem:[#allocation1] ss:$4 sm:$0xff] %v7397_v6  ;;  %5398 = vrot.lane.b32.xlu2 %v5396_v16, %s6803_s7 }
 0x2fa   : > { %v7419_v30 = vpop.f32.mrf.mxu1 }
 0x2fd   : > { %v5630_v9 = vld.sshfl [vmem:[#allocation1] sm:$0xff pattern:$0x73625140] }
 0x2fe   : > { %5632 = vrot.lane.b32.xlu0 %v5630_v9, %s6803_s7  ;;  %5691 = vst [vmem:[#allocation1] ss:$4 sm:$0xff] %v7422_v4  ;;  %v294_v9 = vld [vmem:[%s9170_s3] sm:$0xff] }
 0x302   : > { %v1481_v35 = vpop.f32.mrf.mxu1 }
 0x305   : > { %v5692_v36 = vld.sshfl [vmem:[#allocation1] sm:$0xff pattern:$0x73625140] }
 0x306   : > { %5718 = vst [vmem:[#allocation1] ss:$4 sm:$0xff] %v7397_v6  ;;  %5694 = vrot.lane.b32.xlu1 %v5692_v36, %s6803_s7 }
 0x30a   : > { %v7437_v43 = vpop.f32.mrf.mxu0  ;;  %v1483_v44 = vpop.f32.mrf.mxu1 }
 0x30d   : > { %v5719_v54 = vld.sshfl [vmem:[#allocation1] sm:$0xff pattern:$0x73625140] }
 0x30e   : > { %5742 = vst [vmem:[#allocation1] ss:$4 sm:$0xff] %v7397_v6  ;;  %5721 = vrot.lane.b32.xlu2 %v5719_v54, %s6804_s8  ;;  %v7491_v54 = vpop.permute.xlu0 %4226 }
 0x312   : > { %v1455_v63 = vpop.f32.mrf.mxu0  ;;  %v1583_v7 = vpop.f32.mrf.mxu1 }
 0x313   : > { %v1459_v11 = vadd.f32 %v1455_v63, %v1436_v51 }
 0x315   : > { %v1485_v16 = vadd.f32 %v1481_v35, %v1459_v11  ;;  %v5743_v23 = vld.sshfl [vmem:[#allocation1] sm:$0xff pattern:$0x73625140] }
 0x316   : > { %5745 = vrot.lane.b32.xlu0 %v5743_v23, %s6803_s7  ;;  %5767 = vst [vmem:[#allocation1] ss:$4 sm:$0xff] %v7422_v4  ;;  %v7496_v51 = vpop.permute.xlu0 %4339 }
 0x317   : > { %6310 = vmatmul.msk.f32.vlgmr.msrb.gmra.mxu3 %vm9183_vm3, %v1485_v16 }
 0x318   : > { %1939 = vmatpush.bf16.msrb.mxu3 %v1930_v13 }
 0x31a   : > { %v1457_v3 = vpop.f32.mrf.mxu0  ;;  %v1585_v14 = vpop.f32.mrf.mxu1 }
 0x31b   : > { %v928_v3 = vadd.f32 %v7299_v47, %v7323_v5  ;;  %v1286_v14 = vadd.f32 %v7419_v30, %v7437_v43 }
 0x31d   : > { %v5768_v44 = vld.sshfl [vmem:[#allocation1] sm:$0xff pattern:$0x73625140] }
 0x31e   : > { %564 = vperm.xlu0 %6733, %v294_v9   ;;  %5770 = vrot.lane.b32.xlu1 %v5768_v44, %s6803_s7  ;;  %5793 = vst [vmem:[#allocation1] ss:$4 sm:$0xff] %v7422_v4  ;;  %v7503_v59 = vpop.permute.xlu0 %4644  ;;  %v6806_v9 = vmov 286326784   ;;  %v653_v4 = vld [vmem:[%s6938_s26 + $0x10] sm:$0x1] }
 0x31f   : > { %6326 = vmatmul.msk.bf16.vlgmr.msra.gmra.mxu3 %vm316_vm2, %v6325_v32  ;;  %v605_v32 = vunpack.c.l.s4 %v6806_v9 }
 0x320   : > { %2141 = vmatpush.bf16.msra.mxu3 %v1802_v18  ;;  %v2116_v18 = vsel %vm320_vm1, %v7381_v57, 0  ;;  %v6331_v57 = vld [vmem:[%s9168_s1 + $0x18] sm:$0xf] }
 0x322   : > { %v1557_v35 = vpop.f32.mrf.mxu0 }
 0x323   : > { %v1561_v36 = vadd.f32 %v1557_v35, %v1533_v34 }
 0x325   : > { %v1587_v42 = vadd.f32 %v1583_v7, %v1561_v36  ;;  %v5794_v52 = vld.sshfl [vmem:[#allocation1] sm:$0xff pattern:$0x73625140] }
 0x326   : > { %5796 = vrot.lane.b32.xlu2 %v5794_v52, %s6804_s8  ;;  %v7505_v63 = vpop.permute.xlu0 %4746 }
 0x327   : > { %6309 = vmatmul.msk.f32.vlgmr.msrb.gmra.mxu2 %vm9183_vm3, %v1587_v42  ;;  %v7536_v42 = vunpack.c.0.s8 %v605_v32 }
 0x328   : > { %1913 = vmatpush.bf16.msrb.mxu2 %v1904_v15 }
 0x32a   : > { %v1559_v48 = vpop.f32.mrf.mxu0 }
 0x32e   : > { %v7507_v7 = vpop.permute.xlu0 %4929 }
 0x32f   : > { %6324 = vmatmul.msk.bf16.vlgmr.msra.gmra.mxu2 %vm316_vm2, %v6323_v28  ;;  %6334 = vmatmul.msk.bf16.vlgmr.msrb.gmra.mxu3 %vm316_vm2, %v6333_v29 }
 0x330   : > { %2125 = vmatpush.bf16.msra.mxu2 %v2116_v18  ;;  %2238 = vmatpush.bf16.msrb.mxu3 %v2229_v49 }
 0x336   : > { %v7509_v11 = vpop.permute.xlu0 %5042 }
 0x337   : > { %9194 = vst [vmem:[#allocation15_spill] sm:$0xff] %v7509_v11  ;;  %v668_v11 = vld [vmem:[%s6938_s26 + $0x38] sm:$0x1] }
 0x33f   : > { %6332 = vmatmul.msk.bf16.vlgmr.msrb.gmra.mxu2 %vm316_vm2, %v6331_v57 }
 0x340   : > { %2214 = vmatpush.bf16.msrb.mxu2 %v2205_v60 }
 0x348   : > { %v7511_v13 = vpop.permute.xlu0 %5347 }
 0x349   : > { %9195 = vst [vmem:[#allocation16_spill] sm:$0xff] %v7511_v13 }
 0x368   : > { %v7513_v16 = vpop.permute.xlu0 %5449 }
 0x369   : > { %9196 = vst [vmem:[#allocation17_spill] sm:$0xff] %v7513_v16 }
 0x370   : > { %v7515_v23 = vpop.permute.xlu0 %5632 }
 0x371   : > { %9197 = vst [vmem:[#allocation18_spill] sm:$0xff] %v7515_v23  ;;  %v665_v23 = vld [vmem:[%s6938_s26 + $0x30] sm:$0x1] }
 0x388   : > { %v7517_v24 = vpop.permute.xlu0 %5745 }
 0x389   : > { %9198 = vst [vmem:[#allocation19_spill] sm:$0xff] %v7517_v24  ;;  %v659_v24 = vld [vmem:[%s6938_s26 + $0x20] sm:$0x1] }
 0x390   : > { %v7525_v53 = vpop.permute.xlu0 %564 }
 0x391   : > { %v567_v31 = vadd.f32 %v7525_v53, %v560_v20  ;;  %v930_v34 = vadd.f32 %v928_v3, %v7525_v53  ;;  %v1288_v35 = vadd.f32 %v1286_v14, %v7525_v53 }
 0x393   : > { %v672_v21 = vsel %vm671_vm5, %v567_v31, 0.0  ;;  %v568_v41 = vpack.c.bf16 %v567_v31, %v567_v31  ;;  %v1029_v47 = vsel %vm671_vm5, %v930_v34, 0.0  ;;  %v7532_v5 = vpack.c.bf16 %v930_v34, %v930_v34 }
 0x394   : > { %673 = vadd.xlane.f32.xlu1 %v672_v21  ;;  %1030 = vadd.xlane.f32.xlu0 %v1029_v47  ;;  %v676_v30 = vmul.f32 %v567_v31, %v567_v31  ;;  %v7534_v43 = vpack.c.bf16 %v1288_v35, %v1288_v35  ;;  %v1033_v36 = vmul.f32 %v930_v34, %v930_v34  ;;  %v1388_v48 = vsel %vm671_vm5, %v1288_v35, 0.0 }
 0x395   : > { %v570_v15 = vrot.slane %v568_v41, 3  ;;  %v7539_v44 = vrot.slane %v7532_v5, 3  ;;  %v7547_v49 = vmul.f32 %v1288_v35, %v1288_v35 }
 0x396   : > { %v677_v28 = vsel %vm671_vm5, %v676_v30, 0.0  ;;  %v7544_v29 = vrot.slane %v7534_v43, 3  ;;  %v1034_v18 = vsel %vm671_vm5, %v1033_v36, 0.0 }
 0x397   : > { %v574_v52 = vsel %vm571_vm4, %v568_v41, %v570_v15  ;;  %v577_v57 = vsel %vm576_vm6, %v568_v41, %v570_v15  ;;  %v581_v58 = vsel %vm9182_vm7, %v568_v41, %v570_v15  ;;  %v585_v60 = vsel %vm584_vm8, %v568_v41, %v570_v15  ;;  %678 = vadd.xlane.f32.xlu2 %v677_v28  ;;  %v647_v41 = vld [vmem:[%s6938_s26] sm:$0x1]  ;;  %v650_v28 = vld [vmem:[%s6938_s26 + $0x8] sm:$0x1] }
 0x398   : > { %v579_v20 = vrot.slane %v577_v57, 1  ;;  %v583_v3 = vrot.slane %v581_v58, 2  ;;  %v587_v14 = vrot.slane %v585_v60, 3  ;;  %v589_v31 = vunpack.i.h.s16 %v574_v52 }
 0x399   : > { %v6235_v9 = vpack.i.b16 %v574_v52, %v574_v52  ;;  %v7556_v32 = vsel %vm571_vm4, %v7532_v5, %v7539_v44  ;;  %v938_v34 = vsel %vm576_vm6, %v7532_v5, %v7539_v44  ;;  %v941_v35 = vsel %vm9182_vm7, %v7532_v5, %v7539_v44 }
 0x39a   : > { %v591_v47 = vunpack.i.h.s16 %v579_v20  ;;  %v593_v30 = vunpack.i.h.s16 %v583_v3  ;;  %v595_v36 = vunpack.i.h.s16 %v587_v14  ;;  %v597_v15 = vpack.i.b16 %v589_v31, %v589_v31  ;;  %v662_v31 = vld [vmem:[%s6938_s26 + $0x28] sm:$0x1] }
 0x39b   : > { %v6236_v52 = vpack.i.b16 %v579_v20, %v579_v20  ;;  %v6237_v57 = vpack.i.b16 %v583_v3, %v583_v3  ;;  %v6238_v58 = vpack.i.b16 %v587_v14, %v587_v14  ;;  %v607_v60 = vperm.slane %v6235_v9, %v7536_v42 }
 0x39c   : > { %v599_v16 = vpack.i.b16 %v591_v47, %v591_v47  ;;  %v601_v61 = vpack.i.b16 %v593_v30, %v593_v30  ;;  %v603_v6 = vpack.i.b16 %v595_v36, %v595_v36  ;;  %v611_v13 = vperm.slane %v597_v15, %v7536_v42  ;;  %1389 = vadd.xlane.f32.xlu1 %v1388_v48 }
 0x39d   : > { %v615_v20 = vperm.slane %v6236_v52, %v7536_v42  ;;  %v623_v3 = vperm.slane %v6237_v57, %v7536_v42  ;;  %v631_v14 = vperm.slane %v6238_v58, %v7536_v42  ;;  %v648_v9 = vsel %vm7566_vm12, %v607_v60, %v647_v41 }
 0x39e   : > { %v619_v47 = vperm.slane %v599_v16, %v7536_v42  ;;  %v627_v30 = vperm.slane %v601_v61, %v7536_v42  ;;  %v635_v48 = vperm.slane %v603_v6, %v7536_v42  ;;  %649 = vst [vmem:[%s6938_s26] sm:$0x1] %v648_v9  ;;  %v651_v36 = vsel %vm7566_vm12, %v611_v13, %v650_v28  ;;  %v7630_v9 = vpop.f32.mrf.mxu0 }
 0x39f   : > { %652 = vst [vmem:[%s6938_s26 + $0x8] sm:$0x1] %v651_v36  ;;  %v654_v15 = vsel %vm7566_vm12, %v615_v20, %v653_v4  ;;  %v660_v52 = vsel %vm7566_vm12, %v623_v3, %v659_v24  ;;  %v666_v41 = vsel %vm7566_vm12, %v631_v14, %v665_v23  ;;  %v940_v16 = vrot.slane %v938_v34, 1  ;;  %1035 = vadd.xlane.f32.xlu2 %v1034_v18  ;;  %v7612_v34 = vpop.f32.mrf.mxu3 }
 0x3a0   : > { %655 = vst [vmem:[%s6938_s26 + $0x10] sm:$0x1] %v654_v15  ;;  %v657_v61 = vsel %vm7566_vm12, %v619_v47, %v656_v46  ;;  %v663_v6 = vsel %vm7566_vm12, %v627_v30, %v662_v31  ;;  %v669_v4 = vsel %vm7566_vm12, %v635_v48, %v668_v11  ;;  %v943_v13 = vrot.slane %v941_v35, 2  ;;  %v7632_v47 = vpop.f32.mrf.mxu1 }
 0x3a1   : > { %658 = vst [vmem:[%s6938_s26 + $0x18] sm:$0x1] %v657_v61  ;;  %v944_v23 = vsel %vm584_vm8, %v7532_v5, %v7539_v44  ;;  %v948_v24 = vunpack.i.h.s16 %v7556_v32  ;;  %v950_v18 = vunpack.i.h.s16 %v940_v16  ;;  %v6259_v46 = vpack.i.b16 %v7556_v32, %v7556_v32 }
 0x3a2   : > { %661 = vst [vmem:[%s6938_s26 + $0x20] sm:$0x1] %v660_v52  ;;  %v946_v28 = vrot.slane %v944_v23, 3  ;;  %v952_v11 = vunpack.i.h.s16 %v943_v13  ;;  %v6260_v35 = vpack.i.b16 %v940_v16, %v940_v16  ;;  %v6261_v57 = vpack.i.b16 %v943_v13, %v943_v13 }
 0x3a3   : > { %664 = vst [vmem:[%s6938_s26 + $0x28] sm:$0x1] %v663_v6  ;;  %v956_v44 = vpack.i.b16 %v948_v24, %v948_v24  ;;  %v958_v32 = vpack.i.b16 %v950_v18, %v950_v18  ;;  %v966_v58 = vperm.slane %v6259_v46, %v7536_v42  ;;  %v7626_v60 = vsel %vm571_vm4, %v7534_v43, %v7544_v29 }
 0x3a4   : > { %667 = vst [vmem:[%s6938_s26 + $0x30] sm:$0x1] %v666_v41  ;;  %v954_v31 = vunpack.i.h.s16 %v946_v28  ;;  %v960_v20 = vpack.i.b16 %v952_v11, %v952_v11  ;;  %v6262_v3 = vpack.i.b16 %v946_v28, %v946_v28  ;;  %v974_v14 = vperm.slane %v6260_v35, %v7536_v42 }
 0x3a5   : > { %670 = vst [vmem:[%s6938_s26 + $0x38] sm:$0x1] %v669_v4  ;;  %v1005_v30 = vld [vmem:[%s6938_s26] sm:$0x1]  ;;  %v970_v48 = vperm.slane %v956_v44, %v7536_v42  ;;  %v978_v36 = vperm.slane %v958_v32, %v7536_v42  ;;  %v982_v15 = vperm.slane %v6261_v57, %v7536_v42  ;;  %v1296_v52 = vsel %vm576_vm6, %v7534_v43, %v7544_v29 }
 0x3a6   : > { %v1008_v41 = vld [vmem:[%s6938_s26 + $0x8] sm:$0x1]  ;;  %v962_v16 = vpack.i.b16 %v954_v31, %v954_v31  ;;  %v986_v61 = vperm.slane %v960_v20, %v7536_v42  ;;  %v990_v6 = vperm.slane %v6262_v3, %v7536_v42  ;;  %v1006_v4 = vsel %vm7618_vm15, %v966_v58, %v1005_v30  ;;  %v7674_v3 = vld [vmem:[%s9169_s2 + $0x8] sm:$0xff] }
 0x3a7   : > { %v1011_v13 = vld [vmem:[%s6938_s26 + $0x10] sm:$0x1]  ;;  %1007 = vst [vmem:[%s6938_s26] sm:$0x1] %v1006_v4  ;;  %v1009_v23 = vsel %vm7618_vm15, %v970_v48, %v1008_v41  ;;  %v1298_v24 = vrot.slane %v1296_v52, 1  ;;  %v1299_v18 = vsel %vm9182_vm7, %v7534_v43, %v7544_v29  ;;  %v1302_v46 = vsel %vm584_vm8, %v7534_v43, %v7544_v29  ;;  %v7669_v20 = vpop.f32.mrf.mxu3  ;;  %v1364_v48 = vld [vmem:[%s6938_s26] sm:$0x2]  ;;  %1990 = vmatpush.msra.mxu1 %v7674_v3 }
 0x3a8   : > { %v1014_v28 = vld [vmem:[%s6938_s26 + $0x18] sm:$0x1]  ;;  %v994_v11 = vperm.slane %v962_v16, %v7536_v42  ;;  %1010 = vst [vmem:[%s6938_s26 + $0x8] sm:$0x1] %v1009_v23  ;;  %v1012_v35 = vsel %vm7618_vm15, %v974_v14, %v1011_v13  ;;  %v1301_v57 = vrot.slane %v1299_v18, 2  ;;  %v1304_v44 = vrot.slane %v1302_v46, 3 }
 0x3a9   : > { %v1017_v32 = vld [vmem:[%s6938_s26 + $0x20] sm:$0x1]  ;;  %1013 = vst [vmem:[%s6938_s26 + $0x10] sm:$0x1] %v1012_v35  ;;  %v1015_v58 = vsel %vm7618_vm15, %v978_v36, %v1014_v28  ;;  %v1306_v43 = vunpack.i.h.s16 %v7626_v60  ;;  %v1308_v29 = vunpack.i.h.s16 %v1298_v24  ;;  %v6287_v31 = vpack.i.b16 %v7626_v60, %v7626_v60  ;;  %v1367_v36 = vld [vmem:[%s6938_s26 + $0x8] sm:$0x2] }
 0x3aa   : > { %v1020_v14 = vld [vmem:[%s6938_s26 + $0x28] sm:$0x1]  ;;  %1016 = vst [vmem:[%s6938_s26 + $0x18] sm:$0x1] %v1015_v58  ;;  %v1018_v30 = vsel %vm7618_vm15, %v982_v15, %v1017_v32  ;;  %v1310_v52 = vunpack.i.h.s16 %v1301_v57  ;;  %v1312_v41 = vunpack.i.h.s16 %v1304_v44  ;;  %v6288_v60 = vpack.i.b16 %v1298_v24, %v1298_v24  ;;  %v1612_v16 = vpop.f32.mrf.mxu2  ;;  %v1370_v23 = vld [vmem:[%s6938_s26 + $0x10] sm:$0x2] }
 0x3ab   : > { %v1023_v4 = vld [vmem:[%s6938_s26 + $0x30] sm:$0x1]  ;;  %1019 = vst [vmem:[%s6938_s26 + $0x20] sm:$0x1] %v1018_v30  ;;  %v1021_v13 = vsel %vm7618_vm15, %v986_v61, %v1020_v14  ;;  %v1314_v18 = vpack.i.b16 %v1306_v43, %v1306_v43  ;;  %v1316_v15 = vpack.i.b16 %v1308_v29, %v1308_v29  ;;  %v6289_v46 = vpack.i.b16 %v1301_v57, %v1301_v57  ;;  %v1777_v14 = vpop.f32.mrf.mxu0  ;;  %v1795_v43 = vpop.f32.mrf.mxu1  ;;  %v7701_v57 = vld [vmem:[%s9169_s2] sm:$0xff] }
 0x3ac   : > { %v1026_v28 = vld [vmem:[%s6938_s26 + $0x38] sm:$0x1]  ;;  %1022 = vst [vmem:[%s6938_s26 + $0x28] sm:$0x1] %v1021_v13  ;;  %v1024_v24 = vsel %vm7618_vm15, %v990_v6, %v1023_v4  ;;  %v1318_v32 = vpack.i.b16 %v1310_v52, %v1310_v52  ;;  %v6290_v61 = vpack.i.b16 %v1304_v44, %v1304_v44  ;;  %v1320_v58 = vpack.i.b16 %v1312_v41, %v1312_v41  ;;  %v1373_v29 = vld [vmem:[%s6938_s26 + $0x18] sm:$0x2] }
 0x3ad   : > { %1025 = vst [vmem:[%s6938_s26 + $0x30] sm:$0x1] %v1024_v24  ;;  %v1027_v6 = vsel %vm7618_vm15, %v994_v11, %v1026_v28  ;;  %v1376_v30 = vld [vmem:[%s6938_s26 + $0x20] sm:$0x2]  ;;  %v1324_v4 = vperm.slane %v6287_v31, %v7536_v42  ;;  %v1328_v52 = vperm.slane %v1314_v18, %v7536_v42  ;;  %v1332_v44 = vperm.slane %v6288_v60, %v7536_v42  ;;  %v7718_v11 = vld [vmem:[%s9169_s2 + $0x18] sm:$0xff]  ;;  %v2173_v60 = vpop.permute.xlu1 %2172 }
 0x3ae   : > { %1028 = vst [vmem:[%s6938_s26 + $0x38] sm:$0x1] %v1027_v6  ;;  %v1336_v41 = vperm.slane %v1316_v15, %v7536_v42  ;;  %v1340_v13 = vperm.slane %v6289_v46, %v7536_v42  ;;  %v1344_v24 = vperm.slane %v1318_v32, %v7536_v42  ;;  %v6344_v31 = vld [vmem:[%s9168_s1 + $0x24] sm:$0xf]  ;;  %v1379_v18 = vld [vmem:[%s6938_s26 + $0x28] sm:$0x2]  ;;  %v1348_v15 = vperm.slane %v6290_v61, %v7536_v42 }
 0x3af   : > { %v1365_v46 = vsel %vm7694_vm0, %v1324_v4, %v1364_v48  ;;  %v1368_v28 = vsel %vm7694_vm0, %v1328_v52, %v1367_v36  ;;  %v1371_v32 = vsel %vm7694_vm0, %v1332_v44, %v1370_v23  ;;  %1991 = vmatpush.msra.mxu1 %v7701_v57  ;;  %v6343_v14 = vld [vmem:[%s9168_s1 + $0x20] sm:$0xf]  ;;  %v2178_v43 = vsel %vm320_vm1, %v2173_v60, 0  ;;  %v1382_v6 = vld [vmem:[%s6938_s26 + $0x30] sm:$0x2]  ;;  %v7744_v36 = vld [vmem:[%s9169_s2 + $0x10] sm:$0xff]  ;;  %1967 = vmatpush.msra.mxu0 %v7718_v11 }
 0x3b0   : > { %v1352_v61 = vperm.slane %v1320_v58, %v7536_v42  ;;  %1366 = vst [vmem:[%s6938_s26] sm:$0x2] %v1365_v46  ;;  %v1374_v48 = vsel %vm7694_vm0, %v1336_v41, %v1373_v29  ;;  %v1385_v23 = vld [vmem:[%s6938_s26 + $0x38] sm:$0x2]  ;;  %v1377_v4 = vsel %vm7694_vm0, %v1340_v13, %v1376_v30  ;;  %v1393_v52 = vsel %vm671_vm5, %v7547_v49, 0.0  ;;  %v1841_v58 = vpop.f32.mrf.mxu3  ;;  %6345 = vmatmul.msk.bf16.vlgmr.msra.gmra.mxu2 %vm316_vm2, %v6344_v31 }
 0x3b1   : > { %1369 = vst [vmem:[%s6938_s26 + $0x8] sm:$0x2] %v1368_v28  ;;  %v1380_v29 = vsel %vm7694_vm0, %v1344_v24, %v1379_v18  ;;  %1394 = vadd.xlane.f32.xlu2 %v1393_v52  ;;  %v1636_v44 = vadd.f32 %v7612_v34, %v1612_v16  ;;  %6346 = vmatmul.msk.bf16.vlgmr.msra.gmra.mxu3 %vm316_vm2, %v6343_v14  ;;  %v2152_v31 = vsel %vm320_vm1, %v7063_v0, 0 }
 0x3b2   : > { %1372 = vst [vmem:[%s6938_s26 + $0x10] sm:$0x2] %v1371_v32  ;;  %v1813_v41 = vpop.f32.mrf.mxu2  ;;  %v1383_v49 = vsel %vm7694_vm0, %v1348_v15, %v1382_v6  ;;  %v1794_v30 = vadd.f32 %v7632_v47, %v7630_v9  ;;  %1968 = vmatpush.msra.mxu0 %v7744_v36  ;;  %2187 = vmatpush.bf16.msrb.mxu1 %v2178_v43  ;;  %v2275_v15 = vpop.permute.xlu2 %2274 }
 0x3b3   : > { %1375 = vst [vmem:[%s6938_s26 + $0x18] sm:$0x2] %v1374_v48  ;;  %v1386_v13 = vsel %vm7694_vm0, %v1352_v61, %v1385_v23  ;;  %v1638_v34 = vadd.f32 %v1636_v44, %v7525_v53  ;;  %v1866_v16 = vpop.f32.mrf.mxu0  ;;  %v1890_v24 = vpop.f32.mrf.mxu1  ;;  %2340 = vmatpush.msra.mxu3 %v7674_v3  ;;  %2317 = vmatpush.msra.mxu2 %v7718_v11  ;;  %v2280_v46 = vsel %vm320_vm1, %v2275_v15, 0 }
 0x3b4   : > { %1378 = vst [vmem:[%s6938_s26 + $0x20] sm:$0x2] %v1377_v4  ;;  %v1817_v9 = vadd.f32 %v1813_v41, %v1794_v30  ;;  %2161 = vmatpush.bf16.msrb.mxu0 %v2152_v31  ;;  %v1891_v41 = vadd.f32 %v1890_v24, %v1866_v16 }
 0x3b5   : > { %1381 = vst [vmem:[%s6938_s26 + $0x28] sm:$0x2] %v1380_v29  ;;  %v1639_v47 = vpack.c.bf16 %v1638_v34, %v1638_v34  ;;  %v1737_v60 = vsel %vm671_vm5, %v1638_v34, 0.0  ;;  %v1741_v18 = vmul.f32 %v1638_v34, %v1638_v34  ;;  %2341 = vmatpush.msra.mxu3 %v7701_v57  ;;  %2318 = vmatpush.msra.mxu2 %v7744_v36  ;;  %v2536_v29 = vsel %vm320_vm1, %v7394_v2, 0 }
 0x3b6   : > { %1384 = vst [vmem:[%s6938_s26 + $0x30] sm:$0x2] %v1383_v49  ;;  %1738 = vadd.xlane.f32.xlu1 %v1737_v60  ;;  %v1843_v0 = vadd.f32 %v7669_v20, %v1817_v9 }
 0x3b7   : > { %1387 = vst [vmem:[%s6938_s26 + $0x38] sm:$0x2] %v1386_v13  ;;  %v1641_v28 = vrot.slane %v1639_v47, 3  ;;  %v1742_v32 = vsel %vm671_vm5, %v1741_v18, 0.0 }
 0x3b8   : > { %v7782_v14 = vpop.f32.mrf.mxu3  ;;  %6338 = vmatmul.msk.f32.vlgmr.msra.gmra.mxu1 %vm9183_vm3, %v1843_v0 }
 0x3b9   : > { %v1644_v43 = vsel %vm571_vm4, %v1639_v47, %v1641_v28  ;;  %v1646_v6 = vsel %vm576_vm6, %v1639_v47, %v1641_v28  ;;  %v1649_v61 = vsel %vm9182_vm7, %v1639_v47, %v1641_v28  ;;  %v1652_v48 = vsel %vm584_vm8, %v1639_v47, %v1641_v28  ;;  %1743 = vadd.xlane.f32.xlu2 %v1742_v32  ;;  %v1713_v28 = vld [vmem:[%s6938_s26] sm:$0x2]  ;;  %v6349_v32 = vld [vmem:[%s9168_s1 + $0x2c] sm:$0xf] }
 0x3ba   : > { %v1815_v20 = vpop.f32.mrf.mxu2  ;;  %v1648_v23 = vrot.slane %v1646_v6, 1  ;;  %v1651_v4 = vrot.slane %v1649_v61, 2  ;;  %v1654_v52 = vrot.slane %v1652_v48, 3  ;;  %v1656_v58 = vunpack.i.h.s16 %v1644_v43  ;;  %2289 = vmatpush.bf16.msra.mxu1 %v2280_v46 }
 0x3bb   : > { %v6311_v44 = vpack.i.b16 %v1644_v43, %v1644_v43  ;;  %v1868_v49 = vpop.f32.mrf.mxu0  ;;  %v1892_v30 = vpop.f32.mrf.mxu1  ;;  %v1716_v20 = vld [vmem:[%s6938_s26 + $0x8] sm:$0x2] }
 0x3bc   : > { %v1658_v13 = vunpack.i.h.s16 %v1648_v23  ;;  %v1660_v34 = vunpack.i.h.s16 %v1651_v4  ;;  %v1662_v31 = vunpack.i.h.s16 %v1654_v52  ;;  %v1664_v9 = vpack.i.b16 %v1656_v58, %v1656_v58  ;;  %v1719_v30 = vld [vmem:[%s6938_s26 + $0x10] sm:$0x2] }
 0x3bd   : > { %v6312_v60 = vpack.i.b16 %v1648_v23, %v1648_v23  ;;  %v6313_v18 = vpack.i.b16 %v1651_v4, %v1651_v4  ;;  %v6314_v15 = vpack.i.b16 %v1654_v52, %v1654_v52  ;;  %v1674_v2 = vperm.slane %v6311_v44, %v7536_v42  ;;  %v6352_v23 = vld [vmem:[%s9168_s1 + $0x34] sm:$0xf]  ;;  %v6351_v4 = vld [vmem:[%s9168_s1 + $0x30] sm:$0xf] }
 0x3be   : > { %v1666_v16 = vpack.i.b16 %v1658_v13, %v1658_v13  ;;  %v1668_v24 = vpack.i.b16 %v1660_v34, %v1660_v34  ;;  %v1670_v0 = vpack.i.b16 %v1662_v31, %v1662_v31  ;;  %v1678_v46 = vperm.slane %v1664_v9, %v7536_v42  ;;  %v1725_v13 = vld [vmem:[%s6938_s26 + $0x20] sm:$0x2]  ;;  %v2249_v31 = vpop.permute.xlu1 %2248 }
 0x3bf   : > { %v1682_v43 = vperm.slane %v6312_v60, %v7536_v42  ;;  %v1690_v6 = vperm.slane %v6313_v18, %v7536_v42  ;;  %v1698_v61 = vperm.slane %v6314_v15, %v7536_v42  ;;  %v1714_v48 = vsel %vm7793_vm10, %v1674_v2, %v1713_v28  ;;  %v1722_v60 = vld [vmem:[%s6938_s26 + $0x18] sm:$0x2]  ;;  %v1728_v15 = vld [vmem:[%s6938_s26 + $0x28] sm:$0x2] }
 0x3c0   : > { %v1686_v52 = vperm.slane %v1666_v16, %v7536_v42  ;;  %v1694_v58 = vperm.slane %v1668_v24, %v7536_v42  ;;  %v1702_v44 = vperm.slane %v1670_v0, %v7536_v42  ;;  %1715 = vst [vmem:[%s6938_s26] sm:$0x2] %v1714_v48  ;;  %v1717_v49 = vsel %vm7793_vm10, %v1678_v46, %v1716_v20  ;;  %v1943_v34 = vpop.f32.mrf.mxu3  ;;  %v1731_v0 = vld [vmem:[%s6938_s26 + $0x30] sm:$0x2]  ;;  %v6347_v20 = vld [vmem:[%s9168_s1 + $0x28] sm:$0xf] }
 0x3c1   : > { %1718 = vst [vmem:[%s6938_s26 + $0x8] sm:$0x2] %v1717_v49  ;;  %v1720_v9 = vsel %vm7793_vm10, %v1682_v43, %v1719_v30  ;;  %v1726_v18 = vsel %vm7793_vm10, %v1690_v6, %v1725_v13  ;;  %6350 = vmatmul.msk.bf16.vlgmr.msrb.gmra.mxu1 %vm316_vm2, %v6349_v32  ;;  %v1732_v28 = vsel %vm7793_vm10, %v1698_v61, %v1731_v0  ;;  %v1734_v43 = vld [vmem:[%s6938_s26 + $0x38] sm:$0x2]  ;;  %v2254_v32 = vsel %vm320_vm1, %v2249_v31, 0  ;;  %v7866_v30 = vpop.permute.xlu2 %2606 }
 0x3c2   : > { %v1915_v2 = vpop.f32.mrf.mxu2  ;;  %1721 = vst [vmem:[%s6938_s26 + $0x10] sm:$0x2] %v1720_v9  ;;  %v1723_v16 = vsel %vm7793_vm10, %v1686_v52, %v1722_v60  ;;  %v1729_v24 = vsel %vm7793_vm10, %v1694_v58, %v1728_v15  ;;  %6353 = vmatmul.msk.bf16.vlgmr.msrb.gmra.mxu2 %vm316_vm2, %v6352_v23  ;;  %6354 = vmatmul.msk.bf16.vlgmr.msrb.gmra.mxu3 %vm316_vm2, %v6351_v4  ;;  %v6355_v4 = vld [vmem:[%s9168_s1 + $0x38] sm:$0xf]  ;;  %v7872_v34 = vsel %vm320_vm1, %v7140_v45, 0  ;;  %v2490_v45 = vsel %vm320_vm1, %v7134_v40, 0 }
 0x3c3   : > { %v1919_v46 = vadd.f32 %v1915_v2, %v1891_v41  ;;  %1724 = vst [vmem:[%s6938_s26 + $0x18] sm:$0x2] %v1723_v16  ;;  %v1735_v6 = vsel %vm7793_vm10, %v1702_v44, %v1734_v43  ;;  %2545 = vmatpush.bf16.msrb.mxu3 %v2536_v29  ;;  %2519 = vmatpush.bf16.msrb.mxu2 %v7872_v34  ;;  %v6372_v43 = vld [vmem:[%s9168_s1 + $0x4] sm:$0xf] }
 0x3c4   : > { %1727 = vst [vmem:[%s6938_s26 + $0x20] sm:$0x2] %v1726_v18  ;;  %2499 = vmatpush.bf16.msrb.mxu1 %v2490_v45 }
 0x3c5   : > { %v1945_v48 = vadd.f32 %v7782_v14, %v1919_v46  ;;  %1730 = vst [vmem:[%s6938_s26 + $0x28] sm:$0x2] %v1729_v24  ;;  %v6357_v14 = vld [vmem:[%s9168_s1 + $0x3c] sm:$0xf] }
 0x3c6   : > { %1733 = vst [vmem:[%s6938_s26 + $0x30] sm:$0x2] %v1732_v28  ;;  %v2467_v61 = vpop.permute.xlu1 %2466 }
 0x3c7   : > { %6337 = vmatmul.msk.f32.vlgmr.msra.gmra.mxu0 %vm9183_vm3, %v1945_v48  ;;  %1736 = vst [vmem:[%s6938_s26 + $0x38] sm:$0x2] %v1735_v6  ;;  %v2472_v23 = vsel %vm320_vm1, %v2467_v61, 0 }
 0x3c8   : > { %2263 = vmatpush.bf16.msra.mxu0 %v2254_v32  ;;  %v2460_v32 = vld [vmem:[%s9168_s1] sm:$0xf] }
 0x3c9   : > { %v2582_v15 = vpop.permute.xlu2 %2581 }
 0x3ca   : > { %v1917_v41 = vpop.f32.mrf.mxu2  ;;  %v2587_v24 = vsel %vm320_vm1, %v2582_v15, 0 }
 0x3ce   : > { %v2558_v29 = vpop.permute.xlu1 %2557 }
 0x3cf   : > { %6348 = vmatmul.msk.bf16.vlgmr.msrb.gmra.mxu0 %vm316_vm2, %v6347_v20  ;;  %v2563_v52 = vsel %vm320_vm1, %v2558_v29, 0 }
 0x3d0   : > { %2481 = vmatpush.bf16.msrb.mxu0 %v2472_v23 }
 0x3d1   : > { %6358 = vmatmul.msk.bf16.vlgmr.msra.gmra.mxu1 %vm316_vm2, %v6357_v14 }
 0x3d2   : > { %2596 = vmatpush.bf16.msra.mxu1 %v2587_v24 }
 0x3df   : > { %6356 = vmatmul.msk.bf16.vlgmr.msra.gmra.mxu0 %vm316_vm2, %v6355_v4 }
 0x3e0   : > { %2572 = vmatpush.bf16.msra.mxu0 %v2563_v52 }
 0x3e1   : > { %6374 = vmatmul.msk.bf16.vlgmr.msrb.gmra.mxu1 %vm316_vm2, %v2460_v32  ;;  %v2075_v32 = vld [vmem:[%s6938_s26 + $0x8] sm:$0x4] }
 0x3e2   : > { %2698 = vmatpush.msrb.mxu1 %v7674_v3 }
 0x3e4   : > { %2699 = vmatpush.msrb.mxu1 %v7701_v57 }
 0x3ef   : > { %6373 = vmatmul.msk.bf16.vlgmr.msrb.gmra.mxu0 %vm316_vm2, %v6372_v43 }
 0x3f0   : > { %2675 = vmatpush.msrb.mxu0 %v7718_v11 }
 0x3f2   : > { %2676 = vmatpush.msrb.mxu0 %v7744_v36 }
 0x433   : > { %v2127_v44 = vpop.f32.mrf.mxu2 }
 0x434   : > { %v2143_v49 = vpop.f32.mrf.mxu3 }
 0x435   : > { %v1993_v58 = vpop.f32.mrf.mxu1  ;;  %v2144_v48 = vadd.f32 %v2143_v49, %v2127_v44 }
 0x43b   : > { %v2129_v31 = vpop.f32.mrf.mxu2 }
 0x43c   : > { %v2145_v9 = vpop.f32.mrf.mxu3 }
 0x43e   : > { %v7868_v13 = vpop.f32.mrf.mxu1 }
 0x444   : > { %v1970_v60 = vpop.f32.mrf.mxu0 }
 0x445   : > { %v1994_v18 = vadd.f32 %v1993_v58, %v1970_v60  ;;  %v7887_v61 = vpop.f32.mrf.mxu2  ;;  %v7889_v20 = vpop.f32.mrf.mxu3 }
 0x446   : > { %v2191_v16 = vpop.f32.mrf.mxu1 }
 0x447   : > { %v1996_v2 = vadd.f32 %v1994_v18, %v7525_v53 }
 0x449   : > { %v1997_v0 = vpack.c.bf16 %v1996_v2, %v1996_v2  ;;  %v2096_v46 = vsel %vm671_vm5, %v1996_v2, 0.0  ;;  %v2100_v28 = vmul.f32 %v1996_v2, %v1996_v2 }
 0x44a   : > { %2097 = vadd.xlane.f32.xlu0 %v2096_v46 }
 0x44b   : > { %v1999_v6 = vrot.slane %v1997_v0, 3  ;;  %v2101_v41 = vsel %vm671_vm5, %v2100_v28, 0.0 }
 0x44c   : > { %v2163_v40 = vpop.f32.mrf.mxu0  ;;  %2102 = vadd.xlane.f32.xlu1 %v2101_v41 }
 0x44d   : > { %v2002_v23 = vsel %vm571_vm4, %v1997_v0, %v1999_v6  ;;  %v2004_v14 = vsel %vm576_vm6, %v1997_v0, %v1999_v6  ;;  %v2007_v29 = vsel %vm9182_vm7, %v1997_v0, %v1999_v6  ;;  %v2010_v4 = vsel %vm584_vm8, %v1997_v0, %v1999_v6  ;;  %v2072_v0 = vld [vmem:[%s6938_s26] sm:$0x4] }
 0x44e   : > { %v2006_v52 = vrot.slane %v2004_v14, 1  ;;  %v2009_v58 = vrot.slane %v2007_v29, 2  ;;  %v2012_v44 = vrot.slane %v2010_v4, 3  ;;  %v2014_v49 = vunpack.i.h.s16 %v2002_v23  ;;  %v7900_v60 = vpop.f32.mrf.mxu1  ;;  %v2084_v14 = vld [vmem:[%s6938_s26 + $0x20] sm:$0x4] }
 0x44f   : > { %v6339_v31 = vpack.i.b16 %v2002_v23, %v2002_v23  ;;  %v2167_v9 = vadd.f32 %v2163_v40, %v2144_v48  ;;  %v2078_v23 = vld [vmem:[%s6938_s26 + $0x10] sm:$0x4] }
 0x450   : > { %v2016_v18 = vunpack.i.h.s16 %v2006_v52  ;;  %v2018_v15 = vunpack.i.h.s16 %v2009_v58  ;;  %v2020_v2 = vunpack.i.h.s16 %v2012_v44  ;;  %v2022_v16 = vpack.i.b16 %v2014_v49, %v2014_v49  ;;  %v2087_v49 = vld [vmem:[%s6938_s26 + $0x28] sm:$0x4] }
 0x451   : > { %v6340_v46 = vpack.i.b16 %v2006_v52, %v2006_v52  ;;  %v6341_v28 = vpack.i.b16 %v2009_v58, %v2009_v58  ;;  %v6342_v45 = vpack.i.b16 %v2012_v44, %v2012_v44  ;;  %v2032_v43 = vperm.slane %v6339_v31, %v7536_v42  ;;  %v2081_v44 = vld [vmem:[%s6938_s26 + $0x18] sm:$0x4]  ;;  %v2218_v31 = vpop.f32.mrf.mxu2 }
 0x452   : > { %v2024_v6 = vpack.i.b16 %v2016_v18, %v2016_v18  ;;  %v2026_v48 = vpack.i.b16 %v2018_v15, %v2018_v15  ;;  %v2028_v41 = vpack.i.b16 %v2020_v2, %v2020_v2  ;;  %v2036_v40 = vperm.slane %v2022_v16, %v7536_v42  ;;  %v2242_v18 = vpop.f32.mrf.mxu3 }
 0x453   : > { %v2040_v29 = vperm.slane %v6340_v46, %v7536_v42  ;;  %v2048_v4 = vperm.slane %v6341_v28, %v7536_v42  ;;  %v2056_v52 = vperm.slane %v6342_v45, %v7536_v42  ;;  %v2073_v58 = vsel %vm7904_vm14, %v2032_v43, %v2072_v0  ;;  %v2090_v28 = vld [vmem:[%s6938_s26 + $0x30] sm:$0x4]  ;;  %v6375_v18 = vld [vmem:[%s9168_s1 + $0x8] sm:$0xf] }
 0x454   : > { %v2044_v15 = vperm.slane %v2024_v6, %v7536_v42  ;;  %v2052_v2 = vperm.slane %v2026_v48, %v7536_v42  ;;  %v2060_v16 = vperm.slane %v2028_v41, %v7536_v42  ;;  %2074 = vst [vmem:[%s6938_s26] sm:$0x4] %v2073_v58  ;;  %v2076_v46 = vsel %vm7904_vm14, %v2036_v40, %v2075_v32  ;;  %v2165_v0 = vpop.f32.mrf.mxu0  ;;  %v2093_v48 = vld [vmem:[%s6938_s26 + $0x38] sm:$0x4] }
 0x455   : > { %v2638_v45 = vsel %vm320_vm1, %v7401_v8, 0  ;;  %2077 = vst [vmem:[%s6938_s26 + $0x8] sm:$0x4] %v2076_v46  ;;  %v2079_v43 = vsel %vm7904_vm14, %v2040_v29, %v2078_v23  ;;  %v2085_v6 = vsel %vm7904_vm14, %v2048_v4, %v2084_v14  ;;  %v2193_v41 = vadd.f32 %v7868_v13, %v2167_v9  ;;  %v6380_v9 = vld [vmem:[%s9168_s1 + $0x14] sm:$0xf]  ;;  %v2881_v29 = vpop.permute.xlu1 %2880 }
 0x456   : > { %2080 = vst [vmem:[%s6938_s26 + $0x10] sm:$0x4] %v2079_v43  ;;  %v2082_v32 = vsel %vm7904_vm14, %v2044_v15, %v2081_v44  ;;  %v2088_v8 = vsel %vm7904_vm14, %v2052_v2, %v2087_v49  ;;  %v2091_v40 = vsel %vm7904_vm14, %v2056_v52, %v2090_v28  ;;  %v2293_v23 = vpop.f32.mrf.mxu1  ;;  %v2094_v14 = vsel %vm7904_vm14, %v2060_v16, %v2093_v48  ;;  %v6379_v4 = vld [vmem:[%s9168_s1 + $0x10] sm:$0xf]  ;;  %v6383_v2 = vld [vmem:[%s9168_s1 + $0x18] sm:$0xf] }
 0x457   : > { %2083 = vst [vmem:[%s6938_s26 + $0x18] sm:$0x4] %v2082_v32  ;;  %6362 = vmatmul.msk.f32.vlgmr.msra.gmra.mxu3 %vm9183_vm3, %v2193_v41  ;;  %v2241_v13 = vadd.f32 %v7889_v20, %v7887_v61  ;;  %v2886_v52 = vsel %vm320_vm1, %v2881_v29, 0  ;;  %6381 = vmatmul.msk.bf16.vlgmr.msra.gmra.mxu0 %vm316_vm2, %v6380_v9  ;;  %v6377_v61 = vld [vmem:[%s9168_s1 + $0xc] sm:$0xf]  ;;  %v2612_v44 = vsel %vm320_vm1, %v7866_v30, 0 }
 0x458   : > { %2086 = vst [vmem:[%s6938_s26 + $0x20] sm:$0x4] %v2085_v6  ;;  %2647 = vmatpush.bf16.msra.mxu3 %v2638_v45  ;;  %6382 = vmatmul.msk.bf16.vlgmr.msra.gmra.mxu1 %vm316_vm2, %v6379_v4  ;;  %v2824_v15 = vsel %vm320_vm1, %v7405_v39, 0  ;;  %v6385_v30 = vld [vmem:[%s9168_s1 + $0x1c] sm:$0xf]  ;;  %v2860_v45 = vsel %vm320_vm1, %v7169_v1, 0 }
 0x459   : > { %2089 = vst [vmem:[%s6938_s26 + $0x28] sm:$0x4] %v2088_v8  ;;  %2895 = vmatpush.bf16.msra.mxu1 %v2886_v52  ;;  %v6395_v0 = vld [vmem:[%s9168_s1 + $0x20] sm:$0xf]  ;;  %2869 = vmatpush.bf16.msra.mxu0 %v2860_v45 }
 0x45a   : > { %2092 = vst [vmem:[%s6938_s26 + $0x30] sm:$0x4] %v2091_v40 }
 0x45b   : > { %2095 = vst [vmem:[%s6938_s26 + $0x38] sm:$0x4] %v2094_v14 }
 0x45c   : > { %v2265_v58 = vpop.f32.mrf.mxu0 }
 0x45d   : > { %v2269_v20 = vadd.f32 %v2265_v58, %v2241_v13 }
 0x45e   : > { %v2501_v28 = vpop.f32.mrf.mxu1 }
 0x45f   : > { %v2295_v49 = vadd.f32 %v7900_v60, %v2269_v20  ;;  %6378 = vmatmul.msk.bf16.vlgmr.msrb.gmra.mxu3 %vm316_vm2, %v6377_v61  ;;  %v2908_v60 = vpop.permute.xlu2 %2907 }
 0x460   : > { %2849 = vmatpush.bf16.msrb.mxu3 %v7872_v34  ;;  %v2937_v34 = vsel %vm320_vm1, %v7410_v17, 0  ;;  %v2913_v39 = vsel %vm320_vm1, %v2908_v60, 0  ;;  %v6396_v17 = vld [vmem:[%s9168_s1 + $0x24] sm:$0xf]  ;;  %v6404_v60 = vld [vmem:[%s9168_s1 + $0x34] sm:$0xf] }
 0x461   : > { %6361 = vmatmul.msk.f32.vlgmr.msra.gmra.mxu2 %vm9183_vm3, %v2295_v49 }
 0x462   : > { %2621 = vmatpush.bf16.msra.mxu2 %v2612_v44 }
 0x464   : > { %v2267_v31 = vpop.f32.mrf.mxu0 }
 0x466   : > { %v2503_v48 = vpop.f32.mrf.mxu1 }
 0x467   : > { %v2983_v61 = vpop.permute.xlu2 %2982 }
 0x469   : > { %6376 = vmatmul.msk.bf16.vlgmr.msrb.gmra.mxu2 %vm316_vm2, %v6375_v18  ;;  %v3244_v18 = vsel %vm320_vm1, %v7414_v26, 0  ;;  %v6403_v26 = vld [vmem:[%s9168_s1 + $0x30] sm:$0xf] }
 0x46a   : > { %2833 = vmatpush.bf16.msrb.mxu2 %v2824_v15  ;;  %v2988_v15 = vsel %vm320_vm1, %v2983_v61, 0 }
 0x46c   : > { %v2483_v46 = vpop.f32.mrf.mxu0 }
 0x46d   : > { %v2502_v9 = vadd.f32 %v2501_v28, %v2483_v46 }
 0x46f   : > { %6386 = vmatmul.msk.bf16.vlgmr.msra.gmra.mxu3 %vm316_vm2, %v6385_v30 }
 0x470   : > { %2946 = vmatpush.bf16.msra.mxu3 %v2937_v34 }
 0x474   : > { %v2485_v6 = vpop.f32.mrf.mxu0 }
 0x479   : > { %6384 = vmatmul.msk.bf16.vlgmr.msra.gmra.mxu2 %vm316_vm2, %v6383_v2 }
 0x47a   : > { %2922 = vmatpush.bf16.msra.mxu2 %v2913_v39 }
 0x47f   : > { %6398 = vmatmul.msk.bf16.vlgmr.msrb.gmra.mxu3 %vm316_vm2, %v6395_v0 }
 0x480   : > { %3048 = vmatpush.msrb.mxu3 %v7674_v3 }
 0x482   : > { %3049 = vmatpush.msrb.mxu3 %v7701_v57 }
 0x489   : > { %6397 = vmatmul.msk.bf16.vlgmr.msrb.gmra.mxu2 %vm316_vm2, %v6396_v17 }
 0x48a   : > { %3025 = vmatpush.msrb.mxu2 %v7718_v11 }
 0x48c   : > { %3026 = vmatpush.msrb.mxu2 %v7744_v36 }
 0x48f   : > { %6406 = vmatmul.msk.bf16.vlgmr.msra.gmra.mxu3 %vm316_vm2, %v6403_v26  ;;  %v2439_v26 = vld [vmem:[%s6938_s26 + $0x30] sm:$0x4] }
 0x490   : > { %3253 = vmatpush.bf16.msra.mxu3 %v3244_v18  ;;  %v2957_v18 = vpop.permute.xlu1 %2956 }
 0x499   : > { %6405 = vmatmul.msk.bf16.vlgmr.msra.gmra.mxu2 %vm316_vm2, %v6404_v60 }
 0x4d4   : > { %v8009_v29 = vpop.f32.mrf.mxu0 }
 0x4d5   : > { %v8011_v11 = vpop.f32.mrf.mxu1 }
 0x4da   : > { %v2343_v16 = vpop.f32.mrf.mxu3 }
 0x4e2   : > { %v7998_v43 = vpop.f32.mrf.mxu3 }
 0x4e4   : > { %v2320_v41 = vpop.f32.mrf.mxu2 }
 0x4e5   : > { %v2344_v32 = vadd.f32 %v2343_v16, %v2320_v41 }
 0x4e7   : > { %v2346_v1 = vadd.f32 %v2344_v32, %v7525_v53 }
 0x4e9   : > { %v2347_v8 = vpack.c.bf16 %v2346_v1, %v2346_v1  ;;  %v2445_v40 = vsel %vm671_vm5, %v2346_v1, 0.0  ;;  %v2449_v23 = vmul.f32 %v2346_v1, %v2346_v1 }
 0x4ea   : > { %2446 = vadd.xlane.f32.xlu2 %v2445_v40  ;;  %v2549_v14 = vpop.f32.mrf.mxu3 }
 0x4eb   : > { %v2349_v13 = vrot.slane %v2347_v8, 3  ;;  %v2450_v3 = vsel %vm671_vm5, %v2449_v23, 0.0 }
 0x4ec   : > { %v2521_v57 = vpop.f32.mrf.mxu2  ;;  %2451 = vadd.xlane.f32.xlu0 %v2450_v3  ;;  %v2424_v3 = vld [vmem:[%s6938_s26 + $0x8] sm:$0x4] }
 0x4ed   : > { %v2352_v36 = vsel %vm571_vm4, %v2347_v8, %v2349_v13  ;;  %v2354_v4 = vsel %vm576_vm6, %v2347_v8, %v2349_v13  ;;  %v2357_v52 = vsel %vm9182_vm7, %v2347_v8, %v2349_v13  ;;  %v2360_v58 = vsel %vm584_vm8, %v2347_v8, %v2349_v13  ;;  %v2421_v8 = vld [vmem:[%s6938_s26] sm:$0x4] }
 0x4ee   : > { %v2356_v20 = vrot.slane %v2354_v4, 1  ;;  %v2359_v44 = vrot.slane %v2357_v52, 2  ;;  %v2362_v49 = vrot.slane %v2360_v58, 3  ;;  %v2364_v31 = vunpack.i.h.s16 %v2352_v36 }
 0x4ef   : > { %v6363_v30 = vpack.i.b16 %v2352_v36, %v2352_v36  ;;  %v2525_v34 = vadd.f32 %v2521_v57, %v2502_v9  ;;  %v2576_v57 = vpop.f32.mrf.mxu0  ;;  %v2600_v36 = vpop.f32.mrf.mxu1 }
 0x4f0   : > { %v2366_v2 = vunpack.i.h.s16 %v2356_v20  ;;  %v2368_v39 = vunpack.i.h.s16 %v2359_v44  ;;  %v2370_v16 = vunpack.i.h.s16 %v2362_v49  ;;  %v2372_v46 = vpack.i.b16 %v2364_v31, %v2364_v31  ;;  %v8098_v36 = vpop.permute.xlu2 %3314 }
 0x4f1   : > { %v6364_v17 = vpack.i.b16 %v2356_v20, %v2356_v20  ;;  %v6365_v0 = vpack.i.b16 %v2359_v44, %v2359_v44  ;;  %v6366_v45 = vpack.i.b16 %v2362_v49, %v2362_v49  ;;  %v2382_v6 = vperm.slane %v6363_v30, %v7536_v42  ;;  %v2427_v20 = vld [vmem:[%s6938_s26 + $0x10] sm:$0x4]  ;;  %v2433_v44 = vld [vmem:[%s6938_s26 + $0x20] sm:$0x4]  ;;  %v2430_v30 = vld [vmem:[%s6938_s26 + $0x18] sm:$0x4] }
 0x4f2   : > { %v2374_v48 = vpack.i.b16 %v2366_v2, %v2366_v2  ;;  %v2376_v41 = vpack.i.b16 %v2368_v39, %v2368_v39  ;;  %v2378_v32 = vpack.i.b16 %v2370_v16, %v2370_v16  ;;  %v2386_v1 = vperm.slane %v2372_v46, %v7536_v42  ;;  %v2649_v40 = vpop.f32.mrf.mxu3  ;;  %v2436_v2 = vld [vmem:[%s6938_s26 + $0x28] sm:$0x4] }
 0x4f3   : > { %v2390_v23 = vperm.slane %v6364_v17, %v7536_v42  ;;  %v2398_v14 = vperm.slane %v6365_v0, %v7536_v42  ;;  %v2406_v13 = vperm.slane %v6366_v45, %v7536_v42  ;;  %v2422_v9 = vsel %vm8025_vm13, %v2382_v6, %v2421_v8  ;;  %v2442_v0 = vld [vmem:[%s6938_s26 + $0x38] sm:$0x4] }
 0x4f4   : > { %v2394_v4 = vperm.slane %v2374_v48, %v7536_v42  ;;  %v2402_v52 = vperm.slane %v2376_v41, %v7536_v42  ;;  %v2410_v58 = vperm.slane %v2378_v32, %v7536_v42  ;;  %2423 = vst [vmem:[%s6938_s26] sm:$0x4] %v2422_v9  ;;  %v2425_v61 = vsel %vm8025_vm13, %v2386_v1, %v2424_v3  ;;  %v2523_v49 = vpop.f32.mrf.mxu2  ;;  %v6401_v48 = vld [vmem:[%s9168_s1 + $0x2c] sm:$0xf] }
 0x4f5   : > { %2426 = vst [vmem:[%s6938_s26 + $0x8] sm:$0x4] %v2425_v61  ;;  %v2428_v31 = vsel %vm8025_vm13, %v2390_v23, %v2427_v20  ;;  %v2434_v60 = vsel %vm8025_vm13, %v2398_v14, %v2433_v44  ;;  %v2551_v39 = vadd.f32 %v7998_v43, %v2525_v34  ;;  %v2440_v17 = vsel %vm8025_vm13, %v2406_v13, %v2439_v26  ;;  %v6407_v14 = vld [vmem:[%s9168_s1 + $0x38] sm:$0xf]  ;;  %v3168_v26 = vld [vmem:[%s9168_s1] sm:$0xf] }
 0x4f6   : > { %2429 = vst [vmem:[%s6938_s26 + $0x10] sm:$0x4] %v2428_v31  ;;  %v2431_v16 = vsel %vm8025_vm13, %v2394_v4, %v2430_v30  ;;  %v2437_v46 = vsel %vm8025_vm13, %v2402_v52, %v2436_v2  ;;  %v2443_v43 = vsel %vm8025_vm13, %v2410_v58, %v2442_v0  ;;  %v2599_v34 = vadd.f32 %v8011_v11, %v8009_v29  ;;  %v3175_v29 = vpop.permute.xlu1 %3174  ;;  %v6399_v11 = vld [vmem:[%s9168_s1 + $0x28] sm:$0xf] }
 0x4f7   : > { %2432 = vst [vmem:[%s6938_s26 + $0x18] sm:$0x4] %v2431_v16  ;;  %6390 = vmatmul.msk.f32.vlgmr.msrb.gmra.mxu1 %vm9183_vm3, %v2551_v39  ;;  %v2962_v32 = vsel %vm320_vm1, %v2957_v18, 0  ;;  %v3180_v8 = vsel %vm320_vm1, %v3175_v29, 0  ;;  %v8102_v4 = vsel %vm320_vm1, %v7187_v12, 0  ;;  %v3198_v12 = vsel %vm320_vm1, %v7182_v10, 0 }
 0x4f8   : > { %2435 = vst [vmem:[%s6938_s26 + $0x20] sm:$0x4] %v2434_v60  ;;  %2997 = vmatpush.bf16.msrb.mxu1 %v2988_v15  ;;  %3227 = vmatpush.bf16.msra.mxu2 %v8102_v4  ;;  %v3290_v49 = vpop.permute.xlu2 %3289  ;;  %v6424_v16 = vld [vmem:[%s9168_s1 + $0x4] sm:$0xf] }
 0x4f9   : > { %2438 = vst [vmem:[%s6938_s26 + $0x28] sm:$0x4] %v2437_v46  ;;  %v3295_v30 = vsel %vm320_vm1, %v3290_v49, 0 }
 0x4fa   : > { %2441 = vst [vmem:[%s6938_s26 + $0x30] sm:$0x4] %v2440_v17  ;;  %v2651_v45 = vpop.f32.mrf.mxu3 }
 0x4fb   : > { %2444 = vst [vmem:[%s6938_s26 + $0x38] sm:$0x4] %v2443_v43 }
 0x4fc   : > { %v2623_v6 = vpop.f32.mrf.mxu2 }
 0x4fd   : > { %v2627_v41 = vadd.f32 %v2623_v6, %v2599_v34 }
 0x4fe   : > { %v3266_v23 = vpop.permute.xlu1 %3265 }
 0x4ff   : > { %v2653_v1 = vadd.f32 %v2649_v40, %v2627_v41  ;;  %6402 = vmatmul.msk.bf16.vlgmr.msra.gmra.mxu1 %vm316_vm2, %v6401_v48  ;;  %v6409_v40 = vld [vmem:[%s9168_s1 + $0x3c] sm:$0xf]  ;;  %v3271_v13 = vsel %vm320_vm1, %v3266_v23, 0 }
 0x500   : > { %3207 = vmatpush.bf16.msra.mxu1 %v3198_v12 }
 0x501   : > { %6389 = vmatmul.msk.f32.vlgmr.msrb.gmra.mxu0 %vm9183_vm3, %v2653_v1 }
 0x502   : > { %2971 = vmatpush.bf16.msrb.mxu0 %v2962_v32  ;;  %v2851_v57 = vpop.f32.mrf.mxu3 }
 0x504   : > { %v2625_v15 = vpop.f32.mrf.mxu2 }
 0x509   : > { %6400 = vmatmul.msk.bf16.vlgmr.msra.gmra.mxu0 %vm316_vm2, %v6399_v11 }
 0x50a   : > { %3189 = vmatpush.bf16.msra.mxu0 %v3180_v8  ;;  %v2853_v61 = vpop.f32.mrf.mxu3 }
 0x50c   : > { %v2835_v3 = vpop.f32.mrf.mxu2 }
 0x50d   : > { %v2852_v0 = vadd.f32 %v2851_v57, %v2835_v3  ;;  %v2780_v3 = vld [vmem:[%s6938_s26] sm:$0x8] }
 0x50f   : > { %6410 = vmatmul.msk.bf16.vlgmr.msrb.gmra.mxu1 %vm316_vm2, %v6409_v40 }
 0x510   : > { %3304 = vmatpush.bf16.msrb.mxu1 %v3295_v30 }
 0x512   : > { %v8121_v45 = vpop.f32.mrf.mxu3 }
 0x514   : > { %v2837_v58 = vpop.f32.mrf.mxu2 }
 0x519   : > { %6408 = vmatmul.msk.bf16.vlgmr.msrb.gmra.mxu0 %vm316_vm2, %v6407_v14 }
 0x51a   : > { %3280 = vmatpush.bf16.msrb.mxu0 %v3271_v13 }
 0x51c   : > { %v8119_v34 = vpop.f32.mrf.mxu2 }
 0x51f   : > { %6426 = vmatmul.msk.bf16.vlgmr.msra.gmra.mxu1 %vm316_vm2, %v3168_v26 }
 0x529   : > { %6425 = vmatmul.msk.bf16.vlgmr.msra.gmra.mxu0 %vm316_vm2, %v6424_v16 }
 0x574   : > { %v2701_v9 = vpop.f32.mrf.mxu1 }
 0x57c   : > { %v8104_v52 = vpop.f32.mrf.mxu1 }
 0x57e   : > { %v2678_v20 = vpop.f32.mrf.mxu0 }
 0x57f   : > { %v2702_v44 = vadd.f32 %v2701_v9, %v2678_v20 }
 0x581   : > { %v2704_v31 = vadd.f32 %v2702_v44, %v7525_v53  ;;  %v2783_v44 = vld [vmem:[%s6938_s26 + $0x8] sm:$0x8] }
 0x583   : > { %v2705_v60 = vpack.c.bf16 %v2704_v31, %v2704_v31  ;;  %v2804_v2 = vsel %vm671_vm5, %v2704_v31, 0.0  ;;  %v2808_v39 = vmul.f32 %v2704_v31, %v2704_v31 }
 0x584   : > { %2805 = vadd.xlane.f32.xlu1 %v2804_v2  ;;  %v2899_v46 = vpop.f32.mrf.mxu1  ;;  %v2786_v2 = vld [vmem:[%s6938_s26 + $0x10] sm:$0x8] }
 0x585   : > { %v2707_v17 = vrot.slane %v2705_v60, 3  ;;  %v2809_v43 = vsel %vm671_vm5, %v2808_v39, 0.0  ;;  %v2792_v39 = vld [vmem:[%s6938_s26 + $0x20] sm:$0x8] }
 0x586   : > { %v2871_v10 = vpop.f32.mrf.mxu0  ;;  %2810 = vadd.xlane.f32.xlu2 %v2809_v43  ;;  %v2795_v43 = vld [vmem:[%s6938_s26 + $0x28] sm:$0x8] }
 0x587   : > { %v2710_v18 = vsel %vm571_vm4, %v2705_v60, %v2707_v17  ;;  %v2712_v6 = vsel %vm576_vm6, %v2705_v60, %v2707_v17  ;;  %v2715_v48 = vsel %vm9182_vm7, %v2705_v60, %v2707_v17  ;;  %v2718_v41 = vsel %vm584_vm8, %v2705_v60, %v2707_v17  ;;  %vm8131_vm7 = vmand %vm2777_vm11, %vm2778_vm9 }
 0x588   : > { %v2714_v32 = vrot.slane %v2712_v6, 1  ;;  %v2717_v1 = vrot.slane %v2715_v48, 2  ;;  %v2720_v15 = vrot.slane %v2718_v41, 3  ;;  %v2722_v29 = vunpack.i.h.s16 %v2710_v18 }
 0x589   : > { %v6391_v11 = vpack.i.b16 %v2710_v18, %v2710_v18  ;;  %v2875_v8 = vadd.f32 %v2871_v10, %v2852_v0  ;;  %v2789_v0 = vld [vmem:[%s6938_s26 + $0x18] sm:$0x8]  ;;  %v2926_v10 = vpop.f32.mrf.mxu2  ;;  %v2950_v18 = vpop.f32.mrf.mxu3  ;;  %vm3127_vm9 = vsmask.f32 7950 }
 0x58a   : > { %v2724_v40 = vunpack.i.h.s16 %v2714_v32  ;;  %v2726_v23 = vunpack.i.h.s16 %v2717_v1  ;;  %v2728_v14 = vunpack.i.h.s16 %v2720_v15  ;;  %v2730_v13 = vpack.i.b16 %v2722_v29, %v2722_v29  ;;  %v8235_v10 = vld [vmem:[%s9169_s2 + $0x10] sm:$0xff]  ;;  %v6448_v18 = vld [vmem:[%s9168_s1 + $0x24] sm:$0xf] }
 0x58b   : > { %v6392_v57 = vpack.i.b16 %v2714_v32, %v2714_v32  ;;  %v6393_v58 = vpack.i.b16 %v2717_v1, %v2717_v1  ;;  %v6394_v61 = vpack.i.b16 %v2720_v15, %v2720_v15  ;;  %v2740_v20 = vperm.slane %v6391_v11, %v7536_v42  ;;  %v2798_v1 = vld [vmem:[%s6938_s26 + $0x30] sm:$0x8] }
 0x58c   : > { %v2732_v49 = vpack.i.b16 %v2724_v40, %v2724_v40  ;;  %v2734_v31 = vpack.i.b16 %v2726_v23, %v2726_v23  ;;  %v2736_v30 = vpack.i.b16 %v2728_v14, %v2728_v14  ;;  %v2744_v60 = vperm.slane %v2730_v13, %v7536_v42  ;;  %v2999_v12 = vpop.f32.mrf.mxu1  ;;  %v2801_v23 = vld [vmem:[%s6938_s26 + $0x38] sm:$0x8] }
 0x58d   : > { %v2748_v16 = vperm.slane %v6392_v57, %v7536_v42  ;;  %v2756_v46 = vperm.slane %v6393_v58, %v7536_v42  ;;  %v2764_v26 = vperm.slane %v6394_v61, %v7536_v42  ;;  %v2781_v17 = vsel %vm8131_vm7, %v2740_v20, %v2780_v3  ;;  %v6431_v61 = vld [vmem:[%s9168_s1 + $0x10] sm:$0xf] }
 0x58e   : > { %v2752_v6 = vperm.slane %v2732_v49, %v7536_v42  ;;  %v2760_v48 = vperm.slane %v2734_v31, %v7536_v42  ;;  %v2768_v41 = vperm.slane %v2736_v30, %v7536_v42  ;;  %2782 = vst [vmem:[%s6938_s26] sm:$0x8] %v2781_v17  ;;  %v2784_v32 = vsel %vm8131_vm7, %v2744_v60, %v2783_v44  ;;  %v2873_v15 = vpop.f32.mrf.mxu0  ;;  %v6429_v44 = vld [vmem:[%s9168_s1 + $0xc] sm:$0xf]  ;;  %v6427_v30 = vld [vmem:[%s9168_s1 + $0x8] sm:$0xf] }
 0x58f   : > { %v3346_v29 = vsel %vm320_vm1, %v7424_v19, 0  ;;  %2785 = vst [vmem:[%s6938_s26 + $0x8] sm:$0x8] %v2784_v32  ;;  %v2787_v11 = vsel %vm8131_vm7, %v2748_v16, %v2786_v2  ;;  %v2793_v40 = vsel %vm8131_vm7, %v2756_v46, %v2792_v39  ;;  %v2901_v14 = vadd.f32 %v8104_v52, %v2875_v8  ;;  %v6432_v8 = vld [vmem:[%s9168_s1 + $0x14] sm:$0xf]  ;;  %6434 = vmatmul.msk.bf16.vlgmr.msrb.gmra.mxu1 %vm316_vm2, %v6431_v61  ;;  %v3613_v2 = vpop.permute.xlu2 %3612 }
 0x590   : > { %2788 = vst [vmem:[%s6938_s26 + $0x10] sm:$0x8] %v2787_v11  ;;  %v2790_v13 = vsel %vm8131_vm7, %v2752_v6, %v2789_v0  ;;  %v2796_v3 = vsel %vm8131_vm7, %v2760_v48, %v2795_v43  ;;  %v2799_v19 = vsel %vm8131_vm7, %v2764_v26, %v2798_v1  ;;  %v2802_v57 = vsel %vm8131_vm7, %v2768_v41, %v2801_v23  ;;  %v6435_v39 = vld [vmem:[%s9168_s1 + $0x18] sm:$0xf]  ;;  %v8224_v0 = vld [vmem:[%s9169_s2] sm:$0xff] }
 0x591   : > { %2791 = vst [vmem:[%s6938_s26 + $0x18] sm:$0x8] %v2790_v13  ;;  %6414 = vmatmul.msk.f32.vlgmr.msrb.gmra.mxu3 %vm9183_vm3, %v2901_v14  ;;  %v2949_v52 = vadd.f32 %v8121_v45, %v8119_v34  ;;  %6433 = vmatmul.msk.bf16.vlgmr.msrb.gmra.mxu0 %vm316_vm2, %v6432_v8  ;;  %v3320_v34 = vsel %vm320_vm1, %v8098_v36, 0  ;;  %v3529_v60 = vsel %vm320_vm1, %v7428_v37, 0  ;;  %v6437_v36 = vld [vmem:[%s9168_s1 + $0x1c] sm:$0xf] }
 0x592   : > { %2794 = vst [vmem:[%s6938_s26 + $0x20] sm:$0x8] %v2793_v40  ;;  %3355 = vmatpush.bf16.msrb.mxu3 %v3346_v29  ;;  %v3618_v37 = vsel %vm320_vm1, %v3613_v2, 0  ;;  %v8230_v43 = vld [vmem:[%s9169_s2 + $0x18] sm:$0xff]  ;;  %v6447_v6 = vld [vmem:[%s9168_s1 + $0x20] sm:$0xf] }
 0x593   : > { %2797 = vst [vmem:[%s6938_s26 + $0x28] sm:$0x8] %v2796_v3  ;;  %3383 = vmatpush.msra.mxu0 %v8230_v43  ;;  %v3565_v48 = vsel %vm320_vm1, %v7224_v56, 0 }
 0x594   : > { %2800 = vst [vmem:[%s6938_s26 + $0x30] sm:$0x8] %v2799_v19  ;;  %v3001_v58 = vpop.f32.mrf.mxu1 }
 0x595   : > { %2803 = vst [vmem:[%s6938_s26 + $0x38] sm:$0x8] %v2802_v57  ;;  %3384 = vmatpush.msra.mxu0 %v8235_v10 }
 0x596   : > { %v2973_v20 = vpop.f32.mrf.mxu0 }
 0x597   : > { %v2977_v49 = vadd.f32 %v2973_v20, %v2949_v52  ;;  %3574 = vmatpush.bf16.msrb.mxu0 %v3565_v48 }
 0x599   : > { %v3003_v45 = vadd.f32 %v2999_v12, %v2977_v49  ;;  %6430 = vmatmul.msk.bf16.vlgmr.msra.gmra.mxu3 %vm316_vm2, %v6429_v44  ;;  %v3586_v12 = vpop.permute.xlu1 %3585  ;;  %v3688_v49 = vpop.permute.xlu2 %3687 }
 0x59a   : > { %3554 = vmatpush.bf16.msra.mxu3 %v8102_v4  ;;  %v3642_v4 = vsel %vm320_vm1, %v7449_v55, 0  ;;  %v8217_v55 = vld [vmem:[%s9169_s2 + $0x8] sm:$0xff]  ;;  %v3591_v17 = vsel %vm320_vm1, %v3586_v12, 0 }
 0x59b   : > { %6413 = vmatmul.msk.f32.vlgmr.msrb.gmra.mxu2 %vm9183_vm3, %v3003_v45  ;;  %3406 = vmatpush.msra.mxu1 %v8217_v55  ;;  %vm9213_vm3 = vcmask 1042434  }
 0x59c   : > { %3329 = vmatpush.bf16.msrb.mxu2 %v3320_v34  ;;  %v3209_v26 = vpop.f32.mrf.mxu1 }
 0x59d   : > { %3407 = vmatpush.msra.mxu1 %v8224_v0 }
 0x59e   : > { %v2975_v31 = vpop.f32.mrf.mxu0 }
 0x59f   : > { %3600 = vmatpush.bf16.msrb.mxu1 %v3591_v17 }
 0x5a3   : > { %6428 = vmatmul.msk.bf16.vlgmr.msra.gmra.mxu2 %vm316_vm2, %v6427_v30 }
 0x5a4   : > { %3538 = vmatpush.bf16.msra.mxu2 %v3529_v60  ;;  %v3211_v1 = vpop.f32.mrf.mxu1  ;;  %v3947_v60 = vsel %vm320_vm1, %v7458_v22, 0  ;;  %v6455_v22 = vld [vmem:[%s9168_s1 + $0x30] sm:$0xf] }
 0x5a6   : > { %v3191_v46 = vpop.f32.mrf.mxu0 }
 0x5a7   : > { %v3210_v3 = vadd.f32 %v3209_v26, %v3191_v46 }
 0x5a9   : > { %6438 = vmatmul.msk.bf16.vlgmr.msrb.gmra.mxu3 %vm316_vm2, %v6437_v36  ;;  %v3693_v36 = vsel %vm320_vm1, %v3688_v49, 0  ;;  %v3135_v49 = vld [vmem:[%s6938_s26 + $0x10] sm:$0x8] }
 0x5aa   : > { %3651 = vmatpush.bf16.msrb.mxu3 %v3642_v4 }
 0x5ae   : > { %v3193_v32 = vpop.f32.mrf.mxu0 }
 0x5b3   : > { %6436 = vmatmul.msk.bf16.vlgmr.msrb.gmra.mxu2 %vm316_vm2, %v6435_v39  ;;  %v6456_v39 = vld [vmem:[%s9168_s1 + $0x34] sm:$0xf] }
 0x5b4   : > { %3627 = vmatpush.bf16.msrb.mxu2 %v3618_v37 }
 0x5b9   : > { %6450 = vmatmul.msk.bf16.vlgmr.msra.gmra.mxu3 %vm316_vm2, %v6447_v6 }
 0x5ba   : > { %3753 = vmatpush.msra.mxu3 %v8217_v55 }
 0x5bc   : > { %3754 = vmatpush.msra.mxu3 %v8224_v0 }
 0x5c3   : > { %6449 = vmatmul.msk.bf16.vlgmr.msra.gmra.mxu2 %vm316_vm2, %v6448_v18 }
 0x5c4   : > { %3730 = vmatpush.msra.mxu2 %v8230_v43 }
 0x5c6   : > { %3731 = vmatpush.msra.mxu2 %v8235_v10 }
 0x5c9   : > { %6458 = vmatmul.msk.bf16.vlgmr.msrb.gmra.mxu3 %vm316_vm2, %v6455_v22 }
 0x5ca   : > { %3956 = vmatpush.bf16.msrb.mxu3 %v3947_v60  ;;  %v3662_v60 = vpop.permute.xlu1 %3661 }
 0x5d3   : > { %6457 = vmatmul.msk.bf16.vlgmr.msrb.gmra.mxu2 %vm316_vm2, %v6456_v39  ;;  %v3144_v39 = vld [vmem:[%s6938_s26 + $0x28] sm:$0x8] }
 0x60c   : > { %v8260_v52 = vpop.f32.mrf.mxu1 }
 0x60e   : > { %v8258_v57 = vpop.f32.mrf.mxu0 }
 0x614   : > { %v3051_v16 = vpop.f32.mrf.mxu3 }
 0x61c   : > { %v8246_v41 = vpop.f32.mrf.mxu3 }
 0x61e   : > { %v3028_v15 = vpop.f32.mrf.mxu2 }
 0x61f   : > { %v3052_v29 = vadd.f32 %v3051_v16, %v3028_v15 }
 0x621   : > { %v3054_v56 = vadd.f32 %v3052_v29, %v7525_v53 }
 0x623   : > { %v3055_v11 = vpack.c.bf16 %v3054_v56, %v3054_v56  ;;  %v3153_v40 = vsel %vm671_vm5, %v3054_v56, 0.0  ;;  %v3157_v23 = vmul.f32 %v3054_v56, %v3054_v56  ;;  %v3129_v56 = vld [vmem:[%s6938_s26] sm:$0x8] }
 0x624   : > { %3154 = vadd.xlane.f32.xlu0 %v3153_v40  ;;  %v3257_v14 = vpop.f32.mrf.mxu3 }
 0x625   : > { %v3057_v13 = vrot.slane %v3055_v11, 3  ;;  %v3158_v19 = vsel %vm671_vm5, %v3157_v23, 0.0 }
 0x626   : > { %v3229_v8 = vpop.f32.mrf.mxu2  ;;  %3159 = vadd.xlane.f32.xlu1 %v3158_v19  ;;  %v3284_v19 = vpop.f32.mrf.mxu0 }
 0x627   : > { %v3060_v58 = vsel %vm571_vm4, %v3055_v11, %v3057_v13  ;;  %v3062_v61 = vsel %vm576_vm6, %v3055_v11, %v3057_v13  ;;  %v3065_v20 = vsel %vm9213_vm3, %v3055_v11, %v3057_v13  ;;  %v3068_v44 = vsel %vm584_vm8, %v3055_v11, %v3057_v13  ;;  %vm8274_vm3 = vmand %vm2777_vm11, %vm3127_vm9  ;;  %v8347_v19 = vpop.permute.xlu2 %4017 }
 0x628   : > { %v3064_v34 = vrot.slane %v3062_v61, 1  ;;  %v3067_v45 = vrot.slane %v3065_v20, 2  ;;  %v3070_v31 = vrot.slane %v3068_v44, 3  ;;  %v3072_v30 = vunpack.i.h.s16 %v3060_v58 }
 0x629   : > { %v6415_v4 = vpack.i.b16 %v3060_v58, %v3060_v58  ;;  %v3233_v2 = vadd.f32 %v3229_v8, %v3210_v3  ;;  %v3132_v3 = vld [vmem:[%s6938_s26 + $0x8] sm:$0x8]  ;;  %v3308_v8 = vpop.f32.mrf.mxu1  ;;  %vm9216_vm11 = vcmask 130048  }
 0x62a   : > { %v3074_v37 = vunpack.i.h.s16 %v3064_v34  ;;  %v3076_v12 = vunpack.i.h.s16 %v3067_v45  ;;  %v3078_v16 = vunpack.i.h.s16 %v3070_v31  ;;  %v3080_v46 = vpack.i.b16 %v3072_v30, %v3072_v30  ;;  %v3138_v30 = vld [vmem:[%s6938_s26 + $0x18] sm:$0x8]  ;;  %vm9217_vm9 = vmmov %vm9216_vm11 }
 0x62b   : > { %v6416_v17 = vpack.i.b16 %v3064_v34, %v3064_v34  ;;  %v6417_v18 = vpack.i.b16 %v3067_v45, %v3067_v45  ;;  %v6418_v6 = vpack.i.b16 %v3070_v31, %v3070_v31  ;;  %v3090_v48 = vperm.slane %v6415_v4, %v7536_v42  ;;  %v3141_v34 = vld [vmem:[%s6938_s26 + $0x20] sm:$0x8] }
 0x62c   : > { %v3082_v32 = vpack.i.b16 %v3074_v37, %v3074_v37  ;;  %v3084_v1 = vpack.i.b16 %v3076_v12, %v3076_v12  ;;  %v3086_v15 = vpack.i.b16 %v3078_v16, %v3078_v16  ;;  %v3094_v29 = vperm.slane %v3080_v46, %v7536_v42  ;;  %v3357_v11 = vpop.f32.mrf.mxu3  ;;  %v3147_v46 = vld [vmem:[%s6938_s26 + $0x30] sm:$0x8] }
 0x62d   : > { %v3098_v40 = vperm.slane %v6416_v17, %v7536_v42  ;;  %v3106_v23 = vperm.slane %v6417_v18, %v7536_v42  ;;  %v3114_v14 = vperm.slane %v6418_v6, %v7536_v42  ;;  %v3130_v13 = vsel %vm8274_vm3, %v3090_v48, %v3129_v56  ;;  %v3150_v17 = vld [vmem:[%s6938_s26 + $0x38] sm:$0x8]  ;;  %v6453_v48 = vld [vmem:[%s9168_s1 + $0x2c] sm:$0xf]  ;;  %v6461_v56 = vld [vmem:[%s9168_s1 + $0x3c] sm:$0xf] }
 0x62e   : > { %v3102_v58 = vperm.slane %v3082_v32, %v7536_v42  ;;  %v3110_v61 = vperm.slane %v3084_v1, %v7536_v42  ;;  %v3118_v20 = vperm.slane %v3086_v15, %v7536_v42  ;;  %3131 = vst [vmem:[%s6938_s26] sm:$0x8] %v3130_v13  ;;  %v3133_v44 = vsel %vm8274_vm3, %v3094_v29, %v3132_v3  ;;  %v3231_v45 = vpop.f32.mrf.mxu2 }
 0x62f   : > { %3134 = vst [vmem:[%s6938_s26 + $0x8] sm:$0x8] %v3133_v44  ;;  %v3136_v31 = vsel %vm8274_vm3, %v3098_v40, %v3135_v49  ;;  %v3142_v4 = vsel %vm8274_vm3, %v3106_v23, %v3141_v34  ;;  %v3259_v37 = vadd.f32 %v8246_v41, %v3233_v2  ;;  %v3148_v22 = vsel %vm8274_vm3, %v3114_v14, %v3147_v46  ;;  %v6459_v40 = vld [vmem:[%s9168_s1 + $0x38] sm:$0xf]  ;;  %v3993_v34 = vpop.permute.xlu2 %3992 }
 0x630   : > { %3137 = vst [vmem:[%s6938_s26 + $0x10] sm:$0x8] %v3136_v31  ;;  %v3139_v12 = vsel %vm8274_vm3, %v3102_v58, %v3138_v30  ;;  %v3145_v16 = vsel %vm8274_vm3, %v3110_v61, %v3144_v39  ;;  %v3151_v41 = vsel %vm8274_vm3, %v3118_v20, %v3150_v17  ;;  %v3307_v2 = vadd.f32 %v8260_v52, %v8258_v57  ;;  %v3878_v57 = vpop.permute.xlu1 %3877  ;;  %v6451_v52 = vld [vmem:[%s9168_s1 + $0x28] sm:$0xf] }
 0x631   : > { %3140 = vst [vmem:[%s6938_s26 + $0x18] sm:$0x8] %v3139_v12  ;;  %6442 = vmatmul.msk.f32.vlgmr.msra.gmra.mxu1 %vm9216_vm11, %v3259_v37  ;;  %v3667_v1 = vsel %vm320_vm1, %v3662_v60, 0  ;;  %v3883_v29 = vsel %vm320_vm1, %v3878_v57, 0  ;;  %v8351_v8 = vsel %vm320_vm1, %v7272_v27, 0  ;;  %v3998_v31 = vsel %vm320_vm1, %v3993_v34, 0 }
 0x632   : > { %3143 = vst [vmem:[%s6938_s26 + $0x20] sm:$0x8] %v3142_v4  ;;  %3702 = vmatpush.bf16.msra.mxu1 %v3693_v36  ;;  %3930 = vmatpush.bf16.msrb.mxu2 %v8351_v8  ;;  %v3901_v27 = vsel %vm320_vm1, %v7266_v25, 0  ;;  %v6476_v37 = vld [vmem:[%s9168_s1 + $0x4] sm:$0xf]  ;;  %vm9218_vm11 = vcmask 1042434  }
 0x633   : > { %3146 = vst [vmem:[%s6938_s26 + $0x28] sm:$0x8] %v3145_v16  ;;  %v3871_v16 = vld [vmem:[%s9168_s1] sm:$0xf] }
 0x634   : > { %3149 = vst [vmem:[%s6938_s26 + $0x30] sm:$0x8] %v3148_v22  ;;  %v3359_v18 = vpop.f32.mrf.mxu3 }
 0x635   : > { %3152 = vst [vmem:[%s6938_s26 + $0x38] sm:$0x8] %v3151_v41 }
 0x636   : > { %v3331_v6 = vpop.f32.mrf.mxu2 }
 0x637   : > { %v3335_v32 = vadd.f32 %v3331_v6, %v3307_v2 }
 0x639   : > { %v3361_v15 = vadd.f32 %v3357_v11, %v3335_v32  ;;  %6454 = vmatmul.msk.bf16.vlgmr.msrb.gmra.mxu1 %vm316_vm2, %v6453_v48  ;;  %v3969_v11 = vpop.permute.xlu1 %3968 }
 0x63a   : > { %v3974_v23 = vsel %vm320_vm1, %v3969_v11, 0  ;;  %3910 = vmatpush.bf16.msrb.mxu1 %v3901_v27 }
 0x63b   : > { %6441 = vmatmul.msk.f32.vlgmr.msra.gmra.mxu0 %vm9217_vm9, %v3361_v15 }
 0x63c   : > { %3676 = vmatpush.bf16.msra.mxu0 %v3667_v1  ;;  %v3556_v3 = vpop.f32.mrf.mxu3 }
 0x63e   : > { %v3333_v36 = vpop.f32.mrf.mxu2 }
 0x643   : > { %6452 = vmatmul.msk.bf16.vlgmr.msrb.gmra.mxu0 %vm316_vm2, %v6451_v52 }
 0x644   : > { %3892 = vmatpush.bf16.msrb.mxu0 %v3883_v29  ;;  %v3558_v20 = vpop.f32.mrf.mxu3 }
 0x645   : > { %v3488_v20 = vld [vmem:[%s6938_s26 + $0xc] sm:$0x1] }
 0x646   : > { %v3540_v13 = vpop.f32.mrf.mxu2 }
 0x647   : > { %v3557_v22 = vadd.f32 %v3556_v3, %v3540_v13 }
 0x649   : > { %6462 = vmatmul.msk.bf16.vlgmr.msra.gmra.mxu1 %vm316_vm2, %v6461_v56 }
 0x64a   : > { %4007 = vmatpush.bf16.msra.mxu1 %v3998_v31  ;;  %v3491_v31 = vld [vmem:[%s6938_s26 + $0x14] sm:$0x1] }
 0x64c   : > { %v8370_v2 = vpop.f32.mrf.mxu3 }
 0x64e   : > { %v3542_v61 = vpop.f32.mrf.mxu2 }
 0x653   : > { %6460 = vmatmul.msk.bf16.vlgmr.msra.gmra.mxu0 %vm316_vm2, %v6459_v40 }
 0x654   : > { %3983 = vmatpush.bf16.msra.mxu0 %v3974_v23  ;;  %v3485_v23 = vld [vmem:[%s6938_s26 + $0x4] sm:$0x1] }
 0x656   : > { %v8368_v41 = vpop.f32.mrf.mxu2 }
 0x659   : > { %6478 = vmatmul.msk.bf16.vlgmr.msrb.gmra.mxu1 %vm316_vm2, %v3871_v16  ;;  %v3494_v16 = vld [vmem:[%s6938_s26 + $0x1c] sm:$0x1] }
 0x65a   : > { %4109 = vmatpush.msrb.mxu1 %v8217_v55 }
 0x65c   : > { %4110 = vmatpush.msrb.mxu1 %v8224_v0 }
 0x663   : > { %6477 = vmatmul.msk.bf16.vlgmr.msrb.gmra.mxu0 %vm316_vm2, %v6476_v37 }
 0x664   : > { %4086 = vmatpush.msrb.mxu0 %v8230_v43 }
 0x666   : > { %4087 = vmatpush.msrb.mxu0 %v8235_v10 }
 0x6ae   : > { %v3409_v14 = vpop.f32.mrf.mxu1 }
 0x6b6   : > { %v8353_v58 = vpop.f32.mrf.mxu1 }
 0x6b8   : > { %v3386_v44 = vpop.f32.mrf.mxu0 }
 0x6b9   : > { %v3410_v49 = vadd.f32 %v3409_v14, %v3386_v44 }
 0x6bb   : > { %v3412_v45 = vadd.f32 %v3410_v49, %v7525_v53 }
 0x6bd   : > { %v3413_v30 = vpack.c.bf16 %v3412_v45, %v3412_v45  ;;  %v3509_v4 = vsel %vm671_vm5, %v3412_v45, 0.0  ;;  %v3513_v39 = vmul.f32 %v3412_v45, %v3412_v45 }
 0x6be   : > { %3510 = vadd.xlane.f32.xlu2 %v3509_v4  ;;  %v3604_v12 = vpop.f32.mrf.mxu1 }
 0x6bf   : > { %v3415_v46 = vrot.slane %v3413_v30, 3  ;;  %v3514_v17 = vsel %vm671_vm5, %v3513_v39, 0.0 }
 0x6c0   : > { %v3576_v25 = vpop.f32.mrf.mxu0  ;;  %3515 = vadd.xlane.f32.xlu0 %v3514_v17  ;;  %v3655_v17 = vpop.f32.mrf.mxu3 }
 0x6c1   : > { %v3418_v18 = vsel %vm571_vm4, %v3413_v30, %v3415_v46  ;;  %v3420_v60 = vsel %vm576_vm6, %v3413_v30, %v3415_v46  ;;  %v3423_v6 = vsel %vm9218_vm11, %v3413_v30, %v3415_v46  ;;  %v3426_v48 = vsel %vm584_vm8, %v3413_v30, %v3415_v46  ;;  %v3497_v30 = vld [vmem:[%s6938_s26 + $0x24] sm:$0x1]  ;;  %v3500_v46 = vld [vmem:[%s6938_s26 + $0x2c] sm:$0x1] }
 0x6c2   : > { %v3422_v32 = vrot.slane %v3420_v60, 1  ;;  %v3425_v1 = vrot.slane %v3423_v6, 2  ;;  %v3428_v15 = vrot.slane %v3426_v48, 3  ;;  %v3430_v36 = vunpack.i.h.s16 %v3418_v18  ;;  %v3503_v48 = vld [vmem:[%s6938_s26 + $0x34] sm:$0x1] }
 0x6c3   : > { %v6443_v57 = vpack.i.b16 %v3418_v18, %v3418_v18  ;;  %v3580_v52 = vadd.f32 %v3576_v25, %v3557_v22  ;;  %v3631_v22 = vpop.f32.mrf.mxu2 }
 0x6c4   : > { %v3432_v29 = vunpack.i.h.s16 %v3422_v32  ;;  %v3434_v56 = vunpack.i.h.s16 %v3425_v1  ;;  %v3436_v11 = vunpack.i.h.s16 %v3428_v15  ;;  %v3438_v40 = vpack.i.b16 %v3430_v36, %v3430_v36 }
 0x6c5   : > { %v6444_v14 = vpack.i.b16 %v3422_v32, %v3422_v32  ;;  %v6445_v13 = vpack.i.b16 %v3425_v1, %v3425_v1  ;;  %v6446_v3 = vpack.i.b16 %v3428_v15, %v3428_v15  ;;  %v3448_v61 = vperm.slane %v6443_v57, %v7536_v42  ;;  %v3506_v57 = vld [vmem:[%s6938_s26 + $0x3c] sm:$0x1] }
 0x6c6   : > { %v3440_v44 = vpack.i.b16 %v3432_v29, %v3432_v29  ;;  %v3442_v49 = vpack.i.b16 %v3434_v56, %v3434_v56  ;;  %v3444_v34 = vpack.i.b16 %v3436_v11, %v3436_v11  ;;  %v3452_v45 = vperm.slane %v3438_v40, %v7536_v42  ;;  %v3704_v4 = vpop.f32.mrf.mxu1 }
 0x6c7   : > { %v3456_v39 = vperm.slane %v6444_v14, %v7536_v42  ;;  %v3464_v27 = vperm.slane %v6445_v13, %v7536_v42  ;;  %v3472_v37 = vperm.slane %v6446_v3, %v7536_v42  ;;  %v3486_v12 = vsel %vm7566_vm12, %v3448_v61, %v3485_v23  ;;  %v4289_v23 = vpop.permute.xlu1 %4288  ;;  %v6483_v13 = vld [vmem:[%s9168_s1 + $0x10] sm:$0xf] }
 0x6c8   : > { %v3460_v25 = vperm.slane %v3440_v44, %v7536_v42  ;;  %v3468_v18 = vperm.slane %v3442_v49, %v7536_v42  ;;  %v3476_v60 = vperm.slane %v3444_v34, %v7536_v42  ;;  %3487 = vst [vmem:[%s6938_s26 + $0x4] sm:$0x1] %v3486_v12  ;;  %v3489_v6 = vsel %vm7566_vm12, %v3452_v45, %v3488_v20  ;;  %v3578_v32 = vpop.f32.mrf.mxu0  ;;  %v6479_v49 = vld [vmem:[%s9168_s1 + $0x8] sm:$0xf]  ;;  %v4316_v45 = vpop.permute.xlu2 %4315 }
 0x6c9   : > { %v4049_v1 = vsel %vm320_vm1, %v7475_v38, 0  ;;  %3490 = vst [vmem:[%s6938_s26 + $0xc] sm:$0x1] %v3489_v6  ;;  %v3492_v15 = vsel %vm7566_vm12, %v3456_v39, %v3491_v31  ;;  %v3498_v36 = vsel %vm7566_vm12, %v3464_v27, %v3497_v30  ;;  %v3606_v29 = vadd.f32 %v8353_v58, %v3580_v52  ;;  %v6484_v52 = vld [vmem:[%s9168_s1 + $0x14] sm:$0xf]  ;;  %6486 = vmatmul.msk.bf16.vlgmr.msra.gmra.mxu1 %vm316_vm2, %v6483_v13 }
 0x6ca   : > { %3493 = vst [vmem:[%s6938_s26 + $0x14] sm:$0x1] %v3492_v15  ;;  %v3495_v56 = vsel %vm7566_vm12, %v3460_v25, %v3494_v16  ;;  %v3501_v11 = vsel %vm7566_vm12, %v3468_v18, %v3500_v46  ;;  %v3504_v38 = vsel %vm7566_vm12, %v3472_v37, %v3503_v48  ;;  %v3507_v40 = vsel %vm7566_vm12, %v3476_v60, %v3506_v57  ;;  %vm9219_vm12 = vmmov %vm9217_vm9  ;;  %v6487_v31 = vld [vmem:[%s9168_s1 + $0x18] sm:$0xf]  ;;  %v6499_v27 = vld [vmem:[%s9168_s1 + $0x20] sm:$0xf] }
 0x6cb   : > { %3496 = vst [vmem:[%s6938_s26 + $0x1c] sm:$0x1] %v3495_v56  ;;  %6466 = vmatmul.msk.f32.vlgmr.msra.gmra.mxu3 %vm9217_vm9, %v3606_v29  ;;  %v3654_v58 = vadd.f32 %v8370_v2, %v8368_v41  ;;  %v4294_v3 = vsel %vm320_vm1, %v4289_v23, 0  ;;  %6485 = vmatmul.msk.bf16.vlgmr.msra.gmra.mxu0 %vm316_vm2, %v6484_v52  ;;  %v6481_v41 = vld [vmem:[%s9168_s1 + $0xc] sm:$0xf]  ;;  %v4023_v61 = vsel %vm320_vm1, %v8347_v19, 0 }
 0x6cc   : > { %3499 = vst [vmem:[%s6938_s26 + $0x24] sm:$0x1] %v3498_v36  ;;  %4058 = vmatpush.bf16.msra.mxu3 %v4049_v1  ;;  %4303 = vmatpush.bf16.msra.mxu1 %v4294_v3  ;;  %v4232_v34 = vsel %vm320_vm1, %v7491_v54, 0  ;;  %v6489_v19 = vld [vmem:[%s9168_s1 + $0x1c] sm:$0xf]  ;;  %v4321_v54 = vsel %vm320_vm1, %v4316_v45, 0 }
 0x6cd   : > { %3502 = vst [vmem:[%s6938_s26 + $0x2c] sm:$0x1] %v3501_v11  ;;  %v4268_v37 = vsel %vm320_vm1, %v7287_v33, 0  ;;  %v4650_v13 = vsel %vm320_vm1, %v7503_v59, 0 }
 0x6ce   : > { %3505 = vst [vmem:[%s6938_s26 + $0x34] sm:$0x1] %v3504_v38  ;;  %v3706_v14 = vpop.f32.mrf.mxu1  ;;  %4277 = vmatpush.bf16.msra.mxu0 %v4268_v37 }
 0x6cf   : > { %3508 = vst [vmem:[%s6938_s26 + $0x3c] sm:$0x1] %v3507_v40 }
 0x6d0   : > { %v3678_v21 = vpop.f32.mrf.mxu0  ;;  %v4391_v40 = vpop.permute.xlu2 %4390 }
 0x6d1   : > { %v3682_v2 = vadd.f32 %v3678_v21, %v3654_v58  ;;  %v4396_v3 = vsel %vm320_vm1, %v4391_v40, 0 }
 0x6d3   : > { %v3708_v20 = vadd.f32 %v3704_v4, %v3682_v2  ;;  %6482 = vmatmul.msk.bf16.vlgmr.msrb.gmra.mxu3 %vm316_vm2, %v6481_v41  ;;  %v6508_v2 = vld [vmem:[%s9168_s1 + $0x34] sm:$0xf] }
 0x6d4   : > { %4257 = vmatpush.bf16.msrb.mxu3 %v8351_v8  ;;  %v4345_v8 = vsel %vm320_vm1, %v7496_v51, 0  ;;  %v6500_v51 = vld [vmem:[%s9168_s1 + $0x24] sm:$0xf] }
 0x6d5   : > { %6465 = vmatmul.msk.f32.vlgmr.msra.gmra.mxu2 %vm9219_vm12, %v3708_v20  ;;  %vm9221_vm12 = vmmov %vm9218_vm11 }
 0x6d6   : > { %4032 = vmatpush.bf16.msra.mxu2 %v4023_v61  ;;  %v3912_v39 = vpop.f32.mrf.mxu1 }
 0x6d8   : > { %v3680_v44 = vpop.f32.mrf.mxu0 }
 0x6dd   : > { %6480 = vmatmul.msk.bf16.vlgmr.msrb.gmra.mxu2 %vm316_vm2, %v6479_v49 }
 0x6de   : > { %4241 = vmatpush.bf16.msrb.mxu2 %v4232_v34  ;;  %v3914_v46 = vpop.f32.mrf.mxu1  ;;  %v6507_v34 = vld [vmem:[%s9168_s1 + $0x30] sm:$0xf] }
 0x6e0   : > { %v3894_v4 = vpop.f32.mrf.mxu0 }
 0x6e1   : > { %v3913_v32 = vadd.f32 %v3912_v39, %v3894_v4  ;;  %v3832_v39 = vld [vmem:[%s6938_s26 + $0x4] sm:$0x1] }
 0x6e3   : > { %6490 = vmatmul.msk.bf16.vlgmr.msra.gmra.mxu3 %vm316_vm2, %v6489_v19 }
 0x6e4   : > { %4354 = vmatpush.bf16.msra.mxu3 %v4345_v8 }
 0x6e8   : > { %v3896_v16 = vpop.f32.mrf.mxu0 }
 0x6ed   : > { %6488 = vmatmul.msk.bf16.vlgmr.msra.gmra.mxu2 %vm316_vm2, %v6487_v31 }
 0x6ee   : > { %4330 = vmatpush.bf16.msra.mxu2 %v4321_v54 }
 0x6f3   : > { %6502 = vmatmul.msk.bf16.vlgmr.msrb.gmra.mxu3 %vm316_vm2, %v6499_v27 }
 0x6f4   : > { %4456 = vmatpush.msrb.mxu3 %v8217_v55 }
 0x6f6   : > { %4457 = vmatpush.msrb.mxu3 %v8224_v0 }
 0x6fd   : > { %6501 = vmatmul.msk.bf16.vlgmr.msrb.gmra.mxu2 %vm316_vm2, %v6500_v51 }
 0x6fe   : > { %4433 = vmatpush.msrb.mxu2 %v8230_v43 }
 0x700   : > { %4434 = vmatpush.msrb.mxu2 %v8235_v10 }
 0x703   : > { %6510 = vmatmul.msk.bf16.vlgmr.msra.gmra.mxu3 %vm316_vm2, %v6507_v34  ;;  %v6513_v34 = vld [vmem:[%s9168_s1 + $0x3c] sm:$0xf] }
 0x704   : > { %4659 = vmatpush.bf16.msra.mxu3 %v4650_v13  ;;  %v4365_v13 = vpop.permute.xlu1 %4364 }
 0x70d   : > { %6509 = vmatmul.msk.bf16.vlgmr.msra.gmra.mxu2 %vm316_vm2, %v6508_v2 }
 0x746   : > { %v8483_v36 = vpop.f32.mrf.mxu1 }
 0x748   : > { %v8481_v15 = vpop.f32.mrf.mxu0 }
 0x74e   : > { %v3756_v30 = vpop.f32.mrf.mxu3 }
 0x756   : > { %v8470_v12 = vpop.f32.mrf.mxu3 }
 0x758   : > { %v3733_v22 = vpop.f32.mrf.mxu2 }
 0x759   : > { %v3757_v17 = vadd.f32 %v3756_v30, %v3733_v22  ;;  %v3835_v22 = vld [vmem:[%s6938_s26 + $0xc] sm:$0x1] }
 0x75b   : > { %v3759_v33 = vadd.f32 %v3757_v17, %v7525_v53  ;;  %v3987_v17 = vpop.f32.mrf.mxu0 }
 0x75d   : > { %v3760_v25 = vpack.c.bf16 %v3759_v33, %v3759_v33  ;;  %v3856_v18 = vsel %vm671_vm5, %v3759_v33, 0.0  ;;  %v3860_v60 = vmul.f32 %v3759_v33, %v3759_v33  ;;  %v4011_v33 = vpop.f32.mrf.mxu1 }
 0x75e   : > { %3857 = vadd.xlane.f32.xlu1 %v3856_v18  ;;  %v3960_v6 = vpop.f32.mrf.mxu3 }
 0x75f   : > { %v3762_v48 = vrot.slane %v3760_v25, 3  ;;  %v3861_v1 = vsel %vm671_vm5, %v3860_v60, 0.0 }
 0x760   : > { %v3932_v57 = vpop.f32.mrf.mxu2  ;;  %3862 = vadd.xlane.f32.xlu2 %v3861_v1 }
 0x761   : > { %v3765_v29 = vsel %vm571_vm4, %v3760_v25, %v3762_v48  ;;  %v3767_v56 = vsel %vm576_vm6, %v3760_v25, %v3762_v48  ;;  %v3770_v11 = vsel %vm9218_vm11, %v3760_v25, %v3762_v48  ;;  %v3773_v38 = vsel %vm584_vm8, %v3760_v25, %v3762_v48  ;;  %v3838_v48 = vld [vmem:[%s6938_s26 + $0x14] sm:$0x1]  ;;  %vm9222_vm11 = vmmov %vm9217_vm9 }
 0x762   : > { %v3769_v58 = vrot.slane %v3767_v56, 1  ;;  %v3772_v52 = vrot.slane %v3770_v11, 2  ;;  %v3775_v23 = vrot.slane %v3773_v38, 3  ;;  %v3777_v14 = vunpack.i.h.s16 %v3765_v29  ;;  %v3847_v11 = vld [vmem:[%s6938_s26 + $0x2c] sm:$0x1] }
 0x763   : > { %v6467_v21 = vpack.i.b16 %v3765_v29, %v3765_v29  ;;  %v3936_v41 = vadd.f32 %v3932_v57, %v3913_v32  ;;  %v3844_v32 = vld [vmem:[%s6938_s26 + $0x24] sm:$0x1]  ;;  %v3841_v29 = vld [vmem:[%s6938_s26 + $0x1c] sm:$0x1] }
 0x764   : > { %v3779_v61 = vunpack.i.h.s16 %v3769_v58  ;;  %v3781_v20 = vunpack.i.h.s16 %v3772_v52  ;;  %v3783_v44 = vunpack.i.h.s16 %v3775_v23  ;;  %v3785_v49 = vpack.i.b16 %v3777_v14, %v3777_v14  ;;  %v3853_v14 = vld [vmem:[%s6938_s26 + $0x3c] sm:$0x1] }
 0x765   : > { %v6468_v19 = vpack.i.b16 %v3769_v58, %v3769_v58  ;;  %v6469_v59 = vpack.i.b16 %v3772_v52, %v3772_v52  ;;  %v6470_v8 = vpack.i.b16 %v3775_v23, %v3775_v23  ;;  %v3795_v45 = vperm.slane %v6467_v21, %v7536_v42  ;;  %v3850_v52 = vld [vmem:[%s6938_s26 + $0x34] sm:$0x1] }
 0x766   : > { %v3787_v31 = vpack.i.b16 %v3779_v61, %v3779_v61  ;;  %v3789_v54 = vpack.i.b16 %v3781_v20, %v3781_v20  ;;  %v3791_v30 = vpack.i.b16 %v3783_v44, %v3783_v44  ;;  %v3799_v4 = vperm.slane %v3785_v49, %v7536_v42  ;;  %v4060_v51 = vpop.f32.mrf.mxu3  ;;  %v6505_v61 = vld [vmem:[%s9168_s1 + $0x2c] sm:$0xf] }
 0x767   : > { %v3803_v27 = vperm.slane %v6468_v19, %v7536_v42  ;;  %v3811_v37 = vperm.slane %v6469_v59, %v7536_v42  ;;  %v3819_v16 = vperm.slane %v6470_v8, %v7536_v42  ;;  %v3833_v46 = vsel %vm7618_vm15, %v3795_v45, %v3832_v39  ;;  %v6511_v59 = vld [vmem:[%s9168_s1 + $0x38] sm:$0xf] }
 0x768   : > { %v3807_v25 = vperm.slane %v3787_v31, %v7536_v42  ;;  %v3815_v18 = vperm.slane %v3789_v54, %v7536_v42  ;;  %v3823_v60 = vperm.slane %v3791_v30, %v7536_v42  ;;  %3834 = vst [vmem:[%s6938_s26 + $0x4] sm:$0x1] %v3833_v46  ;;  %v3836_v6 = vsel %vm7618_vm15, %v3799_v4, %v3835_v22  ;;  %v3934_v1 = vpop.f32.mrf.mxu2  ;;  %v8564_v30 = vpop.permute.xlu2 %4720 }
 0x769   : > { %3837 = vst [vmem:[%s6938_s26 + $0xc] sm:$0x1] %v3836_v6  ;;  %v3839_v57 = vsel %vm7618_vm15, %v3803_v27, %v3838_v48  ;;  %v3845_v56 = vsel %vm7618_vm15, %v3811_v37, %v3844_v32  ;;  %v3962_v38 = vadd.f32 %v8470_v12, %v3936_v41  ;;  %v3851_v23 = vsel %vm7618_vm15, %v3819_v16, %v3850_v52  ;;  %v4574_v48 = vld [vmem:[%s9168_s1] sm:$0xf] }
 0x76a   : > { %3840 = vst [vmem:[%s6938_s26 + $0x14] sm:$0x1] %v3839_v57  ;;  %v3842_v40 = vsel %vm7618_vm15, %v3807_v25, %v3841_v29  ;;  %v3848_v58 = vsel %vm7618_vm15, %v3815_v18, %v3847_v11  ;;  %v3854_v12 = vsel %vm7618_vm15, %v3823_v60, %v3853_v14  ;;  %v4010_v21 = vadd.f32 %v8483_v36, %v8481_v15  ;;  %vm9220_vm15 = vmmov %vm9217_vm9  ;;  %v4581_v15 = vpop.permute.xlu1 %4580  ;;  %v6503_v36 = vld [vmem:[%s9168_s1 + $0x28] sm:$0xf]  ;;  %v6528_v60 = vld [vmem:[%s9168_s1 + $0x4] sm:$0xf] }
 0x76b   : > { %3843 = vst [vmem:[%s6938_s26 + $0x1c] sm:$0x1] %v3842_v40  ;;  %6494 = vmatmul.msk.f32.vlgmr.msrb.gmra.mxu1 %vm9217_vm9, %v3962_v38  ;;  %v4370_v44 = vsel %vm320_vm1, %v4365_v13, 0  ;;  %v8568_v4 = vsel %vm320_vm1, %v7317_v62, 0  ;;  %v4604_v62 = vsel %vm320_vm1, %v7303_v50, 0 }
 0x76c   : > { %3846 = vst [vmem:[%s6938_s26 + $0x24] sm:$0x1] %v3845_v56  ;;  %4405 = vmatpush.bf16.msrb.mxu1 %v4396_v3  ;;  %v4586_v3 = vsel %vm320_vm1, %v4581_v15, 0  ;;  %4633 = vmatpush.bf16.msra.mxu2 %v8568_v4  ;;  %v4191_v15 = vld [vmem:[%s6938_s26 + $0xc] sm:$0x2] }
 0x76d   : > { %3849 = vst [vmem:[%s6938_s26 + $0x2c] sm:$0x1] %v3848_v58 }
 0x76e   : > { %3852 = vst [vmem:[%s6938_s26 + $0x34] sm:$0x1] %v3851_v23  ;;  %v4062_v41 = vpop.f32.mrf.mxu3 }
 0x76f   : > { %3855 = vst [vmem:[%s6938_s26 + $0x3c] sm:$0x1] %v3854_v12 }
 0x770   : > { %v4034_v2 = vpop.f32.mrf.mxu2  ;;  %v4696_v46 = vpop.permute.xlu2 %4695 }
 0x771   : > { %v4038_v20 = vadd.f32 %v4034_v2, %v4010_v21  ;;  %v4701_v17 = vsel %vm320_vm1, %v4696_v46, 0 }
 0x772   : > { %v4672_v19 = vpop.permute.xlu1 %4671 }
 0x773   : > { %v4064_v49 = vadd.f32 %v4060_v51, %v4038_v20  ;;  %6506 = vmatmul.msk.bf16.vlgmr.msra.gmra.mxu1 %vm316_vm2, %v6505_v61  ;;  %v4677_v8 = vsel %vm320_vm1, %v4672_v19, 0  ;;  %v4188_v20 = vld [vmem:[%s6938_s26 + $0x4] sm:$0x2]  ;;  %v4194_v19 = vld [vmem:[%s6938_s26 + $0x14] sm:$0x2] }
 0x774   : > { %4613 = vmatpush.bf16.msra.mxu1 %v4604_v62  ;;  %v4752_v62 = vsel %vm320_vm1, %v7505_v63, 0 }
 0x775   : > { %6493 = vmatmul.msk.f32.vlgmr.msrb.gmra.mxu0 %vm9220_vm15, %v4064_v49 }
 0x776   : > { %4379 = vmatpush.bf16.msrb.mxu0 %v4370_v44  ;;  %v4259_v54 = vpop.f32.mrf.mxu3 }
 0x778   : > { %v4036_v5 = vpop.f32.mrf.mxu2 }
 0x77d   : > { %6504 = vmatmul.msk.bf16.vlgmr.msra.gmra.mxu0 %vm316_vm2, %v6503_v36 }
 0x77e   : > { %4595 = vmatpush.bf16.msra.mxu0 %v4586_v3  ;;  %v4261_v27 = vpop.f32.mrf.mxu3 }
 0x77f   : > { %v4203_v27 = vld [vmem:[%s6938_s26 + $0x2c] sm:$0x2] }
 0x780   : > { %v4243_v31 = vpop.f32.mrf.mxu2 }
 0x781   : > { %v4260_v1 = vadd.f32 %v4259_v54, %v4243_v31 }
 0x783   : > { %6514 = vmatmul.msk.bf16.vlgmr.msrb.gmra.mxu1 %vm316_vm2, %v6513_v34 }
 0x784   : > { %4710 = vmatpush.bf16.msrb.mxu1 %v4701_v17 }
 0x786   : > { %v8587_v56 = vpop.f32.mrf.mxu3 }
 0x788   : > { %v4245_v51 = vpop.f32.mrf.mxu2 }
 0x789   : > { %v4197_v51 = vld [vmem:[%s6938_s26 + $0x1c] sm:$0x2] }
 0x78d   : > { %6512 = vmatmul.msk.bf16.vlgmr.msrb.gmra.mxu0 %vm316_vm2, %v6511_v59  ;;  %v4200_v59 = vld [vmem:[%s6938_s26 + $0x24] sm:$0x2] }
 0x78e   : > { %4686 = vmatpush.bf16.msrb.mxu0 %v4677_v8 }
 0x790   : > { %v8585_v29 = vpop.f32.mrf.mxu2 }
 0x793   : > { %6530 = vmatmul.msk.bf16.vlgmr.msra.gmra.mxu1 %vm316_vm2, %v4574_v48  ;;  %v4209_v48 = vld [vmem:[%s6938_s26 + $0x3c] sm:$0x2] }
 0x794   : > { %4812 = vmatpush.msra.mxu1 %v8217_v55 }
 0x796   : > { %4813 = vmatpush.msra.mxu1 %v8224_v0 }
 0x79d   : > { %6529 = vmatmul.msk.bf16.vlgmr.msra.gmra.mxu0 %vm316_vm2, %v6528_v60 }
 0x79e   : > { %4789 = vmatpush.msra.mxu0 %v8230_v43 }
 0x7a0   : > { %4790 = vmatpush.msra.mxu0 %v8235_v10 }
 0x7e8   : > { %v4112_v45 = vpop.f32.mrf.mxu1 }
 0x7f0   : > { %v8570_v39 = vpop.f32.mrf.mxu1 }
 0x7f2   : > { %v4089_v37 = vpop.f32.mrf.mxu0 }
 0x7f3   : > { %v4113_v16 = vadd.f32 %v4112_v45, %v4089_v37  ;;  %v4334_v37 = vpop.f32.mrf.mxu2 }
 0x7f5   : > { %v4115_v22 = vadd.f32 %v4113_v16, %v7525_v53  ;;  %v4358_v16 = vpop.f32.mrf.mxu3 }
 0x7f7   : > { %v4116_v33 = vpack.c.bf16 %v4115_v22, %v4115_v22  ;;  %v4212_v25 = vsel %vm671_vm5, %v4115_v22, 0.0  ;;  %v4216_v18 = vmul.f32 %v4115_v22, %v4115_v22 }
 0x7f8   : > { %4213 = vadd.xlane.f32.xlu0 %v4212_v25  ;;  %v4307_v6 = vpop.f32.mrf.mxu1  ;;  %v4206_v25 = vld [vmem:[%s6938_s26 + $0x34] sm:$0x2] }
 0x7f9   : > { %v4118_v32 = vrot.slane %v4116_v33, 3  ;;  %v4217_v57 = vsel %vm671_vm5, %v4216_v18, 0.0 }
 0x7fa   : > { %v4279_v50 = vpop.f32.mrf.mxu0  ;;  %4218 = vadd.xlane.f32.xlu1 %v4217_v57 }
 0x7fb   : > { %v4121_v11 = vsel %vm571_vm4, %v4116_v33, %v4118_v32  ;;  %v4123_v38 = vsel %vm576_vm6, %v4116_v33, %v4118_v32  ;;  %v4126_v40 = vsel %vm9221_vm12, %v4116_v33, %v4118_v32  ;;  %v4129_v58 = vsel %vm584_vm8, %v4116_v33, %v4118_v32 }
 0x7fc   : > { %v4125_v52 = vrot.slane %v4123_v38, 1  ;;  %v4128_v23 = vrot.slane %v4126_v40, 2  ;;  %v4131_v14 = vrot.slane %v4129_v58, 3  ;;  %v4133_v12 = vunpack.i.h.s16 %v4121_v11  ;;  %v4992_v38 = vpop.permute.xlu1 %4991  ;;  %v6535_v58 = vld [vmem:[%s9168_s1 + $0x10] sm:$0xf] }
 0x7fd   : > { %v6495_v43 = vpack.i.b16 %v4121_v11, %v4121_v11  ;;  %v4283_v21 = vadd.f32 %v4279_v50, %v4260_v1  ;;  %v6536_v11 = vld [vmem:[%s9168_s1 + $0x14] sm:$0xf]  ;;  %6538 = vmatmul.msk.bf16.vlgmr.msrb.gmra.mxu1 %vm316_vm2, %v6535_v58 }
 0x7fe   : > { %v4135_v41 = vunpack.i.h.s16 %v4125_v52  ;;  %v4137_v13 = vunpack.i.h.s16 %v4128_v23  ;;  %v4139_v2 = vunpack.i.h.s16 %v4131_v14  ;;  %v4141_v61 = vpack.i.b16 %v4133_v12, %v4133_v12  ;;  %6537 = vmatmul.msk.bf16.vlgmr.msrb.gmra.mxu0 %vm316_vm2, %v6536_v11 }
 0x7ff   : > { %v6496_v44 = vpack.i.b16 %v4125_v52, %v4125_v52  ;;  %v6497_v49 = vpack.i.b16 %v4128_v23, %v4128_v23  ;;  %v6498_v5 = vpack.i.b16 %v4131_v14, %v4131_v14  ;;  %v4151_v55 = vperm.slane %v6495_v43, %v7536_v42  ;;  %v6531_v43 = vld [vmem:[%s9168_s1 + $0x8] sm:$0xf] }
 0x800   : > { %v4143_v10 = vpack.i.b16 %v4135_v41, %v4135_v41  ;;  %v4145_v36 = vpack.i.b16 %v4137_v13, %v4137_v13  ;;  %v4147_v3 = vpack.i.b16 %v4139_v2, %v4139_v2  ;;  %v4155_v34 = vperm.slane %v4141_v61, %v7536_v42  ;;  %v4407_v8 = vpop.f32.mrf.mxu1  ;;  %v9224_v41 = vld [vmem:[#allocation15_spill] sm:$0xff]  ;;  %v5019_v13 = vpop.permute.xlu2 %5018  ;;  %v6539_v2 = vld [vmem:[%s9168_s1 + $0x18] sm:$0xf] }
 0x801   : > { %v4159_v0 = vperm.slane %v6496_v44, %v7536_v42  ;;  %v4167_v45 = vperm.slane %v6497_v49, %v7536_v42  ;;  %v4175_v31 = vperm.slane %v6498_v5, %v7536_v42  ;;  %v4189_v54 = vsel %vm7694_vm0, %v4151_v55, %v4188_v20  ;;  %v6552_v49 = vld [vmem:[%s9168_s1 + $0x24] sm:$0xf]  ;;  %v6551_v5 = vld [vmem:[%s9168_s1 + $0x20] sm:$0xf]  ;;  %v9225_v55 = vld [vmem:[#allocation11_spill] sm:$0xff] }
 0x802   : > { %v4163_v46 = vperm.slane %v4143_v10, %v7536_v42  ;;  %v4171_v22 = vperm.slane %v4145_v36, %v7536_v42  ;;  %v4179_v17 = vperm.slane %v4147_v3, %v7536_v42  ;;  %4190 = vst [vmem:[%s6938_s26 + $0x4] sm:$0x2] %v4189_v54  ;;  %v4192_v33 = vsel %vm7694_vm0, %v4155_v34, %v4191_v15  ;;  %v4281_v18 = vpop.f32.mrf.mxu0 }
 0x803   : > { %4193 = vst [vmem:[%s6938_s26 + $0xc] sm:$0x2] %v4192_v33  ;;  %v4195_v60 = vsel %vm7694_vm0, %v4159_v0, %v4194_v19  ;;  %v4201_v6 = vsel %vm7694_vm0, %v4167_v45, %v4200_v59  ;;  %v4309_v32 = vadd.f32 %v8570_v39, %v4283_v21  ;;  %v4207_v63 = vsel %vm7694_vm0, %v4175_v31, %v4206_v25 }
 0x804   : > { %4196 = vst [vmem:[%s6938_s26 + $0x14] sm:$0x2] %v4195_v60  ;;  %v4198_v1 = vsel %vm7694_vm0, %v4163_v46, %v4197_v51  ;;  %v4204_v57 = vsel %vm7694_vm0, %v4171_v22, %v4203_v27  ;;  %v4210_v50 = vsel %vm7694_vm0, %v4179_v17, %v4209_v48  ;;  %v4357_v39 = vadd.f32 %v8587_v56, %v8585_v29  ;;  %v6533_v29 = vld [vmem:[%s9168_s1 + $0xc] sm:$0xf]  ;;  %vm9223_vm0 = vmmov %vm9217_vm9 }
 0x805   : > { %4199 = vst [vmem:[%s6938_s26 + $0x1c] sm:$0x2] %v4198_v1  ;;  %6518 = vmatmul.msk.f32.vlgmr.msrb.gmra.mxu3 %vm9222_vm11, %v4309_v32  ;;  %v4997_v52 = vsel %vm320_vm1, %v4992_v38, 0  ;;  %v4726_v23 = vsel %vm320_vm1, %v8564_v30, 0  ;;  %v4935_v21 = vsel %vm320_vm1, %v7507_v7, 0  ;;  %v5024_v7 = vsel %vm320_vm1, %v5019_v13, 0  ;;  %vm9226_vm9 = vmmov %vm9221_vm12 }
 0x806   : > { %4202 = vst [vmem:[%s6938_s26 + $0x24] sm:$0x2] %v4201_v6  ;;  %4761 = vmatpush.bf16.msrb.mxu3 %v4752_v62  ;;  %5006 = vmatpush.bf16.msrb.mxu1 %v4997_v52  ;;  %v6541_v30 = vld [vmem:[%s9168_s1 + $0x1c] sm:$0xf]  ;;  %v4971_v15 = vsel %vm320_vm1, %v9225_v55, 0  ;;  %vm9227_vm15 = vmmov %vm9223_vm0 }
 0x807   : > { %4205 = vst [vmem:[%s6938_s26 + $0x2c] sm:$0x2] %v4204_v57  ;;  %4980 = vmatpush.bf16.msrb.mxu0 %v4971_v15  ;;  %vm9232_vm12 = vmmov %vm9226_vm9 }
 0x808   : > { %4208 = vst [vmem:[%s6938_s26 + $0x34] sm:$0x2] %v4207_v63  ;;  %v4409_v40 = vpop.f32.mrf.mxu1  ;;  %v5094_v18 = vpop.permute.xlu2 %5093  ;;  %v6560_v63 = vld [vmem:[%s9168_s1 + $0x34] sm:$0xf]  ;;  %vm9234_vm11 = vmmov %vm9223_vm0 }
 0x809   : > { %4211 = vst [vmem:[%s6938_s26 + $0x3c] sm:$0x2] %v4210_v50  ;;  %v5099_v32 = vsel %vm320_vm1, %v5094_v18, 0  ;;  %v6559_v40 = vld [vmem:[%s9168_s1 + $0x30] sm:$0xf] }
 0x80a   : > { %v4381_v35 = vpop.f32.mrf.mxu0 }
 0x80b   : > { %v4385_v56 = vadd.f32 %v4381_v35, %v4357_v39  ;;  %v4541_v55 = vld [vmem:[%s6938_s26 + $0x14] sm:$0x2] }
 0x80d   : > { %v4411_v14 = vadd.f32 %v4407_v8, %v4385_v56  ;;  %6534 = vmatmul.msk.bf16.vlgmr.msra.gmra.mxu3 %vm316_vm2, %v6533_v29  ;;  %v4547_v15 = vld [vmem:[%s6938_s26 + $0x24] sm:$0x2] }
 0x80e   : > { %4960 = vmatpush.bf16.msra.mxu3 %v8568_v4  ;;  %v5048_v4 = vsel %vm320_vm1, %v9224_v41, 0 }
 0x80f   : > { %6517 = vmatmul.msk.f32.vlgmr.msrb.gmra.mxu2 %vm9223_vm0, %v4411_v14 }
 0x810   : > { %4735 = vmatpush.bf16.msrb.mxu2 %v4726_v23  ;;  %v4615_v44 = vpop.f32.mrf.mxu1 }
 0x812   : > { %v4383_v12 = vpop.f32.mrf.mxu0 }
 0x817   : > { %6532 = vmatmul.msk.bf16.vlgmr.msra.gmra.mxu2 %vm316_vm2, %v6531_v43  ;;  %v4535_v43 = vld [vmem:[%s6938_s26 + $0x4] sm:$0x2] }
 0x818   : > { %4944 = vmatpush.bf16.msra.mxu2 %v4935_v21  ;;  %v4617_v3 = vpop.f32.mrf.mxu1 }
 0x81a   : > { %v4597_v20 = vpop.f32.mrf.mxu0 }
 0x81b   : > { %v4616_v51 = vadd.f32 %v4615_v44, %v4597_v20 }
 0x81d   : > { %6542 = vmatmul.msk.bf16.vlgmr.msrb.gmra.mxu3 %vm316_vm2, %v6541_v30 }
 0x81e   : > { %5057 = vmatpush.bf16.msrb.mxu3 %v5048_v4 }
 0x822   : > { %v4599_v36 = vpop.f32.mrf.mxu0 }
 0x827   : > { %6540 = vmatmul.msk.bf16.vlgmr.msrb.gmra.mxu2 %vm316_vm2, %v6539_v2  ;;  %v4538_v2 = vld [vmem:[%s6938_s26 + $0xc] sm:$0x2] }
 0x828   : > { %5033 = vmatpush.bf16.msrb.mxu2 %v5024_v7 }
 0x82d   : > { %6554 = vmatmul.msk.bf16.vlgmr.msra.gmra.mxu3 %vm316_vm2, %v6551_v5 }
 0x837   : > { %6553 = vmatmul.msk.bf16.vlgmr.msra.gmra.mxu2 %vm316_vm2, %v6552_v49 }
 0x83d   : > { %6562 = vmatmul.msk.bf16.vlgmr.msrb.gmra.mxu3 %vm316_vm2, %v6559_v40  ;;  %v8783_v40 = vpop.permute.xlu2 %5423 }
 0x847   : > { %6561 = vmatmul.msk.bf16.vlgmr.msrb.gmra.mxu2 %vm316_vm2, %v6560_v63 }
 0x87a   : > { %v8696_v16 = vpop.f32.mrf.mxu1 }
 0x87b   : > { %v8694_v37 = vpop.f32.mrf.mxu0 }
 0x883   : > { %v4690_v7 = vpop.f32.mrf.mxu0 }
 0x888   : > { %v4459_v61 = vpop.f32.mrf.mxu3 }
 0x890   : > { %v8687_v10 = vpop.f32.mrf.mxu3 }
 0x892   : > { %v4436_v34 = vpop.f32.mrf.mxu2 }
 0x893   : > { %v4460_v19 = vadd.f32 %v4459_v61, %v4436_v34  ;;  %v4714_v61 = vpop.f32.mrf.mxu1  ;;  %v4544_v34 = vld [vmem:[%s6938_s26 + $0x1c] sm:$0x2] }
 0x894   : > { %v9231_v61 = vld [vmem:[#allocation12_spill] sm:$0xff] }
 0x895   : > { %v4462_v59 = vadd.f32 %v4460_v19, %v7525_v53 }
 0x897   : > { %v4463_v8 = vpack.c.bf16 %v4462_v59, %v4462_v59  ;;  %v4559_v0 = vsel %vm671_vm5, %v4462_v59, 0.0  ;;  %v4563_v45 = vmul.f32 %v4462_v59, %v4462_v59  ;;  %v4550_v59 = vld [vmem:[%s6938_s26 + $0x2c] sm:$0x2] }
 0x898   : > { %4560 = vadd.xlane.f32.xlu2 %v4559_v0  ;;  %v4663_v31 = vpop.f32.mrf.mxu3 }
 0x899   : > { %v4465_v54 = vrot.slane %v4463_v8, 3  ;;  %v4564_v27 = vsel %vm671_vm5, %v4563_v45, 0.0  ;;  %v4553_v31 = vld [vmem:[%s6938_s26 + $0x34] sm:$0x2] }
 0x89a   : > { %v4635_v46 = vpop.f32.mrf.mxu2  ;;  %4565 = vadd.xlane.f32.xlu0 %v4564_v27  ;;  %v4713_v27 = vadd.f32 %v8696_v16, %v8694_v37  ;;  %v6555_v16 = vld [vmem:[%s9168_s1 + $0x28] sm:$0xf] }
 0x89b   : > { %v4468_v22 = vsel %vm571_vm4, %v4463_v8, %v4465_v54  ;;  %v4470_v17 = vsel %vm576_vm6, %v4463_v8, %v4465_v54  ;;  %v4473_v33 = vsel %vm9226_vm9, %v4463_v8, %v4465_v54  ;;  %v4476_v25 = vsel %vm584_vm8, %v4463_v8, %v4465_v54 }
 0x89c   : > { %v4472_v62 = vrot.slane %v4470_v17, 1  ;;  %v4475_v60 = vrot.slane %v4473_v33, 2  ;;  %v4478_v6 = vrot.slane %v4476_v25, 3  ;;  %v4480_v48 = vunpack.i.h.s16 %v4468_v22  ;;  %v6557_v33 = vld [vmem:[%s9168_s1 + $0x2c] sm:$0xf] }
 0x89d   : > { %v6519_v1 = vpack.i.b16 %v4468_v22, %v4468_v22  ;;  %v4639_v57 = vadd.f32 %v4635_v46, %v4616_v51  ;;  %v4556_v51 = vld [vmem:[%s6938_s26 + $0x3c] sm:$0x2]  ;;  %v5068_v22 = vpop.permute.xlu1 %5067 }
 0x89e   : > { %v4482_v50 = vunpack.i.h.s16 %v4472_v62  ;;  %v4484_v39 = vunpack.i.h.s16 %v4475_v60  ;;  %v4486_v11 = vunpack.i.h.s16 %v4478_v6  ;;  %v4488_v38 = vpack.i.b16 %v4480_v48, %v4480_v48 }
 0x89f   : > { %v6520_v58 = vpack.i.b16 %v4472_v62, %v4472_v62  ;;  %v6521_v52 = vpack.i.b16 %v4475_v60, %v4475_v60  ;;  %v6522_v35 = vpack.i.b16 %v4478_v6, %v4478_v6  ;;  %v4498_v29 = vperm.slane %v6519_v1, %v7536_v42  ;;  %v6565_v6 = vld [vmem:[%s9168_s1 + $0x3c] sm:$0xf] }
 0x8a0   : > { %v4490_v56 = vpack.i.b16 %v4482_v50, %v4482_v50  ;;  %v4492_v23 = vpack.i.b16 %v4484_v39, %v4484_v39  ;;  %v4494_v14 = vpack.i.b16 %v4486_v11, %v4486_v11  ;;  %v4502_v12 = vperm.slane %v4488_v38, %v7536_v42  ;;  %v4763_v21 = vpop.f32.mrf.mxu3  ;;  %v8778_v39 = vld [vmem:[%s9169_s2 + $0x8] sm:$0xff]  ;;  %v9229_v11 = vld [vmem:[#allocation16_spill] sm:$0xff] }
 0x8a1   : > { %v4506_v30 = vperm.slane %v6520_v58, %v7536_v42  ;;  %v4514_v41 = vperm.slane %v6521_v52, %v7536_v42  ;;  %v4522_v4 = vperm.slane %v6522_v35, %v7536_v42  ;;  %v4536_v13 = vsel %vm7793_vm10, %v4498_v29, %v4535_v43  ;;  %5159 = vmatpush.msra.mxu3 %v8778_v39  ;;  %v8788_v58 = vld [vmem:[%s9169_s2] sm:$0xff]  ;;  %v8794_v52 = vld [vmem:[%s9169_s2 + $0x18] sm:$0xff]  ;;  %v8799_v35 = vld [vmem:[%s9169_s2 + $0x10] sm:$0xff] }
 0x8a2   : > { %v4510_v20 = vperm.slane %v4490_v56, %v7536_v42  ;;  %v4518_v44 = vperm.slane %v4492_v23, %v7536_v42  ;;  %v4526_v49 = vperm.slane %v4494_v14, %v7536_v42  ;;  %4537 = vst [vmem:[%s6938_s26 + $0x4] sm:$0x2] %v4536_v13  ;;  %v4539_v5 = vsel %vm7793_vm10, %v4502_v12, %v4538_v2  ;;  %v4637_v36 = vpop.f32.mrf.mxu2  ;;  %v9230_v29 = vld [vmem:[#allocation13_spill] sm:$0xff] }
 0x8a3   : > { %4540 = vst [vmem:[%s6938_s26 + $0xc] sm:$0x2] %v4539_v5  ;;  %v4542_v3 = vsel %vm7793_vm10, %v4506_v30, %v4541_v55  ;;  %v4548_v19 = vsel %vm7793_vm10, %v4514_v41, %v4547_v15  ;;  %v4665_v8 = vadd.f32 %v8687_v10, %v4639_v57  ;;  %v4554_v54 = vsel %vm7793_vm10, %v4522_v4, %v4553_v31  ;;  %v5399_v30 = vpop.permute.xlu2 %5398  ;;  %v5277_v5 = vld [vmem:[%s9168_s1] sm:$0xf] }
 0x8a4   : > { %4543 = vst [vmem:[%s6938_s26 + $0x14] sm:$0x2] %v4542_v3  ;;  %v4545_v0 = vsel %vm7793_vm10, %v4510_v20, %v4544_v34  ;;  %v4551_v45 = vsel %vm7793_vm10, %v4518_v44, %v4550_v59  ;;  %v4557_v10 = vsel %vm7793_vm10, %v4526_v49, %v4556_v51  ;;  %v5073_v18 = vsel %vm320_vm1, %v5068_v22, 0  ;;  %vm9228_vm10 = vmmov %vm9223_vm0  ;;  %5160 = vmatpush.msra.mxu3 %v8788_v58  ;;  %v6580_v44 = vld [vmem:[%s9168_s1 + $0x4] sm:$0xf] }
 0x8a5   : > { %4546 = vst [vmem:[%s6938_s26 + $0x1c] sm:$0x2] %v4545_v0  ;;  %6546 = vmatmul.msk.f32.vlgmr.msra.gmra.mxu1 %vm9227_vm15, %v4665_v8  ;;  %v5284_v37 = vpop.permute.xlu1 %5283  ;;  %v5353_v38 = vsel %vm320_vm1, %v9229_v11, 0  ;;  %5136 = vmatpush.msra.mxu2 %v8794_v52  ;;  %v8804_v56 = vsel %vm320_vm1, %v9230_v29, 0  ;;  %v5404_v4 = vsel %vm320_vm1, %v5399_v30, 0  ;;  %v5307_v20 = vsel %vm320_vm1, %v9231_v61, 0 }
 0x8a6   : > { %4549 = vst [vmem:[%s6938_s26 + $0x24] sm:$0x2] %v4548_v19  ;;  %5108 = vmatpush.bf16.msra.mxu1 %v5099_v32  ;;  %v5289_v60 = vsel %vm320_vm1, %v5284_v37, 0  ;;  %v6563_v32 = vld [vmem:[%s9168_s1 + $0x38] sm:$0xf]  ;;  %5362 = vmatpush.bf16.msrb.mxu3 %v5353_v38 }
 0x8a7   : > { %4552 = vst [vmem:[%s6938_s26 + $0x2c] sm:$0x2] %v4551_v45  ;;  %5137 = vmatpush.msra.mxu2 %v8799_v35 }
 0x8a8   : > { %4555 = vst [vmem:[%s6938_s26 + $0x34] sm:$0x2] %v4554_v54  ;;  %v4765_v46 = vpop.f32.mrf.mxu3 }
 0x8a9   : > { %4558 = vst [vmem:[%s6938_s26 + $0x3c] sm:$0x2] %v4557_v10  ;;  %5336 = vmatpush.bf16.msrb.mxu2 %v8804_v56 }
 0x8aa   : > { %v4737_v17 = vpop.f32.mrf.mxu2 }
 0x8ab   : > { %v4741_v25 = vadd.f32 %v4737_v17, %v4713_v27 }
 0x8ad   : > { %v4767_v62 = vadd.f32 %v4763_v21, %v4741_v25  ;;  %6558 = vmatmul.msk.bf16.vlgmr.msrb.gmra.mxu1 %vm316_vm2, %v6557_v33  ;;  %v5375_v48 = vpop.permute.xlu1 %5374 }
 0x8ae   : > { %v5380_v1 = vsel %vm320_vm1, %v5375_v48, 0  ;;  %5316 = vmatpush.bf16.msrb.mxu1 %v5307_v20  ;;  %v9233_v20 = vld [vmem:[#allocation17_spill] sm:$0xff] }
 0x8af   : > { %6545 = vmatmul.msk.f32.vlgmr.msra.gmra.mxu0 %vm9228_vm10, %v4767_v62 }
 0x8b0   : > { %5082 = vmatpush.bf16.msra.mxu0 %v5073_v18  ;;  %v4962_v50 = vpop.f32.mrf.mxu3  ;;  %v4891_v18 = vld [vmem:[%s6938_s26 + $0x4] sm:$0x4] }
 0x8b2   : > { %v4739_v47 = vpop.f32.mrf.mxu2 }
 0x8b7   : > { %6556 = vmatmul.msk.bf16.vlgmr.msrb.gmra.mxu0 %vm316_vm2, %v6555_v16 }
 0x8b8   : > { %5298 = vmatpush.bf16.msrb.mxu0 %v5289_v60  ;;  %v4964_v12 = vpop.f32.mrf.mxu3  ;;  %v4894_v60 = vld [vmem:[%s6938_s26 + $0xc] sm:$0x4] }
 0x8b9   : > { %v4900_v12 = vld [vmem:[%s6938_s26 + $0x1c] sm:$0x4] }
 0x8ba   : > { %v4946_v63 = vpop.f32.mrf.mxu2 }
 0x8bb   : > { %v4963_v15 = vadd.f32 %v4962_v50, %v4946_v63  ;;  %v4903_v63 = vld [vmem:[%s6938_s26 + $0x24] sm:$0x4] }
 0x8bd   : > { %6566 = vmatmul.msk.bf16.vlgmr.msra.gmra.mxu1 %vm316_vm2, %v6565_v6 }
 0x8be   : > { %5413 = vmatpush.bf16.msra.mxu1 %v5404_v4 }
 0x8c0   : > { %v8824_v34 = vpop.f32.mrf.mxu3 }
 0x8c2   : > { %v4948_v14 = vpop.f32.mrf.mxu2 }
 0x8c7   : > { %6564 = vmatmul.msk.bf16.vlgmr.msra.gmra.mxu0 %vm316_vm2, %v6563_v32 }
 0x8c8   : > { %5389 = vmatpush.bf16.msra.mxu0 %v5380_v1  ;;  %v5061_v30 = vpop.f32.mrf.mxu3 }
 0x8ca   : > { %v8822_v3 = vpop.f32.mrf.mxu2 }
 0x8cd   : > { %6582 = vmatmul.msk.bf16.vlgmr.msrb.gmra.mxu1 %vm316_vm2, %v5277_v5 }
 0x8ce   : > { %5515 = vmatpush.msrb.mxu1 %v8778_v39 }
 0x8d0   : > { %5516 = vmatpush.msrb.mxu1 %v8788_v58 }
 0x8d7   : > { %6581 = vmatmul.msk.bf16.vlgmr.msrb.gmra.mxu0 %vm316_vm2, %v6580_v44  ;;  %v5455_v44 = vsel %vm320_vm1, %v9233_v20, 0 }
 0x8d8   : > { %5492 = vmatpush.msrb.mxu0 %v8794_v52 }
 0x8da   : > { %5493 = vmatpush.msrb.mxu0 %v8799_v35 }
 0x922   : > { %v4815_v57 = vpop.f32.mrf.mxu1 }
 0x92a   : > { %v8806_v23 = vpop.f32.mrf.mxu1 }
 0x92c   : > { %v4792_v43 = vpop.f32.mrf.mxu0 }
 0x92d   : > { %v4816_v21 = vadd.f32 %v4815_v57, %v4792_v43  ;;  %v4897_v57 = vld [vmem:[%s6938_s26 + $0x14] sm:$0x4]  ;;  %v4906_v43 = vld [vmem:[%s6938_s26 + $0x2c] sm:$0x4] }
 0x92f   : > { %v4818_v41 = vadd.f32 %v4816_v21, %v7525_v53  ;;  %v5037_v21 = vpop.f32.mrf.mxu2 }
 0x931   : > { %v4819_v13 = vpack.c.bf16 %v4818_v41, %v4818_v41  ;;  %v4915_v2 = vsel %vm671_vm5, %v4818_v41, 0.0  ;;  %v4919_v7 = vmul.f32 %v4818_v41, %v4818_v41 }
 0x932   : > { %4916 = vadd.xlane.f32.xlu1 %v4915_v2  ;;  %v5010_v49 = vpop.f32.mrf.mxu1 }
 0x933   : > { %v4821_v55 = vrot.slane %v4819_v13, 3  ;;  %v4920_v36 = vsel %vm671_vm5, %v4919_v7, 0.0  ;;  %v4909_v7 = vld [vmem:[%s6938_s26 + $0x34] sm:$0x4] }
 0x934   : > { %v4982_v19 = vpop.f32.mrf.mxu0  ;;  %4921 = vadd.xlane.f32.xlu2 %v4920_v36 }
 0x935   : > { %v4824_v59 = vsel %vm571_vm4, %v4819_v13, %v4821_v55  ;;  %v4826_v8 = vsel %vm576_vm6, %v4819_v13, %v4821_v55  ;;  %v4829_v0 = vsel %vm9232_vm12, %v4819_v13, %v4821_v55  ;;  %v4832_v45 = vsel %vm584_vm8, %v4819_v13, %v4821_v55  ;;  %v4912_v55 = vld [vmem:[%s6938_s26 + $0x3c] sm:$0x4] }
 0x936   : > { %v4828_v31 = vrot.slane %v4826_v8, 1  ;;  %v4831_v54 = vrot.slane %v4829_v0, 2  ;;  %v4834_v51 = vrot.slane %v4832_v45, 3  ;;  %v4836_v10 = vunpack.i.h.s16 %v4824_v59  ;;  %v6588_v0 = vld [vmem:[%s9168_s1 + $0x14] sm:$0xf]  ;;  %v5695_v45 = vpop.permute.xlu1 %5694 }
 0x937   : > { %v6547_v27 = vpack.i.b16 %v4824_v59, %v4824_v59  ;;  %v4986_v46 = vadd.f32 %v4982_v19, %v4963_v15  ;;  %6589 = vmatmul.msk.bf16.vlgmr.msra.gmra.mxu0 %vm316_vm2, %v6588_v0 }
 0x938   : > { %v4838_v22 = vunpack.i.h.s16 %v4828_v31  ;;  %v4840_v17 = vunpack.i.h.s16 %v4831_v54  ;;  %v4842_v33 = vunpack.i.h.s16 %v4834_v51  ;;  %v4844_v25 = vpack.i.b16 %v4836_v10, %v4836_v10 }
 0x939   : > { %v6548_v62 = vpack.i.b16 %v4828_v31, %v4828_v31  ;;  %v6549_v47 = vpack.i.b16 %v4831_v54, %v4831_v54  ;;  %v6550_v37 = vpack.i.b16 %v4834_v51, %v4834_v51  ;;  %v4854_v16 = vperm.slane %v6547_v27, %v7536_v42  ;;  %v6587_v54 = vld [vmem:[%s9168_s1 + $0x10] sm:$0xf] }
 0x93a   : > { %v4846_v6 = vpack.i.b16 %v4838_v22, %v4838_v22  ;;  %v4848_v48 = vpack.i.b16 %v4840_v17, %v4840_v17  ;;  %v4850_v32 = vpack.i.b16 %v4842_v33, %v4842_v33  ;;  %v4858_v1 = vperm.slane %v4844_v25, %v7536_v42  ;;  %v5110_v50 = vpop.f32.mrf.mxu1  ;;  %6590 = vmatmul.msk.bf16.vlgmr.msra.gmra.mxu1 %vm316_vm2, %v6587_v54  ;;  %v6583_v22 = vld [vmem:[%s9168_s1 + $0x8] sm:$0xf]  ;;  %v9236_v17 = vld [vmem:[#allocation18_spill] sm:$0xff] }
 0x93b   : > { %v4862_v11 = vperm.slane %v6548_v62, %v7536_v42  ;;  %v4870_v38 = vperm.slane %v6549_v47, %v7536_v42  ;;  %v4878_v29 = vperm.slane %v6550_v37, %v7536_v42  ;;  %v4892_v14 = vsel %vm7904_vm14, %v4854_v16, %v4891_v18  ;;  %v9237_v25 = vld [vmem:[#allocation19_spill] sm:$0xff]  ;;  %v5722_v18 = vpop.permute.xlu2 %5721  ;;  %v6591_v62 = vld [vmem:[%s9168_s1 + $0x18] sm:$0xf] }
 0x93c   : > { %v4866_v41 = vperm.slane %v4846_v6, %v7536_v42  ;;  %v4874_v4 = vperm.slane %v4848_v48, %v7536_v42  ;;  %v4882_v13 = vperm.slane %v4850_v32, %v7536_v42  ;;  %4893 = vst [vmem:[%s6938_s26 + $0x4] sm:$0x4] %v4892_v14  ;;  %v4895_v2 = vsel %vm7904_vm14, %v4858_v1, %v4894_v60  ;;  %v4984_v61 = vpop.f32.mrf.mxu0  ;;  %v6604_v6 = vld [vmem:[%s9168_s1 + $0x24] sm:$0xf]  ;;  %v6603_v48 = vld [vmem:[%s9168_s1 + $0x20] sm:$0xf] }
 0x93d   : > { %4896 = vst [vmem:[%s6938_s26 + $0xc] sm:$0x4] %v4895_v2  ;;  %v4898_v49 = vsel %vm7904_vm14, %v4862_v11, %v4897_v57  ;;  %v4904_v5 = vsel %vm7904_vm14, %v4870_v38, %v4903_v63  ;;  %v5012_v15 = vadd.f32 %v8806_v23, %v4986_v46  ;;  %v4910_v59 = vsel %vm7904_vm14, %v4878_v29, %v4909_v7  ;;  %v9238_v32 = vld [vmem:[#allocation14_spill] sm:$0xff] }
 0x93e   : > { %4899 = vst [vmem:[%s6938_s26 + $0x14] sm:$0x4] %v4898_v49  ;;  %v4901_v36 = vsel %vm7904_vm14, %v4866_v41, %v4900_v12  ;;  %v4907_v19 = vsel %vm7904_vm14, %v4874_v4, %v4906_v43  ;;  %v4913_v8 = vsel %vm7904_vm14, %v4882_v13, %v4912_v55  ;;  %v5060_v23 = vadd.f32 %v8824_v34, %v8822_v3  ;;  %v6585_v3 = vld [vmem:[%s9168_s1 + $0xc] sm:$0xf]  ;;  %vm9235_vm14 = vmmov %vm9223_vm0 }
 0x93f   : > { %4902 = vst [vmem:[%s6938_s26 + $0x1c] sm:$0x4] %v4901_v36  ;;  %6570 = vmatmul.msk.f32.vlgmr.msra.gmra.mxu3 %vm9234_vm11, %v5012_v15  ;;  %v5700_v51 = vsel %vm320_vm1, %v5695_v45, 0  ;;  %v5429_v10 = vsel %vm320_vm1, %v8783_v40, 0  ;;  %v5638_v33 = vsel %vm320_vm1, %v9236_v17, 0  ;;  %v5727_v47 = vsel %vm320_vm1, %v5722_v18, 0  ;;  %vm9239_vm0 = vmmov %vm9226_vm9 }
 0x940   : > { %4905 = vst [vmem:[%s6938_s26 + $0x24] sm:$0x4] %v4904_v5  ;;  %5464 = vmatpush.bf16.msra.mxu3 %v5455_v44  ;;  %5709 = vmatpush.bf16.msra.mxu1 %v5700_v51  ;;  %v6593_v40 = vld [vmem:[%s9168_s1 + $0x1c] sm:$0xf]  ;;  %v5674_v1 = vsel %vm320_vm1, %v9238_v32, 0  ;;  %vm9240_vm9 = vmmov %vm9228_vm10 }
 0x941   : > { %4908 = vst [vmem:[%s6938_s26 + $0x2c] sm:$0x4] %v4907_v19  ;;  %5683 = vmatpush.bf16.msra.mxu0 %v5674_v1  ;;  %v6612_v19 = vld [vmem:[%s9168_s1 + $0x34] sm:$0xf]  ;;  %v6611_v45 = vld [vmem:[%s9168_s1 + $0x30] sm:$0xf] }
 0x942   : > { %4911 = vst [vmem:[%s6938_s26 + $0x34] sm:$0x4] %v4910_v59  ;;  %v5112_v31 = vpop.f32.mrf.mxu1 }
 0x943   : > { %4914 = vst [vmem:[%s6938_s26 + $0x3c] sm:$0x4] %v4913_v8  ;;  %v5797_v61 = vpop.permute.xlu2 %5796 }
 0x944   : > { %v5084_v24 = vpop.f32.mrf.mxu0  ;;  %v5802_v55 = vsel %vm320_vm1, %v5797_v61, 0  ;;  %v6615_v61 = vld [vmem:[%s9168_s1 + $0x38] sm:$0xf] }
 0x945   : > { %v5088_v34 = vadd.f32 %v5084_v24, %v5060_v23 }
 0x947   : > { %v5114_v27 = vadd.f32 %v5110_v50, %v5088_v34  ;;  %6586 = vmatmul.msk.bf16.vlgmr.msrb.gmra.mxu3 %vm316_vm2, %v6585_v3 }
 0x948   : > { %5663 = vmatpush.bf16.msrb.mxu3 %v8804_v56  ;;  %v5751_v56 = vsel %vm320_vm1, %v9237_v25, 0 }
 0x949   : > { %6569 = vmatmul.msk.f32.vlgmr.msra.gmra.mxu2 %vm9235_vm14, %v5114_v27 }
 0x94a   : > { %5438 = vmatpush.bf16.msra.mxu2 %v5429_v10  ;;  %v5318_v60 = vpop.f32.mrf.mxu1 }
 0x94c   : > { %v5086_v46 = vpop.f32.mrf.mxu0 }
 0x94d   : > { %v5238_v46 = vld [vmem:[%s6938_s26 + $0x4] sm:$0x4] }
 0x951   : > { %6584 = vmatmul.msk.bf16.vlgmr.msrb.gmra.mxu2 %vm316_vm2, %v6583_v22 }
 0x952   : > { %5647 = vmatpush.bf16.msrb.mxu2 %v5638_v33  ;;  %v5320_v50 = vpop.f32.mrf.mxu1 }
 0x954   : > { %v5300_v16 = vpop.f32.mrf.mxu0 }
 0x955   : > { %v5319_v41 = vadd.f32 %v5318_v60, %v5300_v16 }
 0x957   : > { %6594 = vmatmul.msk.bf16.vlgmr.msra.gmra.mxu3 %vm316_vm2, %v6593_v40 }
 0x958   : > { %5760 = vmatpush.bf16.msra.mxu3 %v5751_v56  ;;  %v5241_v56 = vld [vmem:[%s6938_s26 + $0xc] sm:$0x4] }
 0x95c   : > { %v5302_v63 = vpop.f32.mrf.mxu0 }
 0x95d   : > { %v5247_v63 = vld [vmem:[%s6938_s26 + $0x1c] sm:$0x4] }
 0x961   : > { %6592 = vmatmul.msk.bf16.vlgmr.msra.gmra.mxu2 %vm316_vm2, %v6591_v62 }
 0x962   : > { %5736 = vmatpush.bf16.msra.mxu2 %v5727_v47 }
 0x967   : > { %6606 = vmatmul.msk.bf16.vlgmr.msrb.gmra.mxu3 %vm316_vm2, %v6603_v48  ;;  %v5250_v48 = vld [vmem:[%s6938_s26 + $0x24] sm:$0x4] }
 0x968   : > { %5862 = vmatpush.msrb.mxu3 %v8778_v39 }
 0x96a   : > { %5863 = vmatpush.msrb.mxu3 %v8788_v58 }
 0x971   : > { %6605 = vmatmul.msk.bf16.vlgmr.msrb.gmra.mxu2 %vm316_vm2, %v6604_v6  ;;  %v5244_v6 = vld [vmem:[%s6938_s26 + $0x14] sm:$0x4] }
 0x972   : > { %5839 = vmatpush.msrb.mxu2 %v8794_v52 }
 0x974   : > { %5840 = vmatpush.msrb.mxu2 %v8799_v35 }
 0x977   : > { %6614 = vmatmul.msk.bf16.vlgmr.msra.gmra.mxu3 %vm316_vm2, %v6611_v45 }
 0x981   : > { %6613 = vmatmul.msk.bf16.vlgmr.msra.gmra.mxu2 %vm316_vm2, %v6612_v19 }
 0x9b4   : > { %v8935_v4 = vpop.f32.mrf.mxu0 }
 0x9b7   : > { %v8937_v52 = vpop.f32.mrf.mxu1 }
 0x9bc   : > { %v5393_v18 = vpop.f32.mrf.mxu0 }
 0x9bf   : > { %v5417_v62 = vpop.f32.mrf.mxu1 }
 0x9c2   : > { %v5162_v37 = vpop.f32.mrf.mxu3 }
 0x9ca   : > { %v8924_v57 = vpop.f32.mrf.mxu3 }
 0x9cc   : > { %v5139_v11 = vpop.f32.mrf.mxu2 }
 0x9cd   : > { %v5163_v38 = vadd.f32 %v5162_v37, %v5139_v11  ;;  %v5253_v11 = vld [vmem:[%s6938_s26 + $0x2c] sm:$0x4] }
 0x9cf   : > { %v5165_v29 = vadd.f32 %v5163_v38, %v7525_v53 }
 0x9d1   : > { %v5166_v14 = vpack.c.bf16 %v5165_v29, %v5165_v29  ;;  %v5262_v12 = vsel %vm671_vm5, %v5165_v29, 0.0  ;;  %v5266_v43 = vmul.f32 %v5165_v29, %v5165_v29 }
 0x9d2   : > { %5263 = vadd.xlane.f32.xlu0 %v5262_v12  ;;  %v5366_v21 = vpop.f32.mrf.mxu3  ;;  %v5256_v12 = vld [vmem:[%s6938_s26 + $0x34] sm:$0x4] }
 0x9d3   : > { %v5168_v30 = vrot.slane %v5166_v14, 3  ;;  %v5267_v39 = vsel %vm671_vm5, %v5266_v43, 0.0  ;;  %v5259_v21 = vld [vmem:[%s6938_s26 + $0x3c] sm:$0x4] }
 0x9d4   : > { %v5338_v13 = vpop.f32.mrf.mxu2  ;;  %5268 = vadd.xlane.f32.xlu1 %v5267_v39 }
 0x9d5   : > { %v5171_v58 = vsel %vm571_vm4, %v5166_v14, %v5168_v30  ;;  %v5173_v35 = vsel %vm576_vm6, %v5166_v14, %v5168_v30  ;;  %v5176_v2 = vsel %vm9239_vm0, %v5166_v14, %v5168_v30  ;;  %v5179_v7 = vsel %vm584_vm8, %v5166_v14, %v5168_v30 }
 0x9d6   : > { %v5175_v20 = vrot.slane %v5173_v35, 1  ;;  %v5178_v44 = vrot.slane %v5176_v2, 2  ;;  %v5181_v49 = vrot.slane %v5179_v7, 3  ;;  %v5183_v5 = vunpack.i.h.s16 %v5171_v58  ;;  %v5771_v35 = vpop.permute.xlu1 %5770 }
 0x9d7   : > { %v6571_v15 = vpack.i.b16 %v5171_v58, %v5171_v58  ;;  %v5342_v36 = vadd.f32 %v5338_v13, %v5319_v41  ;;  %v5416_v30 = vadd.f32 %v8937_v52, %v8935_v4  ;;  %v6609_v13 = vld [vmem:[%s9168_s1 + $0x2c] sm:$0xf]  ;;  %v5776_v2 = vsel %vm320_vm1, %v5771_v35, 0  ;;  %v6607_v4 = vld [vmem:[%s9168_s1 + $0x28] sm:$0xf]  ;;  %vm9242_vm1 = vmmov %vm9239_vm0 }
 0x9d8   : > { %v5185_v59 = vunpack.i.h.s16 %v5175_v20  ;;  %v5187_v8 = vunpack.i.h.s16 %v5178_v44  ;;  %v5189_v23 = vunpack.i.h.s16 %v5181_v49  ;;  %v5191_v0 = vpack.i.b16 %v5183_v5, %v5183_v5  ;;  %v6617_v52 = vld [vmem:[%s9168_s1 + $0x3c] sm:$0xf] }
 0x9d9   : > { %v6572_v31 = vpack.i.b16 %v5175_v20, %v5175_v20  ;;  %v6573_v54 = vpack.i.b16 %v5178_v44, %v5178_v44  ;;  %v6574_v51 = vpack.i.b16 %v5181_v49, %v5181_v49  ;;  %v5201_v24 = vperm.slane %v6571_v15, %v7536_v42 }
 0x9da   : > { %v5193_v3 = vpack.i.b16 %v5185_v59, %v5185_v59  ;;  %v5195_v34 = vpack.i.b16 %v5187_v8, %v5187_v8  ;;  %v5197_v10 = vpack.i.b16 %v5189_v23, %v5189_v23  ;;  %v5205_v27 = vperm.slane %v5191_v0, %v7536_v42  ;;  %v5466_v22 = vpop.f32.mrf.mxu3 }
 0x9db   : > { %v5209_v17 = vperm.slane %v6572_v31, %v7536_v42  ;;  %v5217_v33 = vperm.slane %v6573_v54, %v7536_v42  ;;  %v5225_v40 = vperm.slane %v6574_v51, %v7536_v42  ;;  %v5239_v25 = vsel %vm8025_vm13, %v5201_v24, %v5238_v46 }
 0x9dc   : > { %v5213_v47 = vperm.slane %v5193_v3, %v7536_v42  ;;  %v5221_v37 = vperm.slane %v5195_v34, %v7536_v42  ;;  %v5229_v16 = vperm.slane %v5197_v10, %v7536_v42  ;;  %5240 = vst [vmem:[%s6938_s26 + $0x4] sm:$0x4] %v5239_v25  ;;  %v5242_v60 = vsel %vm8025_vm13, %v5205_v27, %v5241_v56  ;;  %v5340_v32 = vpop.f32.mrf.mxu2 }
 0x9dd   : > { %5243 = vst [vmem:[%s6938_s26 + $0xc] sm:$0x4] %v5242_v60  ;;  %v5245_v1 = vsel %vm8025_vm13, %v5209_v17, %v5244_v6  ;;  %v5251_v50 = vsel %vm8025_vm13, %v5217_v33, %v5250_v48  ;;  %v5368_v38 = vadd.f32 %v8924_v57, %v5342_v36  ;;  %v5257_v43 = vsel %vm8025_vm13, %v5225_v40, %v5256_v12  ;;  %v5594_v60 = vld [vmem:[%s6938_s26 + $0x4] sm:$0x8] }
 0x9de   : > { %5246 = vst [vmem:[%s6938_s26 + $0x14] sm:$0x4] %v5245_v1  ;;  %v5248_v29 = vsel %vm8025_vm13, %v5213_v47, %v5247_v63  ;;  %v5254_v14 = vsel %vm8025_vm13, %v5221_v37, %v5253_v11  ;;  %v5260_v57 = vsel %vm8025_vm13, %v5229_v16, %v5259_v21  ;;  %vm9241_vm13 = vmmov %vm9240_vm9  ;;  %v5597_v63 = vld [vmem:[%s6938_s26 + $0xc] sm:$0x8]  ;;  %v5606_v12 = vld [vmem:[%s6938_s26 + $0x24] sm:$0x8] }
 0x9df   : > { %5249 = vst [vmem:[%s6938_s26 + $0x1c] sm:$0x4] %v5248_v29  ;;  %6598 = vmatmul.msk.f32.vlgmr.msrb.gmra.mxu1 %vm9240_vm9, %v5368_v38 }
 0x9e0   : > { %5252 = vst [vmem:[%s6938_s26 + $0x24] sm:$0x4] %v5251_v50  ;;  %5811 = vmatpush.bf16.msrb.mxu1 %v5802_v55 }
 0x9e1   : > { %5255 = vst [vmem:[%s6938_s26 + $0x2c] sm:$0x4] %v5254_v14  ;;  %v5600_v14 = vld [vmem:[%s6938_s26 + $0x14] sm:$0x8] }
 0x9e2   : > { %5258 = vst [vmem:[%s6938_s26 + $0x34] sm:$0x4] %v5257_v43  ;;  %v5468_v41 = vpop.f32.mrf.mxu3 }
 0x9e3   : > { %5261 = vst [vmem:[%s6938_s26 + $0x3c] sm:$0x4] %v5260_v57 }
 0x9e4   : > { %v5440_v39 = vpop.f32.mrf.mxu2 }
 0x9e5   : > { %v5444_v58 = vadd.f32 %v5440_v39, %v5416_v30  ;;  %v5603_v39 = vld [vmem:[%s6938_s26 + $0x1c] sm:$0x8] }
 0x9e7   : > { %v5470_v7 = vadd.f32 %v5466_v22, %v5444_v58  ;;  %6610 = vmatmul.msk.bf16.vlgmr.msra.gmra.mxu1 %vm316_vm2, %v6609_v13  ;;  %v5609_v13 = vld [vmem:[%s6938_s26 + $0x2c] sm:$0x8] }
 0x9e9   : > { %6597 = vmatmul.msk.f32.vlgmr.msrb.gmra.mxu0 %vm9241_vm13, %v5470_v7 }
 0x9ea   : > { %5785 = vmatpush.bf16.msrb.mxu0 %v5776_v2  ;;  %v5665_v49 = vpop.f32.mrf.mxu3 }
 0x9ec   : > { %v5442_v28 = vpop.f32.mrf.mxu2 }
 0x9f1   : > { %6608 = vmatmul.msk.bf16.vlgmr.msra.gmra.mxu0 %vm316_vm2, %v6607_v4 }
 0x9f2   : > { %v5667_v15 = vpop.f32.mrf.mxu3 }
 0x9f4   : > { %v5649_v44 = vpop.f32.mrf.mxu2 }
 0x9f5   : > { %v5666_v54 = vadd.f32 %v5665_v49, %v5649_v44  ;;  %v5615_v49 = vld [vmem:[%s6938_s26 + $0x3c] sm:$0x8] }
 0x9f7   : > { %6618 = vmatmul.msk.bf16.vlgmr.msrb.gmra.mxu1 %vm316_vm2, %v6617_v52  ;;  %v5612_v52 = vld [vmem:[%s6938_s26 + $0x34] sm:$0x8] }
 0x9fa   : > { %v5762_v3 = vpop.f32.mrf.mxu3 }
 0x9fc   : > { %v5651_v55 = vpop.f32.mrf.mxu2 }
 0xa01   : > { %6616 = vmatmul.msk.bf16.vlgmr.msrb.gmra.mxu0 %vm316_vm2, %v6615_v61  ;;  %vm9243_vm2 = vmmov %vm9240_vm9 }
 0xa02   : > { %v5764_v35 = vpop.f32.mrf.mxu3  ;;  %vm9244_vm15 = vmmov %vm9243_vm2 }
 0xa04   : > { %v5738_v24 = vpop.f32.mrf.mxu2 }
 0xa0c   : > { %v5740_v58 = vpop.f32.mrf.mxu2 }
 0xa5c   : > { %v5518_v20 = vpop.f32.mrf.mxu1 }
 0xa64   : > { %v9014_v5 = vpop.f32.mrf.mxu1 }
 0xa66   : > { %v5495_v36 = vpop.f32.mrf.mxu0 }
 0xa67   : > { %v5519_v19 = vadd.f32 %v5518_v20, %v5495_v36 }
 0xa69   : > { %v5521_v59 = vadd.f32 %v5519_v19, %v7525_v53 }
 0xa6b   : > { %v5522_v8 = vpack.c.bf16 %v5521_v59, %v5521_v59  ;;  %v5618_v23 = vsel %vm671_vm5, %v5521_v59, 0.0  ;;  %v5622_v0 = vmul.f32 %v5521_v59, %v5521_v59 }
 0xa6c   : > { %5619 = vadd.xlane.f32.xlu2 %v5618_v23  ;;  %v5713_v45 = vpop.f32.mrf.mxu1 }
 0xa6d   : > { %v5524_v31 = vrot.slane %v5522_v8, 3  ;;  %v5623_v51 = vsel %vm671_vm5, %v5622_v0, 0.0 }
 0xa6e   : > { %v5685_v34 = vpop.f32.mrf.mxu0  ;;  %5624 = vadd.xlane.f32.xlu0 %v5623_v51 }
 0xa6f   : > { %v5527_v10 = vsel %vm571_vm4, %v5522_v8, %v5524_v31  ;;  %v5529_v27 = vsel %vm576_vm6, %v5522_v8, %v5524_v31  ;;  %v5532_v46 = vsel %vm9242_vm1, %v5522_v8, %v5524_v31  ;;  %v5535_v22 = vsel %vm584_vm8, %v5522_v8, %v5524_v31 }
 0xa70   : > { %v5531_v17 = vrot.slane %v5529_v27, 1  ;;  %v5534_v33 = vrot.slane %v5532_v46, 2  ;;  %v5537_v40 = vrot.slane %v5535_v22, 3  ;;  %v5539_v25 = vunpack.i.h.s16 %v5527_v10 }
 0xa71   : > { %v6599_v56 = vpack.i.b16 %v5527_v10, %v5527_v10  ;;  %v5689_v18 = vadd.f32 %v5685_v34, %v5666_v54  ;;  %v5763_v8 = vadd.f32 %v5762_v3, %v5738_v24 }
 0xa72   : > { %v5541_v62 = vunpack.i.h.s16 %v5531_v17  ;;  %v5543_v47 = vunpack.i.h.s16 %v5534_v33  ;;  %v5545_v37 = vunpack.i.h.s16 %v5537_v40  ;;  %v5547_v16 = vpack.i.b16 %v5539_v25, %v5539_v25 }
 0xa73   : > { %v6600_v6 = vpack.i.b16 %v5531_v17, %v5531_v17  ;;  %v6601_v48 = vpack.i.b16 %v5534_v33, %v5534_v33  ;;  %v6602_v32 = vpack.i.b16 %v5537_v40, %v5537_v40  ;;  %v5557_v1 = vperm.slane %v6599_v56, %v7536_v42 }
 0xa74   : > { %v5549_v50 = vpack.i.b16 %v5541_v62, %v5541_v62  ;;  %v5551_v11 = vpack.i.b16 %v5543_v47, %v5543_v47  ;;  %v5553_v38 = vpack.i.b16 %v5545_v37, %v5545_v37  ;;  %v5561_v29 = vperm.slane %v5547_v16, %v7536_v42  ;;  %v5813_v43 = vpop.f32.mrf.mxu1 }
 0xa75   : > { %v5565_v21 = vperm.slane %v6600_v6, %v7536_v42  ;;  %v5573_v57 = vperm.slane %v6601_v48, %v7536_v42  ;;  %v5581_v30 = vperm.slane %v6602_v32, %v7536_v42  ;;  %v5595_v41 = vsel %vm8131_vm7, %v5557_v1, %v5594_v60 }
 0xa76   : > { %v5569_v2 = vperm.slane %v5549_v50, %v7536_v42  ;;  %v5577_v7 = vperm.slane %v5551_v11, %v7536_v42  ;;  %v5585_v28 = vperm.slane %v5553_v38, %v7536_v42  ;;  %5596 = vst [vmem:[%s6938_s26 + $0x4] sm:$0x8] %v5595_v41  ;;  %v5598_v4 = vsel %vm8131_vm7, %v5561_v29, %v5597_v63  ;;  %v5687_v61 = vpop.f32.mrf.mxu0 }
 0xa77   : > { %5599 = vst [vmem:[%s6938_s26 + $0xc] sm:$0x8] %v5598_v4  ;;  %v5601_v20 = vsel %vm8131_vm7, %v5565_v21, %v5600_v14  ;;  %v5607_v44 = vsel %vm8131_vm7, %v5573_v57, %v5606_v12  ;;  %v5715_v55 = vadd.f32 %v9014_v5, %v5689_v18  ;;  %v5613_v19 = vsel %vm8131_vm7, %v5581_v30, %v5612_v52 }
 0xa78   : > { %5602 = vst [vmem:[%s6938_s26 + $0x14] sm:$0x8] %v5601_v20  ;;  %v5604_v15 = vsel %vm8131_vm7, %v5569_v2, %v5603_v39  ;;  %v5610_v36 = vsel %vm8131_vm7, %v5577_v7, %v5609_v13  ;;  %v5616_v59 = vsel %vm8131_vm7, %v5585_v28, %v5615_v49  ;;  %vm9245_vm7 = vmmov %vm9239_vm0 }
 0xa79   : > { %5605 = vst [vmem:[%s6938_s26 + $0x1c] sm:$0x8] %v5604_v15  ;;  %6622 = vmatmul.msk.f32.vlgmr.msrb.gmra.mxu3 %vm9243_vm2, %v5715_v55  ;;  %v679_v55 = vpop.xlane.xlu2 %678  ;;  %v674_v15 = vpop.xlane.xlu1 %673 }
 0xa7a   : > { %5608 = vst [vmem:[%s6938_s26 + $0x24] sm:$0x8] %v5607_v44 }
 0xa7b   : > { %5611 = vst [vmem:[%s6938_s26 + $0x2c] sm:$0x8] %v5610_v36 }
 0xa7c   : > { %5614 = vst [vmem:[%s6938_s26 + $0x34] sm:$0x8] %v5613_v19  ;;  %v5815_v5 = vpop.f32.mrf.mxu1 }
 0xa7d   : > { %5617 = vst [vmem:[%s6938_s26 + $0x3c] sm:$0x8] %v5616_v59  ;;  %v5941_v29 = vld [vmem:[%s6938_s26 + $0x4] sm:$0x8] }
 0xa7e   : > { %v5787_v23 = vpop.f32.mrf.mxu0  ;;  %v5944_v57 = vld [vmem:[%s6938_s26 + $0xc] sm:$0x8] }
 0xa7f   : > { %v5791_v0 = vadd.f32 %v5787_v23, %v5763_v8  ;;  %v5947_v58 = vld [vmem:[%s6938_s26 + $0x14] sm:$0x8]  ;;  %v1031_v8 = vpop.xlane.xlu0 %1030 }
 0xa80   : > { %v5950_v7 = vld [vmem:[%s6938_s26 + $0x1c] sm:$0x8] }
 0xa81   : > { %v5817_v45 = vadd.f32 %v5813_v43, %v5791_v0  ;;  %v5953_v35 = vld [vmem:[%s6938_s26 + $0x24] sm:$0x8]  ;;  %v1036_v36 = vpop.xlane.xlu2 %1035  ;;  %v1390_v19 = vpop.xlane.xlu1 %1389 }
 0xa83   : > { %6621 = vmatmul.msk.f32.vlgmr.msrb.gmra.mxu2 %vm9244_vm15, %v5817_v45  ;;  %v5959_v61 = vld [vmem:[%s6938_s26 + $0x34] sm:$0x8] }
 0xa84   : > { %v5962_v44 = vld [vmem:[%s6938_s26 + $0x3c] sm:$0x8] }
 0xa86   : > { %v5789_v31 = vpop.f32.mrf.mxu0 }
 0xa87   : > { %v2098_v0 = vpop.xlane.xlu0 %2097 }
 0xa89   : > { %v1395_v59 = vpop.xlane.xlu2 %1394  ;;  %v1739_v5 = vpop.xlane.xlu1 %1738 }
 0xa91   : > { %v1744_v23 = vpop.xlane.xlu2 %1743  ;;  %v2103_v45 = vpop.xlane.xlu1 %2102 }
 0xa99   : > { %v2447_v31 = vpop.xlane.xlu2 %2446 }
 0xafc   : > { %v5865_v54 = vpop.f32.mrf.mxu3 }
 0xb06   : > { %v5842_v51 = vpop.f32.mrf.mxu2 }
 0xb07   : > { %v5866_v34 = vadd.f32 %v5865_v54, %v5842_v51  ;;  %v2452_v54 = vpop.xlane.xlu0 %2451  ;;  %v2806_v51 = vpop.xlane.xlu1 %2805 }
 0xb09   : > { %v5868_v10 = vadd.f32 %v5866_v34, %v7525_v53  ;;  %v2811_v34 = vpop.xlane.xlu2 %2810 }
 0xb0b   : > { %v5869_v27 = vpack.c.bf16 %v5868_v10, %v5868_v10  ;;  %v5965_v9 = vsel %vm671_vm5, %v5868_v10, 0.0  ;;  %v5969_v46 = vmul.f32 %v5868_v10, %v5868_v10 }
 0xb0c   : > { %5966 = vadd.xlane.f32.xlu1 %v5965_v9 }
 0xb0d   : > { %v5871_v24 = vrot.slane %v5869_v27, 3  ;;  %v5970_v3 = vsel %vm671_vm5, %v5969_v46, 0.0 }
 0xb0e   : > { %5971 = vadd.xlane.f32.xlu2 %v5970_v3  ;;  %v1032_v3 = vadd.f32 %v1031_v8, %v674_v15 }
 0xb0f   : > { %v5874_v22 = vsel %vm571_vm4, %v5869_v27, %v5871_v24  ;;  %v5876_v17 = vsel %vm576_vm6, %v5869_v27, %v5871_v24  ;;  %v5879_v33 = vsel %vm9245_vm7, %v5869_v27, %v5871_v24  ;;  %v5882_v40 = vsel %vm584_vm8, %v5869_v27, %v5871_v24  ;;  %v3155_v10 = vpop.xlane.xlu0 %3154  ;;  %v3160_v26 = vpop.xlane.xlu1 %3159 }
 0xb10   : > { %v5878_v25 = vrot.slane %v5876_v17, 1  ;;  %v5881_v56 = vrot.slane %v5879_v33, 2  ;;  %v5884_v53 = vrot.slane %v5882_v40, 3  ;;  %v5886_v18 = vunpack.i.h.s16 %v5874_v22 }
 0xb11   : > { %v6623_v62 = vpack.i.b16 %v5874_v22, %v5874_v22  ;;  %v3511_v27 = vpop.xlane.xlu2 %3510  ;;  %v1391_v17 = vadd.f32 %v1390_v19, %v1032_v3  ;;  %v1037_v33 = vadd.f32 %v1036_v36, %v679_v55  ;;  %vm5976_vm4 = vcmask 7168  }
 0xb12   : > { %v5888_v47 = vunpack.i.h.s16 %v5878_v25  ;;  %v5890_v37 = vunpack.i.h.s16 %v5881_v56  ;;  %v5892_v16 = vunpack.i.h.s16 %v5884_v53  ;;  %v5894_v60 = vpack.i.b16 %v5886_v18, %v5886_v18 }
 0xb13   : > { %v6624_v6 = vpack.i.b16 %v5878_v25, %v5878_v25  ;;  %v6625_v48 = vpack.i.b16 %v5881_v56, %v5881_v56  ;;  %v6626_v32 = vpack.i.b16 %v5884_v53, %v5884_v53  ;;  %v5904_v1 = vperm.slane %v6623_v62, %v7536_v42 }
 0xb14   : > { %v5896_v63 = vpack.i.b16 %v5888_v47, %v5888_v47  ;;  %v5898_v50 = vpack.i.b16 %v5890_v37, %v5890_v37  ;;  %v5900_v11 = vpack.i.b16 %v5892_v16, %v5892_v16  ;;  %v5908_v38 = vperm.slane %v5894_v60, %v7536_v42 }
 0xb15   : > { %v5912_v14 = vperm.slane %v6624_v6, %v7536_v42  ;;  %v5920_v12 = vperm.slane %v6625_v48, %v7536_v42  ;;  %v5928_v43 = vperm.slane %v6626_v32, %v7536_v42  ;;  %v5942_v21 = vsel %vm8274_vm3, %v5904_v1, %v5941_v29 }
 0xb16   : > { %v5916_v30 = vperm.slane %v5896_v63, %v7536_v42  ;;  %v5924_v41 = vperm.slane %v5898_v50, %v7536_v42  ;;  %v5932_v39 = vperm.slane %v5900_v11, %v7536_v42  ;;  %5943 = vst [vmem:[%s6938_s26 + $0x4] sm:$0x8] %v5942_v21  ;;  %v5945_v13 = vsel %vm8274_vm3, %v5908_v38, %v5944_v57  ;;  %v5956_v42 = vld [vmem:[%s6938_s26 + $0x2c] sm:$0x8] }
 0xb17   : > { %5946 = vst [vmem:[%s6938_s26 + $0xc] sm:$0x8] %v5945_v13  ;;  %v5948_v2 = vsel %vm8274_vm3, %v5912_v14, %v5947_v58  ;;  %v5954_v28 = vsel %vm8274_vm3, %v5920_v12, %v5953_v35  ;;  %v5960_v20 = vsel %vm8274_vm3, %v5928_v43, %v5959_v61  ;;  %v3516_v9 = vpop.xlane.xlu0 %3515  ;;  %v3858_v46 = vpop.xlane.xlu1 %3857  ;;  %v1396_v25 = vadd.f32 %v1395_v59, %v1037_v33 }
 0xb18   : > { %5949 = vst [vmem:[%s6938_s26 + $0x14] sm:$0x8] %v5948_v2  ;;  %v5951_v4 = vsel %vm8274_vm3, %v5916_v30, %v5950_v7  ;;  %v5957_v52 = vsel %vm8274_vm3, %v5924_v41, %v5956_v42  ;;  %v5963_v49 = vsel %vm8274_vm3, %v5932_v39, %v5962_v44  ;;  %v1740_v56 = vadd.f32 %v1739_v5, %v1391_v17  ;;  %v5974_v42 = vld [vmem:[%s6928_s9] sm:$0xff] }
 0xb19   : > { %5952 = vst [vmem:[%s6938_s26 + $0x1c] sm:$0x8] %v5951_v4  ;;  %v3863_v24 = vpop.xlane.xlu2 %3862  ;;  %v1745_v18 = vadd.f32 %v1744_v23, %v1396_v25 }
 0xb1a   : > { %5955 = vst [vmem:[%s6938_s26 + $0x24] sm:$0x8] %v5954_v28  ;;  %v2099_v62 = vadd.f32 %v2098_v0, %v1740_v56 }
 0xb1b   : > { %5958 = vst [vmem:[%s6938_s26 + $0x2c] sm:$0x8] %v5957_v52  ;;  %v2104_v47 = vadd.f32 %v2103_v45, %v1745_v18 }
 0xb1c   : > { %5961 = vst [vmem:[%s6938_s26 + $0x34] sm:$0x8] %v5960_v20  ;;  %v2448_v37 = vadd.f32 %v2447_v31, %v2099_v62  ;;  %v5978_v20 = vld [vmem:[%s6933_s14] sm:$0xff] }
 0xb1d   : > { %5964 = vst [vmem:[%s6938_s26 + $0x3c] sm:$0x8] %v5963_v49  ;;  %v2453_v60 = vadd.f32 %v2452_v54, %v2104_v47 }
 0xb1e   : > { %v2807_v6 = vadd.f32 %v2806_v51, %v2448_v37 }
 0xb1f   : > { %v4214_v22 = vpop.xlane.xlu0 %4213  ;;  %v4219_v40 = vpop.xlane.xlu1 %4218  ;;  %v2812_v32 = vadd.f32 %v2811_v34, %v2453_v60 }
 0xb20   : > { %v3156_v1 = vadd.f32 %v3155_v10, %v2807_v6 }
 0xb21   : > { %v4561_v53 = vpop.xlane.xlu2 %4560  ;;  %v3161_v50 = vadd.f32 %v3160_v26, %v2812_v32 }
 0xb22   : > { %v3512_v11 = vadd.f32 %v3511_v27, %v3156_v1 }
 0xb23   : > { %v3517_v38 = vadd.f32 %v3516_v9, %v3161_v50 }
 0xb24   : > { %v3859_v29 = vadd.f32 %v3858_v46, %v3512_v11 }
 0xb25   : > { %v3864_v12 = vadd.f32 %v3863_v24, %v3517_v38 }
 0xb26   : > { %v4215_v43 = vadd.f32 %v4214_v22, %v3859_v29 }
 0xb27   : > { %v4566_v16 = vpop.xlane.xlu0 %4565  ;;  %v4917_v48 = vpop.xlane.xlu1 %4916  ;;  %v4220_v57 = vadd.f32 %v4219_v40, %v3864_v12 }
 0xb28   : > { %v4562_v30 = vadd.f32 %v4561_v53, %v4215_v43 }
 0xb29   : > { %v4922_v63 = vpop.xlane.xlu2 %4921  ;;  %v4567_v39 = vadd.f32 %v4566_v16, %v4220_v57 }
 0xb2a   : > { %v4918_v13 = vadd.f32 %v4917_v48, %v4562_v30 }
 0xb2b   : > { %v4923_v58 = vadd.f32 %v4922_v63, %v4567_v39 }
 0xb2f   : > { %v5264_v14 = vpop.xlane.xlu0 %5263  ;;  %v5269_v21 = vpop.xlane.xlu1 %5268 }
 0xb30   : > { %v5265_v35 = vadd.f32 %v5264_v14, %v4918_v13  ;;  %v5270_v7 = vadd.f32 %v5269_v21, %v4923_v58 }
 0xb31   : > { %v5620_v41 = vpop.xlane.xlu2 %5619 }
 0xb32   : > { %v5621_v28 = vadd.f32 %v5620_v41, %v5265_v35 }
 0xb37   : > { %v5625_v2 = vpop.xlane.xlu0 %5624 }
 0xb38   : > { %v5626_v52 = vadd.f32 %v5625_v2, %v5270_v7 }
 0xb7f   : > { %v5967_v4 = vpop.xlane.xlu1 %5966 }
 0xb80   : > { %v5968_v61 = vadd.f32 %v5967_v4, %v5621_v28 }
 0xb81   : > { %v5972_v44 = vpop.xlane.xlu2 %5971 }
 0xb82   : > { %v5975_v49 = vadd.f32 %v5974_v42, %v5968_v61  ;;  %v5973_v55 = vadd.f32 %v5972_v44, %v5626_v52 }
 0xb84   : > { %5977 = vst.msk [vmem:[%s6928_s9] sm:$0xff] %vm5976_vm4, %v5975_v49  ;;  %v5979_v15 = vadd.f32 %v5978_v20, %v5973_v55 }
 0xb86   : > { %5980 = vst.msk [vmem:[%s6933_s14] sm:$0xff] %vm5976_vm4, %v5979_v15 }
 0xb87   : > { %s6628_s27 = sshll.u32 %s6784_s24, 1  ;;  %s6629_s17 = sshll.u32 %s6788_s25, 5 }
 0xb88   : > { %s6001_s19 = sadd.s32 %s6629_s17, %s6628_s27  ;;  %s6014_s29 = sshll.u32 %s6938_s26, 4  ;;  %s6015_s29 = int_to_ptr.vmem [resolvable:$true] %s6014_s29 }
 0xb89   : > { %s6630_s30 = sshll.u32 %s6001_s19, 2  ;;  %s6807_s7 = smov 128  }
 0xb8a   : > { %s6003_s14 = scalar_lea.hbm %s9171_s4, %s6630_s30  ;;  %6644 = sst [smem:[#allocation5]] (%p6900_p3), %s6807_s7 }
 0xb8b   : > { %s6016_s16 = sshll.u32 %s6003_s14, 4  ;;  %s6808_s13 = smov 256   ;;  %s6017_s16 = int_to_ptr.hbm [resolvable:$true] %s6016_s16 }
 0xb8c   : > { %6645 = sst [smem:[#allocation5 + $0x1]] (%p6900_p3), %s6808_s13  ;;  %s6809_s24 = smov 2  }
 0xb8d   : > { %6646 = sst [smem:[#allocation5 + $0x2]] (%p6900_p3), %s6809_s24  ;;  %s6810_s25 = smov 64  }
 0xb8e   : > { %6647 = sst [smem:[#allocation5 + $0x3]] (%p6900_p3), %s6810_s25  ;;  %s6811_s26 = smov 4  }
 0xb8f   : > { %6648 = sst [smem:[#allocation5 + $0x4]] (%p6900_p3), %s6810_s25  ;;  %s6812_s8 = smov [#allocation4]  }
 0xb90   : > { %6649 = sst [smem:[#allocation5 + $0x5]] (%p6900_p3), %s6811_s26  ;;  %s6813_s18 = smov 0  }
 0xb91   : > { %6650 = dma.general (%p6900_p3), %s6015_s29, 1024, %s6017_s16, %s5982_s20, %s6812_s8, [#allocation5], %s6813_s18, 0  }
 0xb92 PF: > { %p6656_p0 = scmp.ge.s32.totalorder %s6800_s28, 2  ;;  %s6050_s27 = sand.u32 1, %s6772_s21  }
 0xb93   : > { %s6051_s17 = scalar_lea.sflag [#allocation3], %s6050_s27 }
 0xb94   : > { %p6653_p1 = pnand %p6656_p0, %p6909_p8 }
 0xb96   : > { %p6654_p2 = pneg %p6653_p1 }
 0xb98   : > { %6767 = dma.done.wait (%p6654_p2), %s6051_s17, 1024  }
 0xb99   : > { %6769 = vsyncadd (%p6654_p2), %s6051_s17, 4294966272  ;;  %s20_s28 = sadd.s32 1, %s6800_s28   ;;  %s9246_s24 = sld [smem:[#allocation7_spill]] }
 0xb9a   : > { %p17_p4 = scmp.ge.s32.totalorder %s20_s28, 6   ;;  %s9247_s25 = sld [smem:[#allocation8_spill]] }
 0xb9b   : > { %s9248_s26 = sld [smem:[#allocation9_spill]]  ;;  %s9250_s21 = smov %s6776_s22 }
 0xb9c   : > { %s9249_s27 = sld [smem:[#allocation10_spill]]  ;;  %s9251_s22 = smov %s6780_s23 }
 0xb9d   : > { %s9252_s23 = smov %s6918_s15  ;;  %19 = sbr.rel (!%p17_p4) target bundleno = 5 (0x5), region = 130 }
 0xba2   :  { %6071 = vsyncpa [#allocation3], 1 }
 0xba3   :  { %6073 = vsyncpa [#allocation3 + $0x1], 1 }

</bundles_post_ra>
